<compile_context>
chip_gen: v7x
topology: tpu7x:2x2x1
jax: 0.10.0
libtpu: 0.0.40
codegen_flags: <defaults>
</compile_context>

<pallas_src>
import functools

import jax
import jax.numpy as jnp
from jax.experimental import pallas as pl
from jax.experimental.pallas import tpu as pltpu

F32 = jnp.float32
BF16 = jnp.bfloat16

OUT_CHANNELS = 14541
OUT_PAD = 15360            # 60 * 256 (= 120 * 128)
HEAD_TN = 3840             # 15 * 256 -> 4 lane-dense, 256-aligned tiles

NUM_LAYERS = 6
XDIM = 128                 # padded node-feature width
EDIM = 512                 # padded edge-feature width
UDIM = 256                 # padded global-feature width

META_WEIGHT_KEYS = (
    "ew_s", "ew_d", "ew_e", "eb1", "ew2", "eb2",
    "n1w_x", "n1w_e", "n1b1", "n1w2", "n1b2",
    "n2w_x", "n2w_a", "n2b1", "n2w2", "n2b2",
    "gw_u", "gw_a", "gb1", "gw2", "gb2",
)


# ----------------------------------------------------------------------------
# Pallas kernels
# ----------------------------------------------------------------------------
def _elu(x):
    # ELU(alpha=1): x>0 -> x ; else exp(x)-1   (clamp exp arg for safety)
    return jnp.where(x > 0, x, jnp.exp(jnp.minimum(x, 0.0)) - 1.0)


def _meta_stack_kernel(
    # graph data (constant across the layer grid; DMA'd once)
    x0_ref, e0_ref, gr_ref, gc_ref, mc_ref, ic_ref, mb_ref, ib_ref,
    # per-layer stacked weights (block = one layer; double-buffered)
    ew_s, ew_d, ew_e, eb1, ew2, eb2,
    n1w_x, n1w_e, n1b1, n1w2, n1b2,
    n2w_x, n2w_a, n2b1, n2w2, n2b2,
    gw_u, gw_a, gb1, gw2, gb2,
    # lin1 (fused, applied only after the last meta layer)
    l1w_ref, l1b_ref,
    # outputs
    u_out_ref, h_out_ref,
    # VMEM scratch: x/e/u state carried across layers
    x_sc, e_sc, u_sc,
):
    """One MetaLayer per grid step; gathers / scatter-means as 0/1-matrix
    matmuls (bf16 MXU) with f32 count normalization; concats as split-weight
    sums.  All accumulation in f32."""
    l = pl.program_id(0)

    @pl.when(l == 0)
    def _():
        x_sc[...] = x0_ref[...]
        e_sc[...] = e0_ref[...]
        u_sc[...] = jnp.zeros_like(u_sc)

    def wdot(a_f32, w_ref):
        # bf16 x bf16 MXU matmul, f32 accumulation
        return jnp.dot(a_f32.astype(BF16), w_ref[0], preferred_element_type=F32)

    x = x_sc[...]
    e = e_sc[...]
    u = u_sc[...]
    x_b = x.astype(BF16)

    # x[row], x[col] as matmuls with 0/1 bf16 gather matrices (exact)
    x_src = jnp.dot(gr_ref[...], x_b, preferred_element_type=F32)
    x_dst = jnp.dot(gc_ref[...], x_b, preferred_element_type=F32)

    # EdgeModel: cat([src, dest, edge_attr]) @ W1 -> ELU -> W2
    h = _elu(wdot(x_src, ew_s) + wdot(x_dst, ew_d) + wdot(e, ew_e) + eb1[0])
    e_new = wdot(h, ew2) + eb2[0]

    # NodeModel: node_mlp_1 on cat([x[row], e_new])
    h = _elu(wdot(x_src, n1w_x) + wdot(e_new, n1w_e) + n1b1[0])
    h = wdot(h, n1w2) + n1b2[0]
    # scatter_mean(h, col, dim_size=N): 0/1 matmul (bf16) + f32 1/count scale
    agg = jnp.dot(mc_ref[...], h.astype(BF16),
                  preferred_element_type=F32) * ic_ref[...]
    # node_mlp_2 on cat([x, agg])
    h2 = _elu(wdot(x, n2w_x) + wdot(agg, n2w_a) + n2b1[0])
    x_new = wdot(h2, n2w2) + n2b2[0]

    # GlobalModel: cat([u, scatter_mean(x_new, batch)])
    gagg = jnp.dot(mb_ref[...], x_new.astype(BF16),
                   preferred_element_type=F32) * ib_ref[...]
    h3 = _elu(wdot(u, gw_u) + wdot(gagg, gw_a) + gb1[0])
    u_new = wdot(h3, gw2) + gb2[0]

    x_sc[...] = x_new
    e_sc[...] = e_new
    u_sc[...] = u_new

    @pl.when(l == pl.num_programs(0) - 1)
    def _():
        u_out_ref[...] = u_new
        # fused lin1: h = elu(g @ W1 + b1), computed once, handed to the head
        h1 = _elu(jnp.dot(u_new.astype(BF16), l1w_ref[...],
                          preferred_element_type=F32) + l1b_ref[...])
        h_out_ref[...] = h1.astype(BF16)


def meta_stack(params, x, e, gr, gc, mc, ic, mb, ib):
    N = x.shape[0]
    E = e.shape[0]
    B = mb.shape[0]

    meta = params["meta"]
    data_args = [x, e, gr, gc, mc, ic, mb, ib]
    w_args = [meta[k] for k in META_WEIGHT_KEYS]
    lin_args = [params["lin1_w"], params["lin1_b"]]

    data_specs = [pl.BlockSpec(a.shape, lambda l: (0, 0)) for a in data_args]
    w_specs = [pl.BlockSpec((1,) + a.shape[1:], lambda l: (l, 0, 0))
               for a in w_args]
    lin_specs = [pl.BlockSpec(a.shape, lambda l: (0, 0)) for a in lin_args]

    out_shape = (
        jax.ShapeDtypeStruct((B, UDIM), F32),    # g (global features)
        jax.ShapeDtypeStruct((B, 512), BF16),    # elu(lin1(g))
    )
    out_specs = (
        pl.BlockSpec((B, UDIM), lambda l: (0, 0)),
        pl.BlockSpec((B, 512), lambda l: (0, 0)),
    )

    return pl.pallas_call(
        _meta_stack_kernel,
        grid=(NUM_LAYERS,),
        in_specs=data_specs + w_specs + lin_specs,
        out_specs=out_specs,
        out_shape=out_shape,
        scratch_shapes=[
            pltpu.VMEM((N, XDIM), F32),
            pltpu.VMEM((E, EDIM), F32),
            pltpu.VMEM((B, UDIM), F32),
        ],
        compiler_params=pltpu.CompilerParams(
            dimension_semantics=("arbitrary",),
            vmem_limit_bytes=32 * 1024 * 1024),
    )(*data_args, *w_args, *lin_args)


def _head_kernel(h_ref, w2_ref, b2_ref, o_ref):
    """logits_tile = h @ W2_tile + b2_tile (lin1 already fused upstream)."""
    o_ref[...] = jnp.dot(h_ref[...], w2_ref[...],
                         preferred_element_type=F32) + b2_ref[...]


def head(h, w2, b2, *, tn=HEAD_TN):
    B, H = h.shape                  # (B, 512), bf16
    N = w2.shape[1]                 # OUT_PAD
    assert N % tn == 0
    # TODO(synk): P10 cross-pallas_call prefetch of w2 (or pl.Buffered(3) on
    # its BlockSpec) to hide the ~15 MB HBM weight stream behind the meta stack.
    return pl.pallas_call(
        _head_kernel,
        grid=(N // tn,),
        in_specs=[
            pl.BlockSpec((B, H), lambda j: (0, 0)),
            pl.BlockSpec((H, tn), lambda j: (0, j)),
            pl.BlockSpec((1, tn), lambda j: (0, j)),
        ],
        out_specs=pl.BlockSpec((B, tn), lambda j: (0, j)),
        out_shape=jax.ShapeDtypeStruct((B, N), F32),
        compiler_params=pltpu.CompilerParams(
            dimension_semantics=("parallel",),
            vmem_limit_bytes=32 * 1024 * 1024),
    )(h, w2, b2)


# ----------------------------------------------------------------------------
# Plain-JAX glue (tiny, computed once per forward)
# ----------------------------------------------------------------------------
def gather_onehot(idx, n):
    """G[e, i] = 1 if idx[e] == i  (bf16, exact)  ->  G @ x == x[idx]."""
    return (idx[:, None] == jnp.arange(n, dtype=idx.dtype)[None, :]).astype(BF16)


def scatter_mean_parts(idx, n):
    """M (0/1 bf16) and 1/count (f32) so that (M @ src) * inv == scatter_mean."""
    oh = (jnp.arange(n, dtype=idx.dtype)[:, None] == idx[None, :])
    cnt = jnp.maximum(jnp.sum(oh.astype(F32), axis=1, keepdims=True), 1.0)
    return oh.astype(BF16), (1.0 / cnt).astype(F32)


def batchnorm(x, weight, bias, eps=1e-5):
    # gnn.BatchNorm -> nn.BatchNorm1d, training mode (batch statistics).
    mean = jnp.mean(x, axis=0)
    var = jnp.var(x, axis=0)
    return (x - mean) / jnp.sqrt(var + eps) * weight + bias


# ----------------------------------------------------------------------------
# Parameter init (PyTorch-Linear-like uniform bounds; bf16 weights, f32 biases)
# ----------------------------------------------------------------------------
def _uniform(key, shape, bound, dtype):
    return jax.random.uniform(key, shape, F32, -bound, bound).astype(dtype)


def _split_linear(key, fan_ins, fan_out, pads=None):
    """Linear over concat(fan_ins), stored as split bf16 blocks, each
    zero-padded along fan-in to pads[i]."""
    total = sum(fan_ins)
    bound = 1.0 / float(total) ** 0.5
    keys = jax.random.split(key, len(fan_ins) + 1)
    ws = []
    for i, (k, fi) in enumerate(zip(keys[:-1], fan_ins)):
        w = _uniform(k, (fi, fan_out), bound, BF16)
        if pads is not None and pads[i] != fi:
            w = jnp.pad(w, ((0, pads[i] - fi), (0, 0)))
        ws.append(w)
    b = _uniform(keys[-1], (1, fan_out), bound, F32)
    return ws, b


def _pad_out(w, b, out_to):
    return (jnp.pad(w, ((0, 0), (0, out_to - w.shape[1]))),
            jnp.pad(b, ((0, 0), (0, out_to - b.shape[1]))))


def init_meta_layer(key, n_in, e_in, e_out, g_in, g_out):
    ke1, ke2, kn1a, kn1b, kn2a, kn2b, kg1, kg2 = jax.random.split(key, 8)
    p = {}
    # EdgeModel.edge_mlp
    (p["ew_s"], p["ew_d"], p["ew_e"]), p["eb1"] = _split_linear(
        ke1, (n_in, n_in, e_in), 128, pads=(XDIM, XDIM, EDIM))
    (w2,), b2 = _split_linear(ke2, (128,), e_out)
    p["ew2"], p["eb2"] = _pad_out(w2, b2, EDIM)
    # NodeModel.node_mlp_1
    (p["n1w_x"], p["n1w_e"]), p["n1b1"] = _split_linear(
        kn1a, (n_in, e_out), 256, pads=(XDIM, EDIM))
    (p["n1w2"],), p["n1b2"] = _split_linear(kn1b, (256,), 256)
    # NodeModel.node_mlp_2
    (p["n2w_x"], p["n2w_a"]), p["n2b1"] = _split_linear(
        kn2a, (n_in, 256), 256, pads=(XDIM, 256))
    (p["n2w2"],), p["n2b2"] = _split_linear(kn2b, (256,), 128)
    # GlobalModel.global_mlp
    if g_in == 0:
        # layer 1: no u input; zero u-weight block makes it a no-op
        (p["gw_a"],), p["gb1"] = _split_linear(kg1, (128,), 256)
        p["gw_u"] = jnp.zeros((UDIM, 256), BF16)
    else:
        (p["gw_u"], p["gw_a"]), p["gb1"] = _split_linear(
            kg1, (g_in, 128), 256, pads=(UDIM, 128))
    (w2g,), b2g = _split_linear(kg2, (256,), g_out)
    p["gw2"], p["gb2"] = _pad_out(w2g, b2g, UDIM)
    return p


def init_net_params(key):
    keys = jax.random.split(key, 8)
    params = {
        "bn_node_w": jnp.ones((10,), F32),
        "bn_node_b": jnp.zeros((10,), F32),
        "bn_edge_w": jnp.ones((5,), F32),
        "bn_edge_b": jnp.zeros((5,), F32),
    }
    layer_cfgs = [
        (10, 5, 512, 0, 128),       # meta1
        (128, 512, 512, 128, 128),  # meta2
        (128, 512, 512, 128, 128),  # meta3
        (128, 512, 512, 128, 128),  # meta4
        (128, 512, 512, 128, 128),  # meta5
        (128, 512, 128, 128, 256),  # meta6
    ]
    layer_keys = jax.random.split(keys[0], NUM_LAYERS)
    layers = [init_meta_layer(k, *cfg) for k, cfg in zip(layer_keys, layer_cfgs)]
    # stack per-layer weights on a leading layer axis for the fused grid=(6,)
    params["meta"] = {k: jnp.stack([L[k] for L in layers])
                      for k in META_WEIGHT_KEYS}

    (params["lin1_w"],), params["lin1_b"] = _split_linear(keys[6], (256,), 512)
    (w2,), b2 = _split_linear(keys[7], (512,), OUT_CHANNELS)
    params["lin2_w"] = jnp.pad(w2, ((0, 0), (0, OUT_PAD - OUT_CHANNELS)))  # bf16
    params["lin2_b"] = jnp.pad(b2, ((0, 0), (0, OUT_PAD - OUT_CHANNELS)))  # f32
    return params


# ----------------------------------------------------------------------------
# Forward pass
# ----------------------------------------------------------------------------
def net_forward(params, x, edge_index, e, batch, *, num_graphs):
    row, col = edge_index[0], edge_index[1]
    num_nodes = x.shape[0]

    x = batchnorm(x, params["bn_node_w"], params["bn_node_b"])
    e = batchnorm(e, params["bn_edge_w"], params["bn_edge_b"])

    # lane-pad layer-1 features (zero weight rows make this a no-op)
    x = jnp.pad(x, ((0, 0), (0, XDIM - x.shape[1])))
    e = jnp.pad(e, ((0, 0), (0, EDIM - e.shape[1])))

    # graph-structure matrices (layer-independent; DMA'd into VMEM once)
    gr = gather_onehot(row, num_nodes)                 # [E, N]  x[row] = gr @ x
    gc = gather_onehot(col, num_nodes)                 # [E, N]  x[col] = gc @ x
    mc, ic = scatter_mean_parts(col, num_nodes)        # [N, E], [N, 1]
    mb, ib = scatter_mean_parts(batch, num_graphs)     # [B, N], [B, 1]

    g, h = meta_stack(params, x, e, gr, gc, mc, ic, mb, ib)
    logits = head(h, params["lin2_w"], params["lin2_b"])   # [B, OUT_PAD]
    return g, logits[:, :OUT_CHANNELS]


# ----------------------------------------------------------------------------
if __name__ == "__main__":
    key = jax.random.PRNGKey(0)
    kp, kx, ke, kr, kc = jax.random.split(key, 5)

    num_nodes, num_edges, num_graphs = 8, 16, 2

    params = init_net_params(kp)

    x = jax.random.normal(kx, (num_nodes, 10), F32)
    e = jax.random.normal(ke, (num_edges, 5), F32)
    row = jax.random.randint(kr, (num_edges,), 0, num_nodes, jnp.int32)
    col = jax.random.randint(kc, (num_edges,), 0, num_nodes, jnp.int32)
    edge_index = jnp.stack([row, col], axis=0)                 # [2, E]
    batch = jnp.array([0, 0, 0, 0, 1, 1, 1, 1], jnp.int32)     # [N]

    fwd = jax.jit(functools.partial(net_forward, num_graphs=num_graphs))
    g_out, logits = fwd(params, x, edge_index, e, batch)
    g_out = jax.block_until_ready(g_out)
    logits = jax.block_until_ready(logits)

    assert g_out.shape == (num_graphs, UDIM)
    assert logits.shape == (num_graphs, OUT_CHANNELS)
    assert bool(jnp.all(jnp.isfinite(g_out))) and bool(jnp.all(jnp.isfinite(logits)))
    print("KERNEL_OK")
</pallas_src>

<mosaic_0001>
module attributes {stable_mosaic.version = 11 : i64} {
  func.func @_meta_stack_kernel(%arg0: i32, %arg1: memref<8x128xf32, #tpu.memory_space<vmem>>, %arg2: memref<16x512xf32, #tpu.memory_space<vmem>>, %arg3: memref<16x8xbf16, #tpu.memory_space<vmem>>, %arg4: memref<16x8xbf16, #tpu.memory_space<vmem>>, %arg5: memref<8x16xbf16, #tpu.memory_space<vmem>>, %arg6: memref<8x1xf32, #tpu.memory_space<vmem>>, %arg7: memref<2x8xbf16, #tpu.memory_space<vmem>>, %arg8: memref<2x1xf32, #tpu.memory_space<vmem>>, %arg9: memref<1x128x128xbf16, #tpu.memory_space<vmem>>, %arg10: memref<1x128x128xbf16, #tpu.memory_space<vmem>>, %arg11: memref<1x512x128xbf16, #tpu.memory_space<vmem>>, %arg12: memref<1x1x128xf32, #tpu.memory_space<vmem>>, %arg13: memref<1x128x512xbf16, #tpu.memory_space<vmem>>, %arg14: memref<1x1x512xf32, #tpu.memory_space<vmem>>, %arg15: memref<1x128x256xbf16, #tpu.memory_space<vmem>>, %arg16: memref<1x512x256xbf16, #tpu.memory_space<vmem>>, %arg17: memref<1x1x256xf32, #tpu.memory_space<vmem>>, %arg18: memref<1x256x256xbf16, #tpu.memory_space<vmem>>, %arg19: memref<1x1x256xf32, #tpu.memory_space<vmem>>, %arg20: memref<1x128x256xbf16, #tpu.memory_space<vmem>>, %arg21: memref<1x256x256xbf16, #tpu.memory_space<vmem>>, %arg22: memref<1x1x256xf32, #tpu.memory_space<vmem>>, %arg23: memref<1x256x128xbf16, #tpu.memory_space<vmem>>, %arg24: memref<1x1x128xf32, #tpu.memory_space<vmem>>, %arg25: memref<1x256x256xbf16, #tpu.memory_space<vmem>>, %arg26: memref<1x128x256xbf16, #tpu.memory_space<vmem>>, %arg27: memref<1x1x256xf32, #tpu.memory_space<vmem>>, %arg28: memref<1x256x256xbf16, #tpu.memory_space<vmem>>, %arg29: memref<1x1x256xf32, #tpu.memory_space<vmem>>, %arg30: memref<256x512xbf16, #tpu.memory_space<vmem>>, %arg31: memref<1x512xf32, #tpu.memory_space<vmem>>, %arg32: memref<2x256xf32, #tpu.memory_space<vmem>>, %arg33: memref<2x512xbf16, #tpu.memory_space<vmem>>, %arg34: memref<8x128xf32, #tpu.memory_space<vmem>>, %arg35: memref<16x512xf32, #tpu.memory_space<vmem>>, %arg36: memref<2x256xf32, #tpu.memory_space<vmem>>) attributes {dimension_semantics = [#tpu.dimension_semantics<arbitrary>], iteration_bounds = array<i64: 6>, scalar_prefetch = 0 : i64, scratch_operands = 3 : i64, tpu.core_type = #tpu.core_type<tc>, window_params = [{pipeline_mode = #tpu.pipeline_mode<synchronous>, transform_indices = @transform_0, window_bounds = array<i64: 8, 128>}, {pipeline_mode = #tpu.pipeline_mode<synchronous>, transform_indices = @transform_1, window_bounds = array<i64: 16, 512>}, {pipeline_mode = #tpu.pipeline_mode<synchronous>, transform_indices = @transform_2, window_bounds = array<i64: 16, 8>}, {pipeline_mode = #tpu.pipeline_mode<synchronous>, transform_indices = @transform_3, window_bounds = array<i64: 16, 8>}, {pipeline_mode = #tpu.pipeline_mode<synchronous>, transform_indices = @transform_4, window_bounds = array<i64: 8, 16>}, {pipeline_mode = #tpu.pipeline_mode<synchronous>, transform_indices = @transform_5, window_bounds = array<i64: 8, 1>}, {pipeline_mode = #tpu.pipeline_mode<synchronous>, transform_indices = @transform_6, window_bounds = array<i64: 2, 8>}, {pipeline_mode = #tpu.pipeline_mode<synchronous>, transform_indices = @transform_7, window_bounds = array<i64: 2, 1>}, {transform_indices = @transform_8, window_bounds = array<i64: 1, 128, 128>}, {transform_indices = @transform_9, window_bounds = array<i64: 1, 128, 128>}, {transform_indices = @transform_10, window_bounds = array<i64: 1, 512, 128>}, {transform_indices = @transform_11, window_bounds = array<i64: 1, 1, 128>}, {transform_indices = @transform_12, window_bounds = array<i64: 1, 128, 512>}, {transform_indices = @transform_13, window_bounds = array<i64: 1, 1, 512>}, {transform_indices = @transform_14, window_bounds = array<i64: 1, 128, 256>}, {transform_indices = @transform_15, window_bounds = array<i64: 1, 512, 256>}, {transform_indices = @transform_16, window_bounds = array<i64: 1, 1, 256>}, {transform_indices = @transform_17, window_bounds = array<i64: 1, 256, 256>}, {transform_indices = @transform_18, window_bounds = array<i64: 1, 1, 256>}, {transform_indices = @transform_19, window_bounds = array<i64: 1, 128, 256>}, {transform_indices = @transform_20, window_bounds = array<i64: 1, 256, 256>}, {transform_indices = @transform_21, window_bounds = array<i64: 1, 1, 256>}, {transform_indices = @transform_22, window_bounds = array<i64: 1, 256, 128>}, {transform_indices = @transform_23, window_bounds = array<i64: 1, 1, 128>}, {transform_indices = @transform_24, window_bounds = array<i64: 1, 256, 256>}, {transform_indices = @transform_25, window_bounds = array<i64: 1, 128, 256>}, {transform_indices = @transform_26, window_bounds = array<i64: 1, 1, 256>}, {transform_indices = @transform_27, window_bounds = array<i64: 1, 256, 256>}, {transform_indices = @transform_28, window_bounds = array<i64: 1, 1, 256>}, {pipeline_mode = #tpu.pipeline_mode<synchronous>, transform_indices = @transform_29, window_bounds = array<i64: 256, 512>}, {pipeline_mode = #tpu.pipeline_mode<synchronous>, transform_indices = @transform_30, window_bounds = array<i64: 1, 512>}, {pipeline_mode = #tpu.pipeline_mode<synchronous>, transform_indices = @transform_31, window_bounds = array<i64: 2, 256>}, {pipeline_mode = #tpu.pipeline_mode<synchronous>, transform_indices = @transform_32, window_bounds = array<i64: 2, 512>}]} {
    %c0_i32 = arith.constant 0 : i32
    %0 = arith.cmpi eq, %arg0, %c0_i32 : i32
    %1 = arith.extui %0 : i1 to i32
    %c0_i32_0 = arith.constant 0 : i32
    %2 = arith.cmpi ne, %1, %c0_i32_0 : i32
    scf.if %2 {
      %c0_116 = arith.constant 0 : index
      %c0_117 = arith.constant 0 : index
      %150 = vector.load %arg1[%c0_116, %c0_117] : memref<8x128xf32, #tpu.memory_space<vmem>>, vector<8x128xf32>
      %c0_118 = arith.constant 0 : index
      %c0_119 = arith.constant 0 : index
      %151 = vector.load %arg34[%c0_118, %c0_119] : memref<8x128xf32, #tpu.memory_space<vmem>>, vector<8x128xf32>
      tpu.vector_store %arg34[%c0_118, %c0_119], %150 {strides = array<i32>} : memref<8x128xf32, #tpu.memory_space<vmem>>, vector<8x128xf32>,
      %c0_120 = arith.constant 0 : index
      %c0_121 = arith.constant 0 : index
      %152 = vector.load %arg2[%c0_120, %c0_121] : memref<16x512xf32, #tpu.memory_space<vmem>>, vector<16x512xf32>
      %c0_122 = arith.constant 0 : index
      %c0_123 = arith.constant 0 : index
      %153 = vector.load %arg35[%c0_122, %c0_123] : memref<16x512xf32, #tpu.memory_space<vmem>>, vector<16x512xf32>
      tpu.vector_store %arg35[%c0_122, %c0_123], %152 {strides = array<i32>} : memref<16x512xf32, #tpu.memory_space<vmem>>, vector<16x512xf32>,
      %cst_124 = arith.constant 0.000000e+00 : f32
      %154 = vector.broadcast %cst_124 : f32 to vector<2x256xf32>
      %c0_125 = arith.constant 0 : index
      %c0_126 = arith.constant 0 : index
      %155 = vector.load %arg36[%c0_125, %c0_126] : memref<2x256xf32, #tpu.memory_space<vmem>>, vector<2x256xf32>
      tpu.vector_store %arg36[%c0_125, %c0_126], %154 {strides = array<i32>} : memref<2x256xf32, #tpu.memory_space<vmem>>, vector<2x256xf32>,
    } else {
    }
    %c0 = arith.constant 0 : index
    %c0_1 = arith.constant 0 : index
    %3 = vector.load %arg34[%c0, %c0_1] : memref<8x128xf32, #tpu.memory_space<vmem>>, vector<8x128xf32>
    %c0_2 = arith.constant 0 : index
    %c0_3 = arith.constant 0 : index
    %4 = vector.load %arg35[%c0_2, %c0_3] : memref<16x512xf32, #tpu.memory_space<vmem>>, vector<16x512xf32>
    %c0_4 = arith.constant 0 : index
    %c0_5 = arith.constant 0 : index
    %5 = vector.load %arg36[%c0_4, %c0_5] : memref<2x256xf32, #tpu.memory_space<vmem>>, vector<2x256xf32>
    %6 = arith.truncf %3 : vector<8x128xf32> to vector<8x128xbf16>
    %c0_6 = arith.constant 0 : index
    %c0_7 = arith.constant 0 : index
    %7 = vector.load %arg3[%c0_6, %c0_7] : memref<16x8xbf16, #tpu.memory_space<vmem>>, vector<16x8xbf16>
    %cst = arith.constant dense<0.000000e+00> : vector<16x128xf32>
    %8 = tpu.matmul %7, %6, %cst {dimension_numbers = #tpu.dot_dimension_numbers<[1], [0], [0], [1], [0, 0, 1, 1], [], []>} : vector<16x8xbf16>, vector<8x128xbf16>, vector<16x128xf32> -> vector<16x128xf32>
    %c0_8 = arith.constant 0 : index
    %c0_9 = arith.constant 0 : index
    %9 = vector.load %arg4[%c0_8, %c0_9] : memref<16x8xbf16, #tpu.memory_space<vmem>>, vector<16x8xbf16>
    %cst_10 = arith.constant dense<0.000000e+00> : vector<16x128xf32>
    %10 = tpu.matmul %9, %6, %cst_10 {dimension_numbers = #tpu.dot_dimension_numbers<[1], [0], [0], [1], [0, 0, 1, 1], [], []>} : vector<16x8xbf16>, vector<8x128xbf16>, vector<16x128xf32> -> vector<16x128xf32>
    %11 = arith.truncf %8 : vector<16x128xf32> to vector<16x128xbf16>
    %c0_11 = arith.constant 0 : index
    %c0_12 = arith.constant 0 : index
    %c0_13 = arith.constant 0 : index
    %12 = vector.load %arg9[%c0_11, %c0_12, %c0_13] : memref<1x128x128xbf16, #tpu.memory_space<vmem>>, vector<1x128x128xbf16>
    %13 = vector.shape_cast %12 : vector<1x128x128xbf16> to vector<128x128xbf16>
    %cst_14 = arith.constant dense<0.000000e+00> : vector<16x128xf32>
    %14 = tpu.matmul %11, %13, %cst_14 {dimension_numbers = #tpu.dot_dimension_numbers<[1], [0], [0], [1], [0, 0, 1, 1], [], []>} : vector<16x128xbf16>, vector<128x128xbf16>, vector<16x128xf32> -> vector<16x128xf32>
    %15 = arith.truncf %10 : vector<16x128xf32> to vector<16x128xbf16>
    %c0_15 = arith.constant 0 : index
    %c0_16 = arith.constant 0 : index
    %c0_17 = arith.constant 0 : index
    %16 = vector.load %arg10[%c0_15, %c0_16, %c0_17] : memref<1x128x128xbf16, #tpu.memory_space<vmem>>, vector<1x128x128xbf16>
    %17 = vector.shape_cast %16 : vector<1x128x128xbf16> to vector<128x128xbf16>
    %cst_18 = arith.constant dense<0.000000e+00> : vector<16x128xf32>
    %18 = tpu.matmul %15, %17, %cst_18 {dimension_numbers = #tpu.dot_dimension_numbers<[1], [0], [0], [1], [0, 0, 1, 1], [], []>} : vector<16x128xbf16>, vector<128x128xbf16>, vector<16x128xf32> -> vector<16x128xf32>
    %19 = arith.addf %14, %18 : vector<16x128xf32>
    %20 = arith.truncf %4 : vector<16x512xf32> to vector<16x512xbf16>
    %c0_19 = arith.constant 0 : index
    %c0_20 = arith.constant 0 : index
    %c0_21 = arith.constant 0 : index
    %21 = vector.load %arg11[%c0_19, %c0_20, %c0_21] : memref<1x512x128xbf16, #tpu.memory_space<vmem>>, vector<1x512x128xbf16>
    %22 = vector.shape_cast %21 : vector<1x512x128xbf16> to vector<512x128xbf16>
    %cst_22 = arith.constant dense<0.000000e+00> : vector<16x128xf32>
    %23 = tpu.matmul %20, %22, %cst_22 {dimension_numbers = #tpu.dot_dimension_numbers<[1], [0], [0], [1], [0, 0, 1, 1], [], []>} : vector<16x512xbf16>, vector<512x128xbf16>, vector<16x128xf32> -> vector<16x128xf32>
    %24 = arith.addf %19, %23 : vector<16x128xf32>
    %c0_23 = arith.constant 0 : index
    %c0_24 = arith.constant 0 : index
    %c0_25 = arith.constant 0 : index
    %25 = vector.load %arg12[%c0_23, %c0_24, %c0_25] : memref<1x1x128xf32, #tpu.memory_space<vmem>>, vector<1x1x128xf32>
    %26 = vector.shape_cast %25 : vector<1x1x128xf32> to vector<1x128xf32>
    %27 = vector.broadcast %26 : vector<1x128xf32> to vector<16x128xf32>
    %28 = arith.addf %24, %27 : vector<16x128xf32>
    %cst_26 = arith.constant 0.000000e+00 : f32
    %29 = vector.broadcast %cst_26 : f32 to vector<16x128xf32>
    %30 = arith.cmpf ogt, %28, %29 : vector<16x128xf32>
    %cst_27 = arith.constant 0.000000e+00 : f32
    %31 = vector.broadcast %cst_27 : f32 to vector<16x128xf32>
    %32 = arith.minimumf %28, %31 : vector<16x128xf32>
    %33 = math.exp %32 : vector<16x128xf32>
    %cst_28 = arith.constant 1.000000e+00 : f32
    %34 = vector.broadcast %cst_28 : f32 to vector<16x128xf32>
    %35 = arith.subf %33, %34 : vector<16x128xf32>
    %36 = arith.select %30, %28, %35 : vector<16x128xi1>, vector<16x128xf32>
    %37 = arith.truncf %36 : vector<16x128xf32> to vector<16x128xbf16>
    %c0_29 = arith.constant 0 : index
    %c0_30 = arith.constant 0 : index
    %c0_31 = arith.constant 0 : index
    %38 = vector.load %arg13[%c0_29, %c0_30, %c0_31] : memref<1x128x512xbf16, #tpu.memory_space<vmem>>, vector<1x128x512xbf16>
    %39 = vector.shape_cast %38 : vector<1x128x512xbf16> to vector<128x512xbf16>
    %cst_32 = arith.constant dense<0.000000e+00> : vector<16x512xf32>
    %40 = tpu.matmul %37, %39, %cst_32 {dimension_numbers = #tpu.dot_dimension_numbers<[1], [0], [0], [1], [0, 0, 1, 1], [], []>} : vector<16x128xbf16>, vector<128x512xbf16>, vector<16x512xf32> -> vector<16x512xf32>
    %c0_33 = arith.constant 0 : index
    %c0_34 = arith.constant 0 : index
    %c0_35 = arith.constant 0 : index
    %41 = vector.load %arg14[%c0_33, %c0_34, %c0_35] : memref<1x1x512xf32, #tpu.memory_space<vmem>>, vector<1x1x512xf32>
    %42 = vector.shape_cast %41 : vector<1x1x512xf32> to vector<1x512xf32>
    %43 = vector.broadcast %42 : vector<1x512xf32> to vector<16x512xf32>
    %44 = arith.addf %40, %43 : vector<16x512xf32>
    %45 = arith.truncf %8 : vector<16x128xf32> to vector<16x128xbf16>
    %c0_36 = arith.constant 0 : index
    %c0_37 = arith.constant 0 : index
    %c0_38 = arith.constant 0 : index
    %46 = vector.load %arg15[%c0_36, %c0_37, %c0_38] : memref<1x128x256xbf16, #tpu.memory_space<vmem>>, vector<1x128x256xbf16>
    %47 = vector.shape_cast %46 : vector<1x128x256xbf16> to vector<128x256xbf16>
    %cst_39 = arith.constant dense<0.000000e+00> : vector<16x256xf32>
    %48 = tpu.matmul %45, %47, %cst_39 {dimension_numbers = #tpu.dot_dimension_numbers<[1], [0], [0], [1], [0, 0, 1, 1], [], []>} : vector<16x128xbf16>, vector<128x256xbf16>, vector<16x256xf32> -> vector<16x256xf32>
    %49 = arith.truncf %44 : vector<16x512xf32> to vector<16x512xbf16>
    %c0_40 = arith.constant 0 : index
    %c0_41 = arith.constant 0 : index
    %c0_42 = arith.constant 0 : index
    %50 = vector.load %arg16[%c0_40, %c0_41, %c0_42] : memref<1x512x256xbf16, #tpu.memory_space<vmem>>, vector<1x512x256xbf16>
    %51 = vector.shape_cast %50 : vector<1x512x256xbf16> to vector<512x256xbf16>
    %cst_43 = arith.constant dense<0.000000e+00> : vector<16x256xf32>
    %52 = tpu.matmul %49, %51, %cst_43 {dimension_numbers = #tpu.dot_dimension_numbers<[1], [0], [0], [1], [0, 0, 1, 1], [], []>} : vector<16x512xbf16>, vector<512x256xbf16>, vector<16x256xf32> -> vector<16x256xf32>
    %53 = arith.addf %48, %52 : vector<16x256xf32>
    %c0_44 = arith.constant 0 : index
    %c0_45 = arith.constant 0 : index
    %c0_46 = arith.constant 0 : index
    %54 = vector.load %arg17[%c0_44, %c0_45, %c0_46] : memref<1x1x256xf32, #tpu.memory_space<vmem>>, vector<1x1x256xf32>
    %55 = vector.shape_cast %54 : vector<1x1x256xf32> to vector<1x256xf32>
    %56 = vector.broadcast %55 : vector<1x256xf32> to vector<16x256xf32>
    %57 = arith.addf %53, %56 : vector<16x256xf32>
    %cst_47 = arith.constant 0.000000e+00 : f32
    %58 = vector.broadcast %cst_47 : f32 to vector<16x256xf32>
    %59 = arith.cmpf ogt, %57, %58 : vector<16x256xf32>
    %cst_48 = arith.constant 0.000000e+00 : f32
    %60 = vector.broadcast %cst_48 : f32 to vector<16x256xf32>
    %61 = arith.minimumf %57, %60 : vector<16x256xf32>
    %62 = math.exp %61 : vector<16x256xf32>
    %cst_49 = arith.constant 1.000000e+00 : f32
    %63 = vector.broadcast %cst_49 : f32 to vector<16x256xf32>
    %64 = arith.subf %62, %63 : vector<16x256xf32>
    %65 = arith.select %59, %57, %64 : vector<16x256xi1>, vector<16x256xf32>
    %66 = arith.truncf %65 : vector<16x256xf32> to vector<16x256xbf16>
    %c0_50 = arith.constant 0 : index
    %c0_51 = arith.constant 0 : index
    %c0_52 = arith.constant 0 : index
    %67 = vector.load %arg18[%c0_50, %c0_51, %c0_52] : memref<1x256x256xbf16, #tpu.memory_space<vmem>>, vector<1x256x256xbf16>
    %68 = vector.shape_cast %67 : vector<1x256x256xbf16> to vector<256x256xbf16>
    %cst_53 = arith.constant dense<0.000000e+00> : vector<16x256xf32>
    %69 = tpu.matmul %66, %68, %cst_53 {dimension_numbers = #tpu.dot_dimension_numbers<[1], [0], [0], [1], [0, 0, 1, 1], [], []>} : vector<16x256xbf16>, vector<256x256xbf16>, vector<16x256xf32> -> vector<16x256xf32>
    %c0_54 = arith.constant 0 : index
    %c0_55 = arith.constant 0 : index
    %c0_56 = arith.constant 0 : index
    %70 = vector.load %arg19[%c0_54, %c0_55, %c0_56] : memref<1x1x256xf32, #tpu.memory_space<vmem>>, vector<1x1x256xf32>
    %71 = vector.shape_cast %70 : vector<1x1x256xf32> to vector<1x256xf32>
    %72 = vector.broadcast %71 : vector<1x256xf32> to vector<16x256xf32>
    %73 = arith.addf %69, %72 : vector<16x256xf32>
    %c0_57 = arith.constant 0 : index
    %c0_58 = arith.constant 0 : index
    %74 = vector.load %arg5[%c0_57, %c0_58] : memref<8x16xbf16, #tpu.memory_space<vmem>>, vector<8x16xbf16>
    %75 = arith.truncf %73 : vector<16x256xf32> to vector<16x256xbf16>
    %cst_59 = arith.constant dense<0.000000e+00> : vector<8x256xf32>
    %76 = tpu.matmul %74, %75, %cst_59 {dimension_numbers = #tpu.dot_dimension_numbers<[1], [0], [0], [1], [0, 0, 1, 1], [], []>} : vector<8x16xbf16>, vector<16x256xbf16>, vector<8x256xf32> -> vector<8x256xf32>
    %c0_60 = arith.constant 0 : index
    %c0_61 = arith.constant 0 : index
    %77 = vector.load %arg6[%c0_60, %c0_61] : memref<8x1xf32, #tpu.memory_space<vmem>>, vector<8x1xf32>
    %78 = vector.broadcast %77 : vector<8x1xf32> to vector<8x256xf32>
    %79 = arith.mulf %76, %78 : vector<8x256xf32>
    %80 = arith.truncf %3 : vector<8x128xf32> to vector<8x128xbf16>
    %c0_62 = arith.constant 0 : index
    %c0_63 = arith.constant 0 : index
    %c0_64 = arith.constant 0 : index
    %81 = vector.load %arg20[%c0_62, %c0_63, %c0_64] : memref<1x128x256xbf16, #tpu.memory_space<vmem>>, vector<1x128x256xbf16>
    %82 = vector.shape_cast %81 : vector<1x128x256xbf16> to vector<128x256xbf16>
    %cst_65 = arith.constant dense<0.000000e+00> : vector<8x256xf32>
    %83 = tpu.matmul %80, %82, %cst_65 {dimension_numbers = #tpu.dot_dimension_numbers<[1], [0], [0], [1], [0, 0, 1, 1], [], []>} : vector<8x128xbf16>, vector<128x256xbf16>, vector<8x256xf32> -> vector<8x256xf32>
    %84 = arith.truncf %79 : vector<8x256xf32> to vector<8x256xbf16>
    %c0_66 = arith.constant 0 : index
    %c0_67 = arith.constant 0 : index
    %c0_68 = arith.constant 0 : index
    %85 = vector.load %arg21[%c0_66, %c0_67, %c0_68] : memref<1x256x256xbf16, #tpu.memory_space<vmem>>, vector<1x256x256xbf16>
    %86 = vector.shape_cast %85 : vector<1x256x256xbf16> to vector<256x256xbf16>
    %cst_69 = arith.constant dense<0.000000e+00> : vector<8x256xf32>
    %87 = tpu.matmul %84, %86, %cst_69 {dimension_numbers = #tpu.dot_dimension_numbers<[1], [0], [0], [1], [0, 0, 1, 1], [], []>} : vector<8x256xbf16>, vector<256x256xbf16>, vector<8x256xf32> -> vector<8x256xf32>
    %88 = arith.addf %83, %87 : vector<8x256xf32>
    %c0_70 = arith.constant 0 : index
    %c0_71 = arith.constant 0 : index
    %c0_72 = arith.constant 0 : index
    %89 = vector.load %arg22[%c0_70, %c0_71, %c0_72] : memref<1x1x256xf32, #tpu.memory_space<vmem>>, vector<1x1x256xf32>
    %90 = vector.shape_cast %89 : vector<1x1x256xf32> to vector<1x256xf32>
    %91 = vector.broadcast %90 : vector<1x256xf32> to vector<8x256xf32>
    %92 = arith.addf %88, %91 : vector<8x256xf32>
    %cst_73 = arith.constant 0.000000e+00 : f32
    %93 = vector.broadcast %cst_73 : f32 to vector<8x256xf32>
    %94 = arith.cmpf ogt, %92, %93 : vector<8x256xf32>
    %cst_74 = arith.constant 0.000000e+00 : f32
    %95 = vector.broadcast %cst_74 : f32 to vector<8x256xf32>
    %96 = arith.minimumf %92, %95 : vector<8x256xf32>
    %97 = math.exp %96 : vector<8x256xf32>
    %cst_75 = arith.constant 1.000000e+00 : f32
    %98 = vector.broadcast %cst_75 : f32 to vector<8x256xf32>
    %99 = arith.subf %97, %98 : vector<8x256xf32>
    %100 = arith.select %94, %92, %99 : vector<8x256xi1>, vector<8x256xf32>
    %101 = arith.truncf %100 : vector<8x256xf32> to vector<8x256xbf16>
    %c0_76 = arith.constant 0 : index
    %c0_77 = arith.constant 0 : index
    %c0_78 = arith.constant 0 : index
    %102 = vector.load %arg23[%c0_76, %c0_77, %c0_78] : memref<1x256x128xbf16, #tpu.memory_space<vmem>>, vector<1x256x128xbf16>
    %103 = vector.shape_cast %102 : vector<1x256x128xbf16> to vector<256x128xbf16>
    %cst_79 = arith.constant dense<0.000000e+00> : vector<8x128xf32>
    %104 = tpu.matmul %101, %103, %cst_79 {dimension_numbers = #tpu.dot_dimension_numbers<[1], [0], [0], [1], [0, 0, 1, 1], [], []>} : vector<8x256xbf16>, vector<256x128xbf16>, vector<8x128xf32> -> vector<8x128xf32>
    %c0_80 = arith.constant 0 : index
    %c0_81 = arith.constant 0 : index
    %c0_82 = arith.constant 0 : index
    %105 = vector.load %arg24[%c0_80, %c0_81, %c0_82] : memref<1x1x128xf32, #tpu.memory_space<vmem>>, vector<1x1x128xf32>
    %106 = vector.shape_cast %105 : vector<1x1x128xf32> to vector<1x128xf32>
    %107 = vector.broadcast %106 : vector<1x128xf32> to vector<8x128xf32>
    %108 = arith.addf %104, %107 : vector<8x128xf32>
    %c0_83 = arith.constant 0 : index
    %c0_84 = arith.constant 0 : index
    %109 = vector.load %arg7[%c0_83, %c0_84] : memref<2x8xbf16, #tpu.memory_space<vmem>>, vector<2x8xbf16>
    %110 = arith.truncf %108 : vector<8x128xf32> to vector<8x128xbf16>
    %cst_85 = arith.constant dense<0.000000e+00> : vector<2x128xf32>
    %111 = tpu.matmul %109, %110, %cst_85 {dimension_numbers = #tpu.dot_dimension_numbers<[1], [0], [0], [1], [0, 0, 1, 1], [], []>} : vector<2x8xbf16>, vector<8x128xbf16>, vector<2x128xf32> -> vector<2x128xf32>
    %c0_86 = arith.constant 0 : index
    %c0_87 = arith.constant 0 : index
    %112 = vector.load %arg8[%c0_86, %c0_87] : memref<2x1xf32, #tpu.memory_space<vmem>>, vector<2x1xf32>
    %113 = vector.broadcast %112 : vector<2x1xf32> to vector<2x128xf32>
    %114 = arith.mulf %111, %113 : vector<2x128xf32>
    %115 = arith.truncf %5 : vector<2x256xf32> to vector<2x256xbf16>
    %c0_88 = arith.constant 0 : index
    %c0_89 = arith.constant 0 : index
    %c0_90 = arith.constant 0 : index
    %116 = vector.load %arg25[%c0_88, %c0_89, %c0_90] : memref<1x256x256xbf16, #tpu.memory_space<vmem>>, vector<1x256x256xbf16>
    %117 = vector.shape_cast %116 : vector<1x256x256xbf16> to vector<256x256xbf16>
    %cst_91 = arith.constant dense<0.000000e+00> : vector<2x256xf32>
    %118 = tpu.matmul %115, %117, %cst_91 {dimension_numbers = #tpu.dot_dimension_numbers<[1], [0], [0], [1], [0, 0, 1, 1], [], []>} : vector<2x256xbf16>, vector<256x256xbf16>, vector<2x256xf32> -> vector<2x256xf32>
    %119 = arith.truncf %114 : vector<2x128xf32> to vector<2x128xbf16>
    %c0_92 = arith.constant 0 : index
    %c0_93 = arith.constant 0 : index
    %c0_94 = arith.constant 0 : index
    %120 = vector.load %arg26[%c0_92, %c0_93, %c0_94] : memref<1x128x256xbf16, #tpu.memory_space<vmem>>, vector<1x128x256xbf16>
    %121 = vector.shape_cast %120 : vector<1x128x256xbf16> to vector<128x256xbf16>
    %cst_95 = arith.constant dense<0.000000e+00> : vector<2x256xf32>
    %122 = tpu.matmul %119, %121, %cst_95 {dimension_numbers = #tpu.dot_dimension_numbers<[1], [0], [0], [1], [0, 0, 1, 1], [], []>} : vector<2x128xbf16>, vector<128x256xbf16>, vector<2x256xf32> -> vector<2x256xf32>
    %123 = arith.addf %118, %122 : vector<2x256xf32>
    %c0_96 = arith.constant 0 : index
    %c0_97 = arith.constant 0 : index
    %c0_98 = arith.constant 0 : index
    %124 = vector.load %arg27[%c0_96, %c0_97, %c0_98] : memref<1x1x256xf32, #tpu.memory_space<vmem>>, vector<1x1x256xf32>
    %125 = vector.shape_cast %124 : vector<1x1x256xf32> to vector<1x256xf32>
    %126 = vector.broadcast %125 : vector<1x256xf32> to vector<2x256xf32>
    %127 = arith.addf %123, %126 : vector<2x256xf32>
    %cst_99 = arith.constant 0.000000e+00 : f32
    %128 = vector.broadcast %cst_99 : f32 to vector<2x256xf32>
    %129 = arith.cmpf ogt, %127, %128 : vector<2x256xf32>
    %cst_100 = arith.constant 0.000000e+00 : f32
    %130 = vector.broadcast %cst_100 : f32 to vector<2x256xf32>
    %131 = arith.minimumf %127, %130 : vector<2x256xf32>
    %132 = math.exp %131 : vector<2x256xf32>
    %cst_101 = arith.constant 1.000000e+00 : f32
    %133 = vector.broadcast %cst_101 : f32 to vector<2x256xf32>
    %134 = arith.subf %132, %133 : vector<2x256xf32>
    %135 = arith.select %129, %127, %134 : vector<2x256xi1>, vector<2x256xf32>
    %136 = arith.truncf %135 : vector<2x256xf32> to vector<2x256xbf16>
    %c0_102 = arith.constant 0 : index
    %c0_103 = arith.constant 0 : index
    %c0_104 = arith.constant 0 : index
    %137 = vector.load %arg28[%c0_102, %c0_103, %c0_104] : memref<1x256x256xbf16, #tpu.memory_space<vmem>>, vector<1x256x256xbf16>
    %138 = vector.shape_cast %137 : vector<1x256x256xbf16> to vector<256x256xbf16>
    %cst_105 = arith.constant dense<0.000000e+00> : vector<2x256xf32>
    %139 = tpu.matmul %136, %138, %cst_105 {dimension_numbers = #tpu.dot_dimension_numbers<[1], [0], [0], [1], [0, 0, 1, 1], [], []>} : vector<2x256xbf16>, vector<256x256xbf16>, vector<2x256xf32> -> vector<2x256xf32>
    %c0_106 = arith.constant 0 : index
    %c0_107 = arith.constant 0 : index
    %c0_108 = arith.constant 0 : index
    %140 = vector.load %arg29[%c0_106, %c0_107, %c0_108] : memref<1x1x256xf32, #tpu.memory_space<vmem>>, vector<1x1x256xf32>
    %141 = vector.shape_cast %140 : vector<1x1x256xf32> to vector<1x256xf32>
    %142 = vector.broadcast %141 : vector<1x256xf32> to vector<2x256xf32>
    %143 = arith.addf %139, %142 : vector<2x256xf32>
    %c0_109 = arith.constant 0 : index
    %c0_110 = arith.constant 0 : index
    %144 = vector.load %arg34[%c0_109, %c0_110] : memref<8x128xf32, #tpu.memory_space<vmem>>, vector<8x128xf32>
    tpu.vector_store %arg34[%c0_109, %c0_110], %108 {strides = array<i32>} : memref<8x128xf32, #tpu.memory_space<vmem>>, vector<8x128xf32>,
    %c0_111 = arith.constant 0 : index
    %c0_112 = arith.constant 0 : index
    %145 = vector.load %arg35[%c0_111, %c0_112] : memref<16x512xf32, #tpu.memory_space<vmem>>, vector<16x512xf32>
    tpu.vector_store %arg35[%c0_111, %c0_112], %44 {strides = array<i32>} : memref<16x512xf32, #tpu.memory_space<vmem>>, vector<16x512xf32>,
    %c0_113 = arith.constant 0 : index
    %c0_114 = arith.constant 0 : index
    %146 = vector.load %arg36[%c0_113, %c0_114] : memref<2x256xf32, #tpu.memory_space<vmem>>, vector<2x256xf32>
    tpu.vector_store %arg36[%c0_113, %c0_114], %143 {strides = array<i32>} : memref<2x256xf32, #tpu.memory_space<vmem>>, vector<2x256xf32>,
    %c5_i32 = arith.constant 5 : i32
    %147 = arith.cmpi eq, %arg0, %c5_i32 : i32
    %148 = arith.extui %147 : i1 to i32
    %c0_i32_115 = arith.constant 0 : i32
    %149 = arith.cmpi ne, %148, %c0_i32_115 : i32
    scf.if %149 {
      %c0_116 = arith.constant 0 : index
      %c0_117 = arith.constant 0 : index
      %150 = vector.load %arg32[%c0_116, %c0_117] : memref<2x256xf32, #tpu.memory_space<vmem>>, vector<2x256xf32>
      tpu.vector_store %arg32[%c0_116, %c0_117], %143 {strides = array<i32>} : memref<2x256xf32, #tpu.memory_space<vmem>>, vector<2x256xf32>,
      %151 = arith.truncf %143 : vector<2x256xf32> to vector<2x256xbf16>
      %c0_118 = arith.constant 0 : index
      %c0_119 = arith.constant 0 : index
      %152 = vector.load %arg30[%c0_118, %c0_119] : memref<256x512xbf16, #tpu.memory_space<vmem>>, vector<256x512xbf16>
      %cst_120 = arith.constant dense<0.000000e+00> : vector<2x512xf32>
      %153 = tpu.matmul %151, %152, %cst_120 {dimension_numbers = #tpu.dot_dimension_numbers<[1], [0], [0], [1], [0, 0, 1, 1], [], []>} : vector<2x256xbf16>, vector<256x512xbf16>, vector<2x512xf32> -> vector<2x512xf32>
      %c0_121 = arith.constant 0 : index
      %c0_122 = arith.constant 0 : index
      %154 = vector.load %arg31[%c0_121, %c0_122] : memref<1x512xf32, #tpu.memory_space<vmem>>, vector<1x512xf32>
      %155 = vector.broadcast %154 : vector<1x512xf32> to vector<2x512xf32>
      %156 = arith.addf %153, %155 : vector<2x512xf32>
      %cst_123 = arith.constant 0.000000e+00 : f32
      %157 = vector.broadcast %cst_123 : f32 to vector<2x512xf32>
      %158 = arith.cmpf ogt, %156, %157 : vector<2x512xf32>
      %cst_124 = arith.constant 0.000000e+00 : f32
      %159 = vector.broadcast %cst_124 : f32 to vector<2x512xf32>
      %160 = arith.minimumf %156, %159 : vector<2x512xf32>
      %161 = math.exp %160 : vector<2x512xf32>
      %cst_125 = arith.constant 1.000000e+00 : f32
      %162 = vector.broadcast %cst_125 : f32 to vector<2x512xf32>
      %163 = arith.subf %161, %162 : vector<2x512xf32>
      %164 = arith.select %158, %156, %163 : vector<2x512xi1>, vector<2x512xf32>
      %165 = arith.truncf %164 : vector<2x512xf32> to vector<2x512xbf16>
      %c0_126 = arith.constant 0 : index
      %c0_127 = arith.constant 0 : index
      %166 = vector.load %arg33[%c0_126, %c0_127] : memref<2x512xbf16, #tpu.memory_space<vmem>>, vector<2x512xbf16>
      tpu.vector_store %arg33[%c0_126, %c0_127], %165 {strides = array<i32>} : memref<2x512xbf16, #tpu.memory_space<vmem>>, vector<2x512xbf16>,
    } else {
    }
    return
  }
  func.func @transform_0(%arg0: i32) -> (i32, i32) {
    %c0_i32 = arith.constant 0 : i32
    %c0_i32_0 = arith.constant 0 : i32
    %c0_i32_1 = arith.constant 0 : i32
    return %c0_i32, %c0_i32_0 : i32, i32
  }
  func.func @transform_1(%arg0: i32) -> (i32, i32) {
    %c0_i32 = arith.constant 0 : i32
    %c0_i32_0 = arith.constant 0 : i32
    %c0_i32_1 = arith.constant 0 : i32
    return %c0_i32, %c0_i32_0 : i32, i32
  }
  func.func @transform_2(%arg0: i32) -> (i32, i32) {
    %c0_i32 = arith.constant 0 : i32
    %c0_i32_0 = arith.constant 0 : i32
    %c0_i32_1 = arith.constant 0 : i32
    return %c0_i32, %c0_i32_0 : i32, i32
  }
  func.func @transform_3(%arg0: i32) -> (i32, i32) {
    %c0_i32 = arith.constant 0 : i32
    %c0_i32_0 = arith.constant 0 : i32
    %c0_i32_1 = arith.constant 0 : i32
    return %c0_i32, %c0_i32_0 : i32, i32
  }
  func.func @transform_4(%arg0: i32) -> (i32, i32) {
    %c0_i32 = arith.constant 0 : i32
    %c0_i32_0 = arith.constant 0 : i32
    %c0_i32_1 = arith.constant 0 : i32
    return %c0_i32, %c0_i32_0 : i32, i32
  }
  func.func @transform_5(%arg0: i32) -> (i32, i32) {
    %c0_i32 = arith.constant 0 : i32
    %c0_i32_0 = arith.constant 0 : i32
    %c0_i32_1 = arith.constant 0 : i32
    return %c0_i32, %c0_i32_0 : i32, i32
  }
  func.func @transform_6(%arg0: i32) -> (i32, i32) {
    %c0_i32 = arith.constant 0 : i32
    %c0_i32_0 = arith.constant 0 : i32
    %c0_i32_1 = arith.constant 0 : i32
    return %c0_i32, %c0_i32_0 : i32, i32
  }
  func.func @transform_7(%arg0: i32) -> (i32, i32) {
    %c0_i32 = arith.constant 0 : i32
    %c0_i32_0 = arith.constant 0 : i32
    %c0_i32_1 = arith.constant 0 : i32
    return %c0_i32, %c0_i32_0 : i32, i32
  }
  func.func @transform_8(%arg0: i32) -> (i32, i32, i32) {
    %c0_i32 = arith.constant 0 : i32
    %c0_i32_0 = arith.constant 0 : i32
    %c0_i32_1 = arith.constant 0 : i32
    return %arg0, %c0_i32, %c0_i32_0 : i32, i32, i32
  }
  func.func @transform_9(%arg0: i32) -> (i32, i32, i32) {
    %c0_i32 = arith.constant 0 : i32
    %c0_i32_0 = arith.constant 0 : i32
    %c0_i32_1 = arith.constant 0 : i32
    return %arg0, %c0_i32, %c0_i32_0 : i32, i32, i32
  }
  func.func @transform_10(%arg0: i32) -> (i32, i32, i32) {
    %c0_i32 = arith.constant 0 : i32
    %c0_i32_0 = arith.constant 0 : i32
    %c0_i32_1 = arith.constant 0 : i32
    return %arg0, %c0_i32, %c0_i32_0 : i32, i32, i32
  }
  func.func @transform_11(%arg0: i32) -> (i32, i32, i32) {
    %c0_i32 = arith.constant 0 : i32
    %c0_i32_0 = arith.constant 0 : i32
    %c0_i32_1 = arith.constant 0 : i32
    return %arg0, %c0_i32, %c0_i32_0 : i32, i32, i32
  }
  func.func @transform_12(%arg0: i32) -> (i32, i32, i32) {
    %c0_i32 = arith.constant 0 : i32
    %c0_i32_0 = arith.constant 0 : i32
    %c0_i32_1 = arith.constant 0 : i32
    return %arg0, %c0_i32, %c0_i32_0 : i32, i32, i32
  }
  func.func @transform_13(%arg0: i32) -> (i32, i32, i32) {
    %c0_i32 = arith.constant 0 : i32
    %c0_i32_0 = arith.constant 0 : i32
    %c0_i32_1 = arith.constant 0 : i32
    return %arg0, %c0_i32, %c0_i32_0 : i32, i32, i32
  }
  func.func @transform_14(%arg0: i32) -> (i32, i32, i32) {
    %c0_i32 = arith.constant 0 : i32
    %c0_i32_0 = arith.constant 0 : i32
    %c0_i32_1 = arith.constant 0 : i32
    return %arg0, %c0_i32, %c0_i32_0 : i32, i32, i32
  }
  func.func @transform_15(%arg0: i32) -> (i32, i32, i32) {
    %c0_i32 = arith.constant 0 : i32
    %c0_i32_0 = arith.constant 0 : i32
    %c0_i32_1 = arith.constant 0 : i32
    return %arg0, %c0_i32, %c0_i32_0 : i32, i32, i32
  }
  func.func @transform_16(%arg0: i32) -> (i32, i32, i32) {
    %c0_i32 = arith.constant 0 : i32
    %c0_i32_0 = arith.constant 0 : i32
    %c0_i32_1 = arith.constant 0 : i32
    return %arg0, %c0_i32, %c0_i32_0 : i32, i32, i32
  }
  func.func @transform_17(%arg0: i32) -> (i32, i32, i32) {
    %c0_i32 = arith.constant 0 : i32
    %c0_i32_0 = arith.constant 0 : i32
    %c0_i32_1 = arith.constant 0 : i32
    return %arg0, %c0_i32, %c0_i32_0 : i32, i32, i32
  }
  func.func @transform_18(%arg0: i32) -> (i32, i32, i32) {
    %c0_i32 = arith.constant 0 : i32
    %c0_i32_0 = arith.constant 0 : i32
    %c0_i32_1 = arith.constant 0 : i32
    return %arg0, %c0_i32, %c0_i32_0 : i32, i32, i32
  }
  func.func @transform_19(%arg0: i32) -> (i32, i32, i32) {
    %c0_i32 = arith.constant 0 : i32
    %c0_i32_0 = arith.constant 0 : i32
    %c0_i32_1 = arith.constant 0 : i32
    return %arg0, %c0_i32, %c0_i32_0 : i32, i32, i32
  }
  func.func @transform_20(%arg0: i32) -> (i32, i32, i32) {
    %c0_i32 = arith.constant 0 : i32
    %c0_i32_0 = arith.constant 0 : i32
    %c0_i32_1 = arith.constant 0 : i32
    return %arg0, %c0_i32, %c0_i32_0 : i32, i32, i32
  }
  func.func @transform_21(%arg0: i32) -> (i32, i32, i32) {
    %c0_i32 = arith.constant 0 : i32
    %c0_i32_0 = arith.constant 0 : i32
    %c0_i32_1 = arith.constant 0 : i32
    return %arg0, %c0_i32, %c0_i32_0 : i32, i32, i32
  }
  func.func @transform_22(%arg0: i32) -> (i32, i32, i32) {
    %c0_i32 = arith.constant 0 : i32
    %c0_i32_0 = arith.constant 0 : i32
    %c0_i32_1 = arith.constant 0 : i32
    return %arg0, %c0_i32, %c0_i32_0 : i32, i32, i32
  }
  func.func @transform_23(%arg0: i32) -> (i32, i32, i32) {
    %c0_i32 = arith.constant 0 : i32
    %c0_i32_0 = arith.constant 0 : i32
    %c0_i32_1 = arith.constant 0 : i32
    return %arg0, %c0_i32, %c0_i32_0 : i32, i32, i32
  }
  func.func @transform_24(%arg0: i32) -> (i32, i32, i32) {
    %c0_i32 = arith.constant 0 : i32
    %c0_i32_0 = arith.constant 0 : i32
    %c0_i32_1 = arith.constant 0 : i32
    return %arg0, %c0_i32, %c0_i32_0 : i32, i32, i32
  }
  func.func @transform_25(%arg0: i32) -> (i32, i32, i32) {
    %c0_i32 = arith.constant 0 : i32
    %c0_i32_0 = arith.constant 0 : i32
    %c0_i32_1 = arith.constant 0 : i32
    return %arg0, %c0_i32, %c0_i32_0 : i32, i32, i32
  }
  func.func @transform_26(%arg0: i32) -> (i32, i32, i32) {
    %c0_i32 = arith.constant 0 : i32
    %c0_i32_0 = arith.constant 0 : i32
    %c0_i32_1 = arith.constant 0 : i32
    return %arg0, %c0_i32, %c0_i32_0 : i32, i32, i32
  }
  func.func @transform_27(%arg0: i32) -> (i32, i32, i32) {
    %c0_i32 = arith.constant 0 : i32
    %c0_i32_0 = arith.constant 0 : i32
    %c0_i32_1 = arith.constant 0 : i32
    return %arg0, %c0_i32, %c0_i32_0 : i32, i32, i32
  }
  func.func @transform_28(%arg0: i32) -> (i32, i32, i32) {
    %c0_i32 = arith.constant 0 : i32
    %c0_i32_0 = arith.constant 0 : i32
    %c0_i32_1 = arith.constant 0 : i32
    return %arg0, %c0_i32, %c0_i32_0 : i32, i32, i32
  }
  func.func @transform_29(%arg0: i32) -> (i32, i32) {
    %c0_i32 = arith.constant 0 : i32
    %c0_i32_0 = arith.constant 0 : i32
    %c0_i32_1 = arith.constant 0 : i32
    return %c0_i32, %c0_i32_0 : i32, i32
  }
  func.func @transform_30(%arg0: i32) -> (i32, i32) {
    %c0_i32 = arith.constant 0 : i32
    %c0_i32_0 = arith.constant 0 : i32
    %c0_i32_1 = arith.constant 0 : i32
    return %c0_i32, %c0_i32_0 : i32, i32
  }
  func.func @transform_31(%arg0: i32) -> (i32, i32) {
    %c0_i32 = arith.constant 0 : i32
    %c0_i32_0 = arith.constant 0 : i32
    %c0_i32_1 = arith.constant 0 : i32
    return %c0_i32, %c0_i32_0 : i32, i32
  }
  func.func @transform_32(%arg0: i32) -> (i32, i32) {
    %c0_i32 = arith.constant 0 : i32
    %c0_i32_0 = arith.constant 0 : i32
    %c0_i32_1 = arith.constant 0 : i32
    return %c0_i32, %c0_i32_0 : i32, i32
  }
}

module attributes {stable_mosaic.version = 11 : i64} {
  func.func @_head_kernel(%arg0: i32, %arg1: memref<2x512xbf16, #tpu.memory_space<vmem>>, %arg2: memref<512x3840xbf16, #tpu.memory_space<vmem>>, %arg3: memref<1x3840xf32, #tpu.memory_space<vmem>>, %arg4: memref<2x3840xf32, #tpu.memory_space<vmem>>) attributes {dimension_semantics = [#tpu.dimension_semantics<parallel>], iteration_bounds = array<i64: 4>, scalar_prefetch = 0 : i64, scratch_operands = 0 : i64, tpu.core_type = #tpu.core_type<tc>, window_params = [{pipeline_mode = #tpu.pipeline_mode<synchronous>, transform_indices = @transform_0, window_bounds = array<i64: 2, 512>}, {transform_indices = @transform_1, window_bounds = array<i64: 512, 3840>}, {transform_indices = @transform_2, window_bounds = array<i64: 1, 3840>}, {transform_indices = @transform_3, window_bounds = array<i64: 2, 3840>}]} {
    %c0 = arith.constant 0 : index
    %c0_0 = arith.constant 0 : index
    %0 = vector.load %arg1[%c0, %c0_0] : memref<2x512xbf16, #tpu.memory_space<vmem>>, vector<2x512xbf16>
    %c0_1 = arith.constant 0 : index
    %c0_2 = arith.constant 0 : index
    %1 = vector.load %arg2[%c0_1, %c0_2] : memref<512x3840xbf16, #tpu.memory_space<vmem>>, vector<512x3840xbf16>
    %cst = arith.constant dense<0.000000e+00> : vector<2x3840xf32>
    %2 = tpu.matmul %0, %1, %cst {dimension_numbers = #tpu.dot_dimension_numbers<[1], [0], [0], [1], [0, 0, 1, 1], [], []>} : vector<2x512xbf16>, vector<512x3840xbf16>, vector<2x3840xf32> -> vector<2x3840xf32>
    %c0_3 = arith.constant 0 : index
    %c0_4 = arith.constant 0 : index
    %3 = vector.load %arg3[%c0_3, %c0_4] : memref<1x3840xf32, #tpu.memory_space<vmem>>, vector<1x3840xf32>
    %4 = vector.broadcast %3 : vector<1x3840xf32> to vector<2x3840xf32>
    %5 = arith.addf %2, %4 : vector<2x3840xf32>
    %c0_5 = arith.constant 0 : index
    %c0_6 = arith.constant 0 : index
    %6 = vector.load %arg4[%c0_5, %c0_6] : memref<2x3840xf32, #tpu.memory_space<vmem>>, vector<2x3840xf32>
    tpu.vector_store %arg4[%c0_5, %c0_6], %5 {strides = array<i32>} : memref<2x3840xf32, #tpu.memory_space<vmem>>, vector<2x3840xf32>,
    return
  }
  func.func @transform_0(%arg0: i32) -> (i32, i32) {
    %c0_i32 = arith.constant 0 : i32
    %c0_i32_0 = arith.constant 0 : i32
    %c0_i32_1 = arith.constant 0 : i32
    return %c0_i32, %c0_i32_0 : i32, i32
  }
  func.func @transform_1(%arg0: i32) -> (i32, i32) {
    %c0_i32 = arith.constant 0 : i32
    %c0_i32_0 = arith.constant 0 : i32
    return %c0_i32, %arg0 : i32, i32
  }
  func.func @transform_2(%arg0: i32) -> (i32, i32) {
    %c0_i32 = arith.constant 0 : i32
    %c0_i32_0 = arith.constant 0 : i32
    return %c0_i32, %arg0 : i32, i32
  }
  func.func @transform_3(%arg0: i32) -> (i32, i32) {
    %c0_i32 = arith.constant 0 : i32
    %c0_i32_0 = arith.constant 0 : i32
    return %c0_i32, %arg0 : i32, i32
  }
}

</mosaic_0001>

<bundles_post_ra>
// kernel: net_forward.2
= control target key start
LH: loop header
LB: loop body
LE: loop exit
PB: predicated region body
PF: predicated region fallthrough
CT: control target
= control target key end

     0   :  { %s8336_s6 = smov 1   ;;  %s8337_s10 = smov 2   ;;  %s9867_s0 = inlined_call_operand.smem [shape: u32[33], index: -1, kind: input, shape index: {}] }
   0x1   :  { %s8413_s5 = sld [smem:[%s9867_s0]]   ;;  %s8338_s14 = smov 3  }
   0x2   :  { %s8418_s9 = sld [smem:[%s9867_s0 + %s8336_s6]]   ;;  %s8339_s18 = smov 4  }
   0x3   :  { %s8423_s13 = sld [smem:[%s9867_s0 + %s8337_s10]]   ;;  %s8340_s22 = smov 5  }
   0x4   :  { %s8428_s17 = sld [smem:[%s9867_s0 + %s8338_s14]]   ;;  %s8341_s26 = smov 6  }
   0x5   :  { %s8433_s21 = sld [smem:[%s9867_s0 + %s8339_s18]]   ;;  %s8342_s30 = smov 7  }
   0x6   :  { %s8438_s25 = sld [smem:[%s9867_s0 + %s8340_s22]]   ;;  %s8343_s4 = smov 8  }
   0x7   :  { %9925 = sst [smem:[#allocation55_spill]] %s8413_s5  ;;  %s8344_s10 = smov 9  }
   0x8   :  { %9926 = sst [smem:[#allocation56_spill]] %s8418_s9  ;;  %s8345_s15 = smov 10  }
   0x9   :  { %9927 = sst [smem:[#allocation57_spill]] %s8423_s13  ;;  %s8346_s20 = smov 11  }
   0xa   :  { %9928 = sst [smem:[#allocation58_spill]] %s8428_s17  ;;  %s8348_s1 = smov 13  }
   0xb   :  { %9929 = sst [smem:[#allocation59_spill]] %s8433_s21  ;;  %s8349_s7 = smov 14  }
   0xc   :  { %9930 = sst [smem:[#allocation60_spill]] %s8438_s25  ;;  %s8351_s22 = smov 16  }
   0xd   :  { %s8443_s29 = sld [smem:[%s9867_s0 + %s8341_s26]]   ;;  %s8347_s26 = smov 12  }
   0xe   :  { %s8448_s3 = sld [smem:[%s9867_s0 + %s8342_s30]]   ;;  %s8352_s28 = smov 17  }
   0xf   :  { %s8453_s8 = sld [smem:[%s9867_s0 + %s8343_s4]]  }
  0x10   :  { %s8458_s14 = sld [smem:[%s9867_s0 + %s8344_s10]]  }
  0x11   :  { %s8463_s19 = sld [smem:[%s9867_s0 + %s8345_s15]]   ;;  %s8350_s15 = smov 15  }
  0x12   :  { %s8468_s24 = sld [smem:[%s9867_s0 + %s8346_s20]]  }
  0x13   :  { %9931 = sst [smem:[#allocation61_spill]] %s8443_s29 }
  0x14   :  { %9932 = sst [smem:[#allocation62_spill]] %s8448_s3 }
  0x15   :  { %9933 = sst [smem:[#allocation63_spill]] %s8453_s8 }
  0x16   :  { %9934 = sst [smem:[#allocation64_spill]] %s8458_s14 }
  0x17   :  { %s8473_s30 = sld [smem:[%s9867_s0 + %s8347_s26]]  }
  0x18   :  { %9935 = sst [smem:[#allocation65_spill]] %s8468_s24 }
  0x19   :  { %s8478_s6 = sld [smem:[%s9867_s0 + %s8348_s1]]  }
  0x1a   :  { %s8483_s12 = sld [smem:[%s9867_s0 + %s8349_s7]]   ;;  %s8353_s7 = smov 18  }
  0x1b   :  { %s8488_s20 = sld [smem:[%s9867_s0 + %s8350_s15]]   ;;  %s8354_s15 = smov 19  }
  0x1c   :  { %s8493_s27 = sld [smem:[%s9867_s0 + %s8351_s22]]   ;;  %s8355_s22 = smov 20  }
  0x1d   :  { %s8498_s4 = sld [smem:[%s9867_s0 + %s8352_s28]]   ;;  %s8356_s28 = smov 21  }
  0x1e   :  { %s8503_s29 = sld [smem:[%s9867_s0 + %s8353_s7]]   ;;  %s8357_s7 = smov 22  }
  0x1f   :  { %9936 = sst [smem:[#allocation66_spill]] %s8478_s6 }
  0x20   :  { %9937 = sst [smem:[#allocation67_spill]] %s8483_s12 }
  0x21   :  { %9938 = sst [smem:[#allocation68_spill]] %s8488_s20 }
  0x22   :  { %9939 = sst [smem:[#allocation69_spill]] %s8493_s27 }
  0x23   :  { %9940 = sst [smem:[#allocation70_spill]] %s8498_s4 }
  0x24   :  { %9941 = sst [smem:[#allocation71_spill]] %s8503_s29 }
  0x25   :  { %s8508_s21 = sld [smem:[%s9867_s0 + %s8354_s15]]   ;;  %s8358_s15 = smov 23  }
  0x26   :  { %s8513_s3 = sld [smem:[%s9867_s0 + %s8355_s22]]   ;;  %s8359_s22 = smov 24  }
  0x27   :  { %s8518_s25 = sld [smem:[%s9867_s0 + %s8356_s28]]   ;;  %s8360_s28 = smov 25  }
  0x28   :  { %s8523_s17 = sld [smem:[%s9867_s0 + %s8357_s7]]   ;;  %s8361_s7 = smov 26  }
  0x29   :  { %s8528_s13 = sld [smem:[%s9867_s0 + %s8358_s15]]   ;;  %s8362_s15 = smov 27  }
  0x2a   :  { %s8533_s9 = sld [smem:[%s9867_s0 + %s8359_s22]]   ;;  %s8363_s22 = smov 28  }
  0x2b   :  { %9942 = sst [smem:[#allocation72_spill]] %s8508_s21 }
  0x2c   :  { %9943 = sst [smem:[#allocation73_spill]] %s8513_s3 }
  0x2d   :  { %s8538_s5 = sld [smem:[%s9867_s0 + %s8360_s28]]   ;;  %s8364_s28 = smov 29  }
  0x2e   :  { %9944 = sst [smem:[#allocation74_spill]] %s8523_s17 }
  0x2f   :  { %9945 = sst [smem:[#allocation75_spill]] %s8528_s13 }
  0x30   :  { %9946 = sst [smem:[#allocation76_spill]] %s8533_s9 }
  0x31   :  { %s8543_s17 = sld [smem:[%s9867_s0 + %s8361_s7]]   ;;  %s8365_s7 = smov 30  }
  0x32   :  { %s8548_s3 = sld [smem:[%s9867_s0 + %s8362_s15]]   ;;  %s8366_s15 = smov 31  }
  0x33   :  { %9947 = sst [smem:[#allocation77_spill]] %s8538_s5 }
  0x34   :  { %s8553_s9 = sld [smem:[%s9867_s0 + %s8363_s22]]   ;;  %s8367_s22 = smov 32  }
  0x35   :  { %s8558_s29 = sld [smem:[%s9867_s0 + %s8364_s28]]  }
  0x36   :  { %s8568_s27 = sld [smem:[%s9867_s0 + %s8366_s15]]  }
  0x37   :  { %9948 = sst [smem:[#allocation78_spill]] %s8543_s17 }
  0x38   :  { %9949 = sst [smem:[#allocation79_spill]] %s8548_s3 }
  0x39   :  { %s8563_s17 = sld [smem:[%s9867_s0 + %s8365_s7]]  }
  0x3a   :  { %9950 = sst [smem:[#allocation80_spill]] %s8553_s9 }
  0x3b   :  { %9951 = sst [smem:[#allocation81_spill]] %s8558_s29 }
  0x3c   :  { %9953 = sst [smem:[#allocation83_spill]] %s8568_s27 }
  0x3d   :  { %s8573_s9 = sld [smem:[%s9867_s0 + %s8367_s22]]  }
  0x3f   :  { %9952 = sst [smem:[#allocation82_spill]] %s8563_s17 }
  0x43   :  { %9954 = sst [smem:[#allocation84_spill]] %s8573_s9 }
  0x44   :  { %71 = vsyncpa [#allocation6], 0 }
  0x45   :  { %73 = vsyncpa [#allocation6 + $0x1], 0 }
  0x46   :  { %74 = vsyncpa [#allocation9], 0 }
  0x47   :  { %76 = vsyncpa [#allocation9 + $0x1], 0 }
  0x48   :  { %77 = vsyncpa [#allocation12], 0 }
  0x49   :  { %79 = vsyncpa [#allocation12 + $0x1], 0 }
  0x4a   :  { %80 = vsyncpa [#allocation15], 0 }
  0x4b   :  { %82 = vsyncpa [#allocation15 + $0x1], 0 }
  0x4c   :  { %83 = vsyncpa [#allocation18], 0 }
  0x4d   :  { %85 = vsyncpa [#allocation18 + $0x1], 0 }
  0x4e   :  { %86 = vsyncpa [#allocation21], 0 }
  0x4f   :  { %88 = vsyncpa [#allocation21 + $0x1], 0 }
  0x50   :  { %89 = vsyncpa [#allocation24], 0 }
  0x51   :  { %91 = vsyncpa [#allocation24 + $0x1], 0 }
  0x52   :  { %92 = vsyncpa [#allocation27], 0 }
  0x53   :  { %94 = vsyncpa [#allocation27 + $0x1], 0 }
  0x54   :  { %95 = vsyncpa [#allocation30], 0 }
  0x55   :  { %97 = vsyncpa [#allocation30 + $0x1], 0 }
  0x56   :  { %98 = vsyncpa [#allocation33], 0 }
  0x57   :  { %100 = vsyncpa [#allocation33 + $0x1], 0 }
  0x58   :  { %101 = vsyncpa [#allocation36], 0 }
  0x59   :  { %103 = vsyncpa [#allocation36 + $0x1], 0 }
  0x5a   :  { %104 = vsyncpa [#allocation39], 0 }
  0x5b   :  { %105 = vsyncpa [#allocation7], 0  ;;  %s8575_s0 = smov 0   ;;  %s8577_s28 = smov 0  }
  0x5c   :  { %s8579_s1 = smov 0   ;;  %s8581_s2 = smov 0  }
  0x5d LB: > { %s9955_s13 = sld [smem:[#allocation75_spill]]  ;;  %s9957_s8 = sld [smem:[#allocation63_spill]]  ;;  %s8322_s0 = sphi %s8575_s0, %s10035_s0   ;;  %s8334_s2 = sphi %s8581_s2, %s10032_s2   ;;  %s8330_s1 = sphi %s8579_s1, %s10034_s1   ;;  %s8326_s28 = sphi %s8577_s28, %s10036_s28  }
  0x5e   : > { %s9956_s12 = sld [smem:[#allocation67_spill]]  ;;  %s9958_s5 = sld [smem:[#allocation77_spill]] }
  0x5f   : > { %s9959_s3 = sld [smem:[#allocation79_spill]]  ;;  %s9960_s21 = sld [smem:[#allocation72_spill]] }
  0x60   : > { %s9961_s24 = sld [smem:[#allocation65_spill]]  ;;  %s9962_s4 = sld [smem:[#allocation70_spill]] }
  0x61   : > { %s9963_s20 = sld [smem:[#allocation68_spill]]  ;;  %s9964_s6 = sld [smem:[#allocation66_spill]] }
  0x62   : > { %s9965_s14 = sld [smem:[#allocation64_spill]]  ;;  %s9966_s29 = sld [smem:[#allocation81_spill]] }
  0x63   : > { %s9967_s17 = sld [smem:[#allocation82_spill]]  ;;  %9968 = sst [smem:[#allocation85_spill]] %s8330_s1 }
  0x64   : > { %s8594_s7 = sadd.s32 4294967295, %s8334_s2   ;;  %s8597_s10 = sadd.s32 1, %s8334_s2  }
  0x65   : > { %9969 = sst [smem:[#allocation86_spill]] %s8594_s7  ;;  %s283_s11 = ssub.s32 %s8334_s2, %s8597_s10 }
  0x66   : > { %9970 = sst [smem:[#allocation87_spill]] %s8597_s10  ;;  %s286_s15 = sadd.s32 1, %s8330_s1 }
  0x67   : > { %p284_p0 = scmp.eq.s32.totalorder %s283_s11, 0  ;;  %p293_p1 = scmp.ne.s32.totalorder %s8330_s1, %s8326_s28 }
  0x68   : > { %p294_p2 = scmp.eq.s32.totalorder %s8334_s2, 0  ;;  %p299_p3 = scmp.ne.s32.totalorder %s8326_s28, %s8322_s0 }
  0x69   : > { %s8607_s16 = scalar_select %p284_p0, %s8330_s1, %s286_s15  }
  0x6a   : > { %p8609_p4 = por %p294_p2, %p293_p1  ;;  %p9878_p5 = scmp.eq.s32.totalorder %s8594_s7, 0 }
  0x6b   : > { %9971 = sst [smem:[#allocation88_spill]] %s8607_s16  ;;  %p6142_p6 = scmp.ge.s32.totalorder %s8334_s2, 1 }
  0x6c   : > { %s9972_s18 = scalar_select %p8609_p4, 1, 0 }
  0x6d   : > { %p914_p7 = scmp.lt.s32.totalorder %s8334_s2, 7  ;;  %p8618_p8 = por %p9878_p5, %p299_p3 }
  0x6e   : > { %s8368_s26 = smov [#allocation38]   ;;  %s8369_s15 = smov [#allocation40]  }
  0x6f   : > { %s9973_s22 = scalar_select %p8618_p8, 1, 0 }
  0x70   : > { %p8623_p10 = pnand %p6142_p6, %p914_p7  ;;  %s950_s0 = sshll.u32 %s8368_s26, 4  ;;  %s951_s0 = int_to_ptr.vmem [resolvable:$true] %s950_s0 }
  0x71   : > { %9974 = sst [smem:[#allocation89_spill]] %s9973_s22  ;;  %s964_s16 = sshll.u32 %s8369_s15, 4  ;;  %s8635_s16 = int_to_ptr.vmem [resolvable:$true] %s964_s16 }
  0x72   : > { %s9975_s23 = scalar_select %p8623_p10, 1, 0 }
  0x73   : > { %p6890_p11 = pneg %p8623_p10  ;;  %s7582_s10 = scalar_lea.hbm %s9966_s29, 8192 }
  0x74   : > { %p7583_p13 = scmp.ne.s32.totalorder %s9966_s29, %s7582_s10  ;;  %p7589_p3 = scmp.lt.u32.totalorder %s7582_s10, %s9966_s29 }
  0x75   : > { %p8631_p12 = pnand %p6890_p11, %p9878_p5 }
  0x77   : > { %p7584_p0 = pneg %p8631_p12 }
  0x79   : > { %p7585_p1 = pnand %p7584_p0, %p7583_p13 }
  0x7b   : > { %p7586_p2 = pneg %p7585_p1 }
  0x7d   : > { %p7591_p6 = pnand %p7589_p3, %p7586_p2 }
  0x7f   : > { %7594 = shalt.err (!%p7591_p6)
}
  0x80   : > { %s7595_s26 = scalar_lea.vmem %s951_s0, 8192  ;;  %p7603_p5 = scmp.lt.s32.totalorder %s951_s0, %s951_s0 }
  0x81   : > { %p7596_p7 = scmp.ne.s32.totalorder %s951_s0, %s7595_s26  ;;  %p7604_p8 = scmp.lt.s32.totalorder %s7595_s26, %s7595_s26 }
  0x83   : > { %p7598_p11 = pnand %p7596_p7, %p7584_p0  ;;  %p7605_p10 = por %p7604_p8, %p7603_p5 }
  0x85   : > { %p7599_p9 = pneg %p7598_p11 }
  0x87   : > { %p7606_p4 = pnand %p7605_p10, %p7599_p9 }
  0x89   : > { %7609 = shalt.err (!%p7606_p4)
}
  0x8a   : > { %s8370_s15 = smov 256   ;;  %s8371_s10 = smov 16  }
  0x8b   : > { %6893 = dma.hbm_to_vmem [thread:$0]  (!%p8631_p12), %s9966_s29, 8192, %s951_s0, [#allocation39], %s8370_s15, %s8370_s15, %s8371_s10  }
  0x8c   : > { %s7610_s27 = scalar_lea.hbm %s9967_s17, 64 }
  0x8d   : > { %p7611_p13 = scmp.ne.s32.totalorder %s9967_s17, %s7610_s27  ;;  %p7617_p3 = scmp.lt.u32.totalorder %s7610_s27, %s9967_s17 }
  0x8f   : > { %p7613_p1 = pnand %p7611_p13, %p7584_p0 }
  0x91   : > { %p7614_p2 = pneg %p7613_p1 }
  0x93   : > { %p7619_p5 = pnand %p7617_p3, %p7614_p2 }
  0x95   : > { %7622 = shalt.err (!%p7619_p5)
}
  0x96   : > { %s7623_s26 = scalar_lea.vmem %s8635_s16, 64  ;;  %p7631_p10 = scmp.lt.s32.totalorder %s8635_s16, %s8635_s16 }
  0x97   : > { %p7624_p4 = scmp.ne.s32.totalorder %s8635_s16, %s7623_s26  ;;  %p7632_p6 = scmp.lt.s32.totalorder %s7623_s26, %s7623_s26 }
  0x99   : > { %p7626_p8 = pnand %p7624_p4, %p7584_p0  ;;  %p7633_p7 = por %p7632_p6, %p7631_p10 }
  0x9b   : > { %p7627_p9 = pneg %p7626_p8 }
  0x9d   : > { %p7634_p11 = pnand %p7633_p7, %p7627_p9 }
  0x9f   : > { %7637 = shalt.err (!%p7634_p11)
}
  0xa0   : > { %6896 = dma.hbm_to_vmem [thread:$0]  (!%p8631_p12), %s9967_s17, 64, %s8635_s16, [#allocation39]  }
  0xa1   : > { %p6145_p13 = scmp.ge.s32.totalorder %s8334_s2, 6 }
  0xa2   : > { %s8670_s27 = sand.u32 (!%p6145_p13), 1, %s8330_s1   ;;  %s9887_s0 = sshll.u32 (!%p6145_p13), %s8334_s2, 10 }
  0xa3   : > { %971 = sbr.rel (%p6145_p13) target bundleno = 680 (0x2a8), region = 56  ;;  %s9886_s11 = sshll.u32 (!%p6145_p13), %s8670_s27, 6 }
  0xa4   : > { %s8675_s15 = sand.u32 (!%p6145_p13), 1, %s8334_s2   ;;  %s8680_s16 = scalar_lea.hbm (!%p6145_p13), %s9965_s14, %s9887_s0 }
  0xa5   : > { %s1000_s10 = scalar_lea.vmem (!%p6145_p13), [#allocation8], %s9886_s11  ;;  %s7638_s29 = scalar_lea.hbm (!%p6145_p13), %s8680_s16, 1024 }
  0xa6   : > { %s1007_s26 = sshll.u32 (!%p6145_p13), %s1000_s10, 4  ;;  %p7639_p12 = scmp.ne.s32.totalorder (!%p6145_p13), %s8680_s16, %s7638_s29  ;;  %s8684_s26 = int_to_ptr.vmem [resolvable:$true] %s1007_s26 }
  0xa7   : > { %p9977_p0 = scmp.ne.s32.totalorder (!%p6145_p13), %s9972_s18, 0  ;;  %s7642_s1 = scalar_lea.hbm (!%p6145_p13), %s9965_s14, 6144 }
  0xa8   : > { %p7643_p3 = scmp.lt.u32.totalorder (!%p6145_p13), %s8680_s16, %s9965_s14  ;;  %p7644_p5 = scmp.lt.u32.totalorder (!%p6145_p13), %s7642_s1, %s7638_s29 }
  0xa9   : > { %p7640_p1 = pnand (!%p6145_p13), %p7639_p12, %p9977_p0  ;;  %p7646_p8 = scmp.lt.u32.totalorder (!%p6145_p13), %s7638_s29, %s8680_s16 }
  0xaa   : > { %p7645_p4 = por %p7644_p5, %p7643_p3 }
  0xab   : > { %p7641_p2 = pneg %p7640_p1 }
  0xac   : > { %p7647_p9 = por %p7646_p8, %p7645_p4 }
  0xae   : > { %p7648_p10 = pnand %p7647_p9, %p7641_p2 }
  0xb0   : > { %7651 = shalt.err (!%p7648_p10)
}
  0xb1   : > { %s7652_s10 = scalar_lea.vmem %s8684_s26, 1024  ;;  %s8372_s11 = smov [#allocation8]  }
  0xb2   : > { %p7653_p6 = scmp.ne.s32.totalorder %s8684_s26, %s7652_s10  ;;  %s7656_s0 = sshll.u32 %s8372_s11, 4  ;;  %s7657_s0 = int_to_ptr.vmem [resolvable:$false] %s7656_s0 }
  0xb3   : > { %s7658_s17 = scalar_lea.vmem %s7657_s0, 2048  ;;  %p7659_p13 = scmp.lt.s32.totalorder %s8684_s26, %s7657_s0 }
  0xb4   : > { %p7654_p7 = pnand %p7653_p6, %p9977_p0  ;;  %p7660_p12 = scmp.lt.s32.totalorder %s7658_s17, %s7652_s10 }
  0xb6   : > { %p7655_p11 = pneg %p7654_p7  ;;  %p7661_p1 = por %p7660_p12, %p7659_p13 }
  0xb8   : > { %p7662_p3 = pnand %p7661_p1, %p7655_p11 }
  0xba   : > { %7665 = shalt.err (!%p7662_p3)
}
  0xbb   : > { %s9894_s29 = smov 64   ;;  %s9896_s1 = smov 4  }
  0xbc   : > { %s9978_s17 = scalar_lea.sflag [#allocation9], %s8675_s15  ;;  %s9900_s0 = sshll.u32 %s8334_s2, 4 }
  0xbd   : > { %6841 = dma.hbm_to_vmem [thread:$0]  (%p9977_p0), %s8680_s16, 1024, %s8684_s26, %s9978_s17, %s9894_s29, %s9894_s29, %s9896_s1  }
  0xbe   : > { %s8713_s11 = scalar_lea.hbm %s9961_s24, %s9900_s0  ;;  %s1041_s10 = scalar_lea.vmem [#allocation11], %s8670_s27 }
  0xbf   : > { %s1048_s14 = sshll.u32 %s1041_s10, 4  ;;  %s9898_s9 = scalar_lea.sflag [#allocation12], %s8675_s15  ;;  %s1049_s14 = int_to_ptr.vmem [resolvable:$true] %s1048_s14 }
  0xc0   : > { %s7666_s7 = scalar_lea.hbm %s8713_s11, 16  ;;  %s7670_s22 = scalar_lea.hbm %s9961_s24, 96 }
  0xc1   : > { %p7667_p2 = scmp.ne.s32.totalorder %s8713_s11, %s7666_s7  ;;  %p7671_p8 = scmp.lt.u32.totalorder %s8713_s11, %s9961_s24 }
  0xc2   : > { %p7672_p9 = scmp.lt.u32.totalorder %s7670_s22, %s7666_s7  ;;  %p7674_p6 = scmp.lt.u32.totalorder %s7666_s7, %s8713_s11 }
  0xc3   : > { %p7668_p5 = pnand %p7667_p2, %p9977_p0 }
  0xc4   : > { %p7673_p10 = por %p7672_p9, %p7671_p8 }
  0xc5   : > { %p7669_p4 = pneg %p7668_p5 }
  0xc6   : > { %p7675_p7 = por %p7674_p6, %p7673_p10 }
  0xc8   : > { %p7676_p11 = pnand %p7675_p7, %p7669_p4 }
  0xca   : > { %7679 = shalt.err (!%p7676_p11)
}
  0xcb   : > { %s7680_s16 = scalar_lea.vmem %s1049_s14, 16  ;;  %s8375_s26 = smov [#allocation11]  }
  0xcc   : > { %p7681_p13 = scmp.ne.s32.totalorder %s1049_s14, %s7680_s16  ;;  %s7684_s17 = sshll.u32 %s8375_s26, 4  ;;  %s7685_s17 = int_to_ptr.vmem [resolvable:$false] %s7684_s17 }
  0xcd   : > { %s7686_s10 = scalar_lea.vmem %s7685_s17, 32  ;;  %p7687_p3 = scmp.lt.s32.totalorder %s1049_s14, %s7685_s17 }
  0xce   : > { %p7682_p12 = pnand %p7681_p13, %p9977_p0  ;;  %p7688_p2 = scmp.lt.s32.totalorder %s7686_s10, %s7680_s16 }
  0xd0   : > { %p7683_p1 = pneg %p7682_p12  ;;  %p7689_p5 = por %p7688_p2, %p7687_p3 }
  0xd2   : > { %p7690_p8 = pnand %p7689_p5, %p7683_p1 }
  0xd4   : > { %7693 = shalt.err (!%p7690_p8)
}
  0xd5   : > { %6843 = dma.hbm_to_vmem [thread:$0]  (%p9977_p0), %s8713_s11, 16, %s1049_s14, %s9898_s9  }
  0xd6   : > { %s6159_s7 = sshll.u32 %s8670_s27, 2  ;;  %s6665_s22 = sshll.u32 %s8334_s2, 6 }
  0xd7   : > { %s8735_s26 = scalar_lea.hbm %s9964_s6, %s6665_s22  ;;  %s1080_s16 = scalar_lea.vmem [#allocation14], %s6159_s7 }
  0xd8   : > { %s1088_s17 = sshll.u32 %s1080_s16, 4  ;;  %s9899_s10 = scalar_lea.sflag [#allocation15], %s8675_s15  ;;  %s1089_s17 = int_to_ptr.vmem [resolvable:$true] %s1088_s17 }
  0xd9   : > { %s7694_s29 = scalar_lea.hbm %s8735_s26, 64  ;;  %s7698_s1 = scalar_lea.hbm %s9964_s6, 384 }
  0xda   : > { %p7695_p4 = scmp.ne.s32.totalorder %s8735_s26, %s7694_s29  ;;  %p7699_p6 = scmp.lt.u32.totalorder %s8735_s26, %s9964_s6 }
  0xdb   : > { %p7700_p7 = scmp.lt.u32.totalorder %s7698_s1, %s7694_s29  ;;  %p7702_p13 = scmp.lt.u32.totalorder %s7694_s29, %s8735_s26 }
  0xdc   : > { %p7696_p9 = pnand %p7695_p4, %p9977_p0 }
  0xdd   : > { %p7701_p11 = por %p7700_p7, %p7699_p6 }
  0xde   : > { %p7697_p10 = pneg %p7696_p9 }
  0xdf   : > { %p7703_p12 = por %p7702_p13, %p7701_p11 }
  0xe1   : > { %p7704_p1 = pnand %p7703_p12, %p7697_p10 }
  0xe3   : > { %7707 = shalt.err (!%p7704_p1)
}
  0xe4   : > { %s7708_s14 = scalar_lea.vmem %s1089_s17, 64  ;;  %s8376_s11 = smov [#allocation14]  }
  0xe5   : > { %p7709_p3 = scmp.ne.s32.totalorder %s1089_s17, %s7708_s14  ;;  %s7712_s7 = sshll.u32 %s8376_s11, 4  ;;  %s7713_s7 = int_to_ptr.vmem [resolvable:$false] %s7712_s7 }
  0xe6   : > { %s7714_s22 = scalar_lea.vmem %s7713_s7, 128  ;;  %p7715_p8 = scmp.lt.s32.totalorder %s1089_s17, %s7713_s7 }
  0xe7   : > { %p7710_p2 = pnand %p7709_p3, %p9977_p0  ;;  %p7716_p4 = scmp.lt.s32.totalorder %s7714_s22, %s7708_s14 }
  0xe9   : > { %p7711_p5 = pneg %p7710_p2  ;;  %p7717_p9 = por %p7716_p4, %p7715_p8 }
  0xeb   : > { %p7718_p6 = pnand %p7717_p9, %p7711_p5 }
  0xed   : > { %7721 = shalt.err (!%p7718_p6)
}
  0xee   : > { %6845 = dma.hbm_to_vmem [thread:$0]  (%p9977_p0), %s8735_s26, 64, %s1089_s17, %s9899_s10  }
  0xef   : > { %s6165_s29 = sshll.u32 %s8670_s27, 9  ;;  %s6667_s1 = sshll.u32 %s8334_s2, 13 }
  0xf0   : > { %s8756_s16 = scalar_lea.hbm %s9963_s20, %s6667_s1  ;;  %s1120_s14 = scalar_lea.vmem [#allocation17], %s6165_s29 }
  0xf1   : > { %s1127_s11 = sshll.u32 %s1120_s14, 4  ;;  %s8761_s7 = sshll.u32 %s8670_s27, 8  ;;  %s8758_s11 = int_to_ptr.vmem [resolvable:$true] %s1127_s11 }
  0xf2   : > { %s9903_s22 = scalar_lea.sflag [#allocation18], %s8675_s15  ;;  %s7722_s9 = scalar_lea.hbm %s8756_s16, 8192 }
  0xf3   : > { %p7723_p10 = scmp.ne.s32.totalorder %s8756_s16, %s7722_s9  ;;  %s7726_s26 = scalar_lea.hbm %s9963_s20, 49152 }
  0xf4   : > { %p7727_p13 = scmp.lt.u32.totalorder %s8756_s16, %s9963_s20  ;;  %p7728_p12 = scmp.lt.u32.totalorder %s7726_s26, %s7722_s9 }
  0xf5   : > { %p7724_p7 = pnand %p7723_p10, %p9977_p0  ;;  %p7730_p3 = scmp.lt.u32.totalorder %s7722_s9, %s8756_s16 }
  0xf6   : > { %p7729_p1 = por %p7728_p12, %p7727_p13 }
  0xf7   : > { %p7725_p11 = pneg %p7724_p7 }
  0xf8   : > { %p7731_p2 = por %p7730_p3, %p7729_p1 }
  0xfa   : > { %p7732_p5 = pnand %p7731_p2, %p7725_p11 }
  0xfc   : > { %7735 = shalt.err (!%p7732_p5)
}
  0xfd   : > { %s7736_s17 = scalar_lea.vmem %s8758_s11, 8192  ;;  %s8377_s29 = smov [#allocation17]  }
  0xfe   : > { %p7737_p8 = scmp.ne.s32.totalorder %s8758_s11, %s7736_s17  ;;  %s7740_s1 = sshll.u32 %s8377_s29, 4  ;;  %s7741_s1 = int_to_ptr.vmem [resolvable:$false] %s7740_s1 }
  0xff   : > { %s7742_s14 = scalar_lea.vmem %s7741_s1, 16384  ;;  %p7743_p6 = scmp.lt.s32.totalorder %s8758_s11, %s7741_s1 }
 0x100   : > { %p7738_p4 = pnand %p7737_p8, %p9977_p0  ;;  %p7744_p10 = scmp.lt.s32.totalorder %s7742_s14, %s7736_s17 }
 0x102   : > { %p7739_p9 = pneg %p7738_p4  ;;  %p7745_p7 = por %p7744_p10, %p7743_p6 }
 0x104   : > { %p7746_p13 = pnand %p7745_p7, %p7739_p9 }
 0x106   : > { %7749 = shalt.err (!%p7746_p13)
}
 0x107   : > { %s9908_s9 = smov 128   ;;  %s9916_s26 = smov 8  }
 0x108   : > { %6847 = dma.hbm_to_vmem [thread:$0]  (%p9977_p0), %s8756_s16, 8192, %s8758_s11, %s9903_s22, %s9908_s9, %s9908_s9, %s9916_s26  }
 0x109   : > { %s8787_s17 = sshll.u32 %s8334_s2, 12  ;;  %s1160_s1 = scalar_lea.vmem [#allocation20], %s8761_s7 }
 0x10a   : > { %s8791_s29 = scalar_lea.hbm %s9962_s4, %s8787_s17  ;;  %s1167_s14 = sshll.u32 %s1160_s1, 4  ;;  %s8797_s14 = int_to_ptr.vmem [resolvable:$true] %s1167_s14 }
 0x10b   : > { %s8795_s10 = sshll.u32 %s8670_s27, 7  ;;  %s8800_s0 = sshll.u32 %s8334_s2, 11 }
 0x10c   : > { %s7750_s20 = scalar_lea.hbm %s8791_s29, 4096  ;;  %s7754_s16 = scalar_lea.hbm %s9962_s4, 24576 }
 0x10d   : > { %p7751_p11 = scmp.ne.s32.totalorder %s8791_s29, %s7750_s20  ;;  %p7755_p3 = scmp.lt.u32.totalorder %s8791_s29, %s9962_s4 }
 0x10e   : > { %p7756_p2 = scmp.lt.u32.totalorder %s7754_s16, %s7750_s20  ;;  %p7758_p8 = scmp.lt.u32.totalorder %s7750_s20, %s8791_s29 }
 0x10f   : > { %p7752_p12 = pnand %p7751_p11, %p9977_p0 }
 0x110   : > { %p7757_p5 = por %p7756_p2, %p7755_p3 }
 0x111   : > { %p7753_p1 = pneg %p7752_p12 }
 0x112   : > { %p7759_p4 = por %p7758_p8, %p7757_p5 }
 0x114   : > { %p7760_p9 = pnand %p7759_p4, %p7753_p1 }
 0x116   : > { %7763 = shalt.err (!%p7760_p9)
}
 0x117   : > { %s7764_s11 = scalar_lea.vmem %s8797_s14, 4096  ;;  %s8380_s1 = smov [#allocation20]  }
 0x118   : > { %p7765_p6 = scmp.ne.s32.totalorder %s8797_s14, %s7764_s11  ;;  %s7768_s22 = sshll.u32 %s8380_s1, 4  ;;  %s7769_s22 = int_to_ptr.vmem [resolvable:$false] %s7768_s22 }
 0x119   : > { %s7770_s6 = scalar_lea.vmem %s7769_s22, 8192  ;;  %p7771_p13 = scmp.lt.s32.totalorder %s8797_s14, %s7769_s22 }
 0x11a   : > { %p7766_p10 = pnand %p7765_p6, %p9977_p0  ;;  %p7772_p11 = scmp.lt.s32.totalorder %s7770_s6, %s7764_s11 }
 0x11c   : > { %p7767_p7 = pneg %p7766_p10  ;;  %p7773_p12 = por %p7772_p11, %p7771_p13 }
 0x11e   : > { %p7774_p3 = pnand %p7773_p12, %p7767_p7 }
 0x120   : > { %7777 = shalt.err (!%p7774_p3)
}
 0x121   : > { %s9979_s20 = scalar_lea.sflag [#allocation21], %s8675_s15  ;;  %s8827_s6 = scalar_lea.hbm %s9960_s21, %s8800_s0 }
 0x122   : > { %6849 = dma.hbm_to_vmem [thread:$0]  (%p9977_p0), %s8791_s29, 4096, %s8797_s14, %s9979_s20, %s9908_s9, %s9908_s9, %s9916_s26  }
 0x123   : > { %s1200_s22 = scalar_lea.vmem [#allocation23], %s8795_s10  ;;  %s8833_s11 = sshll.u32 %s8670_s27, 1 }
 0x124   : > { %s1207_s16 = sshll.u32 %s1200_s22, 4  ;;  %s9907_s1 = scalar_lea.sflag [#allocation24], %s8675_s15  ;;  %s8830_s16 = int_to_ptr.vmem [resolvable:$true] %s1207_s16 }
 0x125   : > { %s7778_s4 = scalar_lea.hbm %s8827_s6, 2048  ;;  %s7782_s24 = scalar_lea.hbm %s9960_s21, 12288 }
 0x126   : > { %p7779_p1 = scmp.ne.s32.totalorder %s8827_s6, %s7778_s4  ;;  %p7783_p8 = scmp.lt.u32.totalorder %s8827_s6, %s9960_s21 }
 0x127   : > { %p7784_p4 = scmp.lt.u32.totalorder %s7782_s24, %s7778_s4  ;;  %p7786_p6 = scmp.lt.u32.totalorder %s7778_s4, %s8827_s6 }
 0x128   : > { %p7780_p2 = pnand %p7779_p1, %p9977_p0 }
 0x129   : > { %p7785_p9 = por %p7784_p4, %p7783_p8 }
 0x12a   : > { %p7781_p5 = pneg %p7780_p2 }
 0x12b   : > { %p7787_p10 = por %p7786_p6, %p7785_p9 }
 0x12d   : > { %p7788_p7 = pnand %p7787_p10, %p7781_p5 }
 0x12f   : > { %7791 = shalt.err (!%p7788_p7)
}
 0x130   : > { %s7792_s29 = scalar_lea.vmem %s8830_s16, 2048  ;;  %s8381_s14 = smov [#allocation23]  }
 0x131   : > { %p7793_p13 = scmp.ne.s32.totalorder %s8830_s16, %s7792_s29  ;;  %s7796_s20 = sshll.u32 %s8381_s14, 4  ;;  %s7797_s20 = int_to_ptr.vmem [resolvable:$false] %s7796_s20 }
 0x132   : > { %s7798_s22 = scalar_lea.vmem %s7797_s20, 4096  ;;  %p7799_p3 = scmp.lt.s32.totalorder %s8830_s16, %s7797_s20 }
 0x133   : > { %p7794_p11 = pnand %p7793_p13, %p9977_p0  ;;  %p7800_p1 = scmp.lt.s32.totalorder %s7798_s22, %s7792_s29 }
 0x135   : > { %p7795_p12 = pneg %p7794_p11  ;;  %p7801_p2 = por %p7800_p1, %p7799_p3 }
 0x137   : > { %p7802_p8 = pnand %p7801_p2, %p7795_p12 }
 0x139   : > { %7805 = shalt.err (!%p7802_p8)
}
 0x13a   : > { %6851 = dma.hbm_to_vmem [thread:$0]  (%p9977_p0), %s8827_s6, 2048, %s8830_s16, %s9907_s1, %s9908_s9, %s9908_s9, %s9916_s26  }
 0x13b   : > { %s8859_s24 = sshll.u32 %s8334_s2, 5  ;;  %s1242_s29 = scalar_lea.vmem [#allocation26], %s8833_s11 }
 0x13c   : > { %s8863_s4 = scalar_lea.hbm %s8518_s25, %s8859_s24  ;;  %s1250_s14 = sshll.u32 %s1242_s29, 4  ;;  %s1251_s14 = int_to_ptr.vmem [resolvable:$true] %s1250_s14 }
 0x13d   : > { %s9911_s20 = scalar_lea.sflag [#allocation27], %s8675_s15  ;;  %s7806_s22 = scalar_lea.hbm %s8863_s4, 32 }
 0x13e   : > { %p7807_p5 = scmp.ne.s32.totalorder %s8863_s4, %s7806_s22  ;;  %s7810_s21 = scalar_lea.hbm %s8518_s25, 192 }
 0x13f   : > { %p7811_p6 = scmp.lt.u32.totalorder %s8863_s4, %s8518_s25  ;;  %p7812_p10 = scmp.lt.u32.totalorder %s7810_s21, %s7806_s22 }
 0x140   : > { %p7808_p4 = pnand %p7807_p5, %p9977_p0  ;;  %p7814_p13 = scmp.lt.u32.totalorder %s7806_s22, %s8863_s4 }
 0x141   : > { %p7813_p7 = por %p7812_p10, %p7811_p6 }
 0x142   : > { %p7809_p9 = pneg %p7808_p4 }
 0x143   : > { %p7815_p11 = por %p7814_p13, %p7813_p7 }
 0x145   : > { %p7816_p12 = pnand %p7815_p11, %p7809_p9 }
 0x147   : > { %7819 = shalt.err (!%p7816_p12)
}
 0x148   : > { %s7820_s6 = scalar_lea.vmem %s1251_s14, 32  ;;  %s8382_s16 = smov [#allocation26]  }
 0x149   : > { %p7821_p3 = scmp.ne.s32.totalorder %s1251_s14, %s7820_s6  ;;  %s7824_s29 = sshll.u32 %s8382_s16, 4  ;;  %s7825_s29 = int_to_ptr.vmem [resolvable:$false] %s7824_s29 }
 0x14a   : > { %s7826_s1 = scalar_lea.vmem %s7825_s29, 64  ;;  %p7827_p8 = scmp.lt.s32.totalorder %s1251_s14, %s7825_s29 }
 0x14b   : > { %p7822_p1 = pnand %p7821_p3, %p9977_p0  ;;  %p7828_p5 = scmp.lt.s32.totalorder %s7826_s1, %s7820_s6 }
 0x14d   : > { %p7823_p2 = pneg %p7822_p1  ;;  %p7829_p4 = por %p7828_p5, %p7827_p8 }
 0x14f   : > { %p7830_p6 = pnand %p7829_p4, %p7823_p2 }
 0x151   : > { %7833 = shalt.err (!%p7830_p6)
}
 0x152   : > { %6853 = dma.hbm_to_vmem [thread:$0]  (%p9977_p0), %s8863_s4, 32, %s1251_s14, %s9911_s20  }
 0x153   : > { %s9980_s21 = sshll.u32 %s8334_s2, 4  ;;  %s1281_s1 = scalar_lea.vmem [#allocation29], %s8670_s27 }
 0x154   : > { %s8885_s22 = scalar_lea.hbm %s9955_s13, %s9980_s21  ;;  %s1288_s6 = sshll.u32 %s1281_s1, 4  ;;  %s1289_s6 = int_to_ptr.vmem [resolvable:$true] %s1288_s6 }
 0x155   : > { %s9910_s16 = scalar_lea.sflag [#allocation30], %s8675_s15  ;;  %s7834_s29 = scalar_lea.hbm %s8885_s22, 16 }
 0x156   : > { %p7835_p9 = scmp.ne.s32.totalorder %s8885_s22, %s7834_s29  ;;  %s7838_s9 = scalar_lea.hbm %s9955_s13, 96 }
 0x157   : > { %p7839_p13 = scmp.lt.u32.totalorder %s8885_s22, %s9955_s13  ;;  %p7840_p11 = scmp.lt.u32.totalorder %s7838_s9, %s7834_s29 }
 0x158   : > { %p7836_p10 = pnand %p7835_p9, %p9977_p0  ;;  %p7842_p3 = scmp.lt.u32.totalorder %s7834_s29, %s8885_s22 }
 0x159   : > { %p7841_p12 = por %p7840_p11, %p7839_p13 }
 0x15a   : > { %p7837_p7 = pneg %p7836_p10 }
 0x15b   : > { %p7843_p1 = por %p7842_p3, %p7841_p12 }
 0x15d   : > { %p7844_p2 = pnand %p7843_p1, %p7837_p7 }
 0x15f   : > { %7847 = shalt.err (!%p7844_p2)
}
 0x160   : > { %s7848_s4 = scalar_lea.vmem %s1289_s6, 16  ;;  %s8383_s14 = smov [#allocation29]  }
 0x161   : > { %p7849_p8 = scmp.ne.s32.totalorder %s1289_s6, %s7848_s4  ;;  %s7852_s21 = sshll.u32 %s8383_s14, 4  ;;  %s7853_s21 = int_to_ptr.vmem [resolvable:$false] %s7852_s21 }
 0x162   : > { %s7854_s1 = scalar_lea.vmem %s7853_s21, 32  ;;  %p7855_p6 = scmp.lt.s32.totalorder %s1289_s6, %s7853_s21 }
 0x163   : > { %p7850_p5 = pnand %p7849_p8, %p9977_p0  ;;  %p7856_p9 = scmp.lt.s32.totalorder %s7854_s1, %s7848_s4 }
 0x165   : > { %p7851_p4 = pneg %p7850_p5  ;;  %p7857_p10 = por %p7856_p9, %p7855_p6 }
 0x167   : > { %p7858_p11 = pnand %p7857_p10, %p7851_p4 }
 0x169   : > { %7861 = shalt.err (!%p7858_p11)
}
 0x16a   : > { %6855 = dma.hbm_to_vmem [thread:$0]  (%p9977_p0), %s8885_s22, 16, %s1289_s6, %s9910_s16  }
 0x16b   : > { %s8906_s9 = scalar_lea.hbm %s9958_s5, %s8800_s0  ;;  %s1320_s29 = scalar_lea.vmem [#allocation32], %s8795_s10 }
 0x16c   : > { %s1327_s4 = sshll.u32 %s1320_s29, 4  ;;  %s9912_s14 = scalar_lea.sflag [#allocation33], %s8675_s15  ;;  %s8909_s4 = int_to_ptr.vmem [resolvable:$true] %s1327_s4 }
 0x16d   : > { %s7862_s21 = scalar_lea.hbm %s8906_s9, 2048  ;;  %s7866_s1 = scalar_lea.hbm %s9958_s5, 12288 }
 0x16e   : > { %p7863_p7 = scmp.ne.s32.totalorder %s8906_s9, %s7862_s21  ;;  %p7867_p3 = scmp.lt.u32.totalorder %s8906_s9, %s9958_s5 }
 0x16f   : > { %p7868_p1 = scmp.lt.u32.totalorder %s7866_s1, %s7862_s21  ;;  %p7870_p8 = scmp.lt.u32.totalorder %s7862_s21, %s8906_s9 }
 0x170   : > { %p7864_p13 = pnand %p7863_p7, %p9977_p0 }
 0x171   : > { %p7869_p2 = por %p7868_p1, %p7867_p3 }
 0x172   : > { %p7865_p12 = pneg %p7864_p13 }
 0x173   : > { %p7871_p5 = por %p7870_p8, %p7869_p2 }
 0x175   : > { %p7872_p4 = pnand %p7871_p5, %p7865_p12 }
 0x177   : > { %7875 = shalt.err (!%p7872_p4)
}
 0x178   : > { %s7876_s22 = scalar_lea.vmem %s8909_s4, 2048  ;;  %s8384_s6 = smov [#allocation32]  }
 0x179   : > { %p7877_p6 = scmp.ne.s32.totalorder %s8909_s4, %s7876_s22  ;;  %s7880_s29 = sshll.u32 %s8384_s6, 4  ;;  %s7881_s29 = int_to_ptr.vmem [resolvable:$false] %s7880_s29 }
 0x17a   : > { %s7882_s16 = scalar_lea.vmem %s7881_s29, 4096  ;;  %p7883_p11 = scmp.lt.s32.totalorder %s8909_s4, %s7881_s29 }
 0x17b   : > { %p7878_p9 = pnand %p7877_p6, %p9977_p0  ;;  %p7884_p7 = scmp.lt.s32.totalorder %s7882_s16, %s7876_s22 }
 0x17d   : > { %p7879_p10 = pneg %p7878_p9  ;;  %p7885_p13 = por %p7884_p7, %p7883_p11 }
 0x17f   : > { %p7886_p3 = pnand %p7885_p13, %p7879_p10 }
 0x181   : > { %7889 = shalt.err (!%p7886_p3)
}
 0x182   : > { %s9981_s21 = smov 128   ;;  %s8936_s16 = scalar_lea.hbm %s9959_s3, %s8787_s17 }
 0x183   : > { %6857 = dma.hbm_to_vmem [thread:$0]  (%p9977_p0), %s8906_s9, 2048, %s8909_s4, %s9912_s14, %s9981_s21, %s9981_s21, %s9916_s26  }
 0x184   : > { %s1360_s1 = scalar_lea.vmem [#allocation35], %s8761_s7  ;;  %s9915_s6 = scalar_lea.sflag [#allocation36], %s8675_s15 }
 0x185   : > { %s1367_s22 = sshll.u32 %s1360_s1, 4  ;;  %s7890_s29 = scalar_lea.hbm %s8936_s16, 4096  ;;  %s8939_s22 = int_to_ptr.vmem [resolvable:$true] %s1367_s22 }
 0x186   : > { %p7891_p12 = scmp.ne.s32.totalorder %s8936_s16, %s7890_s29  ;;  %s7894_s20 = scalar_lea.hbm %s9959_s3, 24576 }
 0x187   : > { %p7895_p8 = scmp.lt.u32.totalorder %s8936_s16, %s9959_s3  ;;  %p7896_p5 = scmp.lt.u32.totalorder %s7894_s20, %s7890_s29 }
 0x188   : > { %p7892_p1 = pnand %p7891_p12, %p9977_p0  ;;  %p7898_p6 = scmp.lt.u32.totalorder %s7890_s29, %s8936_s16 }
 0x189   : > { %p7897_p4 = por %p7896_p5, %p7895_p8 }
 0x18a   : > { %p7893_p2 = pneg %p7892_p1 }
 0x18b   : > { %p7899_p9 = por %p7898_p6, %p7897_p4 }
 0x18d   : > { %p7900_p10 = pnand %p7899_p9, %p7893_p2 }
 0x18f   : > { %7903 = shalt.err (!%p7900_p10)
}
 0x190   : > { %s7904_s9 = scalar_lea.vmem %s8939_s22, 4096  ;;  %s8385_s4 = smov [#allocation35]  }
 0x191   : > { %p7905_p11 = scmp.ne.s32.totalorder %s8939_s22, %s7904_s9  ;;  %s7908_s1 = sshll.u32 %s8385_s4, 4  ;;  %s7909_s1 = int_to_ptr.vmem [resolvable:$false] %s7908_s1 }
 0x192   : > { %s7910_s14 = scalar_lea.vmem %s7909_s1, 8192  ;;  %p7911_p3 = scmp.lt.s32.totalorder %s8939_s22, %s7909_s1 }
 0x193   : > { %p7906_p7 = pnand %p7905_p11, %p9977_p0  ;;  %p7912_p12 = scmp.lt.s32.totalorder %s7910_s14, %s7904_s9 }
 0x195   : > { %p7907_p13 = pneg %p7906_p7  ;;  %p7913_p1 = por %p7912_p12, %p7911_p3 }
 0x197   : > { %p7914_p8 = pnand %p7913_p1, %p7907_p13 }
 0x199   : > { %7917 = shalt.err (!%p7914_p8)
}
 0x19a   : > { %6859 = dma.hbm_to_vmem [thread:$0]  (%p9977_p0), %s8936_s16, 4096, %s8939_s22, %s9915_s6, %s9981_s21, %s9981_s21, %s9916_s26  }
 0x19b   : > { %s9982_s20 = sshll.u32 %s8334_s2, 10  ;;  %s9983_s29 = sshll.u32 %s8670_s27, 6 }
 0x19c   : > { %s8967_s14 = scalar_lea.hbm %s9957_s8, %s9982_s20  ;;  %s979_s9 = scalar_lea.vmem [#allocation5], %s9983_s29 }
 0x19d   : > { %s986_s4 = sshll.u32 %s979_s9, 4  ;;  %s8975_s1 = scalar_lea.hbm %s8463_s19, %s8787_s17  ;;  %s8971_s4 = int_to_ptr.vmem [resolvable:$true] %s986_s4 }
 0x19e   : > { %s976_s3 = scalar_lea.sflag [#allocation6], %s8670_s27  ;;  %s7918_s5 = scalar_lea.hbm %s8967_s14, 1024 }
 0x19f   : > { %p7919_p2 = scmp.ne.s32.totalorder %s8967_s14, %s7918_s5  ;;  %s7922_s2 = scalar_lea.hbm %s9957_s8, 6144 }
 0x1a0   : > { %p7923_p6 = scmp.lt.u32.totalorder %s8967_s14, %s9957_s8  ;;  %p7924_p9 = scmp.lt.u32.totalorder %s7922_s2, %s7918_s5 }
 0x1a1   : > { %p7920_p5 = pnand %p7919_p2, %p9977_p0  ;;  %p7926_p11 = scmp.lt.u32.totalorder %s7918_s5, %s8967_s14 }
 0x1a2   : > { %p7925_p10 = por %p7924_p9, %p7923_p6 }
 0x1a3   : > { %p7921_p4 = pneg %p7920_p5 }
 0x1a4   : > { %p7927_p7 = por %p7926_p11, %p7925_p10 }
 0x1a6   : > { %p7928_p13 = pnand %p7927_p7, %p7921_p4 }
 0x1a8   : > { %7931 = shalt.err (!%p7928_p13)
}
 0x1a9   : > { %s7932_s16 = scalar_lea.vmem %s8971_s4, 1024  ;;  %s8386_s22 = smov [#allocation5]  }
 0x1aa   : > { %p7933_p3 = scmp.ne.s32.totalorder %s8971_s4, %s7932_s16  ;;  %s7936_s20 = sshll.u32 %s8386_s22, 4  ;;  %s7937_s20 = int_to_ptr.vmem [resolvable:$false] %s7936_s20 }
 0x1ab   : > { %s7938_s29 = scalar_lea.vmem %s7937_s20, 2048  ;;  %p7939_p8 = scmp.lt.s32.totalorder %s8971_s4, %s7937_s20 }
 0x1ac   : > { %p7934_p12 = pnand %p7933_p3, %p9977_p0  ;;  %p7940_p2 = scmp.lt.s32.totalorder %s7938_s29, %s7932_s16 }
 0x1ae   : > { %p7935_p1 = pneg %p7934_p12  ;;  %p7941_p5 = por %p7940_p2, %p7939_p8 }
 0x1b0   : > { %p7942_p6 = pnand %p7941_p5, %p7935_p1 }
 0x1b2   : > { %7945 = shalt.err (!%p7942_p6)
}
 0x1b3   : > { %s9984_s5 = smov 4   ;;  %s9985_s9 = smov 64  }
 0x1b4   : > { %6840 = dma.hbm_to_vmem [thread:$0]  (%p9977_p0), %s8967_s14, 1024, %s8971_s4, %s976_s3, %s9985_s9, %s9985_s9, %s9984_s5  }
 0x1b5   : > { %s1021_s2 = scalar_lea.vmem [#allocation10], %s8761_s7  ;;  %s9005_s22 = scalar_lea.hbm %s8473_s30, %s8787_s17 }
 0x1b6   : > { %s1028_s16 = sshll.u32 %s1021_s2, 4  ;;  %s7946_s27 = scalar_lea.hbm %s8975_s1, 4096  ;;  %s9001_s16 = int_to_ptr.vmem [resolvable:$true] %s1028_s16 }
 0x1b7   : > { %p7947_p4 = scmp.ne.s32.totalorder %s8975_s1, %s7946_s27  ;;  %s7950_s20 = scalar_lea.hbm %s8463_s19, 24576 }
 0x1b8   : > { %p7951_p11 = scmp.lt.u32.totalorder %s8975_s1, %s8463_s19  ;;  %p7952_p7 = scmp.lt.u32.totalorder %s7950_s20, %s7946_s27 }
 0x1b9   : > { %p7948_p9 = pnand %p7947_p4, %p9977_p0  ;;  %p7954_p3 = scmp.lt.u32.totalorder %s7946_s27, %s8975_s1 }
 0x1ba   : > { %p7953_p13 = por %p7952_p7, %p7951_p11 }
 0x1bb   : > { %p7949_p10 = pneg %p7948_p9 }
 0x1bc   : > { %p7955_p12 = por %p7954_p3, %p7953_p13 }
 0x1be   : > { %p7956_p1 = pnand %p7955_p12, %p7949_p10 }
 0x1c0   : > { %7959 = shalt.err (!%p7956_p1)
}
 0x1c1   : > { %s7960_s3 = scalar_lea.vmem %s9001_s16, 4096  ;;  %s8387_s14 = smov [#allocation10]  }
 0x1c2   : > { %p7961_p8 = scmp.ne.s32.totalorder %s9001_s16, %s7960_s3  ;;  %s7964_s4 = sshll.u32 %s8387_s14, 4  ;;  %s7965_s4 = int_to_ptr.vmem [resolvable:$false] %s7964_s4 }
 0x1c3   : > { %s7966_s29 = scalar_lea.vmem %s7965_s4, 8192  ;;  %p7967_p6 = scmp.lt.s32.totalorder %s9001_s16, %s7965_s4 }
 0x1c4   : > { %p7962_p2 = pnand %p7961_p8, %p9977_p0  ;;  %p7968_p4 = scmp.lt.s32.totalorder %s7966_s29, %s7960_s3 }
 0x1c6   : > { %p7963_p5 = pneg %p7962_p2  ;;  %p7969_p9 = por %p7968_p4, %p7967_p6 }
 0x1c8   : > { %p7970_p11 = pnand %p7969_p9, %p7963_p5 }
 0x1ca   : > { %7973 = shalt.err (!%p7970_p11)
}
 0x1cb   : > { %s9986_s2 = scalar_lea.sflag [#allocation9], %s8675_s15  ;;  %s1059_s27 = scalar_lea.vmem [#allocation13], %s8761_s7 }
 0x1cc   : > { %6842 = dma.hbm_to_vmem [thread:$0]  (%p9977_p0), %s8975_s1, 4096, %s9001_s16, %s9986_s2, %s9985_s9, %s9985_s9, %s9984_s5  }
 0x1cd   : > { %s1066_s20 = sshll.u32 %s1059_s27, 4  ;;  %s7974_s3 = scalar_lea.hbm %s9005_s22, 4096  ;;  %s9030_s20 = int_to_ptr.vmem [resolvable:$true] %s1066_s20 }
 0x1ce   : > { %p7975_p10 = scmp.ne.s32.totalorder %s9005_s22, %s7974_s3  ;;  %s7978_s14 = scalar_lea.hbm %s8473_s30, 24576 }
 0x1cf   : > { %p7979_p3 = scmp.lt.u32.totalorder %s9005_s22, %s8473_s30  ;;  %p7980_p12 = scmp.lt.u32.totalorder %s7978_s14, %s7974_s3 }
 0x1d0   : > { %p7976_p7 = pnand %p7975_p10, %p9977_p0  ;;  %p7982_p8 = scmp.lt.u32.totalorder %s7974_s3, %s9005_s22 }
 0x1d1   : > { %p7981_p1 = por %p7980_p12, %p7979_p3 }
 0x1d2   : > { %p7977_p13 = pneg %p7976_p7 }
 0x1d3   : > { %p7983_p2 = por %p7982_p8, %p7981_p1 }
 0x1d5   : > { %p7984_p5 = pnand %p7983_p2, %p7977_p13 }
 0x1d7   : > { %7987 = shalt.err (!%p7984_p5)
}
 0x1d8   : > { %s7988_s1 = scalar_lea.vmem %s9030_s20, 4096  ;;  %s8388_s16 = smov [#allocation13]  }
 0x1d9   : > { %p7989_p6 = scmp.ne.s32.totalorder %s9030_s20, %s7988_s1  ;;  %s7992_s4 = sshll.u32 %s8388_s16, 4  ;;  %s7993_s4 = int_to_ptr.vmem [resolvable:$false] %s7992_s4 }
 0x1da   : > { %s7994_s29 = scalar_lea.vmem %s7993_s4, 8192  ;;  %p7995_p11 = scmp.lt.s32.totalorder %s9030_s20, %s7993_s4 }
 0x1db   : > { %p7990_p4 = pnand %p7989_p6, %p9977_p0  ;;  %p7996_p10 = scmp.lt.s32.totalorder %s7994_s29, %s7988_s1 }
 0x1dd   : > { %p7991_p9 = pneg %p7990_p4  ;;  %p7997_p7 = por %p7996_p10, %p7995_p11 }
 0x1df   : > { %p7998_p3 = pnand %p7997_p7, %p7991_p9 }
 0x1e1   : > { %8001 = shalt.err (!%p7998_p3)
}
 0x1e2   : > { %s8389_s2 = smov 256   ;;  %s9987_s27 = sld [smem:[#allocation69_spill]] }
 0x1e3   : > { %s8390_s3 = smov 16   ;;  %s9988_s14 = scalar_lea.sflag [#allocation12], %s8675_s15 }
 0x1e4   : > { %6844 = dma.hbm_to_vmem [thread:$0]  (%p9977_p0), %s9005_s22, 4096, %s9030_s20, %s9988_s14, %s8389_s2, %s8389_s2, %s8390_s3  }
 0x1e5   : > { %s9053_s1 = scalar_lea.hbm %s9956_s12, %s8800_s0  ;;  %s1099_s16 = scalar_lea.vmem [#allocation16], %s8795_s10 }
 0x1e6   : > { %s1106_s4 = sshll.u32 %s1099_s16, 4  ;;  %s8002_s6 = scalar_lea.hbm %s9053_s1, 2048  ;;  %s9056_s4 = int_to_ptr.vmem [resolvable:$true] %s1106_s4 }
 0x1e7   : > { %p8003_p13 = scmp.ne.s32.totalorder %s9053_s1, %s8002_s6  ;;  %s8006_s26 = scalar_lea.hbm %s9956_s12, 12288 }
 0x1e8   : > { %s9060_s29 = scalar_lea.hbm %s9987_s27, %s8859_s24  ;;  %p8007_p8 = scmp.lt.u32.totalorder %s9053_s1, %s9956_s12 }
 0x1e9   : > { %p8004_p12 = pnand %p8003_p13, %p9977_p0  ;;  %p8008_p2 = scmp.lt.u32.totalorder %s8006_s26, %s8002_s6 }
 0x1ea   : > { %p8010_p6 = scmp.lt.u32.totalorder %s8002_s6, %s9053_s1 }
 0x1eb   : > { %p8005_p1 = pneg %p8004_p12  ;;  %p8009_p5 = por %p8008_p2, %p8007_p8 }
 0x1ed   : > { %p8011_p4 = por %p8010_p6, %p8009_p5 }
 0x1ef   : > { %p8012_p9 = pnand %p8011_p4, %p8005_p1 }
 0x1f1   : > { %8015 = shalt.err (!%p8012_p9)
}
 0x1f2   : > { %s8016_s22 = scalar_lea.vmem %s9056_s4, 2048  ;;  %s8391_s20 = smov [#allocation16]  }
 0x1f3   : > { %p8017_p11 = scmp.ne.s32.totalorder %s9056_s4, %s8016_s22  ;;  %s8020_s2 = sshll.u32 %s8391_s20, 4  ;;  %s8021_s2 = int_to_ptr.vmem [resolvable:$false] %s8020_s2 }
 0x1f4   : > { %s8022_s3 = scalar_lea.vmem %s8021_s2, 4096  ;;  %p8023_p3 = scmp.lt.s32.totalorder %s9056_s4, %s8021_s2 }
 0x1f5   : > { %p8018_p10 = pnand %p8017_p11, %p9977_p0  ;;  %p8024_p13 = scmp.lt.s32.totalorder %s8022_s3, %s8016_s22 }
 0x1f7   : > { %p8019_p7 = pneg %p8018_p10  ;;  %p8025_p12 = por %p8024_p13, %p8023_p3 }
 0x1f9   : > { %p8026_p8 = pnand %p8025_p12, %p8019_p7 }
 0x1fb   : > { %8029 = shalt.err (!%p8026_p8)
}
 0x1fc   : > { %s9989_s26 = smov 8   ;;  %s9990_s6 = scalar_lea.sflag [#allocation15], %s8675_s15 }
 0x1fd   : > { %s9991_s14 = sld [smem:[#allocation71_spill]]  ;;  %s1141_s16 = scalar_lea.vmem [#allocation19], %s8833_s11 }
 0x1fe   : > { %6846 = dma.hbm_to_vmem [thread:$0]  (%p9977_p0), %s9053_s1, 2048, %s9056_s4, %s9990_s6, %s9981_s21, %s9981_s21, %s9989_s26  }
 0x1ff   : > { %s1149_s22 = sshll.u32 %s1141_s16, 4  ;;  %s8030_s2 = scalar_lea.hbm %s9060_s29, 32  ;;  %s1150_s22 = int_to_ptr.vmem [resolvable:$true] %s1149_s22 }
 0x200   : > { %p8031_p1 = scmp.ne.s32.totalorder %s9060_s29, %s8030_s2  ;;  %s8034_s3 = scalar_lea.hbm %s9987_s27, 192 }
 0x201   : > { %p8035_p6 = scmp.lt.u32.totalorder %s9060_s29, %s9987_s27  ;;  %p8036_p4 = scmp.lt.u32.totalorder %s8034_s3, %s8030_s2 }
 0x202   : > { %p8032_p2 = pnand %p8031_p1, %p9977_p0  ;;  %p8038_p11 = scmp.lt.u32.totalorder %s8030_s2, %s9060_s29 }
 0x203   : > { %s9087_s20 = scalar_lea.hbm %s9991_s14, %s8859_s24  ;;  %p8037_p9 = por %p8036_p4, %p8035_p6 }
 0x204   : > { %p8033_p5 = pneg %p8032_p2 }
 0x205   : > { %p8039_p10 = por %p8038_p11, %p8037_p9 }
 0x207   : > { %p8040_p7 = pnand %p8039_p10, %p8033_p5 }
 0x209   : > { %8043 = shalt.err (!%p8040_p7)
}
 0x20a   : > { %s8044_s8 = scalar_lea.vmem %s1150_s22, 32  ;;  %s8392_s1 = smov [#allocation19]  }
 0x20b   : > { %p8045_p3 = scmp.ne.s32.totalorder %s1150_s22, %s8044_s8  ;;  %s8048_s4 = sshll.u32 %s8392_s1, 4  ;;  %s8049_s4 = int_to_ptr.vmem [resolvable:$false] %s8048_s4 }
 0x20c   : > { %s8050_s6 = scalar_lea.vmem %s8049_s4, 64  ;;  %p8051_p8 = scmp.lt.s32.totalorder %s1150_s22, %s8049_s4 }
 0x20d   : > { %p8046_p13 = pnand %p8045_p3, %p9977_p0  ;;  %p8052_p1 = scmp.lt.s32.totalorder %s8050_s6, %s8044_s8 }
 0x20f   : > { %p8047_p12 = pneg %p8046_p13  ;;  %p8053_p2 = por %p8052_p1, %p8051_p8 }
 0x211   : > { %p8054_p4 = pnand %p8053_p2, %p8047_p12 }
 0x213   : > { %8057 = shalt.err (!%p8054_p4)
}
 0x214   : > { %s9992_s16 = scalar_lea.sflag [#allocation18], %s8675_s15  ;;  %s9993_s2 = sld [smem:[#allocation73_spill]] }
 0x215   : > { %6848 = dma.hbm_to_vmem [thread:$0]  (%p9977_p0), %s9060_s29, 32, %s1150_s22, %s9992_s16  }
 0x216   : > { %s1181_s8 = scalar_lea.vmem [#allocation22], %s8833_s11  ;;  %s8058_s6 = scalar_lea.hbm %s9087_s20, 32 }
 0x217   : > { %s1189_s1 = sshll.u32 %s1181_s8, 4  ;;  %p8059_p5 = scmp.ne.s32.totalorder %s9087_s20, %s8058_s6  ;;  %s1190_s1 = int_to_ptr.vmem [resolvable:$true] %s1189_s1 }
 0x218   : > { %s8062_s12 = scalar_lea.hbm %s9991_s14, 192  ;;  %p8063_p11 = scmp.lt.u32.totalorder %s9087_s20, %s9991_s14 }
 0x219   : > { %p8060_p6 = pnand %p8059_p5, %p9977_p0  ;;  %p8064_p10 = scmp.lt.u32.totalorder %s8062_s12, %s8058_s6 }
 0x21a   : > { %s9994_s3 = smov %s9993_s2  ;;  %s9107_s4 = scalar_lea.hbm %s9993_s2, %s8787_s17 }
 0x21b   : > { %p8061_p9 = pneg %p8060_p6  ;;  %p8065_p7 = por %p8064_p10, %p8063_p11 }
 0x21c   : > { %p8066_p3 = scmp.lt.u32.totalorder %s8058_s6, %s9087_s20 }
 0x21e   : > { %p8067_p13 = por %p8066_p3, %p8065_p7 }
 0x220   : > { %p8068_p12 = pnand %p8067_p13, %p8061_p9 }
 0x222   : > { %8071 = shalt.err (!%p8068_p12)
}
 0x223   : > { %s8072_s13 = scalar_lea.vmem %s1190_s1, 32  ;;  %s8393_s29 = smov [#allocation22]  }
 0x224   : > { %p8073_p8 = scmp.ne.s32.totalorder %s1190_s1, %s8072_s13  ;;  %s8076_s22 = sshll.u32 %s8393_s29, 4  ;;  %s8077_s22 = int_to_ptr.vmem [resolvable:$false] %s8076_s22 }
 0x225   : > { %s8078_s16 = scalar_lea.vmem %s8077_s22, 64  ;;  %p8079_p4 = scmp.lt.s32.totalorder %s1190_s1, %s8077_s22 }
 0x226   : > { %p8074_p1 = pnand %p8073_p8, %p9977_p0  ;;  %p8080_p5 = scmp.lt.s32.totalorder %s8078_s16, %s8072_s13 }
 0x228   : > { %p8075_p2 = pneg %p8074_p1  ;;  %p8081_p6 = por %p8080_p5, %p8079_p4 }
 0x22a   : > { %p8082_p10 = pnand %p8081_p6, %p8075_p2 }
 0x22c   : > { %8085 = shalt.err (!%p8082_p10)
}
 0x22d   : > { %s9995_s12 = scalar_lea.sflag [#allocation21], %s8675_s15  ;;  %s9996_s2 = sld [smem:[#allocation74_spill]] }
 0x22e   : > { %6850 = dma.hbm_to_vmem [thread:$0]  (%p9977_p0), %s9087_s20, 32, %s1190_s1, %s9995_s12  }
 0x22f   : > { %s1221_s13 = scalar_lea.vmem [#allocation25], %s8761_s7  ;;  %s8086_s22 = scalar_lea.hbm %s9107_s4, 4096 }
 0x230   : > { %s1228_s6 = sshll.u32 %s1221_s13, 4  ;;  %p8087_p9 = scmp.ne.s32.totalorder %s9107_s4, %s8086_s22  ;;  %s9125_s6 = int_to_ptr.vmem [resolvable:$true] %s1228_s6 }
 0x231   : > { %s8090_s16 = scalar_lea.hbm %s9994_s3, 24576  ;;  %p8091_p3 = scmp.lt.u32.totalorder %s9107_s4, %s9994_s3 }
 0x232   : > { %p8088_p11 = pnand %p8087_p9, %p9977_p0  ;;  %p8092_p13 = scmp.lt.u32.totalorder %s8090_s16, %s8086_s22 }
 0x233   : > { %s9997_s8 = smov %s9996_s2  ;;  %s9129_s29 = scalar_lea.hbm %s9996_s2, %s8800_s0 }
 0x234   : > { %p8089_p7 = pneg %p8088_p11  ;;  %p8093_p12 = por %p8092_p13, %p8091_p3 }
 0x235   : > { %p8094_p8 = scmp.lt.u32.totalorder %s8086_s22, %s9107_s4 }
 0x237   : > { %p8095_p1 = por %p8094_p8, %p8093_p12 }
 0x239   : > { %p8096_p2 = pnand %p8095_p1, %p8089_p7 }
 0x23b   : > { %8099 = shalt.err (!%p8096_p2)
}
 0x23c   : > { %s8100_s20 = scalar_lea.vmem %s9125_s6, 4096  ;;  %s8394_s0 = smov [#allocation25]  }
 0x23d   : > { %p8101_p4 = scmp.ne.s32.totalorder %s9125_s6, %s8100_s20  ;;  %s8104_s1 = sshll.u32 %s8394_s0, 4  ;;  %s8105_s1 = int_to_ptr.vmem [resolvable:$false] %s8104_s1 }
 0x23e   : > { %s8106_s12 = scalar_lea.vmem %s8105_s1, 8192  ;;  %p8107_p10 = scmp.lt.s32.totalorder %s9125_s6, %s8105_s1 }
 0x23f   : > { %p8102_p5 = pnand %p8101_p4, %p9977_p0  ;;  %p8108_p9 = scmp.lt.s32.totalorder %s8106_s12, %s8100_s20 }
 0x241   : > { %p8103_p6 = pneg %p8102_p5  ;;  %p8109_p11 = por %p8108_p9, %p8107_p10 }
 0x243   : > { %p8110_p3 = pnand %p8109_p11, %p8103_p6 }
 0x245   : > { %8113 = shalt.err (!%p8110_p3)
}
 0x246   : > { %s9998_s2 = scalar_lea.sflag [#allocation24], %s8675_s15  ;;  %s9999_s13 = sld [smem:[#allocation76_spill]] }
 0x247   : > { %6852 = dma.hbm_to_vmem [thread:$0]  (%p9977_p0), %s9107_s4, 4096, %s9125_s6, %s9998_s2, %s9981_s21, %s9981_s21, %s9989_s26  }
 0x248   : > { %s1261_s22 = scalar_lea.vmem [#allocation28], %s8795_s10  ;;  %s8114_s0 = scalar_lea.hbm %s9129_s29, 2048 }
 0x249   : > { %s1268_s16 = sshll.u32 %s1261_s22, 4  ;;  %p8115_p7 = scmp.ne.s32.totalorder %s9129_s29, %s8114_s0  ;;  %s9154_s16 = int_to_ptr.vmem [resolvable:$true] %s1268_s16 }
 0x24a   : > { %s8118_s1 = scalar_lea.hbm %s9997_s8, 12288  ;;  %p8119_p8 = scmp.lt.u32.totalorder %s9129_s29, %s9997_s8 }
 0x24b   : > { %p8116_p13 = pnand %p8115_p7, %p9977_p0  ;;  %p8120_p1 = scmp.lt.u32.totalorder %s8118_s1, %s8114_s0 }
 0x24c   : > { %s9158_s20 = scalar_lea.hbm %s9999_s13, %s8787_s17  ;;  %p8122_p4 = scmp.lt.u32.totalorder %s8114_s0, %s9129_s29 }
 0x24d   : > { %p8117_p12 = pneg %p8116_p13  ;;  %p8121_p2 = por %p8120_p1, %p8119_p8 }
 0x24f   : > { %p8123_p5 = por %p8122_p4, %p8121_p2 }
 0x251   : > { %p8124_p6 = pnand %p8123_p5, %p8117_p12 }
 0x253   : > { %8127 = shalt.err (!%p8124_p6)
}
 0x254   : > { %s8128_s10 = scalar_lea.vmem %s9154_s16, 2048  ;;  %s8395_s17 = smov [#allocation28]  }
 0x255   : > { %p8129_p10 = scmp.ne.s32.totalorder %s9154_s16, %s8128_s10  ;;  %s8132_s4 = sshll.u32 %s8395_s17, 4  ;;  %s8133_s4 = int_to_ptr.vmem [resolvable:$false] %s8132_s4 }
 0x256   : > { %s8134_s6 = scalar_lea.vmem %s8133_s4, 4096  ;;  %p8135_p3 = scmp.lt.s32.totalorder %s9154_s16, %s8133_s4 }
 0x257   : > { %p8130_p9 = pnand %p8129_p10, %p9977_p0  ;;  %p8136_p7 = scmp.lt.s32.totalorder %s8134_s6, %s8128_s10 }
 0x259   : > { %p8131_p11 = pneg %p8130_p9  ;;  %p8137_p13 = por %p8136_p7, %p8135_p3 }
 0x25b   : > { %p8138_p8 = pnand %p8137_p13, %p8131_p11 }
 0x25d   : > { %8141 = shalt.err (!%p8138_p8)
}
 0x25e   : > { %s10000_s12 = scalar_lea.sflag [#allocation27], %s8675_s15  ;;  %s10001_s2 = sld [smem:[#allocation78_spill]] }
 0x25f   : > { %6854 = dma.hbm_to_vmem [thread:$0]  (%p9977_p0), %s9129_s29, 2048, %s9154_s16, %s10000_s12, %s9985_s9, %s9985_s9, %s9984_s5  }
 0x260   : > { %s1299_s0 = scalar_lea.vmem [#allocation31], %s8761_s7  ;;  %s8142_s17 = scalar_lea.hbm %s9158_s20, 4096 }
 0x261   : > { %s1306_s1 = sshll.u32 %s1299_s0, 4  ;;  %p8143_p12 = scmp.ne.s32.totalorder %s9158_s20, %s8142_s17  ;;  %s9183_s1 = int_to_ptr.vmem [resolvable:$true] %s1306_s1 }
 0x262   : > { %s8146_s4 = scalar_lea.hbm %s9999_s13, 24576  ;;  %p8147_p4 = scmp.lt.u32.totalorder %s9158_s20, %s9999_s13 }
 0x263   : > { %p8144_p1 = pnand %p8143_p12, %p9977_p0  ;;  %p8148_p5 = scmp.lt.u32.totalorder %s8146_s4, %s8142_s17 }
 0x264   : > { %s10002_s22 = smov %s10001_s2  ;;  %s9187_s10 = scalar_lea.hbm %s10001_s2, %s8859_s24 }
 0x265   : > { %p8145_p2 = pneg %p8144_p1  ;;  %p8149_p6 = por %p8148_p5, %p8147_p4 }
 0x266   : > { %p8150_p10 = scmp.lt.u32.totalorder %s8142_s17, %s9158_s20 }
 0x268   : > { %p8151_p9 = por %p8150_p10, %p8149_p6 }
 0x26a   : > { %p8152_p11 = pnand %p8151_p9, %p8145_p2 }
 0x26c   : > { %8155 = shalt.err (!%p8152_p11)
}
 0x26d   : > { %s8156_s7 = scalar_lea.vmem %s9183_s1, 4096  ;;  %s8396_s5 = smov [#allocation31]  }
 0x26e   : > { %p8157_p3 = scmp.ne.s32.totalorder %s9183_s1, %s8156_s7  ;;  %s8160_s9 = sshll.u32 %s8396_s5, 4  ;;  %s8161_s9 = int_to_ptr.vmem [resolvable:$false] %s8160_s9 }
 0x26f   : > { %s8162_s29 = scalar_lea.vmem %s8161_s9, 8192  ;;  %p8163_p8 = scmp.lt.s32.totalorder %s9183_s1, %s8161_s9 }
 0x270   : > { %p8158_p7 = pnand %p8157_p3, %p9977_p0  ;;  %p8164_p12 = scmp.lt.s32.totalorder %s8162_s29, %s8156_s7 }
 0x272   : > { %p8159_p13 = pneg %p8158_p7  ;;  %p8165_p1 = por %p8164_p12, %p8163_p8 }
 0x274   : > { %p8166_p4 = pnand %p8165_p1, %p8159_p13 }
 0x276   : > { %8169 = shalt.err (!%p8166_p4)
}
 0x277   : > { %s10003_s16 = scalar_lea.sflag [#allocation30], %s8675_s15  ;;  %s10004_s6 = sld [smem:[#allocation80_spill]] }
 0x278   : > { %6856 = dma.hbm_to_vmem [thread:$0]  (%p9977_p0), %s9158_s20, 4096, %s9183_s1, %s10003_s16, %s9981_s21, %s9981_s21, %s9989_s26  }
 0x279   : > { %s1341_s12 = scalar_lea.vmem [#allocation34], %s8833_s11  ;;  %s8170_s17 = scalar_lea.hbm %s9187_s10, 32 }
 0x27a   : > { %s1349_s2 = sshll.u32 %s1341_s12, 4  ;;  %p8171_p2 = scmp.ne.s32.totalorder %s9187_s10, %s8170_s17  ;;  %s1350_s2 = int_to_ptr.vmem [resolvable:$true] %s1349_s2 }
 0x27b   : > { %s8174_s4 = scalar_lea.hbm %s10002_s22, 192  ;;  %p8175_p10 = scmp.lt.u32.totalorder %s9187_s10, %s10002_s22 }
 0x27c   : > { %p8172_p5 = pnand %p8171_p2, %p9977_p0  ;;  %p8176_p9 = scmp.lt.u32.totalorder %s8174_s4, %s8170_s17 }
 0x27d   : > { %s9214_s0 = scalar_lea.hbm %s10004_s6, %s8859_s24  ;;  %p8178_p3 = scmp.lt.u32.totalorder %s8170_s17, %s9187_s10 }
 0x27e   : > { %p8173_p6 = pneg %p8172_p5  ;;  %p8177_p11 = por %p8176_p9, %p8175_p10 }
 0x280   : > { %p8179_p7 = por %p8178_p3, %p8177_p11 }
 0x282   : > { %p8180_p13 = pnand %p8179_p7, %p8173_p6 }
 0x284   : > { %8183 = shalt.err (!%p8180_p13)
}
 0x285   : > { %s8184_s7 = scalar_lea.vmem %s1350_s2, 32  ;;  %s8397_s24 = smov [#allocation34]  }
 0x286   : > { %p8185_p8 = scmp.ne.s32.totalorder %s1350_s2, %s8184_s7  ;;  %s8188_s21 = sshll.u32 %s8397_s24, 4  ;;  %s8189_s21 = int_to_ptr.vmem [resolvable:$false] %s8188_s21 }
 0x287   : > { %s8190_s26 = scalar_lea.vmem %s8189_s21, 64  ;;  %p8191_p4 = scmp.lt.s32.totalorder %s1350_s2, %s8189_s21 }
 0x288   : > { %p8186_p12 = pnand %p8185_p8, %p9977_p0  ;;  %p8192_p2 = scmp.lt.s32.totalorder %s8190_s26, %s8184_s7 }
 0x28a   : > { %p8187_p1 = pneg %p8186_p12  ;;  %p8193_p5 = por %p8192_p2, %p8191_p4 }
 0x28c   : > { %p8194_p9 = pnand %p8193_p5, %p8187_p1 }
 0x28e   : > { %8197 = shalt.err (!%p8194_p9)
}
 0x28f   : > { %s10005_s20 = scalar_lea.sflag [#allocation33], %s8675_s15  ;;  %s1381_s1 = scalar_lea.vmem [#allocation37], %s8833_s11 }
 0x290   : > { %6858 = dma.hbm_to_vmem [thread:$0]  (%p9977_p0), %s9187_s10, 32, %s1350_s2, %s10005_s20  }
 0x291   : > { %s1389_s5 = sshll.u32 %s1381_s1, 4  ;;  %s8198_s9 = scalar_lea.hbm %s9214_s0, 32  ;;  %s1390_s5 = int_to_ptr.vmem [resolvable:$true] %s1389_s5 }
 0x292   : > { %p8199_p6 = scmp.ne.s32.totalorder %s9214_s0, %s8198_s9  ;;  %s8202_s29 = scalar_lea.hbm %s10004_s6, 192 }
 0x293   : > { %p8203_p3 = scmp.lt.u32.totalorder %s9214_s0, %s10004_s6  ;;  %p8204_p7 = scmp.lt.u32.totalorder %s8202_s29, %s8198_s9 }
 0x294   : > { %p8200_p10 = pnand %p8199_p6, %p9977_p0  ;;  %p8206_p8 = scmp.lt.u32.totalorder %s8198_s9, %s9214_s0 }
 0x295   : > { %p8205_p13 = por %p8204_p7, %p8203_p3 }
 0x296   : > { %p8201_p11 = pneg %p8200_p10 }
 0x297   : > { %p8207_p12 = por %p8206_p8, %p8205_p13 }
 0x299   : > { %p8208_p1 = pnand %p8207_p12, %p8201_p11 }
 0x29b   : > { %8211 = shalt.err (!%p8208_p1)
}
 0x29c   : > { %s8212_s16 = scalar_lea.vmem %s1390_s5, 32  ;;  %s8398_s11 = smov [#allocation37]  }
 0x29d   : > { %p8213_p4 = scmp.ne.s32.totalorder %s1390_s5, %s8212_s16  ;;  %s8216_s10 = sshll.u32 %s8398_s11, 4  ;;  %s8217_s10 = int_to_ptr.vmem [resolvable:$false] %s8216_s10 }
 0x29e   : > { %s8218_s12 = scalar_lea.vmem %s8217_s10, 64  ;;  %p8219_p9 = scmp.lt.s32.totalorder %s1390_s5, %s8217_s10 }
 0x29f   : > { %p8214_p2 = pnand %p8213_p4, %p9977_p0  ;;  %p8220_p6 = scmp.lt.s32.totalorder %s8218_s12, %s8212_s16 }
 0x2a1   : > { %p8215_p5 = pneg %p8214_p2  ;;  %p8221_p10 = por %p8220_p6, %p8219_p9 }
 0x2a3   : > { %p8222_p3 = pnand %p8221_p10, %p8215_p5 }
 0x2a5   : > { %8225 = shalt.err (!%p8222_p3)
}
 0x2a6   : > { %s10006_s2 = scalar_lea.sflag [#allocation36], %s8675_s15 }
 0x2a7   : > { %6860 = dma.hbm_to_vmem [thread:$0]  (%p9977_p0), %s9214_s0, 32, %s1390_s5, %s10006_s2  }
 0x2a8 PF: > { %p10007_p11 = scmp.ne.s32.totalorder %s9975_s23, 0 }
 0x2a9   : > { %s10008_s17 = sld [smem:[#allocation89_spill]] (!%p10007_p11)  ;;  %s9250_s4 = sand.u32 (!%p10007_p11), 1, %s8326_s28  }
 0x2aa   : > { %1398 = sbr.rel (%p10007_p11) target bundleno = 3691 (0xe6b), region = 144  ;;  %s6206_s7 = sshll.u32 (!%p10007_p11), %s9250_s4, 6 }
 0x2ab   : > { %s1401_s24 = scalar_lea.sflag (!%p10007_p11), [#allocation6], %s9250_s4  ;;  %s9254_s21 = scalar_lea.vmem (!%p10007_p11), [#allocation5], %s6206_s7 }
 0x2af   : > { %p10009_p7 = scmp.ne.s32.totalorder (!%p10007_p11), %s10008_s17, 0 }
 0x2b1   : > { %8269 = dma.done.wait (%p10009_p7), %s1401_s24, 1024  }
 0x2b2   : > { %8271 = vsyncadd (%p10009_p7), %s1401_s24, 4294966272  ;;  %s10010_s18 = sld [smem:[#allocation86_spill]]  ;;  %s9264_s0 = scalar_lea.vmem [#allocation8], %s6206_s7 }
 0x2b8   : > { %s9261_s15 = sand.u32 1, %s10010_s18  }
 0x2b9   : > { %s1410_s23 = scalar_lea.sflag [#allocation9], %s9261_s15 }
 0x2ba   : > { %8273 = dma.done.wait (%p10009_p7), %s1410_s23, 5120  }
 0x2bb   : > { %8275 = vsyncadd (%p10009_p7), %s1410_s23, 4294962176  ;;  %s9271_s26 = sshll.u32 %s9250_s4, 8  ;;  %s1428_s1 = scalar_lea.sflag [#allocation12], %s9261_s15 }
 0x2bc   : > { %s9274_s20 = scalar_lea.vmem [#allocation10], %s9271_s26 }
 0x2bd   : > { %8277 = dma.done.wait (%p10009_p7), %s1428_s1, 4112  }
 0x2be   : > { %8279 = vsyncadd (%p10009_p7), %s1428_s1, 4294963184  ;;  %s6210_s9 = sshll.u32 %s9250_s4, 2  ;;  %s9284_s29 = scalar_lea.vmem [#allocation13], %s9271_s26 }
 0x2bf   : > { %s1445_s16 = scalar_lea.sflag [#allocation15], %s9261_s15  ;;  %s9287_s11 = scalar_lea.vmem [#allocation14], %s6210_s9 }
 0x2c0   : > { %8281 = dma.done.wait (%p10009_p7), %s1445_s16, 2112  }
 0x2c1   : > { %8283 = vsyncadd (%p10009_p7), %s1445_s16, 4294965184  ;;  %s9294_s10 = sshll.u32 %s9250_s4, 7  ;;  %s6212_s12 = sshll.u32 %s9250_s4, 9 }
 0x2c2   : > { %s9298_s2 = scalar_lea.vmem [#allocation16], %s9294_s10  ;;  %s1463_s7 = scalar_lea.sflag [#allocation18], %s9261_s15 }
 0x2c3   : > { %s9301_s24 = scalar_lea.vmem [#allocation17], %s6212_s12 }
 0x2c4   : > { %8285 = dma.done.wait (%p10009_p7), %s1463_s7, 8224  }
 0x2c5   : > { %8287 = vsyncadd (%p10009_p7), %s1463_s7, 4294959072  ;;  %s9308_s23 = sshll.u32 %s9250_s4, 1  ;;  %s1481_s9 = scalar_lea.sflag [#allocation21], %s9261_s15 }
 0x2c6   : > { %s9313_s16 = scalar_lea.vmem [#allocation20], %s9271_s26 }
 0x2c7   : > { %8289 = dma.done.wait (%p10009_p7), %s1481_s9, 4128  }
 0x2c8   : > { %8291 = vsyncadd (%p10009_p7), %s1481_s9, 4294963168  ;;  %s1499_s7 = scalar_lea.sflag [#allocation24], %s9261_s15  ;;  %s9322_s5 = scalar_lea.vmem [#allocation23], %s9294_s10 }
 0x2c9   : > { %8293 = dma.done.wait (%p10009_p7), %s1499_s7, 6144  }
 0x2ca   : > { %8295 = vsyncadd (%p10009_p7), %s1499_s7, 4294961152  ;;  %s9329_s1 = scalar_lea.vmem [#allocation25], %s9271_s26  ;;  %s1517_s9 = scalar_lea.sflag [#allocation27], %s9261_s15 }
 0x2cb   : > { %8297 = dma.done.wait (%p10009_p7), %s1517_s9, 2080  }
 0x2cc   : > { %8299 = vsyncadd (%p10009_p7), %s1517_s9, 4294965216  ;;  %s9338_s12 = scalar_lea.vmem [#allocation28], %s9294_s10  ;;  %s1535_s7 = scalar_lea.sflag [#allocation30], %s9261_s15 }
 0x2cd   : > { %8301 = dma.done.wait (%p10009_p7), %s1535_s7, 4112  }
 0x2ce   : > { %8303 = vsyncadd (%p10009_p7), %s1535_s7, 4294963184  ;;  %s9347_s3 = scalar_lea.vmem [#allocation31], %s9271_s26  ;;  %s1552_s9 = scalar_lea.sflag [#allocation33], %s9261_s15 }
 0x2cf   : > { %s9351_s8 = scalar_lea.vmem [#allocation32], %s9294_s10 }
 0x2d0   : > { %8305 = dma.done.wait (%p10009_p7), %s1552_s9, 2080  }
 0x2d1   : > { %8307 = vsyncadd (%p10009_p7), %s1552_s9, 4294965216  ;;  %s1564_s6 = scalar_lea.vmem [#allocation34], %s9308_s23  ;;  %s1570_s7 = scalar_lea.sflag [#allocation36], %s9261_s15 }
 0x2d2   : > { %s9360_s13 = scalar_lea.vmem [#allocation35], %s9271_s26 }
 0x2d3   : > { %8309 = dma.done.wait (%p10009_p7), %s1570_s7, 4128  }
 0x2d4   : > { %8311 = vsyncadd (%p10009_p7), %s1570_s7, 4294963168  ;;  %s1582_s10 = scalar_lea.vmem [#allocation37], %s9308_s23  ;;  %p10011_p0 = scmp.eq.s32.totalorder %s10010_s18, 0 }
 0x2d6   : > { %8313 = dma.done.wait (%p10011_p0), [#allocation39], 8256   ;;  %p10012_p13 = pmov %p10011_p0 }
 0x2d7   : > { %p10013_p8 = scmp.ne.s32.totalorder %s10010_s18, 0 }
 0x2d8   : > { %8315 = vsyncadd (%p10012_p13), [#allocation39], 4294959040  ;;  %s10014_s9 = sld [smem:[#allocation55_spill]] (!%p10013_p8)  ;;  %s10015_s15 = sld [smem:[#allocation56_spill]] (!%p10013_p8)  ;;  %v8399_v6 = vmov (!%p10013_p8), 0.0  }
 0x2d9   : > { %1768 = sbr.rel (%p10013_p8) target bundleno = 740 (0x2e4), region = 240  ;;  %1787 = vst [vmem:[#allocation4] sm:$0xf] (!%p10013_p8), %v8399_v6 }
 0x2de   : > { %v1769_v0 = vld [vmem:[%s10014_s9] sm:$0xff] (!%p10013_p8)  ;;  %v1772_v2 = vld [vmem:[%s10015_s15 + $0x8] sm:$0xff] (!%p10013_p8)  ;;  %v1773_v3 = vld [vmem:[%s10015_s15 + $0x10] sm:$0xff] (!%p10013_p8) }
 0x2df   : > { %v1771_v1 = vld [vmem:[%s10015_s15] sm:$0xff] (!%p10013_p8)  ;;  %1770 = vst [vmem:[#allocation2] sm:$0xff] (!%p10013_p8), %v1769_v0  ;;  %1780 = vst [vmem:[#allocation3 + $0x8] sm:$0xff] (!%p10013_p8), %v1772_v2  ;;  %v1774_v4 = vld [vmem:[%s10015_s15 + $0x18] sm:$0xff] (!%p10013_p8) }
 0x2e0   : > { %1779 = vst [vmem:[#allocation3] sm:$0xff] %v1771_v1  ;;  %v1775_v5 = vld [vmem:[%s10015_s15 + $0x20] sm:$0xff]  ;;  %1781 = vst [vmem:[#allocation3 + $0x10] sm:$0xff] %v1773_v3  ;;  %v1776_v7 = vld [vmem:[%s10015_s15 + $0x28] sm:$0xff] }
 0x2e1   : > { %1782 = vst [vmem:[#allocation3 + $0x18] sm:$0xff] %v1774_v4  ;;  %1783 = vst [vmem:[#allocation3 + $0x20] sm:$0xff] %v1775_v5  ;;  %v1777_v8 = vld [vmem:[%s10015_s15 + $0x30] sm:$0xff]  ;;  %v1778_v9 = vld [vmem:[%s10015_s15 + $0x38] sm:$0xff] }
 0x2e2   : > { %1784 = vst [vmem:[#allocation3 + $0x28] sm:$0xff] %v1776_v7  ;;  %1785 = vst [vmem:[#allocation3 + $0x30] sm:$0xff] %v1777_v8 }
 0x2e3   : > { %1786 = vst [vmem:[#allocation3 + $0x38] sm:$0xff] %v1778_v9 }
 0x2e4 PF: > { %s10016_s17 = sld [smem:[#allocation57_spill]]  ;;  %s10017_s18 = sld [smem:[#allocation58_spill]]  ;;  %vm1810_vm0 = vcmask 1043456   ;;  %v8400_v11 = vmov 0.0   ;;  %vm8401_vm1 = vmmov 0   ;;  %v6986_v16 = vld [vmem:[%s9264_s0] sm:$0xff]  }
 0x2e5   : > { %6770 = vmatprep.subr.bf16.mxu0 %v8400_v11  ;;  %6776 = vmatprep.subr.bf16.mxu1 %v8400_v11  ;;  %vm1806_vm2 = vcmask 64512   ;;  %v6987_v17 = vld [vmem:[%s9254_s21] sm:$0xff]   ;;  %v6988_v18 = vld [vmem:[%s9264_s0 + $0x8] sm:$0xff]   ;;  %v6990_v20 = vld [vmem:[%s9264_s0 + $0x10] sm:$0xff]   ;;  %s10020_s26 = sld [smem:[#allocation60_spill]]  ;;  %vm3689_vm9 = vcmask 130048  }
 0x2e6   : > { %6772 = vmatprep.mubr.msk.bf16.mxu0 %vm8401_vm1, %v8400_v11  ;;  %6778 = vmatprep.mubr.msk.bf16.mxu1 %vm8401_vm1, %v8400_v11  ;;  %v6989_v19 = vld [vmem:[%s9254_s21 + $0x8] sm:$0xff]   ;;  %v6991_v21 = vld [vmem:[%s9254_s21 + $0x10] sm:$0xff]   ;;  %v6992_v22 = vld [vmem:[%s9264_s0 + $0x18] sm:$0xff]  }
 0x2e7   : > { %v6993_v23 = vld [vmem:[%s9254_s21 + $0x18] sm:$0xff]   ;;  %v6994_v24 = vld [vmem:[%s9264_s0 + $0x20] sm:$0xff]   ;;  %v6996_v26 = vld [vmem:[%s9264_s0 + $0x28] sm:$0xff]  }
 0x2e8   : > { %v6995_v25 = vld [vmem:[%s9254_s21 + $0x20] sm:$0xff]   ;;  %v6997_v27 = vld [vmem:[%s9254_s21 + $0x28] sm:$0xff]   ;;  %v6998_v28 = vld [vmem:[%s9264_s0 + $0x30] sm:$0xff]  }
 0x2e9   : > { %v6999_v29 = vld [vmem:[%s9254_s21 + $0x30] sm:$0xff]   ;;  %v7000_v30 = vld [vmem:[%s9264_s0 + $0x38] sm:$0xff]   ;;  %v7002_v32 = vld [vmem:[%s9274_s20 + $0x40] sm:$0xff]   ;;  %s10019_s0 = scalar_lea.vmem [#allocation19], %s9308_s23 }
 0x2ea   : > { %v1788_v10 = vld [vmem:[#allocation2] sm:$0xff]  ;;  %v7003_v33 = vld [vmem:[%s9274_s20 + $0xc0] sm:$0xff]   ;;  %v7006_v50 = vld [vmem:[%s9274_s20 + $0x48] sm:$0xff]  }
 0x2eb   : > { %v9384_v12 = vpack.c.bf16 %v1788_v10, %v1788_v10  ;;  %v6984_v13 = vld [vmem:[%s10016_s17] sm:$0xff]   ;;  %v1790_v36 = vld [vmem:[#allocation3 + $0x8] sm:$0xff] }
 0x2ec   : > { %v6985_v14 = vld [vmem:[%s10017_s18] sm:$0xff]   ;;  %v1794_v39 = vld [vmem:[#allocation3 + $0x28] sm:$0xff] }
 0x2ed   : > { %v1812_v15 = vsel %vm1810_vm0, %v9384_v12, 0  ;;  %v7001_v31 = vld [vmem:[%s9254_s21 + $0x38] sm:$0xff]   ;;  %v7004_v44 = vld [vmem:[%s9274_s20] sm:$0xff]   ;;  %v7007_v51 = vld [vmem:[%s9274_s20 + $0xc8] sm:$0xff]   ;;  %v2119_v52 = vpack.c.bf16 %v1794_v39, %v1790_v36  ;;  %s10018_s21 = scalar_lea.vmem [#allocation11], %s9250_s4 }
 0x2ee   : > { %6771 = vmatpush3.bf16.msra.mxu0 %v1812_v15  ;;  %6777 = vmatpush3.bf16.msra.mxu1 %v1812_v15  ;;  %v1792_v40 = vld [vmem:[#allocation3 + $0x18] sm:$0xff]  ;;  %v7005_v45 = vld [vmem:[%s9274_s20 + $0x80] sm:$0xff]   ;;  %v7008_v54 = vld [vmem:[%s9274_s20 + $0x8] sm:$0xff]  }
 0x2ef   : > { %6782 = vmatprep.subr.bf16.mxu0 %v8400_v11  ;;  %6802 = vmatprep.subr.bf16.mxu1 %v8400_v11  ;;  %v1796_v41 = vld [vmem:[#allocation3 + $0x38] sm:$0xff]  ;;  %v7009_v55 = vld [vmem:[%s9274_s20 + $0x88] sm:$0xff]   ;;  %v7018_v0 = vld [vmem:[%s9274_s20 + $0x60] sm:$0xff]  }
 0x2f0   : > { %v2121_v53 = vpack.c.bf16 %v1796_v41, %v1792_v40  ;;  %v7010_v56 = vld [vmem:[%s9274_s20 + $0x50] sm:$0xff]   ;;  %v7014_v60 = vld [vmem:[%s9274_s20 + $0x58] sm:$0xff]   ;;  %v7019_v1 = vld [vmem:[%s9274_s20 + $0xe0] sm:$0xff]  }
 0x2f1   : > { %6773 = vmatmul.mubr.msk.bf16.vlgmr.msra.gmra.mrb[0].mxu0 %vm1806_vm2, %v6984_v13  ;;  %6779 = vmatmul.mubr.msk.bf16.vlgmr.msra.gmra.mrb[0].mxu1 %vm1806_vm2, %v6985_v14  ;;  %v7011_v57 = vld [vmem:[%s9274_s20 + $0xd0] sm:$0xff]   ;;  %v7015_v61 = vld [vmem:[%s9274_s20 + $0xd8] sm:$0xff]   ;;  %v7020_v2 = vld [vmem:[%s9274_s20 + $0x20] sm:$0xff]  }
 0x2f2   : > { %6783 = vmatpush3.bf16.msra.mxu0 %v6986_v16  ;;  %6803 = vmatpush3.bf16.msra.mxu1 %v6987_v17  ;;  %v7012_v58 = vld [vmem:[%s9274_s20 + $0x10] sm:$0xff]   ;;  %v7016_v62 = vld [vmem:[%s9274_s20 + $0x18] sm:$0xff]   ;;  %v7021_v3 = vld [vmem:[%s9274_s20 + $0xa0] sm:$0xff]  }
 0x2f3   : > { %6784 = vmatprep.subr.bf16.mxu0 %v8400_v11  ;;  %6804 = vmatprep.subr.bf16.mxu1 %v8400_v11  ;;  %v7013_v59 = vld [vmem:[%s9274_s20 + $0x90] sm:$0xff]   ;;  %v7017_v63 = vld [vmem:[%s9274_s20 + $0x98] sm:$0xff]   ;;  %v7022_v4 = vld [vmem:[%s9274_s20 + $0x68] sm:$0xff]  }
 0x2f4   : > { %6798 = vmatprep.mubr.msk.bf16.mxu0 %vm8401_vm1, %v8400_v11  ;;  %6818 = vmatprep.mubr.msk.bf16.mxu1 %vm8401_vm1, %v8400_v11  ;;  %v7023_v5 = vld [vmem:[%s9274_s20 + $0xe8] sm:$0xff]   ;;  %v7026_v8 = vld [vmem:[%s9274_s20 + $0x70] sm:$0xff]   ;;  %v7030_v14 = vld [vmem:[%s9274_s20 + $0x78] sm:$0xff]  }
 0x2f5   : > { %v7024_v6 = vld [vmem:[%s9274_s20 + $0x28] sm:$0xff]   ;;  %v7027_v9 = vld [vmem:[%s9274_s20 + $0xf0] sm:$0xff]   ;;  %v7031_v15 = vld [vmem:[%s9274_s20 + $0xf8] sm:$0xff]  }
 0x2f6   : > { %6785 = vmatpush3.bf16.msra.mxu0 %v6988_v18  ;;  %6805 = vmatpush3.bf16.msra.mxu1 %v6989_v19  ;;  %v7025_v7 = vld [vmem:[%s9274_s20 + $0xa8] sm:$0xff]   ;;  %v7028_v10 = vld [vmem:[%s9274_s20 + $0x30] sm:$0xff]   ;;  %v7032_v16 = vld [vmem:[%s9274_s20 + $0x38] sm:$0xff]  }
 0x2f7   : > { %6786 = vmatprep.subr.bf16.mxu0 %v8400_v11  ;;  %6806 = vmatprep.subr.bf16.mxu1 %v8400_v11  ;;  %v7029_v13 = vld [vmem:[%s9274_s20 + $0xb0] sm:$0xff]   ;;  %v7033_v17 = vld [vmem:[%s9274_s20 + $0xb8] sm:$0xff]   ;;  %s10021_s20 = sld [smem:[#allocation62_spill]] }
 0x2f8   : > { %v1789_v18 = vld [vmem:[#allocation3] sm:$0xff]  ;;  %v7054_v36 = vld [vmem:[%s9284_s29 + $0x64] ss:$16 sps:$4 sm:$0xff]  }
 0x2f9   : > { %v1793_v19 = vld [vmem:[#allocation3 + $0x20] sm:$0xff]  ;;  %v7060_v40 = vld [vmem:[%s9284_s29 + $0x84] ss:$16 sps:$4 sm:$0xff]  }
 0x2fa   : > { %6787 = vmatpush3.bf16.msra.mxu0 %v6990_v20  ;;  %6807 = vmatpush3.bf16.msra.mxu1 %v6991_v21  ;;  %v1791_v20 = vld [vmem:[#allocation3 + $0x10] sm:$0xff] }
 0x2fb   : > { %6788 = vmatprep.subr.bf16.mxu0 %v8400_v11  ;;  %6808 = vmatprep.subr.bf16.mxu1 %v8400_v11  ;;  %v1795_v21 = vld [vmem:[#allocation3 + $0x30] sm:$0xff] }
 0x2fc   : > { %v7055_v39 = vld [vmem:[%s9284_s29 + $0x68] ss:$16 sps:$4 sm:$0xff]   ;;  %v7063_v41 = vld [vmem:[%s9284_s29 + $0x8c] ss:$16 sps:$4 sm:$0xff]  }
 0x2fe   : > { %6789 = vmatpush3.bf16.msra.mxu0 %v6992_v22  ;;  %6809 = vmatpush3.bf16.msra.mxu1 %v6993_v23  ;;  %v2118_v22 = vpack.c.bf16 %v1793_v19, %v1789_v18  ;;  %v2120_v23 = vpack.c.bf16 %v1795_v21, %v1791_v20  ;;  %v6280_v20 = vld [vmem:[%s10018_s21] ss:$0 sm:$0xff] }
 0x2ff   : > { %6790 = vmatprep.subr.bf16.mxu0 %v8400_v11  ;;  %6810 = vmatprep.subr.bf16.mxu1 %v8400_v11 }
 0x302   : > { %6791 = vmatpush3.bf16.msra.mxu0 %v6994_v24  ;;  %6811 = vmatpush3.bf16.msra.mxu1 %v6995_v25  ;;  %v7036_v24 = vld [vmem:[%s9284_s29 + $0x4] ss:$16 sps:$4 sm:$0xff]   ;;  %v7039_v25 = vld [vmem:[%s9284_s29 + $0xc] ss:$16 sps:$4 sm:$0xff]  }
 0x303   : > { %6792 = vmatprep.subr.bf16.mxu0 %v8400_v11  ;;  %6812 = vmatprep.subr.bf16.mxu1 %v8400_v11 }
 0x306   : > { %6793 = vmatpush3.bf16.msra.mxu0 %v6996_v26  ;;  %6813 = vmatpush3.bf16.msra.mxu1 %v6997_v27  ;;  %v7034_v26 = vld [vmem:[%s9284_s29] ss:$16 sps:$4 sm:$0xff]   ;;  %v7037_v27 = vld [vmem:[%s9284_s29 + $0x8] ss:$16 sps:$4 sm:$0xff]  }
 0x307   : > { %6794 = vmatprep.subr.bf16.mxu0 %v8400_v11  ;;  %6814 = vmatprep.subr.bf16.mxu1 %v8400_v11 }
 0x30a   : > { %6795 = vmatpush3.bf16.msra.mxu0 %v6998_v28  ;;  %6815 = vmatpush3.bf16.msra.mxu1 %v6999_v29  ;;  %v7042_v28 = vld [vmem:[%s9284_s29 + $0x24] ss:$16 sps:$4 sm:$0xff]   ;;  %v7045_v29 = vld [vmem:[%s9284_s29 + $0x2c] ss:$16 sps:$4 sm:$0xff]  }
 0x30b   : > { %6796 = vmatprep.subr.bf16.mxu0 %v8400_v11  ;;  %6816 = vmatprep.subr.bf16.mxu1 %v8400_v11 }
 0x30e   : > { %6797 = vmatpush3.bf16.msra.mxu0 %v7000_v30  ;;  %6817 = vmatpush3.bf16.msra.mxu1 %v7001_v31  ;;  %v7040_v30 = vld [vmem:[%s9284_s29 + $0x20] ss:$16 sps:$4 sm:$0xff]   ;;  %v7043_v31 = vld [vmem:[%s9284_s29 + $0x28] ss:$16 sps:$4 sm:$0xff]  }
 0x30f   : > { %6702 = vmatprep.subr.bf16.mxu0 %v7002_v32  ;;  %6724 = vmatprep.subr.bf16.mxu1 %v7003_v33  ;;  %v7048_v32 = vld [vmem:[%s9284_s29 + $0x44] ss:$16 sps:$4 sm:$0xff]   ;;  %v7051_v33 = vld [vmem:[%s9284_s29 + $0x4c] ss:$16 sps:$4 sm:$0xff]  }
 0x3c4   : > { %v1848_v34 = vpop.f32.mrb[0].mxu0  ;;  %v1899_v35 = vpop.f32.mrb[0].mxu1 }
 0x3c5   : > { %v6774_v37 = vpop.f32.mrb[1].mxu0  ;;  %v6780_v38 = vpop.f32.mrb[1].mxu1 }
 0x3c6   : > { %v1851_v42 = vpop.f32.mrb[2].mxu0  ;;  %v1902_v43 = vpop.f32.mrb[2].mxu1  ;;  %v7057_v37 = vld [vmem:[%s9284_s29 + $0x6c] ss:$16 sps:$4 sm:$0xff]   ;;  %v7052_v38 = vld [vmem:[%s9284_s29 + $0x60] ss:$16 sps:$4 sm:$0xff]  }
 0x3c7   : > { %v9436_v46 = vpack.c.bf16 %v1851_v42, %v1848_v34  ;;  %v1923_v47 = vpack.c.bf16 %v1902_v43, %v1899_v35  ;;  %v6775_v48 = vpop.f32.mrb[3].mxu0  ;;  %v6781_v49 = vpop.f32.mrb[3].mxu1  ;;  %v7046_v34 = vld [vmem:[%s9284_s29 + $0x40] ss:$16 sps:$4 sm:$0xff]   ;;  %v7049_v35 = vld [vmem:[%s9284_s29 + $0x48] ss:$16 sps:$4 sm:$0xff]  }
 0x3c8   : > { %v7058_v42 = vld [vmem:[%s9284_s29 + $0x80] ss:$16 sps:$4 sm:$0xff]   ;;  %v7061_v43 = vld [vmem:[%s9284_s29 + $0x88] ss:$16 sps:$4 sm:$0xff]   ;;  %v7069_v48 = vld [vmem:[%s9284_s29 + $0xac] ss:$16 sps:$4 sm:$0xff]  }
 0x3c9   : > { %6799 = vmatmul.mubr.bf16.vlgmr.msra.gmra.mrb[4].mxu0 %v1923_v47  ;;  %6819 = vmatmul.mubr.bf16.vlgmr.msra.gmra.mrb[4].mxu1 %v9436_v46  ;;  %v7067_v47 = vld [vmem:[%s9284_s29 + $0xa8] ss:$16 sps:$4 sm:$0xff]   ;;  %v7072_v49 = vld [vmem:[%s9284_s29 + $0xc4] ss:$16 sps:$4 sm:$0xff]  }
 0x3ca   : > { %6703 = vmatpush3.bf16.msra.mxu0 %v7004_v44  ;;  %6725 = vmatpush3.bf16.msra.mxu1 %v7005_v45  ;;  %v7066_v44 = vld [vmem:[%s9284_s29 + $0xa4] ss:$16 sps:$4 sm:$0xff]   ;;  %v7064_v45 = vld [vmem:[%s9284_s29 + $0xa0] ss:$16 sps:$4 sm:$0xff]  }
 0x3cb   : > { %6704 = vmatprep.subr.bf16.mxu0 %v7006_v50  ;;  %6726 = vmatprep.subr.bf16.mxu1 %v7007_v51  ;;  %v7075_v50 = vld [vmem:[%s9284_s29 + $0xcc] ss:$16 sps:$4 sm:$0xff]   ;;  %v7070_v51 = vld [vmem:[%s9284_s29 + $0xc0] ss:$16 sps:$4 sm:$0xff]  }
 0x3cc   : > { %2410 = vmatprep.mubr.bf16.mxu0 %v2119_v52  ;;  %2451 = vmatprep.mubr.bf16.mxu1 %v2121_v53  ;;  %v7073_v52 = vld [vmem:[%s9284_s29 + $0xc8] ss:$16 sps:$4 sm:$0xff]   ;;  %v7078_v53 = vld [vmem:[%s9284_s29 + $0xe4] ss:$16 sps:$4 sm:$0xff]  }
 0x3ce   : > { %6705 = vmatpush3.bf16.msra.mxu0 %v7008_v54  ;;  %6727 = vmatpush3.bf16.msra.mxu1 %v7009_v55  ;;  %v7081_v54 = vld [vmem:[%s9284_s29 + $0xec] ss:$16 sps:$4 sm:$0xff]   ;;  %v8402_v55 = vmov 0  }
 0x3cf   : > { %6706 = vmatprep.subr.bf16.mxu0 %v7010_v56  ;;  %6728 = vmatprep.subr.bf16.mxu1 %v7011_v57  ;;  %v7076_v56 = vld [vmem:[%s9284_s29 + $0xe0] ss:$16 sps:$4 sm:$0xff]   ;;  %v7079_v57 = vld [vmem:[%s9284_s29 + $0xe8] ss:$16 sps:$4 sm:$0xff]   ;;  %s10022_s29 = scalar_lea.vmem [#allocation22], %s9308_s23 }
 0x3d0   : > { %6983 = vset.pattern.permute.xlu0 %v8402_v55 }
 0x3d2   : > { %6707 = vmatpush3.bf16.msra.mxu0 %v7012_v58  ;;  %6729 = vmatpush3.bf16.msra.mxu1 %v7013_v59  ;;  %v7084_v58 = vld [vmem:[%s9301_s24 + $0x4] ss:$8 sps:$4 sm:$0xff]  }
 0x3d3   : > { %6708 = vmatprep.subr.bf16.mxu0 %v7014_v60  ;;  %6730 = vmatprep.subr.bf16.mxu1 %v7015_v61 }
 0x3d6   : > { %6709 = vmatpush3.bf16.msra.mxu0 %v7016_v62  ;;  %6731 = vmatpush3.bf16.msra.mxu1 %v7017_v63 }
 0x3d7   : > { %6710 = vmatprep.subr.bf16.mxu0 %v7018_v0  ;;  %6732 = vmatprep.subr.bf16.mxu1 %v7019_v1 }
 0x3da   : > { %6711 = vmatpush3.bf16.msra.mxu0 %v7020_v2  ;;  %6733 = vmatpush3.bf16.msra.mxu1 %v7021_v3 }
 0x3db   : > { %6712 = vmatprep.subr.bf16.mxu0 %v7022_v4  ;;  %6734 = vmatprep.subr.bf16.mxu1 %v7023_v5 }
 0x3de   : > { %6713 = vmatpush3.bf16.msra.mxu0 %v7024_v6  ;;  %6735 = vmatpush3.bf16.msra.mxu1 %v7025_v7 }
 0x3df   : > { %6714 = vmatprep.subr.bf16.mxu0 %v7026_v8  ;;  %6736 = vmatprep.subr.bf16.mxu1 %v7027_v9 }
 0x3e2   : > { %6715 = vmatpush3.bf16.msra.mxu0 %v7028_v10  ;;  %6737 = vmatpush3.bf16.msra.mxu1 %v7029_v13 }
 0x3e3   : > { %6716 = vmatprep.subr.bf16.mxu0 %v7030_v14  ;;  %6738 = vmatprep.subr.bf16.mxu1 %v7031_v15 }
 0x3e6   : > { %6717 = vmatpush3.bf16.msra.mxu0 %v7032_v16  ;;  %6739 = vmatpush3.bf16.msra.mxu1 %v7033_v17 }
 0x3e7   : > { %2698 = vmatprep.subr.bf16.mxu0 %v7036_v24  ;;  %2741 = vmatprep.subr.bf16.mxu1 %v7039_v25 }
 0x3e9   : > { %2411 = vmatmul.mubr.bf16.vlgmr.msra.gmra.mrb[8].mxu0 %v2118_v22  ;;  %2452 = vmatmul.mubr.bf16.vlgmr.msra.gmra.mrb[8].mxu1 %v2120_v23 }
 0x3ea   : > { %2699 = vmatpush1.bf16.msra.mxu0 %v7034_v26  ;;  %2742 = vmatpush1.bf16.msra.mxu1 %v7037_v27 }
 0x3eb   : > { %2700 = vmatprep.subr.bf16.mxu0 %v7042_v28  ;;  %2743 = vmatprep.subr.bf16.mxu1 %v7045_v29 }
 0x3ec   : > { %2730 = vmatprep.mubr.bf16.mxu0 %v8402_v55  ;;  %2773 = vmatprep.mubr.bf16.mxu1 %v8402_v55 }
 0x3ee   : > { %2701 = vmatpush1.bf16.msra.mxu0 %v7040_v30  ;;  %2744 = vmatpush1.bf16.msra.mxu1 %v7043_v31 }
 0x3ef   : > { %2702 = vmatprep.subr.bf16.mxu0 %v7048_v32  ;;  %2745 = vmatprep.subr.bf16.mxu1 %v7051_v33 }
 0x3f2   : > { %2703 = vmatpush1.bf16.msra.mxu0 %v7046_v34  ;;  %2746 = vmatpush1.bf16.msra.mxu1 %v7049_v35 }
 0x3f3   : > { %2704 = vmatprep.subr.bf16.mxu0 %v7054_v36  ;;  %2747 = vmatprep.subr.bf16.mxu1 %v7057_v37  ;;  %v7082_v36 = vld [vmem:[%s9301_s24] ss:$8 sps:$4 sm:$0xff]  }
 0x3f6   : > { %2705 = vmatpush1.bf16.msra.mxu0 %v7052_v38  ;;  %2748 = vmatpush1.bf16.msra.mxu1 %v7055_v39  ;;  %v7087_v38 = vld [vmem:[%s9301_s24 + $0x14] ss:$8 sps:$4 sm:$0xff]   ;;  %v7085_v39 = vld [vmem:[%s9301_s24 + $0x10] ss:$8 sps:$4 sm:$0xff]  }
 0x3f7   : > { %2706 = vmatprep.subr.bf16.mxu0 %v7060_v40  ;;  %2749 = vmatprep.subr.bf16.mxu1 %v7063_v41  ;;  %v7090_v40 = vld [vmem:[%s9301_s24 + $0x24] ss:$8 sps:$4 sm:$0xff]   ;;  %v7088_v41 = vld [vmem:[%s9301_s24 + $0x20] ss:$8 sps:$4 sm:$0xff]  }
 0x3fa   : > { %2707 = vmatpush1.bf16.msra.mxu0 %v7058_v42  ;;  %2750 = vmatpush1.bf16.msra.mxu1 %v7061_v43  ;;  %v7093_v42 = vld [vmem:[%s9301_s24 + $0x34] ss:$8 sps:$4 sm:$0xff]   ;;  %v7091_v43 = vld [vmem:[%s9301_s24 + $0x30] ss:$8 sps:$4 sm:$0xff]  }
 0x3fb   : > { %2708 = vmatprep.subr.bf16.mxu0 %v7066_v44  ;;  %2751 = vmatprep.subr.bf16.mxu1 %v7069_v48  ;;  %v7096_v44 = vld [vmem:[%s9301_s24 + $0x44] ss:$8 sps:$4 sm:$0xff]   ;;  %v7097_v48 = vld [vmem:[%s9301_s24 + $0x50] ss:$8 sps:$4 sm:$0xff]  }
 0x3fe   : > { %2709 = vmatpush1.bf16.msra.mxu0 %v7064_v45  ;;  %2752 = vmatpush1.bf16.msra.mxu1 %v7067_v47  ;;  %v7094_v45 = vld [vmem:[%s9301_s24 + $0x40] ss:$8 sps:$4 sm:$0xff]   ;;  %v7099_v47 = vld [vmem:[%s9301_s24 + $0x54] ss:$8 sps:$4 sm:$0xff]  }
 0x3ff   : > { %2710 = vmatprep.subr.bf16.mxu0 %v7072_v49  ;;  %2753 = vmatprep.subr.bf16.mxu1 %v7075_v50  ;;  %v7102_v49 = vld [vmem:[%s9301_s24 + $0x64] ss:$8 sps:$4 sm:$0xff]   ;;  %v7100_v50 = vld [vmem:[%s9301_s24 + $0x60] ss:$8 sps:$4 sm:$0xff]  }
 0x402   : > { %2711 = vmatpush1.bf16.msra.mxu0 %v7070_v51  ;;  %2754 = vmatpush1.bf16.msra.mxu1 %v7073_v52  ;;  %v7105_v51 = vld [vmem:[%s9301_s24 + $0x74] ss:$8 sps:$4 sm:$0xff]   ;;  %v7103_v52 = vld [vmem:[%s9301_s24 + $0x70] ss:$8 sps:$4 sm:$0xff]  }
 0x403   : > { %2712 = vmatprep.subr.bf16.mxu0 %v7078_v53  ;;  %2755 = vmatprep.subr.bf16.mxu1 %v7081_v54  ;;  %v7108_v53 = vld [vmem:[%s9301_s24 + $0x84] ss:$8 sps:$4 sm:$0xff]   ;;  %v7106_v54 = vld [vmem:[%s9301_s24 + $0x80] ss:$8 sps:$4 sm:$0xff]  }
 0x406   : > { %2713 = vmatpush1.bf16.msra.mxu0 %v7076_v56  ;;  %2756 = vmatpush1.bf16.msra.mxu1 %v7079_v57  ;;  %v7111_v56 = vld [vmem:[%s9301_s24 + $0x94] ss:$8 sps:$4 sm:$0xff]   ;;  %v7109_v57 = vld [vmem:[%s9301_s24 + $0x90] ss:$8 sps:$4 sm:$0xff]  }
 0x407   : > { %3188 = vmatprep.subr.bf16.mxu0 %v7084_v58  ;;  %v7114_v58 = vld [vmem:[%s9301_s24 + $0xa4] ss:$8 sps:$4 sm:$0xff]  }
 0x49c   : > { %v2022_v59 = vpop.f32.mrb[4].mxu0  ;;  %v2111_v60 = vpop.f32.mrb[4].mxu1 }
 0x49d   : > { %v2112_v61 = vadd.f32 %v2111_v60, %v2022_v59  ;;  %v6800_v62 = vpop.f32.mrb[5].mxu0  ;;  %v6820_v63 = vpop.f32.mrb[5].mxu1  ;;  %v7112_v59 = vld [vmem:[%s9301_s24 + $0xa0] ss:$8 sps:$4 sm:$0xff]   ;;  %v7117_v60 = vld [vmem:[%s9301_s24 + $0xb4] ss:$8 sps:$4 sm:$0xff]  }
 0x49e   : > { %v2025_v0 = vpop.f32.mrb[6].mxu0  ;;  %v2114_v1 = vpop.f32.mrb[6].mxu1  ;;  %v7120_v62 = vld [vmem:[%s9301_s24 + $0xc4] ss:$8 sps:$4 sm:$0xff]   ;;  %v7118_v63 = vld [vmem:[%s9301_s24 + $0xc0] ss:$8 sps:$4 sm:$0xff]  }
 0x49f   : > { %v2115_v2 = vadd.f32 %v2114_v1, %v2025_v0  ;;  %v6801_v3 = vpop.f32.mrb[7].mxu0  ;;  %v6821_v4 = vpop.f32.mrb[7].mxu1  ;;  %v7123_v0 = vld [vmem:[%s9301_s24 + $0xd4] ss:$8 sps:$4 sm:$0xff]   ;;  %v7121_v1 = vld [vmem:[%s9301_s24 + $0xd0] ss:$8 sps:$4 sm:$0xff]  }
 0x4a0   : > { %v7124_v3 = vld [vmem:[%s9301_s24 + $0xe0] ss:$8 sps:$4 sm:$0xff]   ;;  %v7129_v4 = vld [vmem:[%s9301_s24 + $0xf4] ss:$8 sps:$4 sm:$0xff]  }
 0x4bc   : > { %v6718_v5 = vpop.f32.mrb[8].mxu0  ;;  %v6740_v6 = vpop.f32.mrb[8].mxu1 }
 0x4bd   : > { %v6719_v7 = vpop.f32.mrb[9].mxu0  ;;  %v6741_v8 = vpop.f32.mrb[9].mxu1 }
 0x4be   : > { %v6720_v9 = vadd.f32 %v6719_v7, %v6718_v5  ;;  %v6742_v10 = vadd.f32 %v6741_v8, %v6740_v6  ;;  %v6721_v13 = vpop.f32.mrb[10].mxu0  ;;  %v6743_v14 = vpop.f32.mrb[10].mxu1  ;;  %v7127_v5 = vld [vmem:[%s9301_s24 + $0xf0] ss:$8 sps:$4 sm:$0xff]   ;;  %v7132_v6 = vld [vmem:[%s9301_s24 + $0x104] ss:$8 sps:$4 sm:$0xff]  }
 0x4bf   : > { %v6722_v15 = vpop.f32.mrb[11].mxu0  ;;  %v6744_v16 = vpop.f32.mrb[11].mxu1  ;;  %v7202_v7 = vld [vmem:[%s9313_s16] ss:$8 sps:$4 sm:$0xff]   ;;  %v7204_v8 = vld [vmem:[%s9313_s16 + $0x4] ss:$8 sps:$4 sm:$0xff]  }
 0x4c0   : > { %v2454_v17 = vadd.f32 %v6742_v10, %v6720_v9  ;;  %v6723_v18 = vadd.f32 %v6722_v15, %v6721_v13  ;;  %v6745_v19 = vadd.f32 %v6744_v16, %v6743_v14  ;;  %v7207_v9 = vld [vmem:[%s9313_s16 + $0x14] ss:$8 sps:$4 sm:$0xff]   ;;  %3643 = vmatprep.subr.bf16.mxu1 %v7204_v8  ;;  %v7205_v10 = vld [vmem:[%s9313_s16 + $0x10] ss:$8 sps:$4 sm:$0xff]   ;;  %v7210_v13 = vld [vmem:[%s9313_s16 + $0x24] ss:$8 sps:$4 sm:$0xff]   ;;  %v2518_v15 = vlaneseq }
 0x4c1   : > { %v7208_v14 = vld [vmem:[%s9313_s16 + $0x20] ss:$8 sps:$4 sm:$0xff]   ;;  %v7213_v16 = vld [vmem:[%s9313_s16 + $0x34] ss:$8 sps:$4 sm:$0xff]  }
 0x4c2   : > { %v2460_v21 = vadd.f32 %v2454_v17, %v2112_v61  ;;  %v2457_v22 = vadd.f32 %v6745_v19, %v6723_v18  ;;  %v7115_v61 = vld [vmem:[%s9301_s24 + $0xb0] ss:$8 sps:$4 sm:$0xff]   ;;  %v7211_v17 = vld [vmem:[%s9313_s16 + $0x30] ss:$8 sps:$4 sm:$0xff]   ;;  %v9545_v18 = vshrl.u32 %v2518_v15, 7 }
 0x4c3   : > { %v7216_v19 = vld [vmem:[%s9313_s16 + $0x44] ss:$8 sps:$4 sm:$0xff]   ;;  %v7156_v15 = vld [vmem:[%s9301_s24 + $0x184] ss:$8 sps:$4 sm:$0xff]  }
 0x4c4   : > { %v2469_v23 = vadd.f32 %v6280_v20, %v2460_v21  ;;  %v2461_v24 = vadd.f32 %v2457_v22, %v2115_v2  ;;  %v7126_v2 = vld [vmem:[%s9301_s24 + $0xe4] ss:$8 sps:$4 sm:$0xff]   ;;  %v9550_v21 = vsub.s32 0, %v9545_v18  ;;  %v2528_v22 = vsub.s32 2, %v9545_v18  ;;  %v7145_v8 = vld [vmem:[%s9301_s24 + $0x150] ss:$8 sps:$4 sm:$0xff]  }
 0x4c6   : > { %v2473_v25 = vmin.f32 %v2469_v23, 0.0  ;;  %v2470_v26 = vadd.f32 %v6280_v20, %v2461_v24  ;;  %vm2471_vm3 = vcmp.gt.f32.partialorder %v2469_v23, 0.0  ;;  %v7214_v20 = vld [vmem:[%s9313_s16 + $0x40] ss:$8 sps:$4 sm:$0xff]   ;;  %v2516_v24 = vld [vmem:[%s9287_s11] sm:$0xf] }
 0x4c7   : > { %s10023_s11 = sld [smem:[#allocation59_spill]] }
 0x4c8   : > { %v2475_v27 = vmul.f32 1.442695, %v2473_v25  ;;  %v2474_v28 = vmin.f32 %v2470_v26, 0.0  ;;  %vm2472_vm4 = vcmp.gt.f32.partialorder %v2470_v26, 0.0  ;;  %v9556_v25 = vsub.s32 1, %v9545_v18 }
 0x4ca   : > { %7458 = vpow2.f32 %v2475_v27  ;;  %v2477_v29 = vmul.f32 1.442695, %v2474_v28  ;;  %v7217_v27 = vld [vmem:[%s9313_s16 + $0x50] ss:$8 sps:$4 sm:$0xff]   ;;  %v2521_v28 = vrot.slane %v2516_v24, %v9550_v21 }
 0x4cc   : > { %7460 = vpow2.f32 %v2477_v29  ;;  %v2529_v29 = vrot.slane %v2516_v24, %v2528_v22 }
 0x4d4   : > { %v7459_v30 = vpop.eup %7458 }
 0x4d5   : > { %v6281_v31 = vadd.f32 -1.0, %v7459_v30  ;;  %v7222_v30 = vld [vmem:[%s9313_s16 + $0x64] ss:$8 sps:$4 sm:$0xff]  }
 0x4d6   : > { %v7461_v32 = vpop.eup %7460 }
 0x4d7   : > { %v6282_v33 = vadd.f32 -1.0, %v7461_v32  ;;  %v2481_v34 = vsel %vm2471_vm3, %v2469_v23, %v6281_v31  ;;  %v7219_v23 = vld [vmem:[%s9313_s16 + $0x54] ss:$8 sps:$4 sm:$0xff]   ;;  %v2525_v31 = vrot.slane %v2516_v24, %v9556_v25 }
 0x4d9   : > { %v2482_v35 = vsel %vm2472_vm4, %v2470_v26, %v6282_v33  ;;  %v2532_v26 = vsub.s32 3, %v9545_v18 }
 0x4da   : > { %v2483_v37 = vpack.c.bf16 %v2482_v35, %v2481_v34  ;;  %v7220_v35 = vld [vmem:[%s9313_s16 + $0x60] ss:$8 sps:$4 sm:$0xff]  }
 0x4db   : > { %v2533_v32 = vrot.slane %v2516_v24, %v2532_v26  ;;  %v7165_v24 = vld [vmem:[%s9301_s24 + $0x1b4] ss:$8 sps:$4 sm:$0xff]  }
 0x4dc   : > { %2731 = vmatmul.mubr.bf16.vlgmr.msra.gmra.mrb[12].mxu0 %v2483_v37  ;;  %2774 = vmatmul.mubr.bf16.vlgmr.msra.gmra.mrb[12].mxu1 %v2483_v37 }
 0x4dd   : > { %3189 = vmatpush1.bf16.msra.mxu0 %v7082_v36  ;;  %3644 = vmatpush1.bf16.msra.mxu1 %v7202_v7  ;;  %v7147_v7 = vld [vmem:[%s9301_s24 + $0x154] ss:$8 sps:$4 sm:$0xff]  }
 0x4de   : > { %3190 = vmatprep.subr.bf16.mxu0 %v7087_v38  ;;  %3645 = vmatprep.subr.bf16.mxu1 %v7207_v9  ;;  %v7150_v9 = vld [vmem:[%s9301_s24 + $0x164] ss:$8 sps:$4 sm:$0xff]  }
 0x4e1   : > { %3191 = vmatpush1.bf16.msra.mxu0 %v7085_v39  ;;  %3646 = vmatpush1.bf16.msra.mxu1 %v7205_v10  ;;  %v7148_v10 = vld [vmem:[%s9301_s24 + $0x160] ss:$8 sps:$4 sm:$0xff]  }
 0x4e2   : > { %3192 = vmatprep.subr.bf16.mxu0 %v7090_v40  ;;  %3647 = vmatprep.subr.bf16.mxu1 %v7210_v13  ;;  %v7225_v40 = vld [vmem:[%s9313_s16 + $0x74] ss:$8 sps:$4 sm:$0xff]   ;;  %v7153_v13 = vld [vmem:[%s9301_s24 + $0x174] ss:$8 sps:$4 sm:$0xff]  }
 0x4e5   : > { %3193 = vmatpush1.bf16.msra.mxu0 %v7088_v41  ;;  %3648 = vmatpush1.bf16.msra.mxu1 %v7208_v14  ;;  %v7151_v14 = vld [vmem:[%s9301_s24 + $0x170] ss:$8 sps:$4 sm:$0xff]  }
 0x4e6   : > { %3194 = vmatprep.subr.bf16.mxu0 %v7093_v42  ;;  %3649 = vmatprep.subr.bf16.mxu1 %v7213_v16  ;;  %v7154_v16 = vld [vmem:[%s9301_s24 + $0x180] ss:$8 sps:$4 sm:$0xff]  }
 0x4e9   : > { %3195 = vmatpush1.bf16.msra.mxu0 %v7091_v43  ;;  %3650 = vmatpush1.bf16.msra.mxu1 %v7211_v17  ;;  %v7159_v17 = vld [vmem:[%s9301_s24 + $0x194] ss:$8 sps:$4 sm:$0xff]  }
 0x4ea   : > { %3196 = vmatprep.subr.bf16.mxu0 %v7096_v44  ;;  %3651 = vmatprep.subr.bf16.mxu1 %v7216_v19  ;;  %v7157_v19 = vld [vmem:[%s9301_s24 + $0x190] ss:$8 sps:$4 sm:$0xff]  }
 0x4ed   : > { %3197 = vmatpush1.bf16.msra.mxu0 %v7094_v45  ;;  %3652 = vmatpush1.bf16.msra.mxu1 %v7214_v20  ;;  %v7162_v20 = vld [vmem:[%s9301_s24 + $0x1a4] ss:$8 sps:$4 sm:$0xff]  }
 0x4ee   : > { %3198 = vmatprep.subr.bf16.mxu0 %v7099_v47  ;;  %3653 = vmatprep.subr.bf16.mxu1 %v7219_v23  ;;  %v7160_v23 = vld [vmem:[%s9301_s24 + $0x1a0] ss:$8 sps:$4 sm:$0xff]  }
 0x4f1   : > { %3199 = vmatpush1.bf16.msra.mxu0 %v7097_v48  ;;  %3654 = vmatpush1.bf16.msra.mxu1 %v7217_v27  ;;  %v7163_v27 = vld [vmem:[%s9301_s24 + $0x1b0] ss:$8 sps:$4 sm:$0xff]  }
 0x4f2   : > { %3200 = vmatprep.subr.bf16.mxu0 %v7102_v49  ;;  %3655 = vmatprep.subr.bf16.mxu1 %v7222_v30  ;;  %v7171_v30 = vld [vmem:[%s9301_s24 + $0x1d4] ss:$8 sps:$4 sm:$0xff]  }
 0x4f5   : > { %3201 = vmatpush1.bf16.msra.mxu0 %v7100_v50  ;;  %3656 = vmatpush1.bf16.msra.mxu1 %v7220_v35  ;;  %v7175_v35 = vld [vmem:[%s9301_s24 + $0x1f0] ss:$8 sps:$4 sm:$0xff]  }
 0x4f6   : > { %3202 = vmatprep.subr.bf16.mxu0 %v7105_v51  ;;  %3657 = vmatprep.subr.bf16.mxu1 %v7225_v40  ;;  %v7181_v40 = vld [vmem:[%s9298_s2 + $0x10] ss:$8 sps:$4 sm:$0xff]  }
 0x4f9   : > { %3203 = vmatpush1.bf16.msra.mxu0 %v7103_v52  ;;  %v7223_v52 = vld [vmem:[%s9313_s16 + $0x70] ss:$8 sps:$4 sm:$0xff]  }
 0x4fa   : > { %3204 = vmatprep.subr.bf16.mxu0 %v7108_v53  ;;  %3658 = vmatpush1.bf16.msra.mxu1 %v7223_v52  ;;  %v7199_v52 = vld [vmem:[%s9298_s2 + $0x70] ss:$8 sps:$4 sm:$0xff]  }
 0x4fd   : > { %3205 = vmatpush1.bf16.msra.mxu0 %v7106_v54 }
 0x4fe   : > { %3206 = vmatprep.subr.bf16.mxu0 %v7111_v56  ;;  %v7228_v56 = vld [vmem:[%s9313_s16 + $0x84] ss:$8 sps:$4 sm:$0xff]  }
 0x4ff   : > { %3659 = vmatprep.subr.bf16.mxu1 %v7228_v56  ;;  %v7237_v56 = vld [vmem:[%s9313_s16 + $0xb4] ss:$8 sps:$4 sm:$0xff]  }
 0x501   : > { %3207 = vmatpush1.bf16.msra.mxu0 %v7109_v57 }
 0x502   : > { %3208 = vmatprep.subr.bf16.mxu0 %v7114_v58 }
 0x505   : > { %3209 = vmatpush1.bf16.msra.mxu0 %v7112_v59  ;;  %v7130_v59 = vld [vmem:[%s9301_s24 + $0x100] ss:$8 sps:$4 sm:$0xff]  }
 0x506   : > { %3210 = vmatprep.subr.bf16.mxu0 %v7117_v60  ;;  %v7135_v60 = vld [vmem:[%s9301_s24 + $0x114] ss:$8 sps:$4 sm:$0xff]  }
 0x509   : > { %3211 = vmatpush1.bf16.msra.mxu0 %v7115_v61  ;;  %v7226_v61 = vld [vmem:[%s9313_s16 + $0x80] ss:$8 sps:$4 sm:$0xff]  }
 0x50a   : > { %3212 = vmatprep.subr.bf16.mxu0 %v7120_v62  ;;  %v7231_v62 = vld [vmem:[%s9313_s16 + $0x94] ss:$8 sps:$4 sm:$0xff]   ;;  %3660 = vmatpush1.bf16.msra.mxu1 %v7226_v61  ;;  %v7246_v61 = vld [vmem:[%s9313_s16 + $0xe4] ss:$8 sps:$4 sm:$0xff]  }
 0x50b   : > { %3661 = vmatprep.subr.bf16.mxu1 %v7231_v62  ;;  %v7244_v62 = vld [vmem:[%s9313_s16 + $0xe0] ss:$8 sps:$4 sm:$0xff]  }
 0x50d   : > { %3213 = vmatpush1.bf16.msra.mxu0 %v7118_v63  ;;  %v7133_v63 = vld [vmem:[%s9301_s24 + $0x110] ss:$8 sps:$4 sm:$0xff]  }
 0x50e   : > { %3214 = vmatprep.subr.bf16.mxu0 %v7123_v0  ;;  %v7138_v0 = vld [vmem:[%s9301_s24 + $0x124] ss:$8 sps:$4 sm:$0xff]  }
 0x511   : > { %3215 = vmatpush1.bf16.msra.mxu0 %v7121_v1  ;;  %v7229_v1 = vld [vmem:[%s9313_s16 + $0x90] ss:$8 sps:$4 sm:$0xff]  }
 0x512   : > { %3216 = vmatprep.subr.bf16.mxu0 %v7126_v2  ;;  %v7136_v2 = vld [vmem:[%s9301_s24 + $0x120] ss:$8 sps:$4 sm:$0xff]   ;;  %3662 = vmatpush1.bf16.msra.mxu1 %v7229_v1 }
 0x513   : > { %v3397_v1 = vld [vmem:[%s10019_s0] sm:$0x3] }
 0x515   : > { %3217 = vmatpush1.bf16.msra.mxu0 %v7124_v3  ;;  %v7141_v3 = vld [vmem:[%s9301_s24 + $0x134] ss:$8 sps:$4 sm:$0xff]  }
 0x516   : > { %3218 = vmatprep.subr.bf16.mxu0 %v7129_v4  ;;  %v7139_v4 = vld [vmem:[%s9301_s24 + $0x130] ss:$8 sps:$4 sm:$0xff]  }
 0x519   : > { %3219 = vmatpush1.bf16.msra.mxu0 %v7127_v5  ;;  %v7144_v5 = vld [vmem:[%s9301_s24 + $0x144] ss:$8 sps:$4 sm:$0xff]  }
 0x51a   : > { %3231 = vmatprep.subr.bf16.mxu0 %v7132_v6  ;;  %v7142_v6 = vld [vmem:[%s9301_s24 + $0x140] ss:$8 sps:$4 sm:$0xff]  }
 0x5af   : > { %v2732_v33 = vpop.f32.mrb[12].mxu0  ;;  %v2775_v34 = vpop.f32.mrb[12].mxu1 }
 0x5b0   : > { %v2733_v36 = vadd.f32 %v2732_v33, %v2521_v28  ;;  %v9568_v37 = vadd.f32 %v2775_v34, %v2529_v29  ;;  %v2734_v38 = vpop.f32.mrb[13].mxu0  ;;  %v2777_v39 = vpop.f32.mrb[13].mxu1  ;;  %v7172_v33 = vld [vmem:[%s9301_s24 + $0x1e0] ss:$8 sps:$4 sm:$0xff]   ;;  %v7177_v34 = vld [vmem:[%s9301_s24 + $0x1f4] ss:$8 sps:$4 sm:$0xff]  }
 0x5b1   : > { %v2735_v41 = vadd.f32 %v2734_v38, %v2525_v31  ;;  %v2778_v42 = vadd.f32 %v2777_v39, %v2533_v32  ;;  %v2736_v43 = vpop.f32.mrb[14].mxu0  ;;  %v2779_v44 = vpop.f32.mrb[14].mxu1  ;;  %v7178_v38 = vld [vmem:[%s9298_s2] ss:$8 sps:$4 sm:$0xff]   ;;  %v7183_v39 = vld [vmem:[%s9298_s2 + $0x14] ss:$8 sps:$4 sm:$0xff]  }
 0x5b2   : > { %5030 = vst [vmem:[#allocation3] sm:$0xff] %v2733_v36  ;;  %5032 = vst [vmem:[#allocation3 + $0x10] sm:$0xff] %v9568_v37  ;;  %v2737_v45 = vadd.f32 %v2736_v43, %v2521_v28  ;;  %v9572_v47 = vadd.f32 %v2779_v44, %v2529_v29  ;;  %v2738_v48 = vpop.f32.mrb[15].mxu0  ;;  %v2781_v49 = vpop.f32.mrb[15].mxu1  ;;  %v7168_v28 = vld [vmem:[%s9301_s24 + $0x1c4] ss:$8 sps:$4 sm:$0xff]  }
 0x5b3   : > { %5031 = vst [vmem:[#allocation3 + $0x8] sm:$0xff] %v2735_v41  ;;  %5033 = vst [vmem:[#allocation3 + $0x18] sm:$0xff] %v2778_v42  ;;  %v2739_v50 = vadd.f32 %v2738_v48, %v2525_v31  ;;  %v2782_v51 = vadd.f32 %v2781_v49, %v2533_v32  ;;  %v7166_v29 = vld [vmem:[%s9301_s24 + $0x1c0] ss:$8 sps:$4 sm:$0xff]   ;;  %v7169_v31 = vld [vmem:[%s9301_s24 + $0x1d0] ss:$8 sps:$4 sm:$0xff]  }
 0x5b4   : > { %v2800_v53 = vpack.c.bf16 %v2737_v45, %v2733_v36  ;;  %5034 = vst [vmem:[#allocation3 + $0x20] sm:$0xff] %v2737_v45  ;;  %v2802_v54 = vpack.c.bf16 %v9572_v47, %v9568_v37  ;;  %5036 = vst [vmem:[#allocation3 + $0x30] sm:$0xff] %v9572_v47  ;;  %v7174_v32 = vld [vmem:[%s9301_s24 + $0x1e4] ss:$8 sps:$4 sm:$0xff]   ;;  %v7189_v43 = vld [vmem:[%s9298_s2 + $0x34] ss:$8 sps:$4 sm:$0xff]  }
 0x5b5   : > { %v2801_v57 = vpack.c.bf16 %v2739_v50, %v2735_v41  ;;  %5035 = vst [vmem:[#allocation3 + $0x28] sm:$0xff] %v2739_v50  ;;  %v2803_v58 = vpack.c.bf16 %v2782_v51, %v2778_v42  ;;  %5037 = vst [vmem:[#allocation3 + $0x38] sm:$0xff] %v2782_v51  ;;  %v7180_v36 = vld [vmem:[%s9298_s2 + $0x4] ss:$8 sps:$4 sm:$0xff]   ;;  %v7184_v42 = vld [vmem:[%s9298_s2 + $0x20] ss:$8 sps:$4 sm:$0xff]  }
 0x5b6   : > { %v7186_v41 = vld [vmem:[%s9298_s2 + $0x24] ss:$8 sps:$4 sm:$0xff]   ;;  %v7187_v44 = vld [vmem:[%s9298_s2 + $0x30] ss:$8 sps:$4 sm:$0xff]   ;;  %v7190_v45 = vld [vmem:[%s9298_s2 + $0x40] ss:$8 sps:$4 sm:$0xff]  }
 0x5b7   : > { %3220 = vmatprep.mubr.bf16.mxu0 %v2801_v57  ;;  %v7192_v37 = vld [vmem:[%s9298_s2 + $0x44] ss:$8 sps:$4 sm:$0xff]   ;;  %v7195_v47 = vld [vmem:[%s9298_s2 + $0x54] ss:$8 sps:$4 sm:$0xff]   ;;  %v7193_v48 = vld [vmem:[%s9298_s2 + $0x50] ss:$8 sps:$4 sm:$0xff]  }
 0x5b8   : > { %3221 = vmatmul.mubr.bf16.vlgmr.msra.gmra.mrb[16].mxu0 %v2800_v53  ;;  %v7198_v49 = vld [vmem:[%s9298_s2 + $0x64] ss:$8 sps:$4 sm:$0xff]   ;;  %v7196_v50 = vld [vmem:[%s9298_s2 + $0x60] ss:$8 sps:$4 sm:$0xff]   ;;  %v7201_v51 = vld [vmem:[%s9298_s2 + $0x74] ss:$8 sps:$4 sm:$0xff]  }
 0x5b9   : > { %3232 = vmatpush1.bf16.msra.mxu0 %v7130_v59  ;;  %3263 = vmatprep.mubr.bf16.mxu0 %v2803_v58  ;;  %v7234_v53 = vld [vmem:[%s9313_s16 + $0xa4] ss:$8 sps:$4 sm:$0xff]   ;;  %v7235_v57 = vld [vmem:[%s9313_s16 + $0xb0] ss:$8 sps:$4 sm:$0xff]   ;;  %v7238_v59 = vld [vmem:[%s9313_s16 + $0xc0] ss:$8 sps:$4 sm:$0xff]  }
 0x5ba   : > { %3233 = vmatprep.subr.bf16.mxu0 %v7135_v60  ;;  %3663 = vmatprep.subr.bf16.mxu1 %v7234_v53  ;;  %v7240_v58 = vld [vmem:[%s9313_s16 + $0xc4] ss:$8 sps:$4 sm:$0xff]   ;;  %v7241_v60 = vld [vmem:[%s9313_s16 + $0xd0] ss:$8 sps:$4 sm:$0xff]   ;;  %s10025_s2 = sld [smem:[#allocation61_spill]]  ;;  %s10026_s24 = scalar_lea.vmem [#allocation29], %s9250_s4 }
 0x5bb   : > { %v7262_v53 = vld [vmem:[%s9329_s1 + $0x40] ss:$8 sps:$4 sm:$0xff]  }
 0x5bd   : > { %3234 = vmatpush1.bf16.msra.mxu0 %v7133_v63  ;;  %v7249_v63 = vld [vmem:[%s9313_s16 + $0xf4] ss:$8 sps:$4 sm:$0xff]  }
 0x5be   : > { %3235 = vmatprep.subr.bf16.mxu0 %v7138_v0  ;;  %v7247_v0 = vld [vmem:[%s9313_s16 + $0xf0] ss:$8 sps:$4 sm:$0xff]  }
 0x5c1   : > { %3236 = vmatpush1.bf16.msra.mxu0 %v7136_v2  ;;  %v3402_v2 = vrot.slane %v3397_v1, %v9550_v21 }
 0x5c2   : > { %3237 = vmatprep.subr.bf16.mxu0 %v7141_v3  ;;  %v3406_v3 = vrot.slane %v3397_v1, %v9556_v25  ;;  %v7280_v1 = vld [vmem:[%s9329_s1 + $0xa0] ss:$8 sps:$4 sm:$0xff]  }
 0x5c5   : > { %3238 = vmatpush1.bf16.msra.mxu0 %v7139_v4 }
 0x5c6   : > { %3239 = vmatprep.subr.bf16.mxu0 %v7144_v5 }
 0x5c9   : > { %3240 = vmatpush1.bf16.msra.mxu0 %v7142_v6 }
 0x5ca   : > { %3241 = vmatprep.subr.bf16.mxu0 %v7147_v7 }
 0x5cd   : > { %3242 = vmatpush1.bf16.msra.mxu0 %v7145_v8 }
 0x5ce   : > { %3243 = vmatprep.subr.bf16.mxu0 %v7150_v9 }
 0x5d1   : > { %3244 = vmatpush1.bf16.msra.mxu0 %v7148_v10 }
 0x5d2   : > { %3245 = vmatprep.subr.bf16.mxu0 %v7153_v13 }
 0x5d5   : > { %3246 = vmatpush1.bf16.msra.mxu0 %v7151_v14 }
 0x5d6   : > { %3247 = vmatprep.subr.bf16.mxu0 %v7156_v15 }
 0x5d9   : > { %3248 = vmatpush1.bf16.msra.mxu0 %v7154_v16 }
 0x5da   : > { %3249 = vmatprep.subr.bf16.mxu0 %v7159_v17 }
 0x5dd   : > { %3250 = vmatpush1.bf16.msra.mxu0 %v7157_v19 }
 0x5de   : > { %3251 = vmatprep.subr.bf16.mxu0 %v7162_v20 }
 0x5e1   : > { %3252 = vmatpush1.bf16.msra.mxu0 %v7160_v23 }
 0x5e2   : > { %3253 = vmatprep.subr.bf16.mxu0 %v7165_v24 }
 0x5e5   : > { %3254 = vmatpush1.bf16.msra.mxu0 %v7163_v27 }
 0x5e6   : > { %3255 = vmatprep.subr.bf16.mxu0 %v7168_v28 }
 0x5e9   : > { %3256 = vmatpush1.bf16.msra.mxu0 %v7166_v29 }
 0x5ea   : > { %3257 = vmatprep.subr.bf16.mxu0 %v7171_v30 }
 0x5ed   : > { %3258 = vmatpush1.bf16.msra.mxu0 %v7169_v31 }
 0x5ee   : > { %3259 = vmatprep.subr.bf16.mxu0 %v7174_v32 }
 0x5f1   : > { %3260 = vmatpush1.bf16.msra.mxu0 %v7172_v33 }
 0x5f2   : > { %3261 = vmatprep.subr.bf16.mxu0 %v7177_v34 }
 0x5f5   : > { %3262 = vmatpush1.bf16.msra.mxu0 %v7175_v35 }
 0x5f6   : > { %3354 = vmatprep.subr.bf16.mxu0 %v7180_v36 }
 0x5f8   : > { %3264 = vmatmul.mubr.bf16.vlgmr.msra.gmra.mrb[16].mxu0 %v2802_v54  ;;  %v7232_v54 = vld [vmem:[%s9313_s16 + $0xa0] ss:$8 sps:$4 sm:$0xff]  }
 0x5f9   : > { %3355 = vmatpush1.bf16.msra.mxu0 %v7178_v38  ;;  %3386 = vmatprep.mubr.bf16.mxu0 %v8402_v55 }
 0x5fa   : > { %3356 = vmatprep.subr.bf16.mxu0 %v7183_v39  ;;  %3664 = vmatpush1.bf16.msra.mxu1 %v7232_v54  ;;  %v7267_v54 = vld [vmem:[%s9329_s1 + $0x54] ss:$8 sps:$4 sm:$0xff]  }
 0x5fb   : > { %3665 = vmatprep.subr.bf16.mxu1 %v7237_v56  ;;  %v7265_v56 = vld [vmem:[%s9329_s1 + $0x50] ss:$8 sps:$4 sm:$0xff]  }
 0x5fd   : > { %3357 = vmatpush1.bf16.msra.mxu0 %v7181_v40 }
 0x5fe   : > { %3358 = vmatprep.subr.bf16.mxu0 %v7186_v41  ;;  %3666 = vmatpush1.bf16.msra.mxu1 %v7235_v57  ;;  %v7270_v57 = vld [vmem:[%s9329_s1 + $0x64] ss:$8 sps:$4 sm:$0xff]  }
 0x5ff   : > { %3667 = vmatprep.subr.bf16.mxu1 %v7240_v58  ;;  %v7268_v58 = vld [vmem:[%s9329_s1 + $0x60] ss:$8 sps:$4 sm:$0xff]  }
 0x601   : > { %3359 = vmatpush1.bf16.msra.mxu0 %v7184_v42  ;;  %v3734_v42 = vld [vmem:[%s10020_s26] sm:$0xff] }
 0x602   : > { %3360 = vmatprep.subr.bf16.mxu0 %v7189_v43  ;;  %3668 = vmatpush1.bf16.msra.mxu1 %v7238_v59  ;;  %v7250_v43 = vld [vmem:[%s9329_s1] ss:$8 sps:$4 sm:$0xff]   ;;  %v7273_v59 = vld [vmem:[%s9329_s1 + $0x74] ss:$8 sps:$4 sm:$0xff]  }
 0x603   : > { %3737 = vperm.xlu0 %6983, %v3734_v42  }
 0x605   : > { %3361 = vmatpush1.bf16.msra.mxu0 %v7187_v44  ;;  %v7252_v44 = vld [vmem:[%s9329_s1 + $0x4] ss:$8 sps:$4 sm:$0xff]  }
 0x606   : > { %3362 = vmatprep.subr.bf16.mxu0 %v7192_v37  ;;  %v7255_v37 = vld [vmem:[%s9329_s1 + $0x14] ss:$8 sps:$4 sm:$0xff]  }
 0x609   : > { %3363 = vmatpush1.bf16.msra.mxu0 %v7190_v45  ;;  %v4365_v45 = vld [vmem:[%s10021_s20] sm:$0x3] }
 0x60a   : > { %3364 = vmatprep.subr.bf16.mxu0 %v7195_v47  ;;  %v7253_v47 = vld [vmem:[%s9329_s1 + $0x10] ss:$8 sps:$4 sm:$0xff]   ;;  %4368 = vperm.xlu0 %6983, %v4365_v45  }
 0x60b   : > { %v7301_v45 = vld [vmem:[%s9322_s5 + $0x10] ss:$8 sps:$4 sm:$0xff]  }
 0x60d   : > { %3365 = vmatpush1.bf16.msra.mxu0 %v7193_v48  ;;  %v7258_v48 = vld [vmem:[%s9329_s1 + $0x24] ss:$8 sps:$4 sm:$0xff]  }
 0x60e   : > { %3366 = vmatprep.subr.bf16.mxu0 %v7198_v49  ;;  %v7256_v49 = vld [vmem:[%s9329_s1 + $0x20] ss:$8 sps:$4 sm:$0xff]  }
 0x611   : > { %3367 = vmatpush1.bf16.msra.mxu0 %v7196_v50  ;;  %v7261_v50 = vld [vmem:[%s9329_s1 + $0x34] ss:$8 sps:$4 sm:$0xff]  }
 0x612   : > { %3368 = vmatprep.subr.bf16.mxu0 %v7201_v51  ;;  %v7259_v51 = vld [vmem:[%s9329_s1 + $0x30] ss:$8 sps:$4 sm:$0xff]  }
 0x615   : > { %3369 = vmatpush1.bf16.msra.mxu0 %v7199_v52  ;;  %v7264_v52 = vld [vmem:[%s9329_s1 + $0x44] ss:$8 sps:$4 sm:$0xff]  }
 0x618   : > { %3387 = vmatmul.mubr.bf16.vlgmr.msra.gmra.mrb[16].mxu0 %v9436_v46  ;;  %v7243_v46 = vld [vmem:[%s9313_s16 + $0xd4] ss:$8 sps:$4 sm:$0xff]  }
 0x619   : > { %3725 = vmatprep.mubr.bf16.mxu0 %v8402_v55  ;;  %3669 = vmatprep.subr.bf16.mxu1 %v7243_v46  ;;  %v7271_v46 = vld [vmem:[%s9329_s1 + $0x70] ss:$8 sps:$4 sm:$0xff]  }
 0x61a   : > { %3670 = vmatpush1.bf16.msra.mxu1 %v7241_v60  ;;  %v7276_v60 = vld [vmem:[%s9329_s1 + $0x84] ss:$8 sps:$4 sm:$0xff]  }
 0x61b   : > { %3671 = vmatprep.subr.bf16.mxu1 %v7246_v61  ;;  %v7274_v61 = vld [vmem:[%s9329_s1 + $0x80] ss:$8 sps:$4 sm:$0xff]  }
 0x61e   : > { %3672 = vmatpush1.bf16.msra.mxu1 %v7244_v62  ;;  %v7279_v62 = vld [vmem:[%s9329_s1 + $0x94] ss:$8 sps:$4 sm:$0xff]  }
 0x61f   : > { %3673 = vmatprep.subr.bf16.mxu1 %v7249_v63  ;;  %v7277_v63 = vld [vmem:[%s9329_s1 + $0x90] ss:$8 sps:$4 sm:$0xff]  }
 0x622   : > { %3674 = vmatpush1.bf16.msra.mxu1 %v7247_v0  ;;  %v7282_v0 = vld [vmem:[%s9329_s1 + $0xa4] ss:$8 sps:$4 sm:$0xff]  }
 0x623   : > { %3952 = vmatprep.subr.bf16.mxu1 %v7252_v44 }
 0x6eb   : > { %v3388_v4 = vpop.f32.mrb[16].mxu0 }
 0x6ec   : > { %v3409_v5 = vadd.f32 %v3402_v2, %v3388_v4  ;;  %v3390_v6 = vpop.f32.mrb[17].mxu0  ;;  %v7288_v4 = vld [vmem:[%s9329_s1 + $0xc4] ss:$8 sps:$4 sm:$0xff]  }
 0x6ed   : > { %v3410_v7 = vadd.f32 %v3406_v3, %v3390_v6  ;;  %v3392_v8 = vpop.f32.mrb[18].mxu0  ;;  %v7291_v6 = vld [vmem:[%s9329_s1 + $0xd4] ss:$8 sps:$4 sm:$0xff]  }
 0x6ee   : > { %v3417_v9 = vmin.f32 %v3409_v5, 0.0  ;;  %v3411_v10 = vadd.f32 %v3402_v2, %v3392_v8  ;;  %v3394_v13 = vpop.f32.mrb[19].mxu0  ;;  %vm3413_vm5 = vcmp.gt.f32.partialorder %v3409_v5, 0.0  ;;  %v7285_v2 = vld [vmem:[%s9329_s1 + $0xb4] ss:$8 sps:$4 sm:$0xff]  }
 0x6ef   : > { %v3418_v14 = vmin.f32 %v3410_v7, 0.0  ;;  %v3412_v15 = vadd.f32 %v3406_v3, %v3394_v13  ;;  %vm3414_vm7 = vcmp.gt.f32.partialorder %v3410_v7, 0.0  ;;  %v7283_v3 = vld [vmem:[%s9329_s1 + $0xb0] ss:$8 sps:$4 sm:$0xff]   ;;  %v7294_v8 = vld [vmem:[%s9329_s1 + $0xe4] ss:$8 sps:$4 sm:$0xff]  }
 0x6f0   : > { %v3421_v16 = vmul.f32 1.442695, %v3417_v9  ;;  %v3419_v17 = vmin.f32 %v3411_v10, 0.0  ;;  %vm3415_vm6 = vcmp.gt.f32.partialorder %v3411_v10, 0.0  ;;  %v7292_v9 = vld [vmem:[%s9329_s1 + $0xe0] ss:$8 sps:$4 sm:$0xff]  }
 0x6f1   : > { %v3423_v19 = vmul.f32 1.442695, %v3418_v14  ;;  %v3420_v20 = vmin.f32 %v3412_v15, 0.0  ;;  %vm3416_vm8 = vcmp.gt.f32.partialorder %v3412_v15, 0.0 }
 0x6f2   : > { %7462 = vpow2.f32 %v3421_v16  ;;  %v3425_v23 = vmul.f32 1.442695, %v3419_v17 }
 0x6f3   : > { %7464 = vpow2.f32 %v3423_v19  ;;  %v3427_v24 = vmul.f32 1.442695, %v3420_v20 }
 0x6f4   : > { %7466 = vpow2.f32 %v3425_v23 }
 0x6f5   : > { %7468 = vpow2.f32 %v3427_v24 }
 0x6fc   : > { %v7463_v27 = vpop.eup %7462 }
 0x6fd   : > { %v7465_v28 = vpop.eup %7464  ;;  %v6395_v29 = vadd.f32 -1.0, %v7463_v27 }
 0x6fe   : > { %v7467_v30 = vpop.eup %7466  ;;  %v6396_v31 = vadd.f32 -1.0, %v7465_v28 }
 0x6ff   : > { %v7469_v32 = vpop.eup %7468  ;;  %v6397_v33 = vadd.f32 -1.0, %v7467_v30  ;;  %v3433_v35 = vsel %vm3413_vm5, %v3409_v5, %v6395_v29  ;;  %v7286_v5 = vld [vmem:[%s9329_s1 + $0xc0] ss:$8 sps:$4 sm:$0xff]  }
 0x700   : > { %v6398_v34 = vadd.f32 -1.0, %v7469_v32  ;;  %v3434_v39 = vsel %vm3414_vm7, %v3410_v7, %v6396_v31  ;;  %v7289_v7 = vld [vmem:[%s9329_s1 + $0xd0] ss:$8 sps:$4 sm:$0xff]   ;;  %v3686_v30 = vld [vmem:[%s10023_s11] sm:$0xf] }
 0x701   : > { %v3435_v36 = vsel %vm3415_vm6, %v3411_v10, %v6397_v33  ;;  %v3471_v10 = vld [vmem:[%s10022_s29] sm:$0x3]  ;;  %v7295_v32 = vld [vmem:[%s9329_s1 + $0xf0] ss:$8 sps:$4 sm:$0xff]   ;;  %v7300_v33 = vld [vmem:[%s9322_s5 + $0x4] ss:$8 sps:$4 sm:$0xff]  }
 0x702   : > { %v3437_v38 = vpack.c.bf16 %v3435_v36, %v3433_v35  ;;  %v3436_v40 = vsel %vm3416_vm8, %v3412_v15, %v6398_v34  ;;  %v3476_v13 = vrot.slane %v3471_v10, %v9550_v21  ;;  %v3480_v15 = vrot.slane %v3471_v10, %v9556_v25  ;;  %v7297_v31 = vld [vmem:[%s9329_s1 + $0xf4] ss:$8 sps:$4 sm:$0xff]   ;;  %v3738_v34 = vpop.permute.xlu0 %3737 }
 0x703   : > { %v3438_v41 = vpack.c.bf16 %v3436_v40, %v3434_v39 }
 0x705   : > { %3675 = vmatprep.mubr.bf16.mxu1 %v3438_v41 }
 0x706   : > { %3676 = vmatmul.mubr.bf16.vlgmr.msra.gmra.mrb[16].mxu1 %v3437_v38 }
 0x707   : > { %3953 = vmatpush1.bf16.msra.mxu1 %v7250_v43  ;;  %v7298_v43 = vld [vmem:[%s9322_s5] ss:$8 sps:$4 sm:$0xff]  }
 0x708   : > { %3954 = vmatprep.subr.bf16.mxu1 %v7255_v37  ;;  %v7303_v37 = vld [vmem:[%s9322_s5 + $0x14] ss:$8 sps:$4 sm:$0xff]  }
 0x70b   : > { %3955 = vmatpush1.bf16.msra.mxu1 %v7253_v47  ;;  %v7306_v47 = vld [vmem:[%s9322_s5 + $0x24] ss:$8 sps:$4 sm:$0xff]  }
 0x70c   : > { %3956 = vmatprep.subr.bf16.mxu1 %v7258_v48  ;;  %v7304_v48 = vld [vmem:[%s9322_s5 + $0x20] ss:$8 sps:$4 sm:$0xff]  }
 0x70f   : > { %3957 = vmatpush1.bf16.msra.mxu1 %v7256_v49  ;;  %v7309_v49 = vld [vmem:[%s9322_s5 + $0x34] ss:$8 sps:$4 sm:$0xff]  }
 0x710   : > { %3958 = vmatprep.subr.bf16.mxu1 %v7261_v50  ;;  %v7307_v50 = vld [vmem:[%s9322_s5 + $0x30] ss:$8 sps:$4 sm:$0xff]  }
 0x713   : > { %3959 = vmatpush1.bf16.msra.mxu1 %v7259_v51  ;;  %v7312_v51 = vld [vmem:[%s9322_s5 + $0x44] ss:$8 sps:$4 sm:$0xff]  }
 0x714   : > { %3960 = vmatprep.subr.bf16.mxu1 %v7264_v52  ;;  %v7310_v52 = vld [vmem:[%s9322_s5 + $0x40] ss:$8 sps:$4 sm:$0xff]  }
 0x717   : > { %3961 = vmatpush1.bf16.msra.mxu1 %v7262_v53  ;;  %v7315_v53 = vld [vmem:[%s9322_s5 + $0x54] ss:$8 sps:$4 sm:$0xff]  }
 0x718   : > { %3962 = vmatprep.subr.bf16.mxu1 %v7267_v54  ;;  %v7313_v54 = vld [vmem:[%s9322_s5 + $0x50] ss:$8 sps:$4 sm:$0xff]  }
 0x71b   : > { %3963 = vmatpush1.bf16.msra.mxu1 %v7265_v56  ;;  %v7318_v56 = vld [vmem:[%s9322_s5 + $0x64] ss:$8 sps:$4 sm:$0xff]  }
 0x71c   : > { %3964 = vmatprep.subr.bf16.mxu1 %v7270_v57  ;;  %v7316_v57 = vld [vmem:[%s9322_s5 + $0x60] ss:$8 sps:$4 sm:$0xff]  }
 0x71f   : > { %3965 = vmatpush1.bf16.msra.mxu1 %v7268_v58  ;;  %v7321_v58 = vld [vmem:[%s9322_s5 + $0x74] ss:$8 sps:$4 sm:$0xff]  }
 0x720   : > { %3966 = vmatprep.subr.bf16.mxu1 %v7273_v59  ;;  %v7319_v59 = vld [vmem:[%s9322_s5 + $0x70] ss:$8 sps:$4 sm:$0xff]   ;;  %s10024_s5 = scalar_lea.vmem [#allocation26], %s9308_s23 }
 0x723   : > { %3967 = vmatpush1.bf16.msra.mxu1 %v7271_v46  ;;  %v7322_v46 = vld [vmem:[%s9338_s12 + $0x40] sm:$0xff]  }
 0x724   : > { %3968 = vmatprep.subr.bf16.mxu1 %v7276_v60  ;;  %v7323_v60 = vld [vmem:[%s9338_s12] sm:$0xff]  }
 0x727   : > { %3969 = vmatpush1.bf16.msra.mxu1 %v7274_v61  ;;  %v7324_v61 = vld [vmem:[%s9338_s12 + $0x48] sm:$0xff]  }
 0x728   : > { %3970 = vmatprep.subr.bf16.mxu1 %v7279_v62  ;;  %v7325_v62 = vld [vmem:[%s9338_s12 + $0x8] sm:$0xff]  }
 0x72b   : > { %3971 = vmatpush1.bf16.msra.mxu1 %v7277_v63  ;;  %v7326_v63 = vld [vmem:[%s9338_s12 + $0x50] sm:$0xff]  }
 0x72c   : > { %3972 = vmatprep.subr.bf16.mxu1 %v7282_v0  ;;  %v7327_v0 = vld [vmem:[%s9338_s12 + $0x10] sm:$0xff]  }
 0x72f   : > { %3973 = vmatpush1.bf16.msra.mxu1 %v7280_v1  ;;  %v7330_v1 = vld [vmem:[%s9338_s12 + $0x60] sm:$0xff]  }
 0x730   : > { %3974 = vmatprep.subr.bf16.mxu1 %v7285_v2  ;;  %v7331_v2 = vld [vmem:[%s9338_s12 + $0x20] sm:$0xff]  }
 0x733   : > { %3975 = vmatpush1.bf16.msra.mxu1 %v7283_v3  ;;  %v7332_v3 = vld [vmem:[%s9338_s12 + $0x68] sm:$0xff]  }
 0x734   : > { %3976 = vmatprep.subr.bf16.mxu1 %v7288_v4  ;;  %v7333_v4 = vld [vmem:[%s9338_s12 + $0x28] sm:$0xff]  }
 0x737   : > { %3977 = vmatpush1.bf16.msra.mxu1 %v7286_v5  ;;  %v7334_v5 = vld [vmem:[%s9338_s12 + $0x70] sm:$0xff]  }
 0x738   : > { %3978 = vmatprep.subr.bf16.mxu1 %v7291_v6  ;;  %v7335_v6 = vld [vmem:[%s9338_s12 + $0x30] sm:$0xff]  }
 0x73b   : > { %3979 = vmatpush1.bf16.msra.mxu1 %v7289_v7  ;;  %v7336_v7 = vld [vmem:[%s9338_s12 + $0x78] sm:$0xff]  }
 0x73c   : > { %3980 = vmatprep.subr.bf16.mxu1 %v7294_v8  ;;  %v7337_v8 = vld [vmem:[%s9338_s12 + $0x38] sm:$0xff]  }
 0x73f   : > { %3981 = vmatpush1.bf16.msra.mxu1 %v7292_v9 }
 0x740   : > { %3982 = vmatprep.subr.bf16.mxu1 %v7297_v31 }
 0x743   : > { %3983 = vmatpush1.bf16.msra.mxu1 %v7295_v32 }
 0x744   : > { %4073 = vmatprep.subr.bf16.mxu1 %v7300_v33 }
 0x7d9   : > { %v3677_v14 = vpop.f32.mrb[16].mxu1 }
 0x7da   : > { %v3679_v16 = vpop.f32.mrb[17].mxu1  ;;  %v3678_v19 = vadd.f32 %v3677_v14, %v3476_v13 }
 0x7db   : > { %v3681_v17 = vpop.f32.mrb[18].mxu1  ;;  %v3680_v24 = vadd.f32 %v3679_v16, %v3480_v15 }
 0x7dc   : > { %v3682_v20 = vadd.f32 %v3681_v17, %v3476_v13  ;;  %v3683_v23 = vpop.f32.mrb[19].mxu1 }
 0x7dd   : > { %v3684_v27 = vadd.f32 %v3683_v23, %v3480_v15  ;;  %v4114_v15 = vld [vmem:[%s10024_s5] sm:$0x3] }
 0x7de   : > { %v3687_v28 = vpack.c.bf16 %v3682_v20, %v3678_v19  ;;  %v4119_v16 = vrot.slane %v4114_v15, %v9550_v21  ;;  %v4123_v19 = vrot.slane %v4114_v15, %v9556_v25 }
 0x7df   : > { %v3688_v29 = vpack.c.bf16 %v3684_v27, %v3680_v24 }
 0x7e1   : > { %3693 = vmatprep.subr.bf16.mxu0 %v3688_v29 }
 0x7e2   : > { %3694 = vmatpush1.bf16.msra.mxu0 %v3687_v28 }
 0x7e3   : > { %6746 = vmatprep.subr.bf16.mxu0 %v7322_v46  ;;  %v7359_v46 = vld [vmem:[%s9347_s3 + $0x70] ss:$8 sps:$4 sm:$0xff]  }
 0x7e5   : > { %6431 = vmatmul.mubr.msk.bf16.vlgmr.msra.gmra.mrb[20].mxu0 %vm3689_vm9, %v3686_v30 }
 0x7e6   : > { %6747 = vmatpush3.bf16.msra.mxu0 %v7323_v60  ;;  %v7367_v60 = vld [vmem:[%s9347_s3 + $0x84] ss:$8 sps:$4 sm:$0xff]  }
 0x7e7   : > { %6748 = vmatprep.subr.bf16.mxu0 %v7324_v61  ;;  %v7365_v61 = vld [vmem:[%s9347_s3 + $0x80] ss:$8 sps:$4 sm:$0xff]  }
 0x7ea   : > { %6749 = vmatpush3.bf16.msra.mxu0 %v7325_v62  ;;  %v7373_v62 = vld [vmem:[%s9347_s3 + $0x94] ss:$8 sps:$4 sm:$0xff]  }
 0x7eb   : > { %6750 = vmatprep.subr.bf16.mxu0 %v7326_v63  ;;  %v7371_v63 = vld [vmem:[%s9347_s3 + $0x90] ss:$8 sps:$4 sm:$0xff]  }
 0x7ee   : > { %6751 = vmatpush3.bf16.msra.mxu0 %v7327_v0  ;;  %v7379_v0 = vld [vmem:[%s9347_s3 + $0xa4] ss:$8 sps:$4 sm:$0xff]  }
 0x8b8   : > { %v3727_v35 = vpop.f32.mrb[20].mxu0 }
 0x8b9   : > { %v3740_v36 = vmul.f32 %v3738_v34, %v3727_v35  ;;  %v3729_v38 = vpop.f32.mrb[21].mxu0 }
 0x8ba   : > { %v3741_v39 = vmul.f32 %v3738_v34, %v3729_v38  ;;  %v3731_v40 = vpop.f32.mrb[22].mxu0 }
 0x8bb   : > { %v3732_v41 = vpop.f32.mrb[23].mxu0  ;;  %v3758_v44 = vpack.c.bf16 %v3740_v36, %v3740_v36 }
 0x8bc   : > { %v3759_v42 = vpack.c.bf16 %v3741_v39, %v3741_v39 }
 0x8be   : > { %3984 = vmatprep.mubr.bf16.mxu1 %v3759_v42 }
 0x8bf   : > { %3985 = vmatmul.mubr.bf16.vlgmr.msra.gmra.mrb[20].mxu1 %v3758_v44  ;;  %v7338_v44 = vld [vmem:[%s9347_s3] ss:$8 sps:$4 sm:$0xff]  }
 0x8c0   : > { %4074 = vmatpush1.bf16.msra.mxu1 %v7298_v43  ;;  %4105 = vmatprep.mubr.bf16.mxu1 %v8402_v55 }
 0x8c1   : > { %4075 = vmatprep.subr.bf16.mxu1 %v7303_v37  ;;  %v7340_v37 = vld [vmem:[%s9347_s3 + $0x4] ss:$8 sps:$4 sm:$0xff]  }
 0x8c4   : > { %4076 = vmatpush1.bf16.msra.mxu1 %v7301_v45  ;;  %v7343_v45 = vld [vmem:[%s9347_s3 + $0x14] ss:$8 sps:$4 sm:$0xff]  }
 0x8c5   : > { %4077 = vmatprep.subr.bf16.mxu1 %v7306_v47  ;;  %v7341_v47 = vld [vmem:[%s9347_s3 + $0x10] ss:$8 sps:$4 sm:$0xff]  }
 0x8c8   : > { %4078 = vmatpush1.bf16.msra.mxu1 %v7304_v48  ;;  %v7346_v48 = vld [vmem:[%s9347_s3 + $0x24] ss:$8 sps:$4 sm:$0xff]  }
 0x8c9   : > { %4079 = vmatprep.subr.bf16.mxu1 %v7309_v49  ;;  %v7344_v49 = vld [vmem:[%s9347_s3 + $0x20] ss:$8 sps:$4 sm:$0xff]  }
 0x8cc   : > { %4080 = vmatpush1.bf16.msra.mxu1 %v7307_v50  ;;  %v7349_v50 = vld [vmem:[%s9347_s3 + $0x34] ss:$8 sps:$4 sm:$0xff]  }
 0x8cd   : > { %4081 = vmatprep.subr.bf16.mxu1 %v7312_v51  ;;  %v7347_v51 = vld [vmem:[%s9347_s3 + $0x30] ss:$8 sps:$4 sm:$0xff]  }
 0x8d0   : > { %4082 = vmatpush1.bf16.msra.mxu1 %v7310_v52  ;;  %v7352_v52 = vld [vmem:[%s9347_s3 + $0x44] ss:$8 sps:$4 sm:$0xff]  }
 0x8d1   : > { %4083 = vmatprep.subr.bf16.mxu1 %v7315_v53  ;;  %v7350_v53 = vld [vmem:[%s9347_s3 + $0x40] ss:$8 sps:$4 sm:$0xff]  }
 0x8d4   : > { %4084 = vmatpush1.bf16.msra.mxu1 %v7313_v54  ;;  %v7355_v54 = vld [vmem:[%s9347_s3 + $0x54] ss:$8 sps:$4 sm:$0xff]  }
 0x8d5   : > { %4085 = vmatprep.subr.bf16.mxu1 %v7318_v56  ;;  %v7353_v56 = vld [vmem:[%s9347_s3 + $0x50] ss:$8 sps:$4 sm:$0xff]  }
 0x8d8   : > { %4086 = vmatpush1.bf16.msra.mxu1 %v7316_v57  ;;  %v7358_v57 = vld [vmem:[%s9347_s3 + $0x64] ss:$8 sps:$4 sm:$0xff]  }
 0x8d9   : > { %4087 = vmatprep.subr.bf16.mxu1 %v7321_v58  ;;  %v7356_v58 = vld [vmem:[%s9347_s3 + $0x60] ss:$8 sps:$4 sm:$0xff]  }
 0x8dc   : > { %4088 = vmatpush1.bf16.msra.mxu1 %v7319_v59  ;;  %v7361_v59 = vld [vmem:[%s9347_s3 + $0x74] ss:$8 sps:$4 sm:$0xff]  }
 0x8dd   : > { %6822 = vmatprep.subr.bf16.mxu1 %v8400_v11 }
 0x8df   : > { %4106 = vmatmul.mubr.bf16.vlgmr.msra.gmra.mrb[24].mxu1 %v9384_v12  ;;  %v7328_v12 = vld [vmem:[%s9338_s12 + $0x58] sm:$0xff]  }
 0x8e0   : > { %6824 = vmatprep.mubr.msk.bf16.mxu1 %vm8401_vm1, %v8400_v11  ;;  %v7329_v11 = vld [vmem:[%s9338_s12 + $0x18] sm:$0xff]   ;;  %6752 = vmatprep.subr.bf16.mxu0 %v7328_v12  ;;  %v7377_v12 = vld [vmem:[%s9347_s3 + $0xa0] ss:$8 sps:$4 sm:$0xff]  }
 0x8e1   : > { %6753 = vmatpush3.bf16.msra.mxu0 %v7329_v11  ;;  %v7385_v11 = vld [vmem:[%s9347_s3 + $0xb4] ss:$8 sps:$4 sm:$0xff]  }
 0x8e2   : > { %6754 = vmatprep.subr.bf16.mxu0 %v7330_v1  ;;  %v7383_v1 = vld [vmem:[%s9347_s3 + $0xb0] ss:$8 sps:$4 sm:$0xff]  }
 0x8e5   : > { %6755 = vmatpush3.bf16.msra.mxu0 %v7331_v2  ;;  %v7391_v2 = vld [vmem:[%s9347_s3 + $0xc4] ss:$8 sps:$4 sm:$0xff]  }
 0x8e6   : > { %6756 = vmatprep.subr.bf16.mxu0 %v7332_v3  ;;  %v7389_v3 = vld [vmem:[%s9347_s3 + $0xc0] ss:$8 sps:$4 sm:$0xff]  }
 0x8e9   : > { %6757 = vmatpush3.bf16.msra.mxu0 %v7333_v4  ;;  %v7397_v4 = vld [vmem:[%s9347_s3 + $0xd4] ss:$8 sps:$4 sm:$0xff]  }
 0x8ea   : > { %6758 = vmatprep.subr.bf16.mxu0 %v7334_v5  ;;  %v7395_v5 = vld [vmem:[%s9347_s3 + $0xd0] ss:$8 sps:$4 sm:$0xff]  }
 0x8ed   : > { %6759 = vmatpush3.bf16.msra.mxu0 %v7335_v6  ;;  %v7403_v6 = vld [vmem:[%s9347_s3 + $0xe4] ss:$8 sps:$4 sm:$0xff]  }
 0x8ee   : > { %6760 = vmatprep.subr.bf16.mxu0 %v7336_v7  ;;  %v7401_v7 = vld [vmem:[%s9347_s3 + $0xe0] ss:$8 sps:$4 sm:$0xff]  }
 0x8f1   : > { %6761 = vmatpush3.bf16.msra.mxu0 %v7337_v8 }
 0x8f2   : > { %4715 = vmatprep.subr.bf16.mxu0 %v7340_v37  ;;  %v7404_v37 = vld [vmem:[%s9351_s8 + $0x70] ss:$8 sps:$4 sm:$0xff]  }
 0x992   : > { %v3986_v9 = vpop.f32.mrb[20].mxu1 }
 0x993   : > { %v3988_v10 = vpop.f32.mrb[21].mxu1 }
 0x994   : > { %v3990_v13 = vpop.f32.mrb[22].mxu1 }
 0x995   : > { %v3991_v14 = vpop.f32.mrb[23].mxu1 }
 0x9b2   : > { %v4107_v17 = vpop.f32.mrb[24].mxu1 }
 0x9b3   : > { %v4108_v20 = vadd.f32 %v4107_v17, %v3986_v9  ;;  %v4109_v23 = vpop.f32.mrb[25].mxu1  ;;  %v6482_v9 = vld [vmem:[%s10026_s24] ss:$0 sm:$0xff] }
 0x9b4   : > { %v4110_v24 = vadd.f32 %v4109_v23, %v3988_v10  ;;  %v4111_v27 = vpop.f32.mrb[26].mxu1  ;;  %v4317_v23 = vld [vmem:[%s10025_s2] sm:$0x1] }
 0x9b5   : > { %v4126_v28 = vadd.f32 %v4119_v16, %v4108_v20  ;;  %v4112_v29 = vpop.f32.mrb[27].mxu1  ;;  %v7370_v27 = vld [vmem:[%s9351_s8 + $0x14] ss:$8 sps:$4 sm:$0xff]  }
 0x9b6   : > { %v4127_v30 = vadd.f32 %v4123_v19, %v4110_v24  ;;  %v7364_v19 = vld [vmem:[%s9351_s8 + $0x4] ss:$8 sps:$4 sm:$0xff]   ;;  %v7362_v24 = vld [vmem:[%s9351_s8] ss:$8 sps:$4 sm:$0xff]  }
 0x9b7   : > { %v4130_v31 = vmin.f32 %v4126_v28, 0.0  ;;  %vm4128_vm10 = vcmp.gt.f32.partialorder %v4126_v28, 0.0  ;;  %v7376_v29 = vld [vmem:[%s9351_s8 + $0x24] ss:$8 sps:$4 sm:$0xff]  }
 0x9b8   : > { %v4131_v32 = vmin.f32 %v4127_v30, 0.0  ;;  %vm4129_vm11 = vcmp.gt.f32.partialorder %v4127_v30, 0.0 }
 0x9b9   : > { %v4132_v33 = vmul.f32 1.442695, %v4130_v31  ;;  %v7382_v31 = vld [vmem:[%s9351_s8 + $0x34] ss:$8 sps:$4 sm:$0xff]  }
 0x9ba   : > { %v4134_v34 = vmul.f32 1.442695, %v4131_v32  ;;  %v7380_v32 = vld [vmem:[%s9351_s8 + $0x30] ss:$8 sps:$4 sm:$0xff]  }
 0x9bb   : > { %7470 = vpow2.f32 %v4132_v33  ;;  %v7388_v33 = vld [vmem:[%s9351_s8 + $0x44] ss:$8 sps:$4 sm:$0xff]  }
 0x9bc   : > { %7472 = vpow2.f32 %v4134_v34  ;;  %v7386_v34 = vld [vmem:[%s9351_s8 + $0x40] ss:$8 sps:$4 sm:$0xff]  }
 0x9c5   : > { %v7471_v35 = vpop.eup %7470 }
 0x9c6   : > { %v7473_v36 = vpop.eup %7472  ;;  %v6480_v38 = vadd.f32 -1.0, %v7471_v35  ;;  %v7392_v35 = vld [vmem:[%s9351_s8 + $0x50] ss:$8 sps:$4 sm:$0xff]  }
 0x9c7   : > { %v6481_v39 = vadd.f32 -1.0, %v7473_v36  ;;  %v7400_v36 = vld [vmem:[%s9351_s8 + $0x64] ss:$8 sps:$4 sm:$0xff]  }
 0x9c8   : > { %v4138_v40 = vsel %vm4128_vm10, %v4126_v28, %v6480_v38  ;;  %v7368_v28 = vld [vmem:[%s9351_s8 + $0x10] ss:$8 sps:$4 sm:$0xff]   ;;  %v7398_v38 = vld [vmem:[%s9351_s8 + $0x60] ss:$8 sps:$4 sm:$0xff]  }
 0x9c9   : > { %v4139_v41 = vsel %vm4129_vm11, %v4127_v30, %v6481_v39  ;;  %v4140_v43 = vpack.c.bf16 %v4138_v40, %v4138_v40  ;;  %v7374_v30 = vld [vmem:[%s9351_s8 + $0x20] ss:$8 sps:$4 sm:$0xff]   ;;  %v7409_v39 = vld [vmem:[%s9347_s3 + $0xf4] ss:$8 sps:$4 sm:$0xff]  }
 0x9ca   : > { %v4141_v42 = vpack.c.bf16 %v4139_v41, %v4139_v41  ;;  %v6500_v40 = vld.sshfl [vmem:[#allocation4] sm:$0x33 pattern:$0x76325410]  ;;  %v7407_v41 = vld [vmem:[%s9347_s3 + $0xf0] ss:$8 sps:$4 sm:$0xff]  }
 0x9cb   : > { %s10027_s3 = sld [smem:[#allocation86_spill]] }
 0x9cc   : > { %4309 = vmatprep.mubr.bf16.mxu0 %v4141_v42  ;;  %v4380_v42 = vcombine.high %v6500_v40, %v6500_v40 }
 0x9cd   : > { %4310 = vmatmul.mubr.bf16.vlgmr.msra.gmra.mrb[24].mxu0 %v4140_v43  ;;  %v7406_v43 = vld [vmem:[%s9351_s8 + $0x74] ss:$8 sps:$4 sm:$0xff]  }
 0x9ce   : > { %4716 = vmatpush1.bf16.msra.mxu0 %v7338_v44  ;;  %v4384_v44 = vpack.c.bf16 %v4380_v42, %v4380_v42 }
 0x9cf   : > { %4717 = vmatprep.subr.bf16.mxu0 %v7343_v45  ;;  %v4383_v45 = vpack.c.bf16 %v6500_v40, %v6500_v40 }
 0x9d0   : > { %4747 = vmatprep.mubr.bf16.mxu0 %v4384_v44 }
 0x9d1   : > { %p6584_p12 = scmp.ne.s32.totalorder %s10027_s3, 5 }
 0x9d2   : > { %4718 = vmatpush1.bf16.msra.mxu0 %v7341_v47  ;;  %v7412_v47 = vld [vmem:[%s9360_s13 + $0x4] ss:$8 sps:$4 sm:$0xff]  }
 0x9d3   : > { %4719 = vmatprep.subr.bf16.mxu0 %v7346_v48  ;;  %v4369_v48 = vpop.permute.xlu0 %4368 }
 0x9d6   : > { %4720 = vmatpush1.bf16.msra.mxu0 %v7344_v49 }
 0x9d7   : > { %4721 = vmatprep.subr.bf16.mxu0 %v7349_v50 }
 0x9da   : > { %4722 = vmatpush1.bf16.msra.mxu0 %v7347_v51 }
 0x9db   : > { %4723 = vmatprep.subr.bf16.mxu0 %v7352_v52 }
 0x9de   : > { %4724 = vmatpush1.bf16.msra.mxu0 %v7350_v53  ;;  %v7410_v53 = vld [vmem:[%s9360_s13] ss:$8 sps:$4 sm:$0xff]  }
 0x9df   : > { %4725 = vmatprep.subr.bf16.mxu0 %v7355_v54 }
 0x9e2   : > { %4726 = vmatpush1.bf16.msra.mxu0 %v7353_v56 }
 0x9e3   : > { %4727 = vmatprep.subr.bf16.mxu0 %v7358_v57  ;;  %v7415_v57 = vld [vmem:[%s9360_s13 + $0x14] ss:$8 sps:$4 sm:$0xff]  }
 0x9e6   : > { %4728 = vmatpush1.bf16.msra.mxu0 %v7356_v58  ;;  %v7413_v58 = vld [vmem:[%s9360_s13 + $0x10] ss:$8 sps:$4 sm:$0xff]  }
 0x9e7   : > { %4729 = vmatprep.subr.bf16.mxu0 %v7361_v59  ;;  %v7418_v59 = vld [vmem:[%s9360_s13 + $0x24] ss:$8 sps:$4 sm:$0xff]  }
 0x9ea   : > { %4730 = vmatpush1.bf16.msra.mxu0 %v7359_v46  ;;  %v7416_v46 = vld [vmem:[%s9360_s13 + $0x20] ss:$8 sps:$4 sm:$0xff]  }
 0x9eb   : > { %4731 = vmatprep.subr.bf16.mxu0 %v7367_v60  ;;  %v7421_v60 = vld [vmem:[%s9360_s13 + $0x34] ss:$8 sps:$4 sm:$0xff]  }
 0x9ee   : > { %4732 = vmatpush1.bf16.msra.mxu0 %v7365_v61  ;;  %v7419_v61 = vld [vmem:[%s9360_s13 + $0x30] ss:$8 sps:$4 sm:$0xff]  }
 0x9ef   : > { %4733 = vmatprep.subr.bf16.mxu0 %v7373_v62  ;;  %v7424_v62 = vld [vmem:[%s9360_s13 + $0x44] ss:$8 sps:$4 sm:$0xff]  }
 0x9f2   : > { %4734 = vmatpush1.bf16.msra.mxu0 %v7371_v63  ;;  %v7422_v63 = vld [vmem:[%s9360_s13 + $0x40] ss:$8 sps:$4 sm:$0xff]  }
 0x9f3   : > { %4735 = vmatprep.subr.bf16.mxu0 %v7379_v0  ;;  %v7427_v0 = vld [vmem:[%s9360_s13 + $0x54] ss:$8 sps:$4 sm:$0xff]  }
 0x9f6   : > { %4736 = vmatpush1.bf16.msra.mxu0 %v7377_v12  ;;  %v7425_v12 = vld [vmem:[%s9360_s13 + $0x50] ss:$8 sps:$4 sm:$0xff]  }
 0x9f7   : > { %4737 = vmatprep.subr.bf16.mxu0 %v7385_v11  ;;  %v7430_v11 = vld [vmem:[%s9360_s13 + $0x64] ss:$8 sps:$4 sm:$0xff]  }
 0x9fa   : > { %4738 = vmatpush1.bf16.msra.mxu0 %v7383_v1  ;;  %v7428_v1 = vld [vmem:[%s9360_s13 + $0x60] ss:$8 sps:$4 sm:$0xff]  }
 0x9fb   : > { %4739 = vmatprep.subr.bf16.mxu0 %v7391_v2  ;;  %v7433_v2 = vld [vmem:[%s9360_s13 + $0x74] ss:$8 sps:$4 sm:$0xff]  }
 0x9fe   : > { %4740 = vmatpush1.bf16.msra.mxu0 %v7389_v3  ;;  %v7431_v3 = vld [vmem:[%s9360_s13 + $0x70] ss:$8 sps:$4 sm:$0xff]  }
 0x9ff   : > { %4741 = vmatprep.subr.bf16.mxu0 %v7397_v4  ;;  %v7436_v4 = vld [vmem:[%s9360_s13 + $0x84] ss:$8 sps:$4 sm:$0xff]  }
 0xa02   : > { %4742 = vmatpush1.bf16.msra.mxu0 %v7395_v5  ;;  %v7434_v5 = vld [vmem:[%s9360_s13 + $0x80] ss:$8 sps:$4 sm:$0xff]  }
 0xa03   : > { %4743 = vmatprep.subr.bf16.mxu0 %v7403_v6  ;;  %v7439_v6 = vld [vmem:[%s9360_s13 + $0x94] ss:$8 sps:$4 sm:$0xff]  }
 0xa06   : > { %4744 = vmatpush1.bf16.msra.mxu0 %v7401_v7  ;;  %v7437_v7 = vld [vmem:[%s9360_s13 + $0x90] ss:$8 sps:$4 sm:$0xff]  }
 0xa07   : > { %4745 = vmatprep.subr.bf16.mxu0 %v7409_v39 }
 0xa0a   : > { %4746 = vmatpush1.bf16.msra.mxu0 %v7407_v41 }
 0xa0d   : > { %4748 = vmatmul.mubr.bf16.vlgmr.msra.gmra.mrb[28].mxu0 %v4383_v45 }
 0xaa0   : > { %v6762_v8 = vpop.f32.mrb[24].mxu0 }
 0xaa1   : > { %v6763_v10 = vpop.f32.mrb[25].mxu0 }
 0xaa2   : > { %v6764_v13 = vadd.f32 %v6763_v10, %v6762_v8  ;;  %v6765_v14 = vpop.f32.mrb[26].mxu0 }
 0xaa3   : > { %v6766_v15 = vpop.f32.mrb[27].mxu0  ;;  %v7442_v14 = vld [vmem:[%s9360_s13 + $0xa4] ss:$8 sps:$4 sm:$0xff]  }
 0xaa4   : > { %v4312_v16 = vadd.f32 %v6764_v13, %v6482_v9  ;;  %v7440_v15 = vld [vmem:[%s9360_s13 + $0xa0] ss:$8 sps:$4 sm:$0xff]  }
 0xaa6   : > { %v4318_v17 = vpack.c.bf16 %v4312_v16, %v4312_v16  ;;  %5029 = vst [vmem:[#allocation2] sm:$0xff] %v4312_v16  ;;  %v7445_v16 = vld [vmem:[%s9360_s13 + $0xb4] ss:$8 sps:$4 sm:$0xff]  }
 0xaa8   : > { %v4323_v20 = vsel %vm1810_vm0, %v4318_v17, 0  ;;  %v7443_v17 = vld [vmem:[%s9360_s13 + $0xb0] ss:$8 sps:$4 sm:$0xff]  }
 0xaa9   : > { %6823 = vmatpush3.bf16.msra.mxu1 %v4323_v20  ;;  %v7446_v20 = vld [vmem:[%s9360_s13 + $0xc0] ss:$8 sps:$4 sm:$0xff]  }
 0xaaa   : > { %4514 = vmatprep.subr.bf16.mxu1 %v7364_v19  ;;  %v7448_v19 = vld [vmem:[%s9360_s13 + $0xc4] ss:$8 sps:$4 sm:$0xff]  }
 0xaac   : > { %6825 = vmatmul.mubr.msk.bf16.vlgmr.msra.gmra.mrb[28].mxu1 %vm1806_vm2, %v4317_v23  ;;  %v7451_v23 = vld [vmem:[%s9360_s13 + $0xd4] ss:$8 sps:$4 sm:$0xff]  }
 0xaad   : > { %4515 = vmatpush1.bf16.msra.mxu1 %v7362_v24  ;;  %4546 = vmatprep.mubr.bf16.mxu1 %v8402_v55  ;;  %v7394_v55 = vld [vmem:[%s9351_s8 + $0x54] ss:$8 sps:$4 sm:$0xff]   ;;  %s10028_s8 = sld [smem:[#allocation84_spill]] (!%p6584_p12) }
 0xaae   : > { %4516 = vmatprep.subr.bf16.mxu1 %v7370_v27  ;;  %v7449_v24 = vld [vmem:[%s9360_s13 + $0xd0] ss:$8 sps:$4 sm:$0xff]   ;;  %v7454_v27 = vld [vmem:[%s9360_s13 + $0xe4] ss:$8 sps:$4 sm:$0xff]  }
 0xab1   : > { %4517 = vmatpush1.bf16.msra.mxu1 %v7368_v28  ;;  %v7452_v28 = vld [vmem:[%s9360_s13 + $0xe0] ss:$8 sps:$4 sm:$0xff]  }
 0xab2   : > { %4518 = vmatprep.subr.bf16.mxu1 %v7376_v29  ;;  %v7457_v29 = vld [vmem:[%s9360_s13 + $0xf4] ss:$8 sps:$4 sm:$0xff]  }
 0xab5   : > { %4519 = vmatpush1.bf16.msra.mxu1 %v7374_v30  ;;  %v7455_v30 = vld [vmem:[%s9360_s13 + $0xf0] ss:$8 sps:$4 sm:$0xff]  }
 0xab6   : > { %4520 = vmatprep.subr.bf16.mxu1 %v7382_v31  ;;  %v4756_v31 = vld [vmem:[%s1564_s6] sm:$0x3] }
 0xab9   : > { %4521 = vmatpush1.bf16.msra.mxu1 %v7380_v32  ;;  %v4761_v32 = vrot.slane %v4756_v31, %v9550_v21 }
 0xaba   : > { %4522 = vmatprep.subr.bf16.mxu1 %v7388_v33 }
 0xabd   : > { %4523 = vmatpush1.bf16.msra.mxu1 %v7386_v34  ;;  %v4765_v34 = vrot.slane %v4756_v31, %v9556_v25  ;;  %v7516_v31 = vld [vmem:[#allocation38 + $0xcc] ss:$16 sps:$4 sm:$0xff] (!%p6584_p12)  }
 0xabe   : > { %4524 = vmatprep.subr.bf16.mxu1 %v7394_v55 }
 0xac1   : > { %4525 = vmatpush1.bf16.msra.mxu1 %v7392_v35 }
 0xac2   : > { %4526 = vmatprep.subr.bf16.mxu1 %v7400_v36 }
 0xac5   : > { %4527 = vmatpush1.bf16.msra.mxu1 %v7398_v38 }
 0xac6   : > { %4528 = vmatprep.subr.bf16.mxu1 %v7406_v43 }
 0xac9   : > { %4529 = vmatpush1.bf16.msra.mxu1 %v7404_v37 }
 0xaca   : > { %4988 = vmatprep.subr.bf16.mxu1 %v7412_v47 }
 0xae0   : > { %v4749_v8 = vpop.f32.mrb[28].mxu0 }
 0xae1   : > { %v4751_v9 = vpop.f32.mrb[29].mxu0 }
 0xae2   : > { %v4753_v10 = vpop.f32.mrb[30].mxu0 }
 0xae3   : > { %v4754_v13 = vpop.f32.mrb[31].mxu0  ;;  %v7495_v10 = vld [vmem:[#allocation38 + $0x48] ss:$16 sps:$4 sm:$0xff] (!%p6584_p12)  }
 0xae4   : > { %v7496_v13 = vld [vmem:[#allocation38 + $0x64] ss:$16 sps:$4 sm:$0xff] (!%p6584_p12)  }
 0xb7f   : > { %v4359_v49 = vpop.f32.mrb[28].mxu1 }
 0xb80   : > { %v4371_v50 = vmul.f32 %v4369_v48, %v4359_v49  ;;  %v6826_v51 = vpop.f32.mrb[29].mxu1 }
 0xb81   : > { %v4362_v52 = vpop.f32.mrb[30].mxu1 }
 0xb82   : > { %v4417_v54 = vpack.c.bf16 %v4371_v50, %v4371_v50  ;;  %v6827_v56 = vpop.f32.mrb[31].mxu1 }
 0xb84   : > { %4547 = vmatmul.mubr.bf16.vlgmr.msra.gmra.mrb[32].mxu1 %v4417_v54  ;;  %v4816_v54 = vld [vmem:[%s1582_s10] sm:$0x3] }
 0xb85   : > { %4989 = vmatpush1.bf16.msra.mxu1 %v7410_v53  ;;  %v4821_v56 = vrot.slane %v4816_v54, %v9550_v21 }
 0xb86   : > { %4990 = vmatprep.subr.bf16.mxu1 %v7415_v57  ;;  %v4825_v57 = vrot.slane %v4816_v54, %v9556_v25  ;;  %v7550_v54 = vld [vmem:[#allocation38 + $0x184] ss:$16 sps:$4 sm:$0xff] (!%p6584_p12)  }
 0xb89   : > { %4991 = vmatpush1.bf16.msra.mxu1 %v7413_v58 }
 0xb8a   : > { %4992 = vmatprep.subr.bf16.mxu1 %v7418_v59 }
 0xb8d   : > { %4993 = vmatpush1.bf16.msra.mxu1 %v7416_v46 }
 0xb8e   : > { %4994 = vmatprep.subr.bf16.mxu1 %v7421_v60 }
 0xb91   : > { %4995 = vmatpush1.bf16.msra.mxu1 %v7419_v61 }
 0xb92   : > { %4996 = vmatprep.subr.bf16.mxu1 %v7424_v62 }
 0xb95   : > { %4997 = vmatpush1.bf16.msra.mxu1 %v7422_v63 }
 0xb96   : > { %4998 = vmatprep.subr.bf16.mxu1 %v7427_v0  ;;  %v7478_v0 = vld [vmem:[#allocation38 + $0x4] ss:$16 sps:$4 sm:$0xff] (!%p6584_p12)  }
 0xb97   : > { %5463 = vmatprep.subr.bf16.mxu0 (!%p6584_p12), %v7478_v0  ;;  %v7564_v0 = vld [vmem:[#allocation38 + $0x1cc] ss:$16 sps:$4 sm:$0xff] (!%p6584_p12)  }
 0xb99   : > { %4999 = vmatpush1.bf16.msra.mxu1 %v7425_v12 }
 0xb9a   : > { %5000 = vmatprep.subr.bf16.mxu1 %v7430_v11  ;;  %v7480_v11 = vld [vmem:[#allocation38 + $0xc] ss:$16 sps:$4 sm:$0xff] (!%p6584_p12)  }
 0xb9d   : > { %5001 = vmatpush1.bf16.msra.mxu1 %v7428_v1  ;;  %v7482_v1 = vld [vmem:[#allocation38] ss:$16 sps:$4 sm:$0xff] (!%p6584_p12)  }
 0xb9e   : > { %5002 = vmatprep.subr.bf16.mxu1 %v7433_v2  ;;  %v7483_v2 = vld [vmem:[#allocation38 + $0x8] ss:$16 sps:$4 sm:$0xff] (!%p6584_p12)   ;;  %5464 = vmatpush1.bf16.msra.mxu0 (!%p6584_p12), %v7482_v1  ;;  %v7568_v1 = vld [vmem:[#allocation38 + $0x1e4] ss:$16 sps:$4 sm:$0xff] (!%p6584_p12)  }
 0xba1   : > { %5003 = vmatpush1.bf16.msra.mxu1 %v7431_v3  ;;  %v7484_v3 = vld [vmem:[#allocation38 + $0x24] ss:$16 sps:$4 sm:$0xff] (!%p6584_p12)  }
 0xba2   : > { %5004 = vmatprep.subr.bf16.mxu1 %v7436_v4  ;;  %v7486_v4 = vld [vmem:[#allocation38 + $0x2c] ss:$16 sps:$4 sm:$0xff] (!%p6584_p12)   ;;  %5465 = vmatprep.subr.bf16.mxu0 (!%p6584_p12), %v7484_v3  ;;  %v7572_v3 = vld [vmem:[#allocation38 + $0x1e0] ss:$16 sps:$4 sm:$0xff] (!%p6584_p12)  }
 0xba5   : > { %5005 = vmatpush1.bf16.msra.mxu1 %v7434_v5  ;;  %v7488_v5 = vld [vmem:[#allocation38 + $0x20] ss:$16 sps:$4 sm:$0xff] (!%p6584_p12)  }
 0xba6   : > { %5006 = vmatprep.subr.bf16.mxu1 %v7439_v6  ;;  %v7489_v6 = vld [vmem:[#allocation38 + $0x28] ss:$16 sps:$4 sm:$0xff] (!%p6584_p12)   ;;  %5466 = vmatpush1.bf16.msra.mxu0 (!%p6584_p12), %v7488_v5 }
 0xba9   : > { %5007 = vmatpush1.bf16.msra.mxu1 %v7437_v7  ;;  %v7490_v7 = vld [vmem:[#allocation38 + $0x44] ss:$16 sps:$4 sm:$0xff] (!%p6584_p12)  }
 0xbaa   : > { %5008 = vmatprep.subr.bf16.mxu1 %v7442_v14  ;;  %5467 = vmatprep.subr.bf16.mxu0 (!%p6584_p12), %v7490_v7  ;;  %v7498_v14 = vld [vmem:[#allocation38 + $0x6c] ss:$16 sps:$4 sm:$0xff] (!%p6584_p12)  }
 0xbad   : > { %5009 = vmatpush1.bf16.msra.mxu1 %v7440_v15  ;;  %v7500_v15 = vld [vmem:[#allocation38 + $0x60] ss:$16 sps:$4 sm:$0xff] (!%p6584_p12)  }
 0xbae   : > { %5010 = vmatprep.subr.bf16.mxu1 %v7445_v16  ;;  %v7501_v16 = vld [vmem:[#allocation38 + $0x68] ss:$16 sps:$4 sm:$0xff] (!%p6584_p12)  }
 0xbb1   : > { %5011 = vmatpush1.bf16.msra.mxu1 %v7443_v17  ;;  %v7502_v17 = vld [vmem:[#allocation38 + $0x84] ss:$16 sps:$4 sm:$0xff] (!%p6584_p12)  }
 0xbb2   : > { %5012 = vmatprep.subr.bf16.mxu1 %v7448_v19  ;;  %v7504_v19 = vld [vmem:[#allocation38 + $0x8c] ss:$16 sps:$4 sm:$0xff] (!%p6584_p12)  }
 0xbb5   : > { %5013 = vmatpush1.bf16.msra.mxu1 %v7446_v20  ;;  %v7506_v20 = vld [vmem:[#allocation38 + $0x80] ss:$16 sps:$4 sm:$0xff] (!%p6584_p12)  }
 0xbb6   : > { %5014 = vmatprep.subr.bf16.mxu1 %v7451_v23  ;;  %v7507_v23 = vld [vmem:[#allocation38 + $0x88] ss:$16 sps:$4 sm:$0xff] (!%p6584_p12)  }
 0xbb9   : > { %5015 = vmatpush1.bf16.msra.mxu1 %v7449_v24  ;;  %v7508_v24 = vld [vmem:[#allocation38 + $0xa4] ss:$16 sps:$4 sm:$0xff] (!%p6584_p12)  }
 0xbba   : > { %5016 = vmatprep.subr.bf16.mxu1 %v7454_v27  ;;  %v7510_v27 = vld [vmem:[#allocation38 + $0xac] ss:$16 sps:$4 sm:$0xff] (!%p6584_p12)  }
 0xbbd   : > { %5017 = vmatpush1.bf16.msra.mxu1 %v7452_v28  ;;  %v7512_v28 = vld [vmem:[#allocation38 + $0xa0] ss:$16 sps:$4 sm:$0xff] (!%p6584_p12)  }
 0xbbe   : > { %5018 = vmatprep.subr.bf16.mxu1 %v7457_v29  ;;  %v7513_v29 = vld [vmem:[#allocation38 + $0xa8] ss:$16 sps:$4 sm:$0xff] (!%p6584_p12)  }
 0xbc1   : > { %5019 = vmatpush1.bf16.msra.mxu1 %v7455_v30  ;;  %v7514_v30 = vld [vmem:[#allocation38 + $0xc4] ss:$16 sps:$4 sm:$0xff] (!%p6584_p12)  }
 0xbc2   : > { %5504 = vmatprep.subr.bf16.mxu1 (!%p6584_p12), %v7480_v11  ;;  %v7567_v11 = vld [vmem:[#allocation38 + $0x1c8] ss:$16 sps:$4 sm:$0xff] (!%p6584_p12)  }
 0xc57   : > { %v4548_v33 = vpop.f32.mrb[32].mxu1 }
 0xc58   : > { %v4750_v55 = vadd.f32 %v4749_v8, %v4548_v33  ;;  %v4550_v35 = vpop.f32.mrb[33].mxu1  ;;  %v7492_v8 = vld [vmem:[#allocation38 + $0x4c] ss:$16 sps:$4 sm:$0xff] (!%p6584_p12)   ;;  %v7519_v33 = vld [vmem:[#allocation38 + $0xc8] ss:$16 sps:$4 sm:$0xff] (!%p6584_p12)  }
 0xc59   : > { %v4752_v36 = vadd.f32 %v4751_v9, %v4550_v35  ;;  %v4552_v38 = vpop.f32.mrb[34].mxu1  ;;  %v7494_v9 = vld [vmem:[#allocation38 + $0x40] ss:$16 sps:$4 sm:$0xff] (!%p6584_p12)  }
 0xc5a   : > { %v4768_v39 = vadd.f32 %v4761_v32, %v4750_v55  ;;  %v4553_v40 = vpop.f32.mrb[35].mxu1  ;;  %5468 = vmatpush1.bf16.msra.mxu0 (!%p6584_p12), %v7494_v9  ;;  %v7518_v32 = vld [vmem:[#allocation38 + $0xc0] ss:$16 sps:$4 sm:$0xff] (!%p6584_p12)   ;;  %v7522_v55 = vld [vmem:[#allocation38 + $0xec] ss:$16 sps:$4 sm:$0xff] (!%p6584_p12)  }
 0xc5b   : > { %v4769_v41 = vadd.f32 %v4765_v34, %v4752_v36  ;;  %5469 = vmatprep.subr.bf16.mxu0 (!%p6584_p12), %v7496_v13  ;;  %v7520_v34 = vld [vmem:[#allocation38 + $0xe4] ss:$16 sps:$4 sm:$0xff] (!%p6584_p12)   ;;  %v7524_v35 = vld [vmem:[#allocation38 + $0xe0] ss:$16 sps:$4 sm:$0xff] (!%p6584_p12)   ;;  %v7525_v36 = vld [vmem:[#allocation38 + $0xe8] ss:$16 sps:$4 sm:$0xff] (!%p6584_p12)  }
 0xc5c   : > { %v4772_v42 = vmin.f32 %v4768_v39, 0.0  ;;  %vm4770_vm12 = vcmp.gt.f32.partialorder %v4768_v39, 0.0  ;;  %v7526_v38 = vld [vmem:[#allocation38 + $0x104] ss:$16 sps:$4 sm:$0xff] (!%p6584_p12)   ;;  %v7530_v40 = vld [vmem:[#allocation38 + $0x100] ss:$16 sps:$4 sm:$0xff] (!%p6584_p12)  }
 0xc5d   : > { %v4773_v43 = vmin.f32 %v4769_v41, 0.0  ;;  %vm4771_vm13 = vcmp.gt.f32.partialorder %v4769_v41, 0.0 }
 0xc5e   : > { %v4774_v44 = vmul.f32 1.442695, %v4772_v42  ;;  %5470 = vmatpush1.bf16.msra.mxu0 (!%p6584_p12), %v7500_v15  ;;  %v7532_v42 = vld [vmem:[#allocation38 + $0x124] ss:$16 sps:$4 sm:$0xff] (!%p6584_p12)  }
 0xc5f   : > { %v4776_v37 = vmul.f32 1.442695, %v4773_v43  ;;  %5471 = vmatprep.subr.bf16.mxu0 (!%p6584_p12), %v7502_v17  ;;  %v7534_v43 = vld [vmem:[#allocation38 + $0x12c] ss:$16 sps:$4 sm:$0xff] (!%p6584_p12)  }
 0xc60   : > { %7474 = vpow2.f32 %v4774_v44  ;;  %v7536_v44 = vld [vmem:[#allocation38 + $0x120] ss:$16 sps:$4 sm:$0xff] (!%p6584_p12)  }
 0xc61   : > { %7476 = vpow2.f32 %v4776_v37  ;;  %v7537_v37 = vld [vmem:[#allocation38 + $0x128] ss:$16 sps:$4 sm:$0xff] (!%p6584_p12)  }
 0xc62   : > { %5472 = vmatpush1.bf16.msra.mxu0 (!%p6584_p12), %v7506_v20 }
 0xc63   : > { %5473 = vmatprep.subr.bf16.mxu0 (!%p6584_p12), %v7508_v24 }
 0xc66   : > { %5474 = vmatpush1.bf16.msra.mxu0 (!%p6584_p12), %v7512_v28 }
 0xc67   : > { %5475 = vmatprep.subr.bf16.mxu0 (!%p6584_p12), %v7514_v30 }
 0xc6a   : > { %v7475_v45 = vpop.eup %7474  ;;  %5476 = vmatpush1.bf16.msra.mxu0 (!%p6584_p12), %v7518_v32 }
 0xc6b   : > { %v7477_v47 = vpop.eup %7476  ;;  %v6549_v48 = vadd.f32 -1.0, %v7475_v45  ;;  %5477 = vmatprep.subr.bf16.mxu0 (!%p6584_p12), %v7520_v34  ;;  %v7538_v45 = vld [vmem:[#allocation38 + $0x144] ss:$16 sps:$4 sm:$0xff] (!%p6584_p12)  }
 0xc6c   : > { %v6550_v49 = vadd.f32 -1.0, %v7477_v47  ;;  %v7540_v47 = vld [vmem:[#allocation38 + $0x14c] ss:$16 sps:$4 sm:$0xff] (!%p6584_p12)  }
 0xc6d   : > { %v4780_v50 = vsel %vm4770_vm12, %v4768_v39, %v6549_v48  ;;  %v7528_v39 = vld [vmem:[#allocation38 + $0x10c] ss:$16 sps:$4 sm:$0xff] (!%p6584_p12)   ;;  %v7542_v48 = vld [vmem:[#allocation38 + $0x140] ss:$16 sps:$4 sm:$0xff] (!%p6584_p12)  }
 0xc6e   : > { %v4781_v51 = vsel %vm4771_vm13, %v4769_v41, %v6550_v49  ;;  %v4782_v53 = vpack.c.bf16 %v4780_v50, %v4780_v50  ;;  %v7531_v41 = vld [vmem:[#allocation38 + $0x108] ss:$16 sps:$4 sm:$0xff] (!%p6584_p12)   ;;  %5478 = vmatpush1.bf16.msra.mxu0 (!%p6584_p12), %v7524_v35  ;;  %v7544_v50 = vld [vmem:[#allocation38 + $0x164] ss:$16 sps:$4 sm:$0xff] (!%p6584_p12)  }
 0xc6f   : > { %v4783_v52 = vpack.c.bf16 %v4781_v51, %v4781_v51  ;;  %5479 = vmatprep.subr.bf16.mxu0 (!%p6584_p12), %v7526_v38  ;;  %v7543_v49 = vld [vmem:[#allocation38 + $0x148] ss:$16 sps:$4 sm:$0xff] (!%p6584_p12)   ;;  %v7546_v51 = vld [vmem:[#allocation38 + $0x16c] ss:$16 sps:$4 sm:$0xff] (!%p6584_p12)  }
 0xc71   : > { %5020 = vmatprep.mubr.bf16.mxu1 %v4783_v52  ;;  %v7548_v52 = vld [vmem:[#allocation38 + $0x160] ss:$16 sps:$4 sm:$0xff] (!%p6584_p12)  }
 0xc72   : > { %5021 = vmatmul.mubr.bf16.vlgmr.msra.gmra.mrb[36].mxu1 %v4782_v53  ;;  %5480 = vmatpush1.bf16.msra.mxu0 (!%p6584_p12), %v7530_v40  ;;  %v7549_v53 = vld [vmem:[#allocation38 + $0x168] ss:$16 sps:$4 sm:$0xff] (!%p6584_p12)  }
 0xc73   : > { %5505 = vmatpush1.bf16.msra.mxu1 (!%p6584_p12), %v7483_v2  ;;  %5481 = vmatprep.subr.bf16.mxu0 (!%p6584_p12), %v7532_v42  ;;  %v7570_v2 = vld [vmem:[#allocation38 + $0x1ec] ss:$16 sps:$4 sm:$0xff] (!%p6584_p12)  }
 0xc74   : > { %5506 = vmatprep.subr.bf16.mxu1 (!%p6584_p12), %v7486_v4  ;;  %v7573_v4 = vld [vmem:[#allocation38 + $0x1e8] ss:$16 sps:$4 sm:$0xff] (!%p6584_p12)  }
 0xc76   : > { %5482 = vmatpush1.bf16.msra.mxu0 (!%p6584_p12), %v7536_v44 }
 0xc77   : > { %5507 = vmatpush1.bf16.msra.mxu1 (!%p6584_p12), %v7489_v6  ;;  %5483 = vmatprep.subr.bf16.mxu0 (!%p6584_p12), %v7538_v45  ;;  %v5121_v6 = vld [vmem:[#allocation40] sm:$0xf] (!%p6584_p12) }
 0xc78   : > { %5508 = vmatprep.subr.bf16.mxu1 (!%p6584_p12), %v7492_v8  ;;  %v5126_v7 = vrot.slane (!%p6584_p12), %v5121_v6, %v9550_v21  ;;  %v5134_v8 = vrot.slane (!%p6584_p12), %v5121_v6, %v2528_v22  ;;  %v5130_v9 = vrot.slane (!%p6584_p12), %v5121_v6, %v9556_v25 }
 0xc7a   : > { %5484 = vmatpush1.bf16.msra.mxu0 (!%p6584_p12), %v7542_v48 }
 0xc7b   : > { %5509 = vmatpush1.bf16.msra.mxu1 (!%p6584_p12), %v7495_v10  ;;  %5485 = vmatprep.subr.bf16.mxu0 (!%p6584_p12), %v7544_v50  ;;  %v5138_v10 = vrot.slane (!%p6584_p12), %v5121_v6, %v2532_v26 }
 0xc7c   : > { %5510 = vmatprep.subr.bf16.mxu1 (!%p6584_p12), %v7498_v14 }
 0xc7e   : > { %5486 = vmatpush1.bf16.msra.mxu0 (!%p6584_p12), %v7548_v52 }
 0xc7f   : > { %5511 = vmatpush1.bf16.msra.mxu1 (!%p6584_p12), %v7501_v16  ;;  %5487 = vmatprep.subr.bf16.mxu0 (!%p6584_p12), %v7550_v54 }
 0xc80   : > { %5512 = vmatprep.subr.bf16.mxu1 (!%p6584_p12), %v7504_v19 }
 0xc83   : > { %5513 = vmatpush1.bf16.msra.mxu1 (!%p6584_p12), %v7507_v23 }
 0xc84   : > { %5514 = vmatprep.subr.bf16.mxu1 (!%p6584_p12), %v7510_v27 }
 0xc87   : > { %5515 = vmatpush1.bf16.msra.mxu1 (!%p6584_p12), %v7513_v29 }
 0xc88   : > { %5516 = vmatprep.subr.bf16.mxu1 (!%p6584_p12), %v7516_v31 }
 0xc8b   : > { %5517 = vmatpush1.bf16.msra.mxu1 (!%p6584_p12), %v7519_v33  ;;  %v8403_v33 = vmov (!%p6584_p12), 1966171168  }
 0xc8c   : > { %5518 = vmatprep.subr.bf16.mxu1 (!%p6584_p12), %v7522_v55  ;;  %v5580_v34 = vunpack.c.l.s4 (!%p6584_p12), %v8403_v33 }
 0xc8e   : > { %v5581_v35 = vunpack.c.0.s8 (!%p6584_p12), %v5580_v34 }
 0xc8f   : > { %5519 = vmatpush1.bf16.msra.mxu1 (!%p6584_p12), %v7525_v36 }
 0xc90   : > { %5520 = vmatprep.subr.bf16.mxu1 (!%p6584_p12), %v7528_v39 }
 0xc93   : > { %5521 = vmatpush1.bf16.msra.mxu1 (!%p6584_p12), %v7531_v41 }
 0xc94   : > { %5522 = vmatprep.subr.bf16.mxu1 (!%p6584_p12), %v7534_v43 }
 0xc97   : > { %5523 = vmatpush1.bf16.msra.mxu1 (!%p6584_p12), %v7537_v37  ;;  %v5584_v37 = vsub.s32 (!%p6584_p12), %v5581_v35, %v9545_v18 }
 0xc98   : > { %5524 = vmatprep.subr.bf16.mxu1 (!%p6584_p12), %v7540_v47 }
 0xc9b   : > { %5525 = vmatpush1.bf16.msra.mxu1 (!%p6584_p12), %v7543_v49 }
 0xc9c   : > { %5526 = vmatprep.subr.bf16.mxu1 (!%p6584_p12), %v7546_v51 }
 0xc9f   : > { %5527 = vmatpush1.bf16.msra.mxu1 (!%p6584_p12), %v7549_v53 }
 0xd45   : > { %v5022_v58 = vpop.f32.mrb[36].mxu1  ;;  %5053 = sbr.rel (%p6584_p12) target bundleno = 3657 (0xe49), region = 244 }
 0xd46   : > { %v9825_v59 = vadd.f32 %v5022_v58, %v4821_v56  ;;  %v5024_v46 = vpop.f32.mrb[37].mxu1  ;;  %v7552_v56 = vld [vmem:[#allocation38 + $0x18c] ss:$16 sps:$4 sm:$0xff] (!%p6584_p12)   ;;  %v7555_v58 = vld [vmem:[#allocation38 + $0x188] ss:$16 sps:$4 sm:$0xff] (!%p6584_p12)  }
 0xd47   : > { %v5025_v60 = vadd.f32 %v5024_v46, %v4825_v57  ;;  %v5026_v61 = vpop.f32.mrb[38].mxu1  ;;  %v7554_v57 = vld [vmem:[#allocation38 + $0x180] ss:$16 sps:$4 sm:$0xff] (!%p6584_p12)   ;;  %5528 = vmatprep.subr.bf16.mxu1 (!%p6584_p12), %v7552_v56  ;;  %v7556_v46 = vld [vmem:[#allocation38 + $0x1a4] ss:$16 sps:$4 sm:$0xff] (!%p6584_p12)  }
 0xd48   : > { %v5027_v62 = vpop.f32.mrb[39].mxu1  ;;  %5488 = vmatpush1.bf16.msra.mxu0 (!%p6584_p12), %v7554_v57  ;;  %5529 = vmatpush1.bf16.msra.mxu1 (!%p6584_p12), %v7555_v58  ;;  %v7560_v61 = vld [vmem:[#allocation38 + $0x1a0] ss:$16 sps:$4 sm:$0xff] (!%p6584_p12)   ;;  %v5055_v5 = vpack.c.bf16 (!%p6584_p12), %v9825_v59, %v9825_v59 }
 0xd49   : > { %v5040_v63 = vcombine.low %v9825_v59, %v5025_v60  ;;  %v5056_v12 = vpack.c.bf16 (!%p6584_p12), %v5025_v60, %v5025_v60  ;;  %v7558_v60 = vld [vmem:[#allocation38 + $0x1ac] ss:$16 sps:$4 sm:$0xff] (!%p6584_p12)   ;;  %v7561_v62 = vld [vmem:[#allocation38 + $0x1a8] ss:$16 sps:$4 sm:$0xff] (!%p6584_p12)   ;;  %5489 = vmatprep.subr.bf16.mxu0 (!%p6584_p12), %v7556_v46 }
 0xd4a   : > { %5530 = vmatprep.subr.bf16.mxu1 (!%p6584_p12), %v7558_v60 }
 0xd4b   : > { %6583 = vst.sshfl [vmem:[#allocation4] sm:$0x33 pattern:$0x76325410] %v5040_v63  ;;  %5495 = vmatprep.mubr.bf16.mxu0 (!%p6584_p12), %v5056_v12  ;;  %5536 = vmatprep.mubr.bf16.mxu1 (!%p6584_p12), %v5056_v12  ;;  %v7566_v12 = vld [vmem:[#allocation38 + $0x1c0] ss:$16 sps:$4 sm:$0xff] (!%p6584_p12)  }
 0xd4c   : > { %6585 = vst.sshfl [vmem:[#allocation41] sm:$0x33 pattern:$0x76325410] %v5040_v63  ;;  %v7562_v63 = vld [vmem:[#allocation38 + $0x1c4] ss:$16 sps:$4 sm:$0xff]   ;;  %5490 = vmatpush1.bf16.msra.mxu0 %v7560_v61  ;;  %5531 = vmatpush1.bf16.msra.mxu1 %v7561_v62 }
 0xd4d   : > { %5491 = vmatprep.subr.bf16.mxu0 %v7562_v63  ;;  %5532 = vmatprep.subr.bf16.mxu1 %v7564_v0 }
 0xd50   : > { %5492 = vmatpush1.bf16.msra.mxu0 %v7566_v12  ;;  %5533 = vmatpush1.bf16.msra.mxu1 %v7567_v11 }
 0xd51   : > { %5493 = vmatprep.subr.bf16.mxu0 %v7568_v1  ;;  %5534 = vmatprep.subr.bf16.mxu1 %v7570_v2 }
 0xd54   : > { %5494 = vmatpush1.bf16.msra.mxu0 %v7572_v3  ;;  %5535 = vmatpush1.bf16.msra.mxu1 %v7573_v4 }
 0xd57   : > { %5496 = vmatmul.mubr.bf16.vlgmr.msra.gmra.mrb[0].mxu0 %v5055_v5  ;;  %5537 = vmatmul.mubr.bf16.vlgmr.msra.gmra.mrb[0].mxu1 %v5055_v5 }
 0xe2a   : > { %v5497_v13 = vpop.f32.mrb[0].mxu0  ;;  %v5538_v14 = vpop.f32.mrb[0].mxu1 }
 0xe2b   : > { %v5498_v15 = vadd.f32 %v5497_v13, %v5126_v7  ;;  %v5539_v16 = vadd.f32 %v5538_v14, %v5134_v8  ;;  %v5499_v59 = vpop.f32.mrb[1].mxu0  ;;  %v5540_v17 = vpop.f32.mrb[1].mxu1 }
 0xe2c   : > { %v5500_v19 = vadd.f32 %v5499_v59, %v5130_v9  ;;  %v5541_v20 = vadd.f32 %v5540_v17, %v5138_v10  ;;  %v5501_v23 = vpop.f32.mrb[2].mxu0  ;;  %v5542_v24 = vpop.f32.mrb[2].mxu1 }
 0xe2d   : > { %v5549_v27 = vmin.f32 %v5498_v15, 0.0  ;;  %v5551_v21 = vmin.f32 %v5539_v16, 0.0  ;;  %v5502_v28 = vpop.f32.mrb[3].mxu0  ;;  %v5543_v29 = vpop.f32.mrb[3].mxu1  ;;  %vm5545_vm14 = vcmp.gt.f32.partialorder %v5498_v15, 0.0  ;;  %vm5547_vm15 = vcmp.gt.f32.partialorder %v5539_v16, 0.0 }
 0xe2e   : > { %v5550_v22 = vmin.f32 %v5500_v19, 0.0  ;;  %v5552_v30 = vmin.f32 %v5541_v20, 0.0  ;;  %vm5546_vm0 = vcmp.gt.f32.partialorder %v5500_v19, 0.0  ;;  %vm5548_vm1 = vcmp.gt.f32.partialorder %v5541_v20, 0.0 }
 0xe2f   : > { %v5553_v25 = vmul.f32 1.442695, %v5549_v27  ;;  %v5557_v31 = vmul.f32 1.442695, %v5551_v21 }
 0xe30   : > { %v5555_v32 = vmul.f32 1.442695, %v5550_v22  ;;  %v5559_v26 = vmul.f32 1.442695, %v5552_v30 }
 0xe31   : > { %7574 = vpow2.f32 %v5553_v25 }
 0xe32   : > { %7576 = vpow2.f32 %v5557_v31 }
 0xe33   : > { %7578 = vpow2.f32 %v5555_v32 }
 0xe34   : > { %7580 = vpow2.f32 %v5559_v26 }
 0xe3b   : > { %v7575_v55 = vpop.eup %7574 }
 0xe3c   : > { %v7577_v36 = vpop.eup %7576  ;;  %v6650_v38 = vadd.f32 -1.0, %v7575_v55 }
 0xe3d   : > { %v7579_v39 = vpop.eup %7578  ;;  %v6652_v40 = vadd.f32 -1.0, %v7577_v36 }
 0xe3e   : > { %v7581_v41 = vpop.eup %7580  ;;  %v5565_v42 = vsel %vm5545_vm14, %v5498_v15, %v6650_v38  ;;  %v6651_v43 = vadd.f32 -1.0, %v7579_v39 }
 0xe3f   : > { %v5567_v44 = vsel %vm5547_vm15, %v5539_v16, %v6652_v40  ;;  %v6653_v45 = vadd.f32 -1.0, %v7581_v41 }
 0xe40   : > { %v5566_v47 = vsel %vm5546_vm0, %v5500_v19, %v6651_v43 }
 0xe41   : > { %v6654_v48 = vpack.c.bf16 %v5566_v47, %v5565_v42  ;;  %v5568_v49 = vsel %vm5548_vm1, %v5541_v20, %v6653_v45 }
 0xe42   : > { %v6655_v50 = vpack.c.bf16 %v5568_v49, %v5567_v44 }
 0xe43   : > { %v5585_v51 = vrot.slane %v6654_v48, %v5584_v37 }
 0xe44   : > { %v5592_v52 = vrot.slane %v6655_v50, %v5584_v37 }
 0xe46   : > { %v5593_v53 = vcombine.low %v5585_v51, %v5592_v52 }
 0xe48   : > { %6656 = vst.sshfl [vmem:[%s10028_s8] sm:$0x55 pattern:$0x73625140] %v5593_v53 }
 0xe49 PF: > { %s10029_s13 = sld [smem:[#allocation86_spill]]  ;;  %s8404_s6 = smov [#allocation41]  }
 0xe4a   : > { %s5610_s4 = sshll.u32 %s8404_s6, 4  ;;  %s5611_s4 = int_to_ptr.vmem [resolvable:$true] %s5610_s4 }
 0xe4b   : > { %s8226_s23 = scalar_lea.vmem %s5611_s4, 64  ;;  %p8233_p9 = scmp.lt.s32.totalorder %s5611_s4, %s5611_s4 }
 0xe4c   : > { %p8227_p4 = scmp.ne.s32.totalorder %s5611_s4, %s8226_s23  ;;  %p8234_p6 = scmp.lt.s32.totalorder %s8226_s23, %s8226_s23 }
 0xe4e   : > { %p8235_p10 = por %p8234_p6, %p8233_p9 }
 0xe4f   : > { %p6901_p1 = scmp.eq.s32.totalorder %s10029_s13, 5 }
 0xe51   : > { %p8228_p2 = pnand %p8227_p4, %p6901_p1 }
 0xe53   : > { %p8229_p5 = pneg %p8228_p2 }
 0xe55   : > { %p8236_p3 = pnand %p8235_p10, %p8229_p5 }
 0xe57   : > { %8239 = shalt.err (!%p8236_p3)
}
 0xe58   : > { %s10030_s1 = sld [smem:[#allocation83_spill]] }
 0xe5e   : > { %s10031_s16 = smov %s10030_s1  ;;  %s8240_s12 = scalar_lea.hbm %s10030_s1, 64 }
 0xe5f   : > { %p8241_p11 = scmp.ne.s32.totalorder %s10031_s16, %s8240_s12  ;;  %p8246_p13 = scmp.lt.u32.totalorder %s8240_s12, %s10031_s16 }
 0xe61   : > { %p8242_p7 = pnand %p8241_p11, %p6901_p1 }
 0xe63   : > { %p8243_p0 = pneg %p8242_p7 }
 0xe65   : > { %p8248_p8 = pnand %p8246_p13, %p8243_p0 }
 0xe67   : > { %8251 = shalt.err (!%p8248_p8)
}
 0xe68   : > { %6887 = dma.vmem_to_hbm [thread:$0]  (%p6901_p1), %s5611_s4, 64, %s10031_s16, [#allocation7]  }
 0xe69   : > { %8317 = dma.done.wait (%p6901_p1), [#allocation7], 64  }
 0xe6a   : > { %8319 = vsyncadd (%p6901_p1), [#allocation7], 4294967232 }
 0xe6b PF: > { %s10032_s2 = sld [smem:[#allocation87_spill]]  ;;  %s10033_s7 = sld [smem:[#allocation85_spill]] }
 0xe6c   : > { %s10034_s1 = sld [smem:[#allocation88_spill]]  ;;  %s10035_s0 = smov %s8326_s28 }
 0xe71   : > { %p108_p12 = scmp.ge.s32.totalorder %s10032_s2, 8   ;;  %s10036_s28 = smov %s10033_s7 }
 0xe73   :  { %110 = sbr.rel (!%p108_p12) target bundleno = 93 (0x5d), region = 477 }
 0xe7a   :  { %5629 = vsyncpa [#allocation6], 1 }
 0xe7b   :  { %5631 = vsyncpa [#allocation6 + $0x1], 1 }
 0xe7c   :  { %5632 = vsyncpa [#allocation9], 1 }
 0xe7d   :  { %5634 = vsyncpa [#allocation9 + $0x1], 1 }
 0xe7e   :  { %5635 = vsyncpa [#allocation12], 1 }
 0xe7f   :  { %5637 = vsyncpa [#allocation12 + $0x1], 1 }
 0xe80   :  { %5638 = vsyncpa [#allocation15], 1 }
 0xe81   :  { %5640 = vsyncpa [#allocation15 + $0x1], 1 }
 0xe82   :  { %5641 = vsyncpa [#allocation18], 1 }
 0xe83   :  { %5643 = vsyncpa [#allocation18 + $0x1], 1 }
 0xe84   :  { %5644 = vsyncpa [#allocation21], 1 }
 0xe85   :  { %5646 = vsyncpa [#allocation21 + $0x1], 1 }
 0xe86   :  { %5647 = vsyncpa [#allocation24], 1 }
 0xe87   :  { %5649 = vsyncpa [#allocation24 + $0x1], 1 }
 0xe88   :  { %5650 = vsyncpa [#allocation27], 1 }
 0xe89   :  { %5652 = vsyncpa [#allocation27 + $0x1], 1 }
 0xe8a   :  { %5653 = vsyncpa [#allocation30], 1 }
 0xe8b   :  { %5655 = vsyncpa [#allocation30 + $0x1], 1 }
 0xe8c   :  { %5656 = vsyncpa [#allocation33], 1 }
 0xe8d   :  { %5658 = vsyncpa [#allocation33 + $0x1], 1 }
 0xe8e   :  { %5659 = vsyncpa [#allocation36], 1 }
 0xe8f   :  { %5661 = vsyncpa [#allocation36 + $0x1], 1 }
 0xe90   :  { %5662 = vsyncpa [#allocation39], 1 }
 0xe91   :  { %5663 = vsyncpa [#allocation7], 1 }
 0xe92   :  { %5665 = vsyncpa [#allocation7 + $0x1], 1 }

// kernel: net_forward.3
= control target key start
LH: loop header
LB: loop body
LE: loop exit
PB: predicated region body
PF: predicated region fallthrough
CT: control target
= control target key end

     0   :  { %8 = vsyncpa [#allocation3], 0  ;;  %s11714_s0 = inlined_call_operand.vmem [shape: bf16[2,512], index: 0, kind: input, shape index: {}]   ;;  %s11715_s1 = inlined_call_operand.hbm [shape: bf16[512,15360], index: 1, kind: input, shape index: {}]   ;;  %s11716_s2 = inlined_call_operand.hbm [shape: f32[1,15360], index: 2, kind: input, shape index: {}]   ;;  %s11717_s3 = inlined_call_operand.vmem [shape: f32[2,15360], index: 3, kind: output, shape index: {}]  }
   0x1   :  { %10 = vsyncpa [#allocation3 + $0x1], 0 }
   0x2   :  { %11 = vsyncpa [#allocation5], 0 }
   0x3   :  { %13 = vsyncpa [#allocation5 + $0x1], 0  ;;  %s10358_s12 = smov 0   ;;  %s10360_s13 = smov 0  }
   0x4   :  { %s10362_s14 = smov 0   ;;  %s10364_s15 = smov 0  }
   0x5 LB: > { %s7673_s16 = sadd.s32 4294967295, %s10329_s15   ;;  %s10378_s17 = sadd.s32 1, %s10329_s15   ;;  %s10329_s15 = sphi %s10364_s15, %s11727_s15   ;;  %s10325_s14 = sphi %s10362_s14, %s11726_s14   ;;  %s10321_s13 = sphi %s10360_s13, %s11725_s13   ;;  %s10317_s12 = sphi %s10358_s12, %s11724_s12  }
   0x6   : > { %s44_s18 = ssub.s32 %s10329_s15, %s10378_s17  ;;  %s47_s19 = sadd.s32 1, %s10325_s14 }
   0x7   : > { %p45_p0 = scmp.eq.s32.totalorder %s44_s18, 0  ;;  %p54_p1 = scmp.ne.s32.totalorder %s10325_s14, %s10321_s13 }
   0x8   : > { %p55_p2 = scmp.eq.s32.totalorder %s10329_s15, 0  ;;  %p60_p3 = scmp.ne.s32.totalorder %s10321_s13, %s10317_s12 }
   0x9   : > { %s10388_s20 = scalar_select %p45_p0, %s10325_s14, %s47_s19  }
   0xa   : > { %p56_p4 = por %p55_p2, %p54_p1  ;;  %p61_p5 = scmp.eq.s32.totalorder %s7673_s16, 0 }
   0xb   : > { %p8750_p6 = scmp.lt.s32.totalorder %s10329_s15, 4  ;;  %s10398_s22 = sand.u32 1, %s10325_s14  }
   0xc   : > { %p10393_p7 = por %p61_p5, %p60_p3  ;;  %s8735_s23 = smul.u32 7680, %s10398_s22 }
   0xd   : > { %s8645_s24 = smul.u32 1920, %s10329_s15  ;;  %p10402_p8 = pnand %p8750_p6, %p56_p4 }
   0xe   : > { %s11719_s21 = scalar_select %p10393_p7, 1, 0 }
   0xf   : > { %s10409_s28 = scalar_lea.hbm %s11715_s1, %s8645_s24  ;;  %s143_s29 = scalar_lea.vmem [#allocation2], %s8735_s23 }
  0x10   : > { %s150_s30 = sshll.u32 %s143_s29, 4  ;;  %s140_s4 = scalar_lea.sflag [#allocation3], %s10398_s22  ;;  %s10411_s30 = int_to_ptr.vmem [resolvable:$true] %s150_s30 }
  0x11   : > { %s10231_s5 = scalar_lea.hbm %s10409_s28, 122880  ;;  %p10233_p10 = pneg %p10402_p8 }
  0x12   : > { %p10232_p9 = scmp.ne.s32.totalorder %s10409_s28, %s10231_s5  ;;  %s10236_s8 = scalar_lea.hbm %s11715_s1, 491520 }
  0x13   : > { %p10237_p13 = scmp.lt.u32.totalorder %s10409_s28, %s11715_s1  ;;  %p10238_p0 = scmp.lt.u32.totalorder %s10236_s8, %s10231_s5 }
  0x14   : > { %p10234_p11 = pnand %p10233_p10, %p10232_p9  ;;  %p10240_p2 = scmp.lt.u32.totalorder %s10231_s5, %s10409_s28 }
  0x15   : > { %p10239_p1 = por %p10238_p0, %p10237_p13 }
  0x16   : > { %p10235_p12 = pneg %p10234_p11 }
  0x17   : > { %p10241_p3 = por %p10240_p2, %p10239_p1 }
  0x19   : > { %p10242_p4 = pnand %p10241_p3, %p10235_p12 }
  0x1b   : > { %10245 = shalt.err (!%p10242_p4)
}
  0x1c   : > { %s10246_s11 = scalar_lea.vmem %s10411_s30, 122880  ;;  %s10331_s12 = smov [#allocation2]  }
  0x1d   : > { %p10247_p5 = scmp.ne.s32.totalorder %s10411_s30, %s10246_s11  ;;  %s10251_s18 = sshll.u32 %s10331_s12, 4  ;;  %s10252_s18 = int_to_ptr.vmem [resolvable:$false] %s10251_s18 }
  0x1e   : > { %s10253_s19 = scalar_lea.vmem %s10252_s18, 245760  ;;  %p10254_p11 = scmp.lt.s32.totalorder %s10411_s30, %s10252_s18 }
  0x1f   : > { %p10249_p6 = pnand %p10247_p5, %p10233_p10  ;;  %p10255_p13 = scmp.lt.s32.totalorder %s10253_s19, %s10246_s11 }
  0x21   : > { %p10250_p9 = pneg %p10249_p6  ;;  %p10256_p0 = por %p10255_p13, %p10254_p11 }
  0x23   : > { %p10257_p1 = pnand %p10256_p0, %p10250_p9 }
  0x25   : > { %10260 = shalt.err (!%p10257_p1)
}
  0x26   : > { %s10332_s23 = smov 7680   ;;  %s10333_s24 = smov 1920  }
  0x27   : > { %s10334_s26 = smov 120   ;;  %p7679_p12 = scmp.ge.s32.totalorder %s10329_s15, 1 }
  0x28   : > { %8746 = dma.hbm_to_vmem [thread:$0]  (!%p10402_p8), %s10409_s28, 122880, %s10411_s30, %s140_s4, %s10332_s23, %s10333_s24, %s10334_s26  }
  0x29   : > { %p177_p2 = scmp.lt.s32.totalorder %s10329_s15, 5  ;;  %s8736_s27 = smul.u32 30, %s10398_s22 }
  0x2a   : > { %s8646_s5 = smul.u32 480, %s10329_s15  ;;  %s161_s28 = scalar_lea.sflag [#allocation5], %s10398_s22 }
  0x2b   : > { %p10444_p3 = pnand %p7679_p12, %p177_p2  ;;  %s164_s9 = scalar_lea.vmem [#allocation4], %s8736_s27 }
  0x2c   : > { %s10452_s8 = scalar_lea.hbm %s11716_s2, %s8646_s5  ;;  %s172_s10 = sshll.u32 %s164_s9, 4  ;;  %s173_s10 = int_to_ptr.vmem [resolvable:$true] %s172_s10 }
  0x2d   : > { %s11721_s29 = scalar_select %p10444_p3, 1, 0 }
  0x2e   : > { %s10261_s30 = scalar_lea.hbm %s10452_s8, 480  ;;  %s10266_s12 = scalar_lea.hbm %s11716_s2, 1920 }
  0x2f   : > { %p10262_p4 = scmp.ne.s32.totalorder %s10452_s8, %s10261_s30  ;;  %p10267_p9 = scmp.lt.u32.totalorder %s10452_s8, %s11716_s2 }
  0x30   : > { %p10268_p11 = scmp.lt.u32.totalorder %s10266_s12, %s10261_s30  ;;  %p10270_p0 = scmp.lt.u32.totalorder %s10261_s30, %s10452_s8 }
  0x31   : > { %p10264_p5 = pnand %p10262_p4, %p10233_p10 }
  0x32   : > { %p10269_p13 = por %p10268_p11, %p10267_p9 }
  0x33   : > { %p10265_p6 = pneg %p10264_p5 }
  0x34   : > { %p10271_p1 = por %p10270_p0, %p10269_p13 }
  0x36   : > { %p10272_p12 = pnand %p10271_p1, %p10265_p6 }
  0x38   : > { %10275 = shalt.err (!%p10272_p12)
}
  0x39   : > { %s10276_s22 = scalar_lea.vmem %s173_s10, 480  ;;  %s10335_s23 = smov [#allocation4]  }
  0x3a   : > { %p10277_p2 = scmp.ne.s32.totalorder %s173_s10, %s10276_s22  ;;  %s10281_s24 = sshll.u32 %s10335_s23, 4  ;;  %s10282_s24 = int_to_ptr.vmem [resolvable:$false] %s10281_s24 }
  0x3b   : > { %s10283_s26 = scalar_lea.vmem %s10282_s24, 960  ;;  %p10284_p7 = scmp.lt.s32.totalorder %s173_s10, %s10282_s24 }
  0x3c   : > { %p10279_p4 = pnand %p10277_p2, %p10233_p10  ;;  %p10285_p3 = scmp.lt.s32.totalorder %s10283_s26, %s10276_s22 }
  0x3e   : > { %p10280_p5 = pneg %p10279_p4  ;;  %p10286_p9 = por %p10285_p3, %p10284_p7 }
  0x40   : > { %p10287_p11 = pnand %p10286_p9, %p10280_p5 }
  0x42   : > { %10290 = shalt.err (!%p10287_p11)
}
  0x43   : > { %8749 = dma.hbm_to_vmem [thread:$0]  (!%p10402_p8), %s10452_s8, 480, %s173_s10, %s161_s28  }
  0x44   : > { %p11722_p6 = scmp.ne.s32.totalorder %s11721_s29, 0 }
  0x45   : > { %s183_s27 = sand.u32 (!%p11722_p6), 1, %s10321_s13   ;;  %p11723_p10 = scmp.ne.s32.totalorder (!%p11722_p6), %s11719_s21, 0 }
  0x46   : > { %181 = sbr.rel (%p11722_p6) target bundleno = 1265 (0x4f1), region = 32  ;;  %s184_s6 = scalar_lea.sflag (!%p11722_p6), [#allocation3], %s183_s27 }
  0x47   : > { %s8737_s5 = smul.u32 (!%p11722_p6), 7680, %s183_s27 }
  0x49   : > { %s10477_s7 = scalar_lea.vmem (!%p11722_p6), [#allocation2], %s8737_s5 }
  0x4d   : > { %10308 = dma.done.wait (%p11723_p10), %s184_s6, 122880  }
  0x4e   : > { %10310 = vsyncadd (%p11723_p10), %s184_s6, 4294844416  ;;  %s8738_s9 = smul.u32 30, %s183_s27  ;;  %s193_s25 = scalar_lea.sflag [#allocation5], %s183_s27 }
  0x50   : > { %s10483_s30 = scalar_lea.vmem [#allocation4], %s8738_s9 }
  0x51   : > { %10312 = dma.done.wait (%p11723_p10), %s193_s25, 480  }
  0x52   : > { %10314 = vsyncadd (%p11723_p10), %s193_s25, 4294966816  ;;  %v8788_v0 = vld [vmem:[%s10477_s7 + $0x4] ss:$120 sps:$4 sm:$0xff]   ;;  %v8792_v2 = vld [vmem:[%s10477_s7] ss:$120 sps:$4 sm:$0xff]   ;;  %v1201_v38 = vlaneseq  ;;  %s10953_s8 = smul.u32 30, %s7673_s16 }
  0x53   : > { %v8790_v1 = vld [vmem:[%s10477_s7 + $0xf04] ss:$120 sps:$4 sm:$0xff]   ;;  %6180 = vmatprep.subr.bf16.mxu1 %v8788_v0  ;;  %v8793_v3 = vld [vmem:[%s10477_s7 + $0xf00] ss:$120 sps:$4 sm:$0xff]   ;;  %v8794_v4 = vld [vmem:[%s10477_s7 + $0xf4] ss:$120 sps:$4 sm:$0xff]  }
  0x54   : > { %6221 = vmatprep.subr.bf16.mxu0 %v8790_v1  ;;  %6181 = vmatpush1.bf16.msra.mxu1 %v8792_v2  ;;  %v8796_v5 = vld [vmem:[%s10477_s7 + $0xff4] ss:$120 sps:$4 sm:$0xff]   ;;  %v8798_v6 = vld [vmem:[%s10477_s7 + $0xf0] ss:$120 sps:$4 sm:$0xff]   ;;  %v8800_v8 = vld [vmem:[%s10477_s7 + $0x1e4] ss:$120 sps:$4 sm:$0xff]  }
  0x55   : > { %6222 = vmatpush1.bf16.msra.mxu0 %v8793_v3  ;;  %6182 = vmatprep.subr.bf16.mxu1 %v8794_v4  ;;  %v8799_v7 = vld [vmem:[%s10477_s7 + $0xff0] ss:$120 sps:$4 sm:$0xff]   ;;  %v8802_v9 = vld [vmem:[%s10477_s7 + $0x10e4] ss:$120 sps:$4 sm:$0xff]   ;;  %v8804_v10 = vld [vmem:[%s10477_s7 + $0x1e0] ss:$120 sps:$4 sm:$0xff]  }
  0x56   : > { %6223 = vmatprep.subr.bf16.mxu0 %v8796_v5  ;;  %v8805_v11 = vld [vmem:[%s10477_s7 + $0x10e0] ss:$120 sps:$4 sm:$0xff]   ;;  %v8806_v12 = vld [vmem:[%s10477_s7 + $0x2d4] ss:$120 sps:$4 sm:$0xff]   ;;  %v8810_v14 = vld [vmem:[%s10477_s7 + $0x2d0] ss:$120 sps:$4 sm:$0xff]  }
  0x57   : > { %v8808_v13 = vld [vmem:[%s10477_s7 + $0x11d4] ss:$120 sps:$4 sm:$0xff]   ;;  %v8811_v15 = vld [vmem:[%s10477_s7 + $0x11d0] ss:$120 sps:$4 sm:$0xff]   ;;  %v8812_v16 = vld [vmem:[%s10477_s7 + $0x3c4] ss:$120 sps:$4 sm:$0xff]  }
  0x58   : > { %6183 = vmatpush1.bf16.msra.mxu1 %v8798_v6  ;;  %v8814_v17 = vld [vmem:[%s10477_s7 + $0x12c4] ss:$120 sps:$4 sm:$0xff]   ;;  %v8816_v18 = vld [vmem:[%s10477_s7 + $0x3c0] ss:$120 sps:$4 sm:$0xff]   ;;  %v8818_v20 = vld [vmem:[%s10477_s7 + $0x4b4] ss:$120 sps:$4 sm:$0xff]  }
  0x59   : > { %6224 = vmatpush1.bf16.msra.mxu0 %v8799_v7  ;;  %6184 = vmatprep.subr.bf16.mxu1 %v8800_v8  ;;  %v8817_v19 = vld [vmem:[%s10477_s7 + $0x12c0] ss:$120 sps:$4 sm:$0xff]   ;;  %v8820_v21 = vld [vmem:[%s10477_s7 + $0x13b4] ss:$120 sps:$4 sm:$0xff]   ;;  %v8822_v22 = vld [vmem:[%s10477_s7 + $0x4b0] ss:$120 sps:$4 sm:$0xff]  }
  0x5a   : > { %6225 = vmatprep.subr.bf16.mxu0 %v8802_v9  ;;  %v8823_v23 = vld [vmem:[%s10477_s7 + $0x13b0] ss:$120 sps:$4 sm:$0xff]   ;;  %v8824_v24 = vld [vmem:[%s10477_s7 + $0x5a4] ss:$120 sps:$4 sm:$0xff]   ;;  %v8828_v26 = vld [vmem:[%s10477_s7 + $0x5a0] ss:$120 sps:$4 sm:$0xff]  }
  0x5b   : > { %v8826_v25 = vld [vmem:[%s10477_s7 + $0x14a4] ss:$120 sps:$4 sm:$0xff]   ;;  %v8829_v27 = vld [vmem:[%s10477_s7 + $0x14a0] ss:$120 sps:$4 sm:$0xff]   ;;  %v8830_v28 = vld [vmem:[%s10477_s7 + $0x694] ss:$120 sps:$4 sm:$0xff]  }
  0x5c   : > { %6185 = vmatpush1.bf16.msra.mxu1 %v8804_v10  ;;  %v8832_v29 = vld [vmem:[%s10477_s7 + $0x1594] ss:$120 sps:$4 sm:$0xff]   ;;  %v8834_v30 = vld [vmem:[%s10477_s7 + $0x690] ss:$120 sps:$4 sm:$0xff]   ;;  %v8836_v32 = vld [vmem:[%s10477_s7 + $0x784] ss:$120 sps:$4 sm:$0xff]  }
  0x5d   : > { %6226 = vmatpush1.bf16.msra.mxu0 %v8805_v11  ;;  %6186 = vmatprep.subr.bf16.mxu1 %v8806_v12  ;;  %v8835_v31 = vld [vmem:[%s10477_s7 + $0x1590] ss:$120 sps:$4 sm:$0xff]   ;;  %v8838_v33 = vld [vmem:[%s10477_s7 + $0x1684] ss:$120 sps:$4 sm:$0xff]   ;;  %v8840_v34 = vld [vmem:[%s10477_s7 + $0x780] ss:$120 sps:$4 sm:$0xff]  }
  0x5e   : > { %6227 = vmatprep.subr.bf16.mxu0 %v8808_v13  ;;  %v8841_v35 = vld [vmem:[%s10477_s7 + $0x1680] ss:$120 sps:$4 sm:$0xff]   ;;  %v8842_v36 = vld [vmem:[%s10477_s7 + $0x874] ss:$120 sps:$4 sm:$0xff]   ;;  %v10336_v39 = vmov 1966171168  }
  0x5f   : > { %v8844_v37 = vld [vmem:[%s10477_s7 + $0x1774] ss:$120 sps:$4 sm:$0xff]   ;;  %v1361_v40 = vunpack.c.l.s4 %v10336_v39  ;;  %v8846_v41 = vld [vmem:[%s10477_s7 + $0x870] ss:$120 sps:$4 sm:$0xff]   ;;  %v8848_v43 = vld [vmem:[%s10477_s7 + $0x964] ss:$120 sps:$4 sm:$0xff]  }
  0x60   : > { %6187 = vmatpush1.bf16.msra.mxu1 %v8810_v14  ;;  %v8847_v42 = vld [vmem:[%s10477_s7 + $0x1770] ss:$120 sps:$4 sm:$0xff]   ;;  %v8850_v44 = vld [vmem:[%s10477_s7 + $0x1864] ss:$120 sps:$4 sm:$0xff]   ;;  %v10531_v45 = vshrl.u32 %v1201_v38, 7  ;;  %p227_p7 = scmp.lt.s32.totalorder %s10953_s8, 119 }
  0x61   : > { %6228 = vmatpush1.bf16.msra.mxu0 %v8811_v15  ;;  %6188 = vmatprep.subr.bf16.mxu1 %v8812_v16  ;;  %v1362_v46 = vunpack.c.0.s8 %v1361_v40  ;;  %v8852_v47 = vld [vmem:[%s10477_s7 + $0x960] ss:$120 sps:$4 sm:$0xff]   ;;  %v8854_v49 = vld [vmem:[%s10477_s7 + $0xa54] ss:$120 sps:$4 sm:$0xff]   ;;  %v8858_v53 = vld [vmem:[%s10477_s7 + $0xa50] ss:$120 sps:$4 sm:$0xff]  }
  0x62   : > { %6229 = vmatprep.subr.bf16.mxu0 %v8814_v17  ;;  %v8853_v48 = vld [vmem:[%s10477_s7 + $0x1860] ss:$120 sps:$4 sm:$0xff]   ;;  %v8856_v50 = vld [vmem:[%s10477_s7 + $0x1954] ss:$120 sps:$4 sm:$0xff]   ;;  %v8859_v54 = vld [vmem:[%s10477_s7 + $0x1950] ss:$120 sps:$4 sm:$0xff]  }
  0x63   : > { %v1365_v51 = vsub.s32 %v1362_v46, %v10531_v45  ;;  %v7681_v52 = vld.sshfl [vmem:[%s11714_s0] sm:$0x33 pattern:$0x75316420]  ;;  %v8860_v56 = vld [vmem:[%s10477_s7 + $0xb44] ss:$120 sps:$4 sm:$0xff]  }
  0x64   : > { %6189 = vmatpush1.bf16.msra.mxu1 %v8816_v18  ;;  %v1359_v55 = vcombine.high %v7681_v52, %v7681_v52  ;;  %v8862_v57 = vld [vmem:[%s10477_s7 + $0x1a44] ss:$120 sps:$4 sm:$0xff]   ;;  %v8864_v59 = vld [vmem:[%s10477_s7 + $0xb40] ss:$120 sps:$4 sm:$0xff]   ;;  %v8866_v62 = vld [vmem:[%s10477_s7 + $0xc34] ss:$120 sps:$4 sm:$0xff]  }
  0x65   : > { %6230 = vmatpush1.bf16.msra.mxu0 %v8817_v19  ;;  %6190 = vmatprep.subr.bf16.mxu1 %v8818_v20  ;;  %v8865_v60 = vld [vmem:[%s10477_s7 + $0x1a40] ss:$120 sps:$4 sm:$0xff]   ;;  %v8868_v63 = vld [vmem:[%s10477_s7 + $0x1b34] ss:$120 sps:$4 sm:$0xff]   ;;  %v8870_v0 = vld [vmem:[%s10477_s7 + $0xc30] ss:$120 sps:$4 sm:$0xff]   ;;  %v10566_v9 = vrot.slane %v7681_v52, %v1365_v51 }
  0x66   : > { %6231 = vmatprep.subr.bf16.mxu0 %v8820_v21  ;;  %v10545_v58 = vrot.slane %v1359_v55, %v1365_v51  ;;  %v8871_v1 = vld [vmem:[%s10477_s7 + $0x1b30] ss:$120 sps:$4 sm:$0xff]   ;;  %v8872_v2 = vld [vmem:[%s10477_s7 + $0xd24] ss:$120 sps:$4 sm:$0xff]   ;;  %v8876_v4 = vld [vmem:[%s10477_s7 + $0xd20] ss:$120 sps:$4 sm:$0xff]  }
  0x67   : > { %v8874_v3 = vld [vmem:[%s10477_s7 + $0x1c24] ss:$120 sps:$4 sm:$0xff]   ;;  %v8877_v5 = vld [vmem:[%s10477_s7 + $0x1c20] ss:$120 sps:$4 sm:$0xff]   ;;  %v8878_v6 = vld [vmem:[%s10477_s7 + $0xe14] ss:$120 sps:$4 sm:$0xff]   ;;  %v10574_v14 = vcombine.high %v10566_v9, %v10566_v9 }
  0x68   : > { %6191 = vmatpush1.bf16.msra.mxu1 %v8822_v22  ;;  %v10551_v61 = vcombine.high %v10545_v58, %v10545_v58  ;;  %6212 = vmatprep.mubr.bf16.mxu1 %v10545_v58  ;;  %v8880_v7 = vld [vmem:[%s10477_s7 + $0x1d14] ss:$120 sps:$4 sm:$0xff]   ;;  %v8882_v8 = vld [vmem:[%s10477_s7 + $0xe10] ss:$120 sps:$4 sm:$0xff]   ;;  %v8895_v17 = vld [vmem:[%s10477_s7 + $0x104] ss:$120 sps:$4 sm:$0xff]  }
  0x69   : > { %6232 = vmatpush1.bf16.msra.mxu0 %v8823_v23  ;;  %6192 = vmatprep.subr.bf16.mxu1 %v8824_v24  ;;  %v8883_v10 = vld [vmem:[%s10477_s7 + $0x1d10] ss:$120 sps:$4 sm:$0xff]   ;;  %v8886_v11 = vld [vmem:[%s10477_s7 + $0xc] ss:$120 sps:$4 sm:$0xff]   ;;  %v8892_v16 = vld [vmem:[%s10477_s7 + $0xfc] ss:$120 sps:$4 sm:$0xff]  }
  0x6a   : > { %6233 = vmatprep.subr.bf16.mxu0 %v8826_v25  ;;  %6253 = vmatprep.mubr.bf16.mxu0 %v10551_v61  ;;  %v8889_v12 = vld [vmem:[%s10477_s7 + $0x14] ss:$120 sps:$4 sm:$0xff]   ;;  %v8884_v13 = vld [vmem:[%s10477_s7 + $0x8] ss:$120 sps:$4 sm:$0xff]   ;;  %v8890_v18 = vld [vmem:[%s10477_s7 + $0xf8] ss:$120 sps:$4 sm:$0xff]  }
  0x6b   : > { %v8887_v15 = vld [vmem:[%s10477_s7 + $0x10] ss:$120 sps:$4 sm:$0xff]   ;;  %v8893_v19 = vld [vmem:[%s10477_s7 + $0x100] ss:$120 sps:$4 sm:$0xff]   ;;  %v8898_v20 = vld [vmem:[%s10477_s7 + $0x1ec] ss:$120 sps:$4 sm:$0xff]  }
  0x6c   : > { %6193 = vmatpush1.bf16.msra.mxu1 %v8828_v26  ;;  %v8901_v21 = vld [vmem:[%s10477_s7 + $0x1f4] ss:$120 sps:$4 sm:$0xff]   ;;  %v8896_v22 = vld [vmem:[%s10477_s7 + $0x1e8] ss:$120 sps:$4 sm:$0xff]   ;;  %v8907_v25 = vld [vmem:[%s10477_s7 + $0x2e4] ss:$120 sps:$4 sm:$0xff]  }
  0x6d   : > { %6234 = vmatpush1.bf16.msra.mxu0 %v8829_v27  ;;  %6194 = vmatprep.subr.bf16.mxu1 %v8830_v28  ;;  %v8899_v23 = vld [vmem:[%s10477_s7 + $0x1f0] ss:$120 sps:$4 sm:$0xff]   ;;  %v8904_v24 = vld [vmem:[%s10477_s7 + $0x2dc] ss:$120 sps:$4 sm:$0xff]   ;;  %v8905_v27 = vld [vmem:[%s10477_s7 + $0x2e0] ss:$120 sps:$4 sm:$0xff]  }
  0x6e   : > { %6235 = vmatprep.subr.bf16.mxu0 %v8832_v29  ;;  %v8902_v26 = vld [vmem:[%s10477_s7 + $0x2d8] ss:$120 sps:$4 sm:$0xff]   ;;  %v8910_v28 = vld [vmem:[%s10477_s7 + $0x3cc] ss:$120 sps:$4 sm:$0xff]   ;;  %v8920_v38 = vld [vmem:[%s10477_s7 + $0x5a8] ss:$120 sps:$4 sm:$0xff]  }
  0x6f   : > { %v8913_v29 = vld [vmem:[%s10477_s7 + $0x3d4] ss:$120 sps:$4 sm:$0xff]   ;;  %v8923_v39 = vld [vmem:[%s10477_s7 + $0x5b0] ss:$120 sps:$4 sm:$0xff]   ;;  %v8941_v52 = vld [vmem:[%s10477_s7 + $0x880] ss:$120 sps:$4 sm:$0xff]  }
  0x70   : > { %6195 = vmatpush1.bf16.msra.mxu1 %v8834_v30  ;;  %v8908_v30 = vld [vmem:[%s10477_s7 + $0x3c8] ss:$120 sps:$4 sm:$0xff]   ;;  %v8928_v40 = vld [vmem:[%s10477_s7 + $0x69c] ss:$120 sps:$4 sm:$0xff]   ;;  %v8938_v51 = vld [vmem:[%s10477_s7 + $0x878] ss:$120 sps:$4 sm:$0xff]  }
  0x71   : > { %6236 = vmatpush1.bf16.msra.mxu0 %v8835_v31  ;;  %6196 = vmatprep.subr.bf16.mxu1 %v8836_v32  ;;  %v8911_v31 = vld [vmem:[%s10477_s7 + $0x3d0] ss:$120 sps:$4 sm:$0xff]   ;;  %v8916_v32 = vld [vmem:[%s10477_s7 + $0x4bc] ss:$120 sps:$4 sm:$0xff]   ;;  %s11729_s8 = smov (!%p227_p7, %s10953_s8), 119 }
  0x72   : > { %6237 = vmatprep.subr.bf16.mxu0 %v8838_v33  ;;  %v8919_v33 = vld [vmem:[%s10477_s7 + $0x4c4] ss:$120 sps:$4 sm:$0xff]   ;;  %v8937_v46 = vld [vmem:[%s10477_s7 + $0x794] ss:$120 sps:$4 sm:$0xff]   ;;  %v8944_v55 = vld [vmem:[%s10477_s7 + $0x968] ss:$120 sps:$4 sm:$0xff]  }
  0x73   : > { %s7680_s15 = sshll.u32 %s11729_s8, 1 }
  0x74   : > { %6197 = vmatpush1.bf16.msra.mxu1 %v8840_v34  ;;  %v8914_v34 = vld [vmem:[%s10477_s7 + $0x4b8] ss:$120 sps:$4 sm:$0xff]   ;;  %s11009_s28 = scalar_lea.vmem %s11717_s3, %s7680_s15 }
  0x75   : > { %6238 = vmatpush1.bf16.msra.mxu0 %v8841_v35  ;;  %6198 = vmatprep.subr.bf16.mxu1 %v8842_v36  ;;  %v8917_v35 = vld [vmem:[%s10477_s7 + $0x4c0] ss:$120 sps:$4 sm:$0xff]   ;;  %v8922_v36 = vld [vmem:[%s10477_s7 + $0x5ac] ss:$120 sps:$4 sm:$0xff]  }
  0x76   : > { %6239 = vmatprep.subr.bf16.mxu0 %v8844_v37  ;;  %v8925_v37 = vld [vmem:[%s10477_s7 + $0x5b4] ss:$120 sps:$4 sm:$0xff]  }
  0x78   : > { %6199 = vmatpush1.bf16.msra.mxu1 %v8846_v41  ;;  %v8931_v41 = vld [vmem:[%s10477_s7 + $0x6a4] ss:$120 sps:$4 sm:$0xff]  }
  0x79   : > { %6240 = vmatpush1.bf16.msra.mxu0 %v8847_v42  ;;  %6200 = vmatprep.subr.bf16.mxu1 %v8848_v43  ;;  %v8926_v42 = vld [vmem:[%s10477_s7 + $0x698] ss:$120 sps:$4 sm:$0xff]  }
  0x7a   : > { %6241 = vmatprep.subr.bf16.mxu0 %v8850_v44  ;;  %v8929_v43 = vld [vmem:[%s10477_s7 + $0x6a0] ss:$120 sps:$4 sm:$0xff]   ;;  %v8934_v44 = vld [vmem:[%s10477_s7 + $0x78c] ss:$120 sps:$4 sm:$0xff]  }
  0x7c   : > { %6201 = vmatpush1.bf16.msra.mxu1 %v8852_v47  ;;  %v8932_v47 = vld [vmem:[%s10477_s7 + $0x788] ss:$120 sps:$4 sm:$0xff]  }
  0x7d   : > { %6242 = vmatpush1.bf16.msra.mxu0 %v8853_v48  ;;  %6202 = vmatprep.subr.bf16.mxu1 %v8854_v49  ;;  %v8935_v48 = vld [vmem:[%s10477_s7 + $0x790] ss:$120 sps:$4 sm:$0xff]   ;;  %v8940_v49 = vld [vmem:[%s10477_s7 + $0x87c] ss:$120 sps:$4 sm:$0xff]  }
  0x7e   : > { %6243 = vmatprep.subr.bf16.mxu0 %v8856_v50  ;;  %v8943_v50 = vld [vmem:[%s10477_s7 + $0x884] ss:$120 sps:$4 sm:$0xff]  }
  0x80   : > { %6203 = vmatpush1.bf16.msra.mxu1 %v8858_v53  ;;  %v8946_v53 = vld [vmem:[%s10477_s7 + $0x96c] ss:$120 sps:$4 sm:$0xff]  }
  0x81   : > { %6244 = vmatpush1.bf16.msra.mxu0 %v8859_v54  ;;  %6204 = vmatprep.subr.bf16.mxu1 %v8860_v56  ;;  %v8949_v54 = vld [vmem:[%s10477_s7 + $0x974] ss:$120 sps:$4 sm:$0xff]   ;;  %v8947_v56 = vld [vmem:[%s10477_s7 + $0x970] ss:$120 sps:$4 sm:$0xff]  }
  0x82   : > { %6245 = vmatprep.subr.bf16.mxu0 %v8862_v57  ;;  %v8952_v57 = vld [vmem:[%s10477_s7 + $0xa5c] ss:$120 sps:$4 sm:$0xff]  }
  0x84   : > { %6205 = vmatpush1.bf16.msra.mxu1 %v8864_v59  ;;  %v8955_v59 = vld [vmem:[%s10477_s7 + $0xa64] ss:$120 sps:$4 sm:$0xff]  }
  0x85   : > { %6246 = vmatpush1.bf16.msra.mxu0 %v8865_v60  ;;  %6206 = vmatprep.subr.bf16.mxu1 %v8866_v62  ;;  %v8950_v60 = vld [vmem:[%s10477_s7 + $0xa58] ss:$120 sps:$4 sm:$0xff]  }
  0x86   : > { %6247 = vmatprep.subr.bf16.mxu0 %v8868_v63  ;;  %v8953_v62 = vld [vmem:[%s10477_s7 + $0xa60] ss:$120 sps:$4 sm:$0xff]   ;;  %v8958_v63 = vld [vmem:[%s10477_s7 + $0xb4c] ss:$120 sps:$4 sm:$0xff]  }
  0x88   : > { %6207 = vmatpush1.bf16.msra.mxu1 %v8870_v0  ;;  %v8961_v0 = vld [vmem:[%s10477_s7 + $0xb54] ss:$120 sps:$4 sm:$0xff]  }
  0x89   : > { %6248 = vmatpush1.bf16.msra.mxu0 %v8871_v1  ;;  %6208 = vmatprep.subr.bf16.mxu1 %v8872_v2  ;;  %v8956_v1 = vld [vmem:[%s10477_s7 + $0xb48] ss:$120 sps:$4 sm:$0xff]  }
  0x8a   : > { %6249 = vmatprep.subr.bf16.mxu0 %v8874_v3  ;;  %v8959_v2 = vld [vmem:[%s10477_s7 + $0xb50] ss:$120 sps:$4 sm:$0xff]   ;;  %v8964_v3 = vld [vmem:[%s10477_s7 + $0xc3c] ss:$120 sps:$4 sm:$0xff]  }
  0x8c   : > { %6209 = vmatpush1.bf16.msra.mxu1 %v8876_v4  ;;  %v8967_v4 = vld [vmem:[%s10477_s7 + $0xc44] ss:$120 sps:$4 sm:$0xff]  }
  0x8d   : > { %6250 = vmatpush1.bf16.msra.mxu0 %v8877_v5  ;;  %6210 = vmatprep.subr.bf16.mxu1 %v8878_v6  ;;  %v8962_v5 = vld [vmem:[%s10477_s7 + $0xc38] ss:$120 sps:$4 sm:$0xff]  }
  0x8e   : > { %6251 = vmatprep.subr.bf16.mxu0 %v8880_v7  ;;  %v8965_v6 = vld [vmem:[%s10477_s7 + $0xc40] ss:$120 sps:$4 sm:$0xff]   ;;  %v8970_v7 = vld [vmem:[%s10477_s7 + $0xd2c] ss:$120 sps:$4 sm:$0xff]  }
  0x90   : > { %6211 = vmatpush1.bf16.msra.mxu1 %v8882_v8  ;;  %v8973_v8 = vld [vmem:[%s10477_s7 + $0xd34] ss:$120 sps:$4 sm:$0xff]  }
  0x91   : > { %6252 = vmatpush1.bf16.msra.mxu0 %v8883_v10  ;;  %6262 = vmatprep.subr.bf16.mxu1 %v8886_v11  ;;  %v8968_v10 = vld [vmem:[%s10477_s7 + $0xd28] ss:$120 sps:$4 sm:$0xff]  }
  0x92   : > { %6344 = vmatprep.subr.bf16.mxu0 %v8889_v12  ;;  %v8971_v11 = vld [vmem:[%s10477_s7 + $0xd30] ss:$120 sps:$4 sm:$0xff]   ;;  %v8976_v12 = vld [vmem:[%s10477_s7 + $0xe1c] ss:$120 sps:$4 sm:$0xff]  }
  0x93   : > { %6213 = vmatmul.mubr.bf16.vlgmr.msra.gmra.mrb[0].mxu1 %v10566_v9 }
  0x94   : > { %6254 = vmatmul.mubr.bf16.vlgmr.msra.gmra.mrb[0].mxu0 %v10574_v14  ;;  %6263 = vmatpush1.bf16.msra.mxu1 %v8884_v13  ;;  %v8979_v13 = vld [vmem:[%s10477_s7 + $0xe24] ss:$120 sps:$4 sm:$0xff]  }
  0x95   : > { %6345 = vmatpush1.bf16.msra.mxu0 %v8887_v15  ;;  %6264 = vmatprep.subr.bf16.mxu1 %v8892_v16  ;;  %v8974_v15 = vld [vmem:[%s10477_s7 + $0xe18] ss:$120 sps:$4 sm:$0xff]  }
  0x96   : > { %6346 = vmatprep.subr.bf16.mxu0 %v8895_v17  ;;  %6294 = vmatprep.mubr.bf16.mxu1 %v10545_v58  ;;  %v8977_v16 = vld [vmem:[%s10477_s7 + $0xe20] ss:$120 sps:$4 sm:$0xff]   ;;  %v8982_v17 = vld [vmem:[%s10477_s7 + $0xf0c] ss:$120 sps:$4 sm:$0xff]  }
  0x97   : > { %6376 = vmatprep.mubr.bf16.mxu0 %v10545_v58 }
  0x98   : > { %6265 = vmatpush1.bf16.msra.mxu1 %v8890_v18  ;;  %v8985_v18 = vld [vmem:[%s10477_s7 + $0xf14] ss:$120 sps:$4 sm:$0xff]  }
  0x99   : > { %6347 = vmatpush1.bf16.msra.mxu0 %v8893_v19  ;;  %6266 = vmatprep.subr.bf16.mxu1 %v8898_v20  ;;  %v8980_v19 = vld [vmem:[%s10477_s7 + $0xf08] ss:$120 sps:$4 sm:$0xff]  }
  0x9a   : > { %6348 = vmatprep.subr.bf16.mxu0 %v8901_v21  ;;  %v8983_v20 = vld [vmem:[%s10477_s7 + $0xf10] ss:$120 sps:$4 sm:$0xff]   ;;  %v8988_v21 = vld [vmem:[%s10477_s7 + $0xffc] ss:$120 sps:$4 sm:$0xff]  }
  0x9c   : > { %6267 = vmatpush1.bf16.msra.mxu1 %v8896_v22  ;;  %v8991_v22 = vld [vmem:[%s10477_s7 + $0x1004] ss:$120 sps:$4 sm:$0xff]  }
  0x9d   : > { %6349 = vmatpush1.bf16.msra.mxu0 %v8899_v23  ;;  %6268 = vmatprep.subr.bf16.mxu1 %v8904_v24  ;;  %v8986_v23 = vld [vmem:[%s10477_s7 + $0xff8] ss:$120 sps:$4 sm:$0xff]  }
  0x9e   : > { %6350 = vmatprep.subr.bf16.mxu0 %v8907_v25  ;;  %v8989_v24 = vld [vmem:[%s10477_s7 + $0x1000] ss:$120 sps:$4 sm:$0xff]   ;;  %v8994_v25 = vld [vmem:[%s10477_s7 + $0x10ec] ss:$120 sps:$4 sm:$0xff]  }
  0xa0   : > { %6269 = vmatpush1.bf16.msra.mxu1 %v8902_v26  ;;  %v8997_v26 = vld [vmem:[%s10477_s7 + $0x10f4] ss:$120 sps:$4 sm:$0xff]  }
  0xa1   : > { %6351 = vmatpush1.bf16.msra.mxu0 %v8905_v27  ;;  %6270 = vmatprep.subr.bf16.mxu1 %v8910_v28  ;;  %v8992_v27 = vld [vmem:[%s10477_s7 + $0x10e8] ss:$120 sps:$4 sm:$0xff]  }
  0xa2   : > { %6352 = vmatprep.subr.bf16.mxu0 %v8913_v29  ;;  %v8995_v28 = vld [vmem:[%s10477_s7 + $0x10f0] ss:$120 sps:$4 sm:$0xff]   ;;  %v9000_v29 = vld [vmem:[%s10477_s7 + $0x11dc] ss:$120 sps:$4 sm:$0xff]  }
  0xa4   : > { %6271 = vmatpush1.bf16.msra.mxu1 %v8908_v30  ;;  %v9003_v30 = vld [vmem:[%s10477_s7 + $0x11e4] ss:$120 sps:$4 sm:$0xff]  }
  0xa5   : > { %6353 = vmatpush1.bf16.msra.mxu0 %v8911_v31  ;;  %6272 = vmatprep.subr.bf16.mxu1 %v8916_v32  ;;  %v8998_v31 = vld [vmem:[%s10477_s7 + $0x11d8] ss:$120 sps:$4 sm:$0xff]  }
  0xa6   : > { %6354 = vmatprep.subr.bf16.mxu0 %v8919_v33  ;;  %v9001_v32 = vld [vmem:[%s10477_s7 + $0x11e0] ss:$120 sps:$4 sm:$0xff]   ;;  %v9006_v33 = vld [vmem:[%s10477_s7 + $0x12cc] ss:$120 sps:$4 sm:$0xff]  }
  0xa8   : > { %6273 = vmatpush1.bf16.msra.mxu1 %v8914_v34  ;;  %v9009_v34 = vld [vmem:[%s10477_s7 + $0x12d4] ss:$120 sps:$4 sm:$0xff]  }
  0xa9   : > { %6355 = vmatpush1.bf16.msra.mxu0 %v8917_v35  ;;  %6274 = vmatprep.subr.bf16.mxu1 %v8922_v36  ;;  %v9004_v35 = vld [vmem:[%s10477_s7 + $0x12c8] ss:$120 sps:$4 sm:$0xff]  }
  0xaa   : > { %6356 = vmatprep.subr.bf16.mxu0 %v8925_v37  ;;  %v9007_v36 = vld [vmem:[%s10477_s7 + $0x12d0] ss:$120 sps:$4 sm:$0xff]   ;;  %v9012_v37 = vld [vmem:[%s10477_s7 + $0x13bc] ss:$120 sps:$4 sm:$0xff]  }
  0xac   : > { %6275 = vmatpush1.bf16.msra.mxu1 %v8920_v38  ;;  %v9015_v38 = vld [vmem:[%s10477_s7 + $0x13c4] ss:$120 sps:$4 sm:$0xff]  }
  0xad   : > { %6357 = vmatpush1.bf16.msra.mxu0 %v8923_v39  ;;  %6276 = vmatprep.subr.bf16.mxu1 %v8928_v40  ;;  %v9010_v39 = vld [vmem:[%s10477_s7 + $0x13b8] ss:$120 sps:$4 sm:$0xff]  }
  0xae   : > { %6358 = vmatprep.subr.bf16.mxu0 %v8931_v41  ;;  %v9013_v40 = vld [vmem:[%s10477_s7 + $0x13c0] ss:$120 sps:$4 sm:$0xff]   ;;  %v9018_v41 = vld [vmem:[%s10477_s7 + $0x14ac] ss:$120 sps:$4 sm:$0xff]  }
  0xb0   : > { %6277 = vmatpush1.bf16.msra.mxu1 %v8926_v42  ;;  %v9021_v42 = vld [vmem:[%s10477_s7 + $0x14b4] ss:$120 sps:$4 sm:$0xff]  }
  0xb1   : > { %6359 = vmatpush1.bf16.msra.mxu0 %v8929_v43  ;;  %6278 = vmatprep.subr.bf16.mxu1 %v8934_v44  ;;  %v9016_v43 = vld [vmem:[%s10477_s7 + $0x14a8] ss:$120 sps:$4 sm:$0xff]  }
  0xb2   : > { %6360 = vmatprep.subr.bf16.mxu0 %v8937_v46  ;;  %v9019_v44 = vld [vmem:[%s10477_s7 + $0x14b0] ss:$120 sps:$4 sm:$0xff]   ;;  %v9024_v46 = vld [vmem:[%s10477_s7 + $0x159c] ss:$120 sps:$4 sm:$0xff]  }
  0xb4   : > { %6279 = vmatpush1.bf16.msra.mxu1 %v8932_v47  ;;  %v9027_v47 = vld [vmem:[%s10477_s7 + $0x15a4] ss:$120 sps:$4 sm:$0xff]  }
  0xb5   : > { %6361 = vmatpush1.bf16.msra.mxu0 %v8935_v48  ;;  %6280 = vmatprep.subr.bf16.mxu1 %v8940_v49  ;;  %v9022_v48 = vld [vmem:[%s10477_s7 + $0x1598] ss:$120 sps:$4 sm:$0xff]  }
  0xb6   : > { %6362 = vmatprep.subr.bf16.mxu0 %v8943_v50  ;;  %v9025_v49 = vld [vmem:[%s10477_s7 + $0x15a0] ss:$120 sps:$4 sm:$0xff]   ;;  %v9030_v50 = vld [vmem:[%s10477_s7 + $0x168c] ss:$120 sps:$4 sm:$0xff]  }
  0xb8   : > { %6281 = vmatpush1.bf16.msra.mxu1 %v8938_v51  ;;  %v9033_v51 = vld [vmem:[%s10477_s7 + $0x1694] ss:$120 sps:$4 sm:$0xff]  }
  0xb9   : > { %6363 = vmatpush1.bf16.msra.mxu0 %v8941_v52  ;;  %6282 = vmatprep.subr.bf16.mxu1 %v8946_v53  ;;  %v9028_v52 = vld [vmem:[%s10477_s7 + $0x1688] ss:$120 sps:$4 sm:$0xff]  }
  0xba   : > { %6364 = vmatprep.subr.bf16.mxu0 %v8949_v54  ;;  %v9031_v53 = vld [vmem:[%s10477_s7 + $0x1690] ss:$120 sps:$4 sm:$0xff]   ;;  %v9036_v54 = vld [vmem:[%s10477_s7 + $0x177c] ss:$120 sps:$4 sm:$0xff]  }
  0xbc   : > { %6283 = vmatpush1.bf16.msra.mxu1 %v8944_v55  ;;  %v9039_v55 = vld [vmem:[%s10477_s7 + $0x1784] ss:$120 sps:$4 sm:$0xff]  }
  0xbd   : > { %6365 = vmatpush1.bf16.msra.mxu0 %v8947_v56  ;;  %6284 = vmatprep.subr.bf16.mxu1 %v8952_v57  ;;  %v9034_v56 = vld [vmem:[%s10477_s7 + $0x1778] ss:$120 sps:$4 sm:$0xff]  }
  0xbe   : > { %6366 = vmatprep.subr.bf16.mxu0 %v8955_v59  ;;  %v9037_v57 = vld [vmem:[%s10477_s7 + $0x1780] ss:$120 sps:$4 sm:$0xff]   ;;  %v9042_v59 = vld [vmem:[%s10477_s7 + $0x186c] ss:$120 sps:$4 sm:$0xff]  }
  0xc0   : > { %6285 = vmatpush1.bf16.msra.mxu1 %v8950_v60  ;;  %v9045_v60 = vld [vmem:[%s10477_s7 + $0x1874] ss:$120 sps:$4 sm:$0xff]  }
  0xc1   : > { %6367 = vmatpush1.bf16.msra.mxu0 %v8953_v62  ;;  %6286 = vmatprep.subr.bf16.mxu1 %v8958_v63  ;;  %v9040_v62 = vld [vmem:[%s10477_s7 + $0x1868] ss:$120 sps:$4 sm:$0xff]  }
  0xc2   : > { %6368 = vmatprep.subr.bf16.mxu0 %v8961_v0  ;;  %v9043_v63 = vld [vmem:[%s10477_s7 + $0x1870] ss:$120 sps:$4 sm:$0xff]   ;;  %v9048_v0 = vld [vmem:[%s10477_s7 + $0x195c] ss:$120 sps:$4 sm:$0xff]  }
  0xc4   : > { %6287 = vmatpush1.bf16.msra.mxu1 %v8956_v1  ;;  %v9051_v1 = vld [vmem:[%s10477_s7 + $0x1964] ss:$120 sps:$4 sm:$0xff]  }
  0xc5   : > { %6369 = vmatpush1.bf16.msra.mxu0 %v8959_v2  ;;  %6288 = vmatprep.subr.bf16.mxu1 %v8964_v3  ;;  %v9046_v2 = vld [vmem:[%s10477_s7 + $0x1958] ss:$120 sps:$4 sm:$0xff]  }
  0xc6   : > { %6370 = vmatprep.subr.bf16.mxu0 %v8967_v4  ;;  %v9049_v3 = vld [vmem:[%s10477_s7 + $0x1960] ss:$120 sps:$4 sm:$0xff]   ;;  %v9054_v4 = vld [vmem:[%s10477_s7 + $0x1a4c] ss:$120 sps:$4 sm:$0xff]  }
  0xc8   : > { %6289 = vmatpush1.bf16.msra.mxu1 %v8962_v5  ;;  %v9057_v5 = vld [vmem:[%s10477_s7 + $0x1a54] ss:$120 sps:$4 sm:$0xff]  }
  0xc9   : > { %6371 = vmatpush1.bf16.msra.mxu0 %v8965_v6  ;;  %6290 = vmatprep.subr.bf16.mxu1 %v8970_v7  ;;  %v9052_v6 = vld [vmem:[%s10477_s7 + $0x1a48] ss:$120 sps:$4 sm:$0xff]  }
  0xca   : > { %6372 = vmatprep.subr.bf16.mxu0 %v8973_v8  ;;  %v9055_v7 = vld [vmem:[%s10477_s7 + $0x1a50] ss:$120 sps:$4 sm:$0xff]   ;;  %v9060_v8 = vld [vmem:[%s10477_s7 + $0x1b3c] ss:$120 sps:$4 sm:$0xff]  }
  0xcc   : > { %6291 = vmatpush1.bf16.msra.mxu1 %v8968_v10  ;;  %v9063_v10 = vld [vmem:[%s10477_s7 + $0x1b44] ss:$120 sps:$4 sm:$0xff]  }
  0xcd   : > { %6373 = vmatpush1.bf16.msra.mxu0 %v8971_v11  ;;  %6292 = vmatprep.subr.bf16.mxu1 %v8976_v12  ;;  %v9058_v11 = vld [vmem:[%s10477_s7 + $0x1b38] ss:$120 sps:$4 sm:$0xff]  }
  0xce   : > { %6374 = vmatprep.subr.bf16.mxu0 %v8979_v13  ;;  %v9061_v12 = vld [vmem:[%s10477_s7 + $0x1b40] ss:$120 sps:$4 sm:$0xff]   ;;  %v9066_v13 = vld [vmem:[%s10477_s7 + $0x1c2c] ss:$120 sps:$4 sm:$0xff]  }
  0xd0   : > { %6293 = vmatpush1.bf16.msra.mxu1 %v8974_v15  ;;  %v9069_v15 = vld [vmem:[%s10477_s7 + $0x1c34] ss:$120 sps:$4 sm:$0xff]  }
  0xd1   : > { %6375 = vmatpush1.bf16.msra.mxu0 %v8977_v16  ;;  %6303 = vmatprep.subr.bf16.mxu1 %v8982_v17  ;;  %v9064_v16 = vld [vmem:[%s10477_s7 + $0x1c28] ss:$120 sps:$4 sm:$0xff]  }
  0xd2   : > { %6385 = vmatprep.subr.bf16.mxu0 %v8985_v18  ;;  %v9067_v17 = vld [vmem:[%s10477_s7 + $0x1c30] ss:$120 sps:$4 sm:$0xff]   ;;  %v9072_v18 = vld [vmem:[%s10477_s7 + $0x1d1c] ss:$120 sps:$4 sm:$0xff]  }
  0xd3   : > { %6295 = vmatmul.mubr.bf16.vlgmr.msra.gmra.mrb[4].mxu1 %v10566_v9 }
  0xd4   : > { %6377 = vmatmul.mubr.bf16.vlgmr.msra.gmra.mrb[4].mxu0 %v10566_v9  ;;  %6304 = vmatpush1.bf16.msra.mxu1 %v8980_v19  ;;  %v9075_v19 = vld [vmem:[%s10477_s7 + $0x1d24] ss:$120 sps:$4 sm:$0xff]  }
  0xd5   : > { %6386 = vmatpush1.bf16.msra.mxu0 %v8983_v20  ;;  %6305 = vmatprep.subr.bf16.mxu1 %v8988_v21  ;;  %v9070_v20 = vld [vmem:[%s10477_s7 + $0x1d18] ss:$120 sps:$4 sm:$0xff]  }
  0xd6   : > { %6387 = vmatprep.subr.bf16.mxu0 %v8991_v22  ;;  %6335 = vmatprep.mubr.bf16.mxu1 %v10551_v61  ;;  %v9073_v21 = vld [vmem:[%s10477_s7 + $0x1d20] ss:$120 sps:$4 sm:$0xff]   ;;  %v9078_v22 = vld [vmem:[%s10477_s7 + $0x1c] ss:$120 sps:$4 sm:$0xff]  }
  0xd7   : > { %6417 = vmatprep.mubr.bf16.mxu0 %v10551_v61 }
  0xd8   : > { %6306 = vmatpush1.bf16.msra.mxu1 %v8986_v23  ;;  %v9081_v23 = vld [vmem:[%s10477_s7 + $0x24] ss:$120 sps:$4 sm:$0xff]  }
  0xd9   : > { %6388 = vmatpush1.bf16.msra.mxu0 %v8989_v24  ;;  %6307 = vmatprep.subr.bf16.mxu1 %v8994_v25  ;;  %v9076_v24 = vld [vmem:[%s10477_s7 + $0x18] ss:$120 sps:$4 sm:$0xff]  }
  0xda   : > { %6389 = vmatprep.subr.bf16.mxu0 %v8997_v26  ;;  %v9079_v25 = vld [vmem:[%s10477_s7 + $0x20] ss:$120 sps:$4 sm:$0xff]   ;;  %v9084_v26 = vld [vmem:[%s10477_s7 + $0x10c] ss:$120 sps:$4 sm:$0xff]  }
  0xdc   : > { %6308 = vmatpush1.bf16.msra.mxu1 %v8992_v27  ;;  %v9087_v27 = vld [vmem:[%s10477_s7 + $0x114] ss:$120 sps:$4 sm:$0xff]  }
  0xdd   : > { %6390 = vmatpush1.bf16.msra.mxu0 %v8995_v28  ;;  %6309 = vmatprep.subr.bf16.mxu1 %v9000_v29  ;;  %v9082_v28 = vld [vmem:[%s10477_s7 + $0x108] ss:$120 sps:$4 sm:$0xff]  }
  0xde   : > { %6391 = vmatprep.subr.bf16.mxu0 %v9003_v30  ;;  %v9085_v29 = vld [vmem:[%s10477_s7 + $0x110] ss:$120 sps:$4 sm:$0xff]   ;;  %v9090_v30 = vld [vmem:[%s10477_s7 + $0x1fc] ss:$120 sps:$4 sm:$0xff]  }
  0xe0   : > { %6310 = vmatpush1.bf16.msra.mxu1 %v8998_v31  ;;  %v9093_v31 = vld [vmem:[%s10477_s7 + $0x204] ss:$120 sps:$4 sm:$0xff]  }
  0xe1   : > { %6392 = vmatpush1.bf16.msra.mxu0 %v9001_v32  ;;  %6311 = vmatprep.subr.bf16.mxu1 %v9006_v33  ;;  %v9088_v32 = vld [vmem:[%s10477_s7 + $0x1f8] ss:$120 sps:$4 sm:$0xff]  }
  0xe2   : > { %6393 = vmatprep.subr.bf16.mxu0 %v9009_v34  ;;  %v9091_v33 = vld [vmem:[%s10477_s7 + $0x200] ss:$120 sps:$4 sm:$0xff]   ;;  %v9096_v34 = vld [vmem:[%s10477_s7 + $0x2ec] ss:$120 sps:$4 sm:$0xff]  }
  0xe4   : > { %6312 = vmatpush1.bf16.msra.mxu1 %v9004_v35  ;;  %v9099_v35 = vld [vmem:[%s10477_s7 + $0x2f4] ss:$120 sps:$4 sm:$0xff]  }
  0xe5   : > { %6394 = vmatpush1.bf16.msra.mxu0 %v9007_v36  ;;  %6313 = vmatprep.subr.bf16.mxu1 %v9012_v37  ;;  %v9094_v36 = vld [vmem:[%s10477_s7 + $0x2e8] ss:$120 sps:$4 sm:$0xff]  }
  0xe6   : > { %6395 = vmatprep.subr.bf16.mxu0 %v9015_v38  ;;  %v9097_v37 = vld [vmem:[%s10477_s7 + $0x2f0] ss:$120 sps:$4 sm:$0xff]   ;;  %v9102_v38 = vld [vmem:[%s10477_s7 + $0x3dc] ss:$120 sps:$4 sm:$0xff]  }
  0xe8   : > { %6314 = vmatpush1.bf16.msra.mxu1 %v9010_v39  ;;  %v9105_v39 = vld [vmem:[%s10477_s7 + $0x3e4] ss:$120 sps:$4 sm:$0xff]  }
  0xe9   : > { %6396 = vmatpush1.bf16.msra.mxu0 %v9013_v40  ;;  %6315 = vmatprep.subr.bf16.mxu1 %v9018_v41  ;;  %v9100_v40 = vld [vmem:[%s10477_s7 + $0x3d8] ss:$120 sps:$4 sm:$0xff]  }
  0xea   : > { %6397 = vmatprep.subr.bf16.mxu0 %v9021_v42  ;;  %v9103_v41 = vld [vmem:[%s10477_s7 + $0x3e0] ss:$120 sps:$4 sm:$0xff]   ;;  %v9108_v42 = vld [vmem:[%s10477_s7 + $0x4cc] ss:$120 sps:$4 sm:$0xff]  }
  0xec   : > { %6316 = vmatpush1.bf16.msra.mxu1 %v9016_v43  ;;  %v9111_v43 = vld [vmem:[%s10477_s7 + $0x4d4] ss:$120 sps:$4 sm:$0xff]  }
  0xed   : > { %6398 = vmatpush1.bf16.msra.mxu0 %v9019_v44  ;;  %6317 = vmatprep.subr.bf16.mxu1 %v9024_v46  ;;  %v9106_v44 = vld [vmem:[%s10477_s7 + $0x4c8] ss:$120 sps:$4 sm:$0xff]  }
  0xee   : > { %6399 = vmatprep.subr.bf16.mxu0 %v9027_v47  ;;  %v9109_v46 = vld [vmem:[%s10477_s7 + $0x4d0] ss:$120 sps:$4 sm:$0xff]   ;;  %v9114_v47 = vld [vmem:[%s10477_s7 + $0x5bc] ss:$120 sps:$4 sm:$0xff]  }
  0xf0   : > { %6318 = vmatpush1.bf16.msra.mxu1 %v9022_v48  ;;  %v9117_v48 = vld [vmem:[%s10477_s7 + $0x5c4] ss:$120 sps:$4 sm:$0xff]  }
  0xf1   : > { %6400 = vmatpush1.bf16.msra.mxu0 %v9025_v49  ;;  %6319 = vmatprep.subr.bf16.mxu1 %v9030_v50  ;;  %v9112_v49 = vld [vmem:[%s10477_s7 + $0x5b8] ss:$120 sps:$4 sm:$0xff]  }
  0xf2   : > { %6401 = vmatprep.subr.bf16.mxu0 %v9033_v51  ;;  %v9115_v50 = vld [vmem:[%s10477_s7 + $0x5c0] ss:$120 sps:$4 sm:$0xff]   ;;  %v9120_v51 = vld [vmem:[%s10477_s7 + $0x6ac] ss:$120 sps:$4 sm:$0xff]  }
  0xf4   : > { %6320 = vmatpush1.bf16.msra.mxu1 %v9028_v52  ;;  %v9123_v52 = vld [vmem:[%s10477_s7 + $0x6b4] ss:$120 sps:$4 sm:$0xff]  }
  0xf5   : > { %6402 = vmatpush1.bf16.msra.mxu0 %v9031_v53  ;;  %6321 = vmatprep.subr.bf16.mxu1 %v9036_v54  ;;  %v9118_v53 = vld [vmem:[%s10477_s7 + $0x6a8] ss:$120 sps:$4 sm:$0xff]  }
  0xf6   : > { %6403 = vmatprep.subr.bf16.mxu0 %v9039_v55  ;;  %v9121_v54 = vld [vmem:[%s10477_s7 + $0x6b0] ss:$120 sps:$4 sm:$0xff]   ;;  %v9126_v55 = vld [vmem:[%s10477_s7 + $0x79c] ss:$120 sps:$4 sm:$0xff]  }
  0xf8   : > { %6322 = vmatpush1.bf16.msra.mxu1 %v9034_v56  ;;  %v9129_v56 = vld [vmem:[%s10477_s7 + $0x7a4] ss:$120 sps:$4 sm:$0xff]  }
  0xf9   : > { %6404 = vmatpush1.bf16.msra.mxu0 %v9037_v57  ;;  %6323 = vmatprep.subr.bf16.mxu1 %v9042_v59  ;;  %v9124_v57 = vld [vmem:[%s10477_s7 + $0x798] ss:$120 sps:$4 sm:$0xff]  }
  0xfa   : > { %6405 = vmatprep.subr.bf16.mxu0 %v9045_v60  ;;  %v9127_v59 = vld [vmem:[%s10477_s7 + $0x7a0] ss:$120 sps:$4 sm:$0xff]   ;;  %v9132_v60 = vld [vmem:[%s10477_s7 + $0x88c] ss:$120 sps:$4 sm:$0xff]  }
  0xfc   : > { %6324 = vmatpush1.bf16.msra.mxu1 %v9040_v62  ;;  %v9135_v62 = vld [vmem:[%s10477_s7 + $0x894] ss:$120 sps:$4 sm:$0xff]  }
  0xfd   : > { %6406 = vmatpush1.bf16.msra.mxu0 %v9043_v63  ;;  %6325 = vmatprep.subr.bf16.mxu1 %v9048_v0  ;;  %v9130_v63 = vld [vmem:[%s10477_s7 + $0x888] ss:$120 sps:$4 sm:$0xff]  }
  0xfe   : > { %6407 = vmatprep.subr.bf16.mxu0 %v9051_v1  ;;  %v9133_v0 = vld [vmem:[%s10477_s7 + $0x890] ss:$120 sps:$4 sm:$0xff]   ;;  %v9138_v1 = vld [vmem:[%s10477_s7 + $0x97c] ss:$120 sps:$4 sm:$0xff]  }
 0x100   : > { %6326 = vmatpush1.bf16.msra.mxu1 %v9046_v2  ;;  %v9141_v2 = vld [vmem:[%s10477_s7 + $0x984] ss:$120 sps:$4 sm:$0xff]  }
 0x101   : > { %6408 = vmatpush1.bf16.msra.mxu0 %v9049_v3  ;;  %6327 = vmatprep.subr.bf16.mxu1 %v9054_v4  ;;  %v9136_v3 = vld [vmem:[%s10477_s7 + $0x978] ss:$120 sps:$4 sm:$0xff]  }
 0x102   : > { %6409 = vmatprep.subr.bf16.mxu0 %v9057_v5  ;;  %v9139_v4 = vld [vmem:[%s10477_s7 + $0x980] ss:$120 sps:$4 sm:$0xff]   ;;  %v9144_v5 = vld [vmem:[%s10477_s7 + $0xa6c] ss:$120 sps:$4 sm:$0xff]  }
 0x104   : > { %6328 = vmatpush1.bf16.msra.mxu1 %v9052_v6  ;;  %v9147_v6 = vld [vmem:[%s10477_s7 + $0xa74] ss:$120 sps:$4 sm:$0xff]  }
 0x105   : > { %6410 = vmatpush1.bf16.msra.mxu0 %v9055_v7  ;;  %6329 = vmatprep.subr.bf16.mxu1 %v9060_v8  ;;  %v9142_v7 = vld [vmem:[%s10477_s7 + $0xa68] ss:$120 sps:$4 sm:$0xff]  }
 0x106   : > { %6411 = vmatprep.subr.bf16.mxu0 %v9063_v10  ;;  %v9145_v8 = vld [vmem:[%s10477_s7 + $0xa70] ss:$120 sps:$4 sm:$0xff]   ;;  %v9150_v10 = vld [vmem:[%s10477_s7 + $0xb5c] ss:$120 sps:$4 sm:$0xff]  }
 0x108   : > { %6330 = vmatpush1.bf16.msra.mxu1 %v9058_v11  ;;  %v9153_v11 = vld [vmem:[%s10477_s7 + $0xb64] ss:$120 sps:$4 sm:$0xff]  }
 0x109   : > { %6412 = vmatpush1.bf16.msra.mxu0 %v9061_v12  ;;  %6331 = vmatprep.subr.bf16.mxu1 %v9066_v13  ;;  %v9148_v12 = vld [vmem:[%s10477_s7 + $0xb58] ss:$120 sps:$4 sm:$0xff]  }
 0x10a   : > { %6413 = vmatprep.subr.bf16.mxu0 %v9069_v15  ;;  %v9151_v13 = vld [vmem:[%s10477_s7 + $0xb60] ss:$120 sps:$4 sm:$0xff]   ;;  %v9156_v15 = vld [vmem:[%s10477_s7 + $0xc4c] ss:$120 sps:$4 sm:$0xff]  }
 0x10c   : > { %6332 = vmatpush1.bf16.msra.mxu1 %v9064_v16  ;;  %v9159_v16 = vld [vmem:[%s10477_s7 + $0xc54] ss:$120 sps:$4 sm:$0xff]  }
 0x10d   : > { %6414 = vmatpush1.bf16.msra.mxu0 %v9067_v17  ;;  %6333 = vmatprep.subr.bf16.mxu1 %v9072_v18  ;;  %v9154_v17 = vld [vmem:[%s10477_s7 + $0xc48] ss:$120 sps:$4 sm:$0xff]  }
 0x10e   : > { %6415 = vmatprep.subr.bf16.mxu0 %v9075_v19  ;;  %v9157_v18 = vld [vmem:[%s10477_s7 + $0xc50] ss:$120 sps:$4 sm:$0xff]   ;;  %v9162_v19 = vld [vmem:[%s10477_s7 + $0xd3c] ss:$120 sps:$4 sm:$0xff]  }
 0x110   : > { %6334 = vmatpush1.bf16.msra.mxu1 %v9070_v20  ;;  %v9165_v20 = vld [vmem:[%s10477_s7 + $0xd44] ss:$120 sps:$4 sm:$0xff]  }
 0x111   : > { %6416 = vmatpush1.bf16.msra.mxu0 %v9073_v21  ;;  %6426 = vmatprep.subr.bf16.mxu1 %v9078_v22  ;;  %v9160_v21 = vld [vmem:[%s10477_s7 + $0xd38] ss:$120 sps:$4 sm:$0xff]  }
 0x112   : > { %6508 = vmatprep.subr.bf16.mxu0 %v9081_v23  ;;  %v9163_v22 = vld [vmem:[%s10477_s7 + $0xd40] ss:$120 sps:$4 sm:$0xff]   ;;  %v9168_v23 = vld [vmem:[%s10477_s7 + $0xe2c] ss:$120 sps:$4 sm:$0xff]  }
 0x113   : > { %6336 = vmatmul.mubr.bf16.vlgmr.msra.gmra.mrb[4].mxu1 %v10574_v14 }
 0x114   : > { %6418 = vmatmul.mubr.bf16.vlgmr.msra.gmra.mrb[4].mxu0 %v10574_v14  ;;  %6427 = vmatpush1.bf16.msra.mxu1 %v9076_v24  ;;  %v9171_v24 = vld [vmem:[%s10477_s7 + $0xe34] ss:$120 sps:$4 sm:$0xff]  }
 0x115   : > { %6509 = vmatpush1.bf16.msra.mxu0 %v9079_v25  ;;  %6428 = vmatprep.subr.bf16.mxu1 %v9084_v26  ;;  %v9166_v25 = vld [vmem:[%s10477_s7 + $0xe28] ss:$120 sps:$4 sm:$0xff]  }
 0x116   : > { %6510 = vmatprep.subr.bf16.mxu0 %v9087_v27  ;;  %6458 = vmatprep.mubr.bf16.mxu1 %v10545_v58  ;;  %v9169_v26 = vld [vmem:[%s10477_s7 + $0xe30] ss:$120 sps:$4 sm:$0xff]   ;;  %v9174_v27 = vld [vmem:[%s10477_s7 + $0xf1c] ss:$120 sps:$4 sm:$0xff]  }
 0x117   : > { %6540 = vmatprep.mubr.bf16.mxu0 %v10545_v58 }
 0x118   : > { %6429 = vmatpush1.bf16.msra.mxu1 %v9082_v28  ;;  %v9177_v28 = vld [vmem:[%s10477_s7 + $0xf24] ss:$120 sps:$4 sm:$0xff]  }
 0x119   : > { %6511 = vmatpush1.bf16.msra.mxu0 %v9085_v29  ;;  %6430 = vmatprep.subr.bf16.mxu1 %v9090_v30  ;;  %v9172_v29 = vld [vmem:[%s10477_s7 + $0xf18] ss:$120 sps:$4 sm:$0xff]  }
 0x11a   : > { %6512 = vmatprep.subr.bf16.mxu0 %v9093_v31  ;;  %v9175_v30 = vld [vmem:[%s10477_s7 + $0xf20] ss:$120 sps:$4 sm:$0xff]   ;;  %v9180_v31 = vld [vmem:[%s10477_s7 + $0x100c] ss:$120 sps:$4 sm:$0xff]  }
 0x11c   : > { %6431 = vmatpush1.bf16.msra.mxu1 %v9088_v32  ;;  %v9183_v32 = vld [vmem:[%s10477_s7 + $0x1014] ss:$120 sps:$4 sm:$0xff]  }
 0x11d   : > { %6513 = vmatpush1.bf16.msra.mxu0 %v9091_v33  ;;  %6432 = vmatprep.subr.bf16.mxu1 %v9096_v34  ;;  %v9178_v33 = vld [vmem:[%s10477_s7 + $0x1008] ss:$120 sps:$4 sm:$0xff]  }
 0x11e   : > { %6514 = vmatprep.subr.bf16.mxu0 %v9099_v35  ;;  %v9181_v34 = vld [vmem:[%s10477_s7 + $0x1010] ss:$120 sps:$4 sm:$0xff]   ;;  %v9186_v35 = vld [vmem:[%s10477_s7 + $0x10fc] ss:$120 sps:$4 sm:$0xff]  }
 0x120   : > { %6433 = vmatpush1.bf16.msra.mxu1 %v9094_v36  ;;  %v9189_v36 = vld [vmem:[%s10477_s7 + $0x1104] ss:$120 sps:$4 sm:$0xff]  }
 0x121   : > { %6515 = vmatpush1.bf16.msra.mxu0 %v9097_v37  ;;  %6434 = vmatprep.subr.bf16.mxu1 %v9102_v38  ;;  %v9184_v37 = vld [vmem:[%s10477_s7 + $0x10f8] ss:$120 sps:$4 sm:$0xff]  }
 0x122   : > { %6516 = vmatprep.subr.bf16.mxu0 %v9105_v39  ;;  %v9187_v38 = vld [vmem:[%s10477_s7 + $0x1100] ss:$120 sps:$4 sm:$0xff]   ;;  %v9192_v39 = vld [vmem:[%s10477_s7 + $0x11ec] ss:$120 sps:$4 sm:$0xff]  }
 0x124   : > { %6435 = vmatpush1.bf16.msra.mxu1 %v9100_v40  ;;  %v9195_v40 = vld [vmem:[%s10477_s7 + $0x11f4] ss:$120 sps:$4 sm:$0xff]  }
 0x125   : > { %6517 = vmatpush1.bf16.msra.mxu0 %v9103_v41  ;;  %6436 = vmatprep.subr.bf16.mxu1 %v9108_v42  ;;  %v9190_v41 = vld [vmem:[%s10477_s7 + $0x11e8] ss:$120 sps:$4 sm:$0xff]  }
 0x126   : > { %6518 = vmatprep.subr.bf16.mxu0 %v9111_v43  ;;  %v9193_v42 = vld [vmem:[%s10477_s7 + $0x11f0] ss:$120 sps:$4 sm:$0xff]   ;;  %v9198_v43 = vld [vmem:[%s10477_s7 + $0x12dc] ss:$120 sps:$4 sm:$0xff]  }
 0x128   : > { %6437 = vmatpush1.bf16.msra.mxu1 %v9106_v44  ;;  %v9201_v44 = vld [vmem:[%s10477_s7 + $0x12e4] ss:$120 sps:$4 sm:$0xff]  }
 0x129   : > { %6519 = vmatpush1.bf16.msra.mxu0 %v9109_v46  ;;  %6438 = vmatprep.subr.bf16.mxu1 %v9114_v47  ;;  %v9196_v46 = vld [vmem:[%s10477_s7 + $0x12d8] ss:$120 sps:$4 sm:$0xff]   ;;  %v10801_v47 = vsub.s32 0, %v10531_v45 }
 0x12a   : > { %6520 = vmatprep.subr.bf16.mxu0 %v9117_v48  ;;  %v9199_v48 = vld [vmem:[%s10477_s7 + $0x12e0] ss:$120 sps:$4 sm:$0xff]  }
 0x12c   : > { %6439 = vmatpush1.bf16.msra.mxu1 %v9112_v49  ;;  %v1193_v49 = vld [vmem:[%s10483_s30] sm:$0xff] }
 0x12d   : > { %6521 = vmatpush1.bf16.msra.mxu0 %v9115_v50  ;;  %6440 = vmatprep.subr.bf16.mxu1 %v9120_v51  ;;  %v10806_v50 = vsub.s32 1, %v10531_v45  ;;  %v9204_v51 = vld [vmem:[%s10477_s7 + $0x13cc] ss:$120 sps:$4 sm:$0xff]  }
 0x12e   : > { %6522 = vmatprep.subr.bf16.mxu0 %v9123_v52  ;;  %v9207_v52 = vld [vmem:[%s10477_s7 + $0x13d4] ss:$120 sps:$4 sm:$0xff]  }
 0x130   : > { %6441 = vmatpush1.bf16.msra.mxu1 %v9118_v53  ;;  %v9202_v53 = vld [vmem:[%s10477_s7 + $0x13c8] ss:$120 sps:$4 sm:$0xff]  }
 0x131   : > { %6523 = vmatpush1.bf16.msra.mxu0 %v9121_v54  ;;  %6442 = vmatprep.subr.bf16.mxu1 %v9126_v55  ;;  %v9205_v54 = vld [vmem:[%s10477_s7 + $0x13d0] ss:$120 sps:$4 sm:$0xff]   ;;  %v1204_v55 = vrot.slane %v1193_v49, %v10801_v47 }
 0x132   : > { %6524 = vmatprep.subr.bf16.mxu0 %v9129_v56  ;;  %v1208_v56 = vrot.slane %v1193_v49, %v10806_v50  ;;  %v9267_v49 = vld [vmem:[%s10477_s7 + $0x1d34] ss:$120 sps:$4 sm:$0xff]  }
 0x134   : > { %6443 = vmatpush1.bf16.msra.mxu1 %v9124_v57  ;;  %v9210_v57 = vld [vmem:[%s10477_s7 + $0x14bc] ss:$120 sps:$4 sm:$0xff]  }
 0x135   : > { %6525 = vmatpush1.bf16.msra.mxu0 %v9127_v59  ;;  %6444 = vmatprep.subr.bf16.mxu1 %v9132_v60  ;;  %v9213_v59 = vld [vmem:[%s10477_s7 + $0x14c4] ss:$120 sps:$4 sm:$0xff]  }
 0x136   : > { %6526 = vmatprep.subr.bf16.mxu0 %v9135_v62 }
 0x138   : > { %6445 = vmatpush1.bf16.msra.mxu1 %v9130_v63  ;;  %v9208_v63 = vld [vmem:[%s10477_s7 + $0x14b8] ss:$120 sps:$4 sm:$0xff]  }
 0x139   : > { %6527 = vmatpush1.bf16.msra.mxu0 %v9133_v0  ;;  %6446 = vmatprep.subr.bf16.mxu1 %v9138_v1  ;;  %v9211_v0 = vld [vmem:[%s10477_s7 + $0x14c0] ss:$120 sps:$4 sm:$0xff]  }
 0x13a   : > { %6528 = vmatprep.subr.bf16.mxu0 %v9141_v2 }
 0x13c   : > { %6447 = vmatpush1.bf16.msra.mxu1 %v9136_v3 }
 0x13d   : > { %6529 = vmatpush1.bf16.msra.mxu0 %v9139_v4  ;;  %6448 = vmatprep.subr.bf16.mxu1 %v9144_v5  ;;  %v9216_v4 = vld [vmem:[%s10477_s7 + $0x15ac] ss:$120 sps:$4 sm:$0xff]  }
 0x13e   : > { %6530 = vmatprep.subr.bf16.mxu0 %v9147_v6 }
 0x140   : > { %6449 = vmatpush1.bf16.msra.mxu1 %v9142_v7 }
 0x141   : > { %6531 = vmatpush1.bf16.msra.mxu0 %v9145_v8  ;;  %6450 = vmatprep.subr.bf16.mxu1 %v9150_v10 }
 0x142   : > { %6532 = vmatprep.subr.bf16.mxu0 %v9153_v11 }
 0x144   : > { %6451 = vmatpush1.bf16.msra.mxu1 %v9148_v12  ;;  %v9219_v12 = vld [vmem:[%s10477_s7 + $0x15b4] ss:$120 sps:$4 sm:$0xff]  }
 0x145   : > { %6533 = vmatpush1.bf16.msra.mxu0 %v9151_v13  ;;  %6452 = vmatprep.subr.bf16.mxu1 %v9156_v15  ;;  %v9214_v15 = vld [vmem:[%s10477_s7 + $0x15a8] ss:$120 sps:$4 sm:$0xff]  }
 0x146   : > { %6534 = vmatprep.subr.bf16.mxu0 %v9159_v16  ;;  %v9217_v16 = vld [vmem:[%s10477_s7 + $0x15b0] ss:$120 sps:$4 sm:$0xff]  }
 0x148   : > { %6453 = vmatpush1.bf16.msra.mxu1 %v9154_v17 }
 0x149   : > { %6535 = vmatpush1.bf16.msra.mxu0 %v9157_v18  ;;  %6454 = vmatprep.subr.bf16.mxu1 %v9162_v19  ;;  %v9222_v18 = vld [vmem:[%s10477_s7 + $0x169c] ss:$120 sps:$4 sm:$0xff]  }
 0x14a   : > { %6536 = vmatprep.subr.bf16.mxu0 %v9165_v20  ;;  %v9225_v19 = vld [vmem:[%s10477_s7 + $0x16a4] ss:$120 sps:$4 sm:$0xff]   ;;  %v9220_v20 = vld [vmem:[%s10477_s7 + $0x1698] ss:$120 sps:$4 sm:$0xff]  }
 0x14c   : > { %6455 = vmatpush1.bf16.msra.mxu1 %v9160_v21  ;;  %v9223_v21 = vld [vmem:[%s10477_s7 + $0x16a0] ss:$120 sps:$4 sm:$0xff]  }
 0x14d   : > { %6537 = vmatpush1.bf16.msra.mxu0 %v9163_v22  ;;  %6456 = vmatprep.subr.bf16.mxu1 %v9168_v23  ;;  %v9228_v22 = vld [vmem:[%s10477_s7 + $0x178c] ss:$120 sps:$4 sm:$0xff]  }
 0x14e   : > { %6538 = vmatprep.subr.bf16.mxu0 %v9171_v24  ;;  %v9231_v23 = vld [vmem:[%s10477_s7 + $0x1794] ss:$120 sps:$4 sm:$0xff]   ;;  %v9226_v24 = vld [vmem:[%s10477_s7 + $0x1788] ss:$120 sps:$4 sm:$0xff]  }
 0x150   : > { %6457 = vmatpush1.bf16.msra.mxu1 %v9166_v25  ;;  %v9229_v25 = vld [vmem:[%s10477_s7 + $0x1790] ss:$120 sps:$4 sm:$0xff]  }
 0x151   : > { %6539 = vmatpush1.bf16.msra.mxu0 %v9169_v26  ;;  %6467 = vmatprep.subr.bf16.mxu1 %v9174_v27  ;;  %v9234_v26 = vld [vmem:[%s10477_s7 + $0x187c] ss:$120 sps:$4 sm:$0xff]  }
 0x152   : > { %6549 = vmatprep.subr.bf16.mxu0 %v9177_v28  ;;  %v9237_v27 = vld [vmem:[%s10477_s7 + $0x1884] ss:$120 sps:$4 sm:$0xff]   ;;  %v9232_v28 = vld [vmem:[%s10477_s7 + $0x1878] ss:$120 sps:$4 sm:$0xff]  }
 0x153   : > { %6459 = vmatmul.mubr.bf16.vlgmr.msra.gmra.mrb[8].mxu1 %v10566_v9 }
 0x154   : > { %6541 = vmatmul.mubr.bf16.vlgmr.msra.gmra.mrb[8].mxu0 %v10566_v9  ;;  %6468 = vmatpush1.bf16.msra.mxu1 %v9172_v29  ;;  %v9235_v29 = vld [vmem:[%s10477_s7 + $0x1880] ss:$120 sps:$4 sm:$0xff]  }
 0x155   : > { %6550 = vmatpush1.bf16.msra.mxu0 %v9175_v30  ;;  %6469 = vmatprep.subr.bf16.mxu1 %v9180_v31  ;;  %v9240_v30 = vld [vmem:[%s10477_s7 + $0x196c] ss:$120 sps:$4 sm:$0xff]  }
 0x156   : > { %6551 = vmatprep.subr.bf16.mxu0 %v9183_v32  ;;  %6499 = vmatprep.mubr.bf16.mxu1 %v10551_v61  ;;  %v9243_v31 = vld [vmem:[%s10477_s7 + $0x1974] ss:$120 sps:$4 sm:$0xff]   ;;  %v9238_v32 = vld [vmem:[%s10477_s7 + $0x1968] ss:$120 sps:$4 sm:$0xff]  }
 0x157   : > { %6581 = vmatprep.mubr.bf16.mxu0 %v10551_v61 }
 0x158   : > { %6470 = vmatpush1.bf16.msra.mxu1 %v9178_v33  ;;  %v9241_v33 = vld [vmem:[%s10477_s7 + $0x1970] ss:$120 sps:$4 sm:$0xff]  }
 0x159   : > { %6552 = vmatpush1.bf16.msra.mxu0 %v9181_v34  ;;  %6471 = vmatprep.subr.bf16.mxu1 %v9186_v35  ;;  %v9246_v34 = vld [vmem:[%s10477_s7 + $0x1a5c] ss:$120 sps:$4 sm:$0xff]  }
 0x15a   : > { %6553 = vmatprep.subr.bf16.mxu0 %v9189_v36  ;;  %v9249_v35 = vld [vmem:[%s10477_s7 + $0x1a64] ss:$120 sps:$4 sm:$0xff]   ;;  %v9244_v36 = vld [vmem:[%s10477_s7 + $0x1a58] ss:$120 sps:$4 sm:$0xff]  }
 0x15c   : > { %6472 = vmatpush1.bf16.msra.mxu1 %v9184_v37  ;;  %v9247_v37 = vld [vmem:[%s10477_s7 + $0x1a60] ss:$120 sps:$4 sm:$0xff]  }
 0x15d   : > { %6554 = vmatpush1.bf16.msra.mxu0 %v9187_v38  ;;  %6473 = vmatprep.subr.bf16.mxu1 %v9192_v39  ;;  %v9252_v38 = vld [vmem:[%s10477_s7 + $0x1b4c] ss:$120 sps:$4 sm:$0xff]  }
 0x15e   : > { %6555 = vmatprep.subr.bf16.mxu0 %v9195_v40  ;;  %v9255_v39 = vld [vmem:[%s10477_s7 + $0x1b54] ss:$120 sps:$4 sm:$0xff]   ;;  %v9250_v40 = vld [vmem:[%s10477_s7 + $0x1b48] ss:$120 sps:$4 sm:$0xff]  }
 0x160   : > { %6474 = vmatpush1.bf16.msra.mxu1 %v9190_v41  ;;  %v9253_v41 = vld [vmem:[%s10477_s7 + $0x1b50] ss:$120 sps:$4 sm:$0xff]  }
 0x161   : > { %6556 = vmatpush1.bf16.msra.mxu0 %v9193_v42  ;;  %6475 = vmatprep.subr.bf16.mxu1 %v9198_v43  ;;  %v9258_v42 = vld [vmem:[%s10477_s7 + $0x1c3c] ss:$120 sps:$4 sm:$0xff]  }
 0x162   : > { %6557 = vmatprep.subr.bf16.mxu0 %v9201_v44  ;;  %v9261_v43 = vld [vmem:[%s10477_s7 + $0x1c44] ss:$120 sps:$4 sm:$0xff]   ;;  %v9256_v44 = vld [vmem:[%s10477_s7 + $0x1c38] ss:$120 sps:$4 sm:$0xff]  }
 0x164   : > { %6476 = vmatpush1.bf16.msra.mxu1 %v9196_v46  ;;  %v9259_v46 = vld [vmem:[%s10477_s7 + $0x1c40] ss:$120 sps:$4 sm:$0xff]  }
 0x165   : > { %6558 = vmatpush1.bf16.msra.mxu0 %v9199_v48  ;;  %6477 = vmatprep.subr.bf16.mxu1 %v9204_v51  ;;  %v9264_v48 = vld [vmem:[%s10477_s7 + $0x1d2c] ss:$120 sps:$4 sm:$0xff]   ;;  %v9262_v51 = vld [vmem:[%s10477_s7 + $0x1d28] ss:$120 sps:$4 sm:$0xff]  }
 0x166   : > { %6559 = vmatprep.subr.bf16.mxu0 %v9207_v52  ;;  %v6214_v60 = vpop.f32.mrb[0].mxu1  ;;  %v9265_v52 = vld [vmem:[%s10477_s7 + $0x1d30] ss:$120 sps:$4 sm:$0xff]  }
 0x167   : > { %v6255_v62 = vpop.f32.mrb[0].mxu0  ;;  %v6215_v1 = vadd.f32 %v6214_v60, %v1204_v55  ;;  %v6216_v2 = vpop.f32.mrb[1].mxu1  ;;  %v9268_v55 = vld [vmem:[%s10477_s7 + $0x28] ss:$120 sps:$4 sm:$0xff]   ;;  %v9274_v60 = vld [vmem:[%s10477_s7 + $0x118] ss:$120 sps:$4 sm:$0xff]  }
 0x168   : > { %v6257_v3 = vpop.f32.mrb[1].mxu0  ;;  %v6217_v5 = vadd.f32 %v6216_v2, %v1208_v56  ;;  %v6218_v6 = vpop.f32.mrb[2].mxu1  ;;  %6478 = vmatpush1.bf16.msra.mxu1 %v9202_v53  ;;  %v9270_v53 = vld [vmem:[%s10477_s7 + $0x2c] ss:$120 sps:$4 sm:$0xff]   ;;  %v9271_v56 = vld [vmem:[%s10477_s7 + $0x30] ss:$120 sps:$4 sm:$0xff]  }
 0x169   : > { %6560 = vmatpush1.bf16.msra.mxu0 %v9205_v54  ;;  %v6259_v7 = vpop.f32.mrb[2].mxu0  ;;  %v10819_v8 = vadd.f32 %v6255_v62, %v6215_v1  ;;  %v6219_v10 = vpop.f32.mrb[3].mxu1  ;;  %6479 = vmatprep.subr.bf16.mxu1 %v9210_v57  ;;  %v9273_v54 = vld [vmem:[%s10477_s7 + $0x34] ss:$120 sps:$4 sm:$0xff]   ;;  %v9277_v62 = vld [vmem:[%s10477_s7 + $0x120] ss:$120 sps:$4 sm:$0xff]  }
 0x16a   : > { %v6260_v11 = vpop.f32.mrb[3].mxu0  ;;  %6561 = vmatprep.subr.bf16.mxu0 %v9213_v59  ;;  %v10822_v13 = vadd.f32 %v6257_v3, %v6217_v5  ;;  %v9276_v57 = vld [vmem:[%s10477_s7 + $0x11c] ss:$120 sps:$4 sm:$0xff]   ;;  %v9280_v1 = vld [vmem:[%s10477_s7 + $0x208] ss:$120 sps:$4 sm:$0xff]  }
 0x16b   : > { %v9279_v59 = vld [vmem:[%s10477_s7 + $0x124] ss:$120 sps:$4 sm:$0xff]   ;;  %v9283_v2 = vld [vmem:[%s10477_s7 + $0x210] ss:$120 sps:$4 sm:$0xff]   ;;  %v9289_v6 = vld [vmem:[%s10477_s7 + $0x300] ss:$120 sps:$4 sm:$0xff]  }
 0x16c   : > { %v7440_v17 = vcombine.low %v10819_v8, %v10822_v13  ;;  %6480 = vmatpush1.bf16.msra.mxu1 %v9208_v63  ;;  %v9282_v63 = vld [vmem:[%s10477_s7 + $0x20c] ss:$120 sps:$4 sm:$0xff]   ;;  %v9288_v3 = vld [vmem:[%s10477_s7 + $0x2fc] ss:$120 sps:$4 sm:$0xff]   ;;  %v9286_v5 = vld [vmem:[%s10477_s7 + $0x2f8] ss:$120 sps:$4 sm:$0xff]  }
 0x16d   : > { %6562 = vmatpush1.bf16.msra.mxu0 %v9211_v0  ;;  %6481 = vmatprep.subr.bf16.mxu1 %v9216_v4  ;;  %v9285_v0 = vld [vmem:[%s10477_s7 + $0x214] ss:$120 sps:$4 sm:$0xff]   ;;  %v9291_v4 = vld [vmem:[%s10477_s7 + $0x304] ss:$120 sps:$4 sm:$0xff]   ;;  %v9292_v11 = vld [vmem:[%s10477_s7 + $0x3e8] ss:$120 sps:$4 sm:$0xff]  }
 0x16e   : > { %6563 = vmatprep.subr.bf16.mxu0 %v9219_v12  ;;  %v9294_v7 = vld [vmem:[%s10477_s7 + $0x3ec] ss:$120 sps:$4 sm:$0xff]   ;;  %v9295_v12 = vld [vmem:[%s10477_s7 + $0x3f0] ss:$120 sps:$4 sm:$0xff]  }
 0x16f   : > { %v9297_v10 = vld [vmem:[%s10477_s7 + $0x3f4] ss:$120 sps:$4 sm:$0xff]   ;;  %v9412_v13 = vld [vmem:[%s10477_s7 + $0x16a8] ss:$120 sps:$4 sm:$0xff]  }
 0x170   : > { %6482 = vmatpush1.bf16.msra.mxu1 %v9214_v15  ;;  %v9300_v15 = vld [vmem:[%s10477_s7 + $0x4dc] ss:$120 sps:$4 sm:$0xff]  }
 0x171   : > { %6564 = vmatpush1.bf16.msra.mxu0 %v9217_v16  ;;  %6483 = vmatprep.subr.bf16.mxu1 %v9222_v18  ;;  %v9303_v16 = vld [vmem:[%s10477_s7 + $0x4e4] ss:$120 sps:$4 sm:$0xff]   ;;  %v9298_v18 = vld [vmem:[%s10477_s7 + $0x4d8] ss:$120 sps:$4 sm:$0xff]  }
 0x172   : > { %6565 = vmatprep.subr.bf16.mxu0 %v9225_v19  ;;  %v9301_v19 = vld [vmem:[%s10477_s7 + $0x4e0] ss:$120 sps:$4 sm:$0xff]  }
 0x174   : > { %6484 = vmatpush1.bf16.msra.mxu1 %v9220_v20  ;;  %v9306_v20 = vld [vmem:[%s10477_s7 + $0x5cc] ss:$120 sps:$4 sm:$0xff]  }
 0x175   : > { %6566 = vmatpush1.bf16.msra.mxu0 %v9223_v21  ;;  %6485 = vmatprep.subr.bf16.mxu1 %v9228_v22  ;;  %v9309_v21 = vld [vmem:[%s10477_s7 + $0x5d4] ss:$120 sps:$4 sm:$0xff]   ;;  %v9304_v22 = vld [vmem:[%s10477_s7 + $0x5c8] ss:$120 sps:$4 sm:$0xff]  }
 0x176   : > { %6567 = vmatprep.subr.bf16.mxu0 %v9231_v23  ;;  %v9307_v23 = vld [vmem:[%s10477_s7 + $0x5d0] ss:$120 sps:$4 sm:$0xff]  }
 0x178   : > { %6486 = vmatpush1.bf16.msra.mxu1 %v9226_v24  ;;  %v9312_v24 = vld [vmem:[%s10477_s7 + $0x6bc] ss:$120 sps:$4 sm:$0xff]  }
 0x179   : > { %6568 = vmatpush1.bf16.msra.mxu0 %v9229_v25  ;;  %6487 = vmatprep.subr.bf16.mxu1 %v9234_v26  ;;  %v9315_v25 = vld [vmem:[%s10477_s7 + $0x6c4] ss:$120 sps:$4 sm:$0xff]   ;;  %v9310_v26 = vld [vmem:[%s10477_s7 + $0x6b8] ss:$120 sps:$4 sm:$0xff]  }
 0x17a   : > { %6569 = vmatprep.subr.bf16.mxu0 %v9237_v27  ;;  %v9313_v27 = vld [vmem:[%s10477_s7 + $0x6c0] ss:$120 sps:$4 sm:$0xff]  }
 0x17c   : > { %6488 = vmatpush1.bf16.msra.mxu1 %v9232_v28  ;;  %v9318_v28 = vld [vmem:[%s10477_s7 + $0x7ac] ss:$120 sps:$4 sm:$0xff]  }
 0x17d   : > { %6570 = vmatpush1.bf16.msra.mxu0 %v9235_v29  ;;  %6489 = vmatprep.subr.bf16.mxu1 %v9240_v30  ;;  %v9321_v29 = vld [vmem:[%s10477_s7 + $0x7b4] ss:$120 sps:$4 sm:$0xff]   ;;  %v9316_v30 = vld [vmem:[%s10477_s7 + $0x7a8] ss:$120 sps:$4 sm:$0xff]  }
 0x17e   : > { %6571 = vmatprep.subr.bf16.mxu0 %v9243_v31  ;;  %v9319_v31 = vld [vmem:[%s10477_s7 + $0x7b0] ss:$120 sps:$4 sm:$0xff]  }
 0x180   : > { %6490 = vmatpush1.bf16.msra.mxu1 %v9238_v32  ;;  %v9324_v32 = vld [vmem:[%s10477_s7 + $0x89c] ss:$120 sps:$4 sm:$0xff]  }
 0x181   : > { %6572 = vmatpush1.bf16.msra.mxu0 %v9241_v33  ;;  %6491 = vmatprep.subr.bf16.mxu1 %v9246_v34  ;;  %v9327_v33 = vld [vmem:[%s10477_s7 + $0x8a4] ss:$120 sps:$4 sm:$0xff]   ;;  %v9322_v34 = vld [vmem:[%s10477_s7 + $0x898] ss:$120 sps:$4 sm:$0xff]  }
 0x182   : > { %6573 = vmatprep.subr.bf16.mxu0 %v9249_v35  ;;  %v9325_v35 = vld [vmem:[%s10477_s7 + $0x8a0] ss:$120 sps:$4 sm:$0xff]  }
 0x184   : > { %6492 = vmatpush1.bf16.msra.mxu1 %v9244_v36  ;;  %v9330_v36 = vld [vmem:[%s10477_s7 + $0x98c] ss:$120 sps:$4 sm:$0xff]  }
 0x185   : > { %6574 = vmatpush1.bf16.msra.mxu0 %v9247_v37  ;;  %6493 = vmatprep.subr.bf16.mxu1 %v9252_v38  ;;  %v9333_v37 = vld [vmem:[%s10477_s7 + $0x994] ss:$120 sps:$4 sm:$0xff]   ;;  %v9328_v38 = vld [vmem:[%s10477_s7 + $0x988] ss:$120 sps:$4 sm:$0xff]  }
 0x186   : > { %6575 = vmatprep.subr.bf16.mxu0 %v9255_v39  ;;  %v9331_v39 = vld [vmem:[%s10477_s7 + $0x990] ss:$120 sps:$4 sm:$0xff]  }
 0x188   : > { %6494 = vmatpush1.bf16.msra.mxu1 %v9250_v40  ;;  %v9336_v40 = vld [vmem:[%s10477_s7 + $0xa7c] ss:$120 sps:$4 sm:$0xff]  }
 0x189   : > { %6576 = vmatpush1.bf16.msra.mxu0 %v9253_v41  ;;  %6495 = vmatprep.subr.bf16.mxu1 %v9258_v42  ;;  %v9339_v41 = vld [vmem:[%s10477_s7 + $0xa84] ss:$120 sps:$4 sm:$0xff]   ;;  %v9334_v42 = vld [vmem:[%s10477_s7 + $0xa78] ss:$120 sps:$4 sm:$0xff]  }
 0x18a   : > { %6577 = vmatprep.subr.bf16.mxu0 %v9261_v43  ;;  %v9337_v43 = vld [vmem:[%s10477_s7 + $0xa80] ss:$120 sps:$4 sm:$0xff]  }
 0x18c   : > { %6496 = vmatpush1.bf16.msra.mxu1 %v9256_v44  ;;  %v9342_v44 = vld [vmem:[%s10477_s7 + $0xb6c] ss:$120 sps:$4 sm:$0xff]  }
 0x18d   : > { %6578 = vmatpush1.bf16.msra.mxu0 %v9259_v46  ;;  %6497 = vmatprep.subr.bf16.mxu1 %v9264_v48  ;;  %v9345_v46 = vld [vmem:[%s10477_s7 + $0xb74] ss:$120 sps:$4 sm:$0xff]   ;;  %v9340_v48 = vld [vmem:[%s10477_s7 + $0xb68] ss:$120 sps:$4 sm:$0xff]  }
 0x18e   : > { %6579 = vmatprep.subr.bf16.mxu0 %v9267_v49  ;;  %v9343_v49 = vld [vmem:[%s10477_s7 + $0xb70] ss:$120 sps:$4 sm:$0xff]  }
 0x190   : > { %6498 = vmatpush1.bf16.msra.mxu1 %v9262_v51  ;;  %v9348_v51 = vld [vmem:[%s10477_s7 + $0xc5c] ss:$120 sps:$4 sm:$0xff]  }
 0x191   : > { %6580 = vmatpush1.bf16.msra.mxu0 %v9265_v52  ;;  %6590 = vmatprep.subr.bf16.mxu1 %v9270_v53  ;;  %v9351_v52 = vld [vmem:[%s10477_s7 + $0xc64] ss:$120 sps:$4 sm:$0xff]   ;;  %v9346_v53 = vld [vmem:[%s10477_s7 + $0xc58] ss:$120 sps:$4 sm:$0xff]  }
 0x192   : > { %6672 = vmatprep.subr.bf16.mxu0 %v9273_v54  ;;  %v9349_v54 = vld [vmem:[%s10477_s7 + $0xc60] ss:$120 sps:$4 sm:$0xff]  }
 0x193   : > { %6500 = vmatmul.mubr.bf16.vlgmr.msra.gmra.mrb[8].mxu1 %v10574_v14 }
 0x194   : > { %6582 = vmatmul.mubr.bf16.vlgmr.msra.gmra.mrb[8].mxu0 %v10574_v14  ;;  %6591 = vmatpush1.bf16.msra.mxu1 %v9268_v55  ;;  %v9354_v55 = vld [vmem:[%s10477_s7 + $0xd4c] ss:$120 sps:$4 sm:$0xff]  }
 0x195   : > { %6673 = vmatpush1.bf16.msra.mxu0 %v9271_v56  ;;  %6592 = vmatprep.subr.bf16.mxu1 %v9276_v57  ;;  %v9357_v56 = vld [vmem:[%s10477_s7 + $0xd54] ss:$120 sps:$4 sm:$0xff]   ;;  %v9352_v57 = vld [vmem:[%s10477_s7 + $0xd48] ss:$120 sps:$4 sm:$0xff]  }
 0x196   : > { %6674 = vmatprep.subr.bf16.mxu0 %v9279_v59  ;;  %6622 = vmatprep.mubr.bf16.mxu1 %v10545_v58  ;;  %v9355_v59 = vld [vmem:[%s10477_s7 + $0xd50] ss:$120 sps:$4 sm:$0xff]  }
 0x197   : > { %6704 = vmatprep.mubr.bf16.mxu0 %v10545_v58 }
 0x198   : > { %6593 = vmatpush1.bf16.msra.mxu1 %v9274_v60  ;;  %v9360_v60 = vld [vmem:[%s10477_s7 + $0xe3c] ss:$120 sps:$4 sm:$0xff]  }
 0x199   : > { %6675 = vmatpush1.bf16.msra.mxu0 %v9277_v62  ;;  %6594 = vmatprep.subr.bf16.mxu1 %v9282_v63  ;;  %v9363_v62 = vld [vmem:[%s10477_s7 + $0xe44] ss:$120 sps:$4 sm:$0xff]   ;;  %v9358_v63 = vld [vmem:[%s10477_s7 + $0xe38] ss:$120 sps:$4 sm:$0xff]  }
 0x19a   : > { %6676 = vmatprep.subr.bf16.mxu0 %v9285_v0  ;;  %v9361_v0 = vld [vmem:[%s10477_s7 + $0xe40] ss:$120 sps:$4 sm:$0xff]  }
 0x19c   : > { %6595 = vmatpush1.bf16.msra.mxu1 %v9280_v1  ;;  %v9366_v1 = vld [vmem:[%s10477_s7 + $0xf2c] ss:$120 sps:$4 sm:$0xff]  }
 0x19d   : > { %6677 = vmatpush1.bf16.msra.mxu0 %v9283_v2  ;;  %6596 = vmatprep.subr.bf16.mxu1 %v9288_v3  ;;  %v9369_v2 = vld [vmem:[%s10477_s7 + $0xf34] ss:$120 sps:$4 sm:$0xff]   ;;  %v9364_v3 = vld [vmem:[%s10477_s7 + $0xf28] ss:$120 sps:$4 sm:$0xff]  }
 0x19e   : > { %6678 = vmatprep.subr.bf16.mxu0 %v9291_v4  ;;  %v9367_v4 = vld [vmem:[%s10477_s7 + $0xf30] ss:$120 sps:$4 sm:$0xff]  }
 0x1a0   : > { %6597 = vmatpush1.bf16.msra.mxu1 %v9286_v5  ;;  %v9372_v5 = vld [vmem:[%s10477_s7 + $0x101c] ss:$120 sps:$4 sm:$0xff]  }
 0x1a1   : > { %6679 = vmatpush1.bf16.msra.mxu0 %v9289_v6  ;;  %6598 = vmatprep.subr.bf16.mxu1 %v9294_v7  ;;  %v9375_v6 = vld [vmem:[%s10477_s7 + $0x1024] ss:$120 sps:$4 sm:$0xff]   ;;  %v9370_v7 = vld [vmem:[%s10477_s7 + $0x1018] ss:$120 sps:$4 sm:$0xff]  }
 0x1a2   : > { %6680 = vmatprep.subr.bf16.mxu0 %v9297_v10  ;;  %v9373_v10 = vld [vmem:[%s10477_s7 + $0x1020] ss:$120 sps:$4 sm:$0xff]  }
 0x1a4   : > { %6599 = vmatpush1.bf16.msra.mxu1 %v9292_v11  ;;  %v9378_v11 = vld [vmem:[%s10477_s7 + $0x110c] ss:$120 sps:$4 sm:$0xff]  }
 0x1a5   : > { %6681 = vmatpush1.bf16.msra.mxu0 %v9295_v12  ;;  %6600 = vmatprep.subr.bf16.mxu1 %v9300_v15  ;;  %v9381_v12 = vld [vmem:[%s10477_s7 + $0x1114] ss:$120 sps:$4 sm:$0xff]   ;;  %v9376_v15 = vld [vmem:[%s10477_s7 + $0x1108] ss:$120 sps:$4 sm:$0xff]  }
 0x1a6   : > { %6682 = vmatprep.subr.bf16.mxu0 %v9303_v16  ;;  %v9379_v16 = vld [vmem:[%s10477_s7 + $0x1110] ss:$120 sps:$4 sm:$0xff]  }
 0x1a8   : > { %6601 = vmatpush1.bf16.msra.mxu1 %v9298_v18  ;;  %v9384_v18 = vld [vmem:[%s10477_s7 + $0x11fc] ss:$120 sps:$4 sm:$0xff]  }
 0x1a9   : > { %6683 = vmatpush1.bf16.msra.mxu0 %v9301_v19  ;;  %6602 = vmatprep.subr.bf16.mxu1 %v9306_v20  ;;  %v9387_v19 = vld [vmem:[%s10477_s7 + $0x1204] ss:$120 sps:$4 sm:$0xff]   ;;  %v9382_v20 = vld [vmem:[%s10477_s7 + $0x11f8] ss:$120 sps:$4 sm:$0xff]  }
 0x1aa   : > { %6684 = vmatprep.subr.bf16.mxu0 %v9309_v21  ;;  %v9385_v21 = vld [vmem:[%s10477_s7 + $0x1200] ss:$120 sps:$4 sm:$0xff]  }
 0x1ac   : > { %6603 = vmatpush1.bf16.msra.mxu1 %v9304_v22  ;;  %v9390_v22 = vld [vmem:[%s10477_s7 + $0x12ec] ss:$120 sps:$4 sm:$0xff]  }
 0x1ad   : > { %6685 = vmatpush1.bf16.msra.mxu0 %v9307_v23  ;;  %6604 = vmatprep.subr.bf16.mxu1 %v9312_v24  ;;  %v9393_v23 = vld [vmem:[%s10477_s7 + $0x12f4] ss:$120 sps:$4 sm:$0xff]   ;;  %v9388_v24 = vld [vmem:[%s10477_s7 + $0x12e8] ss:$120 sps:$4 sm:$0xff]  }
 0x1ae   : > { %6686 = vmatprep.subr.bf16.mxu0 %v9315_v25  ;;  %v10956_v25 = vsub.s32 2, %v10531_v45 }
 0x1b0   : > { %6605 = vmatpush1.bf16.msra.mxu1 %v9310_v26  ;;  %v10959_v26 = vsub.s32 4, %v10531_v45 }
 0x1b1   : > { %6687 = vmatpush1.bf16.msra.mxu0 %v9313_v27  ;;  %6606 = vmatprep.subr.bf16.mxu1 %v9318_v28  ;;  %v10337_v27 = vmov 1983009808  }
 0x1b2   : > { %6688 = vmatprep.subr.bf16.mxu0 %v9321_v29  ;;  %v7443_v28 = vunpack.c.l.s4 %v10337_v27  ;;  %v9391_v29 = vld [vmem:[%s10477_s7 + $0x12f0] ss:$120 sps:$4 sm:$0xff]  }
 0x1b3   : > { %v9430_v27 = vld [vmem:[%s10477_s7 + $0x1978] ss:$120 sps:$4 sm:$0xff]  }
 0x1b4   : > { %6607 = vmatpush1.bf16.msra.mxu1 %v9316_v30  ;;  %v10963_v30 = vsub.s32 3, %v10531_v45 }
 0x1b5   : > { %6689 = vmatpush1.bf16.msra.mxu0 %v9319_v31  ;;  %6608 = vmatprep.subr.bf16.mxu1 %v9324_v32  ;;  %v10966_v31 = vsub.s32 5, %v10531_v45  ;;  %v9396_v32 = vld [vmem:[%s10477_s7 + $0x13dc] ss:$120 sps:$4 sm:$0xff]  }
 0x1b6   : > { %6690 = vmatprep.subr.bf16.mxu0 %v9327_v33  ;;  %v9399_v33 = vld [vmem:[%s10477_s7 + $0x13e4] ss:$120 sps:$4 sm:$0xff]  }
 0x1b8   : > { %6609 = vmatpush1.bf16.msra.mxu1 %v9322_v34  ;;  %v9394_v34 = vld [vmem:[%s10477_s7 + $0x13d8] ss:$120 sps:$4 sm:$0xff]  }
 0x1b9   : > { %6691 = vmatpush1.bf16.msra.mxu0 %v9325_v35  ;;  %6610 = vmatprep.subr.bf16.mxu1 %v9330_v36  ;;  %v10228_v35 = vld [vmem:[%s10483_s30] sm:$0xff] }
 0x1ba   : > { %6692 = vmatprep.subr.bf16.mxu0 %v9333_v37  ;;  %v1212_v36 = vrot.slane %v10228_v35, %v10956_v25  ;;  %v1220_v37 = vrot.slane %v10228_v35, %v10959_v26 }
 0x1bc   : > { %6611 = vmatpush1.bf16.msra.mxu1 %v9328_v38  ;;  %v7444_v38 = vunpack.c.0.s8 %v7443_v28  ;;  %v9433_v28 = vld [vmem:[%s10477_s7 + $0x1980] ss:$120 sps:$4 sm:$0xff]  }
 0x1bd   : > { %6693 = vmatpush1.bf16.msra.mxu0 %v9331_v39  ;;  %6612 = vmatprep.subr.bf16.mxu1 %v9336_v40  ;;  %v1216_v39 = vrot.slane %v10228_v35, %v10963_v30  ;;  %v1224_v40 = vrot.slane %v10228_v35, %v10966_v31  ;;  %v9444_v35 = vld [vmem:[%s10477_s7 + $0x1b5c] ss:$120 sps:$4 sm:$0xff]  }
 0x1be   : > { %6694 = vmatprep.subr.bf16.mxu0 %v9339_v41  ;;  %v9397_v41 = vld [vmem:[%s10477_s7 + $0x13e0] ss:$120 sps:$4 sm:$0xff]  }
 0x1c0   : > { %6613 = vmatpush1.bf16.msra.mxu1 %v9334_v42  ;;  %v9402_v42 = vld [vmem:[%s10477_s7 + $0x14cc] ss:$120 sps:$4 sm:$0xff]  }
 0x1c1   : > { %6695 = vmatpush1.bf16.msra.mxu0 %v9337_v43  ;;  %6614 = vmatprep.subr.bf16.mxu1 %v9342_v44  ;;  %v9405_v43 = vld [vmem:[%s10477_s7 + $0x14d4] ss:$120 sps:$4 sm:$0xff]  }
 0x1c2   : > { %6696 = vmatprep.subr.bf16.mxu0 %v9345_v46 }
 0x1c4   : > { %6615 = vmatpush1.bf16.msra.mxu1 %v9340_v48  ;;  %v9400_v48 = vld [vmem:[%s10477_s7 + $0x14c8] ss:$120 sps:$4 sm:$0xff]  }
 0x1c5   : > { %6697 = vmatpush1.bf16.msra.mxu0 %v9343_v49  ;;  %6616 = vmatprep.subr.bf16.mxu1 %v9348_v51  ;;  %v9403_v49 = vld [vmem:[%s10477_s7 + $0x14d0] ss:$120 sps:$4 sm:$0xff]  }
 0x1c6   : > { %6698 = vmatprep.subr.bf16.mxu0 %v9351_v52 }
 0x1c8   : > { %6617 = vmatpush1.bf16.msra.mxu1 %v9346_v53 }
 0x1c9   : > { %6699 = vmatpush1.bf16.msra.mxu0 %v9349_v54  ;;  %6618 = vmatprep.subr.bf16.mxu1 %v9354_v55  ;;  %v10990_v55 = vsub.s32 %v7444_v38, %v10531_v45  ;;  %v9445_v38 = vld [vmem:[%s10477_s7 + $0x1b60] ss:$120 sps:$4 sm:$0xff]  }
 0x1ca   : > { %6700 = vmatprep.subr.bf16.mxu0 %v9357_v56 }
 0x1cc   : > { %6619 = vmatpush1.bf16.msra.mxu1 %v9352_v57 }
 0x1cd   : > { %6701 = vmatpush1.bf16.msra.mxu0 %v9355_v59  ;;  %6620 = vmatprep.subr.bf16.mxu1 %v9360_v60 }
 0x1ce   : > { %6702 = vmatprep.subr.bf16.mxu0 %v9363_v62 }
 0x1d0   : > { %6621 = vmatpush1.bf16.msra.mxu1 %v9358_v63 }
 0x1d1   : > { %6703 = vmatpush1.bf16.msra.mxu0 %v9361_v0  ;;  %6631 = vmatprep.subr.bf16.mxu1 %v9366_v1  ;;  %v9408_v0 = vld [vmem:[%s10477_s7 + $0x15bc] ss:$120 sps:$4 sm:$0xff]  }
 0x1d2   : > { %6713 = vmatprep.subr.bf16.mxu0 %v9369_v2  ;;  %v9411_v1 = vld [vmem:[%s10477_s7 + $0x15c4] ss:$120 sps:$4 sm:$0xff]  }
 0x1d3   : > { %6623 = vmatmul.mubr.bf16.vlgmr.msra.gmra.mrb[12].mxu1 %v10566_v9 }
 0x1d4   : > { %6705 = vmatmul.mubr.bf16.vlgmr.msra.gmra.mrb[12].mxu0 %v10566_v9  ;;  %6632 = vmatpush1.bf16.msra.mxu1 %v9364_v3 }
 0x1d5   : > { %6714 = vmatpush1.bf16.msra.mxu0 %v9367_v4  ;;  %6633 = vmatprep.subr.bf16.mxu1 %v9372_v5  ;;  %v9406_v4 = vld [vmem:[%s10477_s7 + $0x15b8] ss:$120 sps:$4 sm:$0xff]  }
 0x1d6   : > { %6715 = vmatprep.subr.bf16.mxu0 %v9375_v6  ;;  %6663 = vmatprep.mubr.bf16.mxu1 %v10551_v61  ;;  %v9409_v5 = vld [vmem:[%s10477_s7 + $0x15c0] ss:$120 sps:$4 sm:$0xff]   ;;  %v7448_v6 = vrot.slane %v7440_v17, %v10990_v55  ;;  %v9415_v17 = vld [vmem:[%s10477_s7 + $0x16b0] ss:$120 sps:$4 sm:$0xff]  }
 0x1d7   : > { %6745 = vmatprep.mubr.bf16.mxu0 %v10551_v61 }
 0x1d8   : > { %6634 = vmatpush1.bf16.msra.mxu1 %v9370_v7 }
 0x1d9   : > { %6716 = vmatpush1.bf16.msra.mxu0 %v9373_v10  ;;  %6635 = vmatprep.subr.bf16.mxu1 %v9378_v11  ;;  %v9414_v10 = vld [vmem:[%s10477_s7 + $0x16ac] ss:$120 sps:$4 sm:$0xff]  }
 0x1da   : > { %6717 = vmatprep.subr.bf16.mxu0 %v9381_v12  ;;  %v9417_v11 = vld [vmem:[%s10477_s7 + $0x16b4] ss:$120 sps:$4 sm:$0xff]  }
 0x1db   : > { %v9420_v12 = vld [vmem:[%s10477_s7 + $0x179c] ss:$120 sps:$4 sm:$0xff]  }
 0x1dc   : > { %6636 = vmatpush1.bf16.msra.mxu1 %v9376_v15  ;;  %v9423_v15 = vld [vmem:[%s10477_s7 + $0x17a4] ss:$120 sps:$4 sm:$0xff]  }
 0x1dd   : > { %6718 = vmatpush1.bf16.msra.mxu0 %v9379_v16  ;;  %6637 = vmatprep.subr.bf16.mxu1 %v9384_v18  ;;  %v9418_v16 = vld [vmem:[%s10477_s7 + $0x1798] ss:$120 sps:$4 sm:$0xff]  }
 0x1de   : > { %6719 = vmatprep.subr.bf16.mxu0 %v9387_v19  ;;  %v9421_v18 = vld [vmem:[%s10477_s7 + $0x17a0] ss:$120 sps:$4 sm:$0xff]   ;;  %v9426_v19 = vld [vmem:[%s10477_s7 + $0x188c] ss:$120 sps:$4 sm:$0xff]  }
 0x1e0   : > { %6638 = vmatpush1.bf16.msra.mxu1 %v9382_v20  ;;  %v9429_v20 = vld [vmem:[%s10477_s7 + $0x1894] ss:$120 sps:$4 sm:$0xff]  }
 0x1e1   : > { %6720 = vmatpush1.bf16.msra.mxu0 %v9385_v21  ;;  %6639 = vmatprep.subr.bf16.mxu1 %v9390_v22  ;;  %v9424_v21 = vld [vmem:[%s10477_s7 + $0x1888] ss:$120 sps:$4 sm:$0xff]  }
 0x1e2   : > { %6721 = vmatprep.subr.bf16.mxu0 %v9393_v23  ;;  %v9427_v22 = vld [vmem:[%s10477_s7 + $0x1890] ss:$120 sps:$4 sm:$0xff]   ;;  %v9432_v23 = vld [vmem:[%s10477_s7 + $0x197c] ss:$120 sps:$4 sm:$0xff]  }
 0x1e4   : > { %6640 = vmatpush1.bf16.msra.mxu1 %v9388_v24  ;;  %v9435_v24 = vld [vmem:[%s10477_s7 + $0x1984] ss:$120 sps:$4 sm:$0xff]  }
 0x1e5   : > { %6722 = vmatpush1.bf16.msra.mxu0 %v9391_v29  ;;  %6641 = vmatprep.subr.bf16.mxu1 %v9396_v32  ;;  %v9438_v29 = vld [vmem:[%s10477_s7 + $0x1a6c] ss:$120 sps:$4 sm:$0xff]  }
 0x1e6   : > { %6723 = vmatprep.subr.bf16.mxu0 %v9399_v33  ;;  %v6337_v44 = vpop.f32.mrb[4].mxu1  ;;  %v9441_v32 = vld [vmem:[%s10477_s7 + $0x1a74] ss:$120 sps:$4 sm:$0xff]   ;;  %v9436_v33 = vld [vmem:[%s10477_s7 + $0x1a68] ss:$120 sps:$4 sm:$0xff]  }
 0x1e7   : > { %v6419_v46 = vpop.f32.mrb[4].mxu0  ;;  %v8651_v51 = vadd.f32 %v6337_v44, %v1212_v36  ;;  %v6339_v53 = vpop.f32.mrb[5].mxu1  ;;  %v9447_v36 = vld [vmem:[%s10477_s7 + $0x1b64] ss:$120 sps:$4 sm:$0xff]  }
 0x1e8   : > { %v10987_v52 = vadd.f32 %v6419_v46, %v1220_v37  ;;  %v6421_v54 = vpop.f32.mrb[5].mxu0  ;;  %v8652_v56 = vadd.f32 %v6339_v53, %v1216_v39  ;;  %v6341_v59 = vpop.f32.mrb[6].mxu1  ;;  %6642 = vmatpush1.bf16.msra.mxu1 %v9394_v34  ;;  %v9439_v34 = vld [vmem:[%s10477_s7 + $0x1a70] ss:$120 sps:$4 sm:$0xff]   ;;  %v9450_v39 = vld [vmem:[%s10477_s7 + $0x1c4c] ss:$120 sps:$4 sm:$0xff]  }
 0x1e9   : > { %v10992_v57 = vadd.f32 %v6421_v54, %v1224_v40  ;;  %v6423_v60 = vpop.f32.mrb[6].mxu0  ;;  %6724 = vmatpush1.bf16.msra.mxu0 %v9397_v41  ;;  %v6342_v62 = vpop.f32.mrb[7].mxu1  ;;  %6643 = vmatprep.subr.bf16.mxu1 %v9402_v42  ;;  %v9442_v37 = vld [vmem:[%s10477_s7 + $0x1b58] ss:$120 sps:$4 sm:$0xff]   ;;  %v9453_v40 = vld [vmem:[%s10477_s7 + $0x1c54] ss:$120 sps:$4 sm:$0xff]  }
 0x1ea   : > { %v6424_v63 = vpop.f32.mrb[7].mxu0  ;;  %6725 = vmatprep.subr.bf16.mxu0 %v9405_v43  ;;  %v7441_v2 = vcombine.low %v8651_v51, %v8652_v56  ;;  %v9448_v41 = vld [vmem:[%s10477_s7 + $0x1c48] ss:$120 sps:$4 sm:$0xff]   ;;  %v9456_v43 = vld [vmem:[%s10477_s7 + $0x1d3c] ss:$120 sps:$4 sm:$0xff]  }
 0x1eb   : > { %v7457_v3 = vcombine.low %v10987_v52, %v10992_v57  ;;  %v9451_v42 = vld [vmem:[%s10477_s7 + $0x1c50] ss:$120 sps:$4 sm:$0xff]   ;;  %v9459_v44 = vld [vmem:[%s10477_s7 + $0x1d44] ss:$120 sps:$4 sm:$0xff]   ;;  %v9463_v54 = vld [vmem:[%s10477_s7 + $0x40] ss:$120 sps:$4 sm:$0xff]  }
 0x1ec   : > { %v7455_v7 = vrot.slane %v7441_v2, %v10990_v55  ;;  %6644 = vmatpush1.bf16.msra.mxu1 %v9400_v48  ;;  %v9454_v46 = vld [vmem:[%s10477_s7 + $0x1d38] ss:$120 sps:$4 sm:$0xff]   ;;  %v9465_v51 = vld [vmem:[%s10477_s7 + $0x44] ss:$120 sps:$4 sm:$0xff]   ;;  %v9471_v59 = vld [vmem:[%s10477_s7 + $0x134] ss:$120 sps:$4 sm:$0xff]  }
 0x1ed   : > { %6726 = vmatpush1.bf16.msra.mxu0 %v9403_v49  ;;  %6645 = vmatprep.subr.bf16.mxu1 %v9408_v0  ;;  %v9457_v48 = vld [vmem:[%s10477_s7 + $0x1d40] ss:$120 sps:$4 sm:$0xff]   ;;  %v9462_v49 = vld [vmem:[%s10477_s7 + $0x3c] ss:$120 sps:$4 sm:$0xff]   ;;  %v9468_v56 = vld [vmem:[%s10477_s7 + $0x12c] ss:$120 sps:$4 sm:$0xff]  }
 0x1ee   : > { %6727 = vmatprep.subr.bf16.mxu0 %v9411_v1  ;;  %v7456_v8 = vcombine.low %v7448_v6, %v7455_v7  ;;  %v9460_v53 = vld [vmem:[%s10477_s7 + $0x38] ss:$120 sps:$4 sm:$0xff]   ;;  %v9466_v60 = vld [vmem:[%s10477_s7 + $0x128] ss:$120 sps:$4 sm:$0xff]   ;;  %v9474_v63 = vld [vmem:[%s10477_s7 + $0x21c] ss:$120 sps:$4 sm:$0xff]  }
 0x1ef   : > { %v9469_v62 = vld [vmem:[%s10477_s7 + $0x130] ss:$120 sps:$4 sm:$0xff]   ;;  %v9477_v0 = vld [vmem:[%s10477_s7 + $0x224] ss:$120 sps:$4 sm:$0xff]   ;;  %v9475_v2 = vld [vmem:[%s10477_s7 + $0x220] ss:$120 sps:$4 sm:$0xff]  }
 0x1f0   : > { %7575 = vst [vmem:[%s11009_s28] sm:$0xff] %v7456_v8  ;;  %6646 = vmatpush1.bf16.msra.mxu1 %v9406_v4  ;;  %v9472_v1 = vld [vmem:[%s10477_s7 + $0x218] ss:$120 sps:$4 sm:$0xff]   ;;  %v9480_v4 = vld [vmem:[%s10477_s7 + $0x30c] ss:$120 sps:$4 sm:$0xff]   ;;  %v9478_v6 = vld [vmem:[%s10477_s7 + $0x308] ss:$120 sps:$4 sm:$0xff]  }
 0x1f1   : > { %6728 = vmatpush1.bf16.msra.mxu0 %v9409_v5  ;;  %6647 = vmatprep.subr.bf16.mxu1 %v9414_v10  ;;  %v9483_v5 = vld [vmem:[%s10477_s7 + $0x314] ss:$120 sps:$4 sm:$0xff]   ;;  %v9481_v7 = vld [vmem:[%s10477_s7 + $0x310] ss:$120 sps:$4 sm:$0xff]   ;;  %v9607_v57 = vld [vmem:[%s10477_s7 + $0x16c0] ss:$120 sps:$4 sm:$0xff]  }
 0x1f2   : > { %6729 = vmatprep.subr.bf16.mxu0 %v9417_v11  ;;  %v9486_v10 = vld [vmem:[%s10477_s7 + $0x3fc] ss:$120 sps:$4 sm:$0xff]   ;;  %v9484_v8 = vld [vmem:[%s10477_s7 + $0x3f8] ss:$120 sps:$4 sm:$0xff]  }
 0x1f3   : > { %v9489_v11 = vld [vmem:[%s10477_s7 + $0x404] ss:$120 sps:$4 sm:$0xff]   ;;  %v9604_v52 = vld [vmem:[%s10477_s7 + $0x16b8] ss:$120 sps:$4 sm:$0xff]  }
 0x1f4   : > { %6648 = vmatpush1.bf16.msra.mxu1 %v9412_v13  ;;  %v9487_v13 = vld [vmem:[%s10477_s7 + $0x400] ss:$120 sps:$4 sm:$0xff]  }
 0x1f5   : > { %6730 = vmatpush1.bf16.msra.mxu0 %v9415_v17  ;;  %6649 = vmatprep.subr.bf16.mxu1 %v9420_v12  ;;  %v9492_v17 = vld [vmem:[%s10477_s7 + $0x4ec] ss:$120 sps:$4 sm:$0xff]  }
 0x1f6   : > { %6731 = vmatprep.subr.bf16.mxu0 %v9423_v15  ;;  %v9495_v12 = vld [vmem:[%s10477_s7 + $0x4f4] ss:$120 sps:$4 sm:$0xff]   ;;  %v9490_v15 = vld [vmem:[%s10477_s7 + $0x4e8] ss:$120 sps:$4 sm:$0xff]  }
 0x1f8   : > { %6650 = vmatpush1.bf16.msra.mxu1 %v9418_v16  ;;  %v9493_v16 = vld [vmem:[%s10477_s7 + $0x4f0] ss:$120 sps:$4 sm:$0xff]  }
 0x1f9   : > { %6732 = vmatpush1.bf16.msra.mxu0 %v9421_v18  ;;  %6651 = vmatprep.subr.bf16.mxu1 %v9426_v19  ;;  %v9498_v18 = vld [vmem:[%s10477_s7 + $0x5dc] ss:$120 sps:$4 sm:$0xff]  }
 0x1fa   : > { %6733 = vmatprep.subr.bf16.mxu0 %v9429_v20  ;;  %v9501_v19 = vld [vmem:[%s10477_s7 + $0x5e4] ss:$120 sps:$4 sm:$0xff]   ;;  %v9496_v20 = vld [vmem:[%s10477_s7 + $0x5d8] ss:$120 sps:$4 sm:$0xff]  }
 0x1fc   : > { %6652 = vmatpush1.bf16.msra.mxu1 %v9424_v21  ;;  %v9499_v21 = vld [vmem:[%s10477_s7 + $0x5e0] ss:$120 sps:$4 sm:$0xff]  }
 0x1fd   : > { %6734 = vmatpush1.bf16.msra.mxu0 %v9427_v22  ;;  %6653 = vmatprep.subr.bf16.mxu1 %v9432_v23  ;;  %v9504_v22 = vld [vmem:[%s10477_s7 + $0x6cc] ss:$120 sps:$4 sm:$0xff]  }
 0x1fe   : > { %6735 = vmatprep.subr.bf16.mxu0 %v9435_v24  ;;  %v9507_v23 = vld [vmem:[%s10477_s7 + $0x6d4] ss:$120 sps:$4 sm:$0xff]   ;;  %v9502_v24 = vld [vmem:[%s10477_s7 + $0x6c8] ss:$120 sps:$4 sm:$0xff]  }
 0x200   : > { %6654 = vmatpush1.bf16.msra.mxu1 %v9430_v27  ;;  %v9505_v27 = vld [vmem:[%s10477_s7 + $0x6d0] ss:$120 sps:$4 sm:$0xff]  }
 0x201   : > { %6736 = vmatpush1.bf16.msra.mxu0 %v9433_v28  ;;  %6655 = vmatprep.subr.bf16.mxu1 %v9438_v29  ;;  %v9510_v28 = vld [vmem:[%s10477_s7 + $0x7bc] ss:$120 sps:$4 sm:$0xff]  }
 0x202   : > { %6737 = vmatprep.subr.bf16.mxu0 %v9441_v32  ;;  %v9513_v29 = vld [vmem:[%s10477_s7 + $0x7c4] ss:$120 sps:$4 sm:$0xff]   ;;  %v9508_v32 = vld [vmem:[%s10477_s7 + $0x7b8] ss:$120 sps:$4 sm:$0xff]  }
 0x204   : > { %6656 = vmatpush1.bf16.msra.mxu1 %v9436_v33  ;;  %v9511_v33 = vld [vmem:[%s10477_s7 + $0x7c0] ss:$120 sps:$4 sm:$0xff]  }
 0x205   : > { %6738 = vmatpush1.bf16.msra.mxu0 %v9439_v34  ;;  %6657 = vmatprep.subr.bf16.mxu1 %v9444_v35  ;;  %v9516_v34 = vld [vmem:[%s10477_s7 + $0x8ac] ss:$120 sps:$4 sm:$0xff]  }
 0x206   : > { %6739 = vmatprep.subr.bf16.mxu0 %v9447_v36  ;;  %v9519_v35 = vld [vmem:[%s10477_s7 + $0x8b4] ss:$120 sps:$4 sm:$0xff]   ;;  %v9514_v36 = vld [vmem:[%s10477_s7 + $0x8a8] ss:$120 sps:$4 sm:$0xff]  }
 0x208   : > { %6658 = vmatpush1.bf16.msra.mxu1 %v9442_v37  ;;  %v9517_v37 = vld [vmem:[%s10477_s7 + $0x8b0] ss:$120 sps:$4 sm:$0xff]  }
 0x209   : > { %6740 = vmatpush1.bf16.msra.mxu0 %v9445_v38  ;;  %6659 = vmatprep.subr.bf16.mxu1 %v9450_v39  ;;  %v9522_v38 = vld [vmem:[%s10477_s7 + $0x99c] ss:$120 sps:$4 sm:$0xff]  }
 0x20a   : > { %6741 = vmatprep.subr.bf16.mxu0 %v9453_v40  ;;  %v9525_v39 = vld [vmem:[%s10477_s7 + $0x9a4] ss:$120 sps:$4 sm:$0xff]   ;;  %v9520_v40 = vld [vmem:[%s10477_s7 + $0x998] ss:$120 sps:$4 sm:$0xff]  }
 0x20c   : > { %6660 = vmatpush1.bf16.msra.mxu1 %v9448_v41  ;;  %v9523_v41 = vld [vmem:[%s10477_s7 + $0x9a0] ss:$120 sps:$4 sm:$0xff]  }
 0x20d   : > { %6742 = vmatpush1.bf16.msra.mxu0 %v9451_v42  ;;  %6661 = vmatprep.subr.bf16.mxu1 %v9456_v43  ;;  %v9528_v42 = vld [vmem:[%s10477_s7 + $0xa8c] ss:$120 sps:$4 sm:$0xff]  }
 0x20e   : > { %6743 = vmatprep.subr.bf16.mxu0 %v9459_v44  ;;  %v9531_v43 = vld [vmem:[%s10477_s7 + $0xa94] ss:$120 sps:$4 sm:$0xff]   ;;  %v9526_v44 = vld [vmem:[%s10477_s7 + $0xa88] ss:$120 sps:$4 sm:$0xff]  }
 0x210   : > { %6662 = vmatpush1.bf16.msra.mxu1 %v9454_v46  ;;  %v9529_v46 = vld [vmem:[%s10477_s7 + $0xa90] ss:$120 sps:$4 sm:$0xff]  }
 0x211   : > { %6744 = vmatpush1.bf16.msra.mxu0 %v9457_v48  ;;  %6754 = vmatprep.subr.bf16.mxu1 %v9462_v49  ;;  %v9534_v48 = vld [vmem:[%s10477_s7 + $0xb7c] ss:$120 sps:$4 sm:$0xff]  }
 0x212   : > { %6836 = vmatprep.subr.bf16.mxu0 %v9465_v51  ;;  %v9537_v49 = vld [vmem:[%s10477_s7 + $0xb84] ss:$120 sps:$4 sm:$0xff]   ;;  %v9532_v51 = vld [vmem:[%s10477_s7 + $0xb78] ss:$120 sps:$4 sm:$0xff]  }
 0x213   : > { %6664 = vmatmul.mubr.bf16.vlgmr.msra.gmra.mrb[12].mxu1 %v10574_v14 }
 0x214   : > { %6746 = vmatmul.mubr.bf16.vlgmr.msra.gmra.mrb[12].mxu0 %v10574_v14  ;;  %6755 = vmatpush1.bf16.msra.mxu1 %v9460_v53  ;;  %v9535_v53 = vld [vmem:[%s10477_s7 + $0xb80] ss:$120 sps:$4 sm:$0xff]  }
 0x215   : > { %6837 = vmatpush1.bf16.msra.mxu0 %v9463_v54  ;;  %6756 = vmatprep.subr.bf16.mxu1 %v9468_v56  ;;  %v9540_v54 = vld [vmem:[%s10477_s7 + $0xc6c] ss:$120 sps:$4 sm:$0xff]  }
 0x216   : > { %6838 = vmatprep.subr.bf16.mxu0 %v9471_v59  ;;  %6786 = vmatprep.mubr.bf16.mxu1 %v10545_v58  ;;  %v9543_v56 = vld [vmem:[%s10477_s7 + $0xc74] ss:$120 sps:$4 sm:$0xff]   ;;  %v9538_v59 = vld [vmem:[%s10477_s7 + $0xc68] ss:$120 sps:$4 sm:$0xff]  }
 0x217   : > { %6868 = vmatprep.mubr.bf16.mxu0 %v10545_v58 }
 0x218   : > { %6757 = vmatpush1.bf16.msra.mxu1 %v9466_v60  ;;  %v9541_v60 = vld [vmem:[%s10477_s7 + $0xc70] ss:$120 sps:$4 sm:$0xff]  }
 0x219   : > { %6839 = vmatpush1.bf16.msra.mxu0 %v9469_v62  ;;  %6758 = vmatprep.subr.bf16.mxu1 %v9474_v63  ;;  %v9546_v62 = vld [vmem:[%s10477_s7 + $0xd5c] ss:$120 sps:$4 sm:$0xff]  }
 0x21a   : > { %6840 = vmatprep.subr.bf16.mxu0 %v9477_v0  ;;  %v9549_v63 = vld [vmem:[%s10477_s7 + $0xd64] ss:$120 sps:$4 sm:$0xff]   ;;  %v9544_v0 = vld [vmem:[%s10477_s7 + $0xd58] ss:$120 sps:$4 sm:$0xff]  }
 0x21c   : > { %6759 = vmatpush1.bf16.msra.mxu1 %v9472_v1  ;;  %v9547_v1 = vld [vmem:[%s10477_s7 + $0xd60] ss:$120 sps:$4 sm:$0xff]  }
 0x21d   : > { %6841 = vmatpush1.bf16.msra.mxu0 %v9475_v2  ;;  %6760 = vmatprep.subr.bf16.mxu1 %v9480_v4  ;;  %v9552_v2 = vld [vmem:[%s10477_s7 + $0xe4c] ss:$120 sps:$4 sm:$0xff]  }
 0x21e   : > { %6842 = vmatprep.subr.bf16.mxu0 %v9483_v5  ;;  %v9555_v4 = vld [vmem:[%s10477_s7 + $0xe54] ss:$120 sps:$4 sm:$0xff]   ;;  %v9550_v5 = vld [vmem:[%s10477_s7 + $0xe48] ss:$120 sps:$4 sm:$0xff]  }
 0x220   : > { %6761 = vmatpush1.bf16.msra.mxu1 %v9478_v6  ;;  %v9553_v6 = vld [vmem:[%s10477_s7 + $0xe50] ss:$120 sps:$4 sm:$0xff]  }
 0x221   : > { %6843 = vmatpush1.bf16.msra.mxu0 %v9481_v7  ;;  %6762 = vmatprep.subr.bf16.mxu1 %v9486_v10  ;;  %v9558_v7 = vld [vmem:[%s10477_s7 + $0xf3c] ss:$120 sps:$4 sm:$0xff]  }
 0x222   : > { %6844 = vmatprep.subr.bf16.mxu0 %v9489_v11  ;;  %v9561_v10 = vld [vmem:[%s10477_s7 + $0xf44] ss:$120 sps:$4 sm:$0xff]   ;;  %v9556_v11 = vld [vmem:[%s10477_s7 + $0xf38] ss:$120 sps:$4 sm:$0xff]  }
 0x224   : > { %6763 = vmatpush1.bf16.msra.mxu1 %v9484_v8  ;;  %v9559_v8 = vld [vmem:[%s10477_s7 + $0xf40] ss:$120 sps:$4 sm:$0xff]  }
 0x225   : > { %6845 = vmatpush1.bf16.msra.mxu0 %v9487_v13  ;;  %6764 = vmatprep.subr.bf16.mxu1 %v9492_v17  ;;  %v9564_v13 = vld [vmem:[%s10477_s7 + $0x102c] ss:$120 sps:$4 sm:$0xff]  }
 0x226   : > { %6846 = vmatprep.subr.bf16.mxu0 %v9495_v12  ;;  %v9567_v17 = vld [vmem:[%s10477_s7 + $0x1034] ss:$120 sps:$4 sm:$0xff]   ;;  %v9562_v12 = vld [vmem:[%s10477_s7 + $0x1028] ss:$120 sps:$4 sm:$0xff]  }
 0x228   : > { %6765 = vmatpush1.bf16.msra.mxu1 %v9490_v15  ;;  %v9565_v15 = vld [vmem:[%s10477_s7 + $0x1030] ss:$120 sps:$4 sm:$0xff]  }
 0x229   : > { %6847 = vmatpush1.bf16.msra.mxu0 %v9493_v16  ;;  %6766 = vmatprep.subr.bf16.mxu1 %v9498_v18  ;;  %v9570_v16 = vld [vmem:[%s10477_s7 + $0x111c] ss:$120 sps:$4 sm:$0xff]  }
 0x22a   : > { %6848 = vmatprep.subr.bf16.mxu0 %v9501_v19  ;;  %v9573_v18 = vld [vmem:[%s10477_s7 + $0x1124] ss:$120 sps:$4 sm:$0xff]   ;;  %v9568_v19 = vld [vmem:[%s10477_s7 + $0x1118] ss:$120 sps:$4 sm:$0xff]  }
 0x22c   : > { %6767 = vmatpush1.bf16.msra.mxu1 %v9496_v20  ;;  %v9571_v20 = vld [vmem:[%s10477_s7 + $0x1120] ss:$120 sps:$4 sm:$0xff]  }
 0x22d   : > { %6849 = vmatpush1.bf16.msra.mxu0 %v9499_v21  ;;  %6768 = vmatprep.subr.bf16.mxu1 %v9504_v22  ;;  %v9576_v21 = vld [vmem:[%s10477_s7 + $0x120c] ss:$120 sps:$4 sm:$0xff]  }
 0x22e   : > { %6850 = vmatprep.subr.bf16.mxu0 %v9507_v23  ;;  %v9579_v22 = vld [vmem:[%s10477_s7 + $0x1214] ss:$120 sps:$4 sm:$0xff]   ;;  %v9574_v23 = vld [vmem:[%s10477_s7 + $0x1208] ss:$120 sps:$4 sm:$0xff]  }
 0x230   : > { %6769 = vmatpush1.bf16.msra.mxu1 %v9502_v24  ;;  %v9577_v24 = vld [vmem:[%s10477_s7 + $0x1210] ss:$120 sps:$4 sm:$0xff]  }
 0x231   : > { %6851 = vmatpush1.bf16.msra.mxu0 %v9505_v27  ;;  %6770 = vmatprep.subr.bf16.mxu1 %v9510_v28  ;;  %v9582_v27 = vld [vmem:[%s10477_s7 + $0x12fc] ss:$120 sps:$4 sm:$0xff]  }
 0x232   : > { %6852 = vmatprep.subr.bf16.mxu0 %v9513_v29  ;;  %v9585_v28 = vld [vmem:[%s10477_s7 + $0x1304] ss:$120 sps:$4 sm:$0xff]   ;;  %v9580_v29 = vld [vmem:[%s10477_s7 + $0x12f8] ss:$120 sps:$4 sm:$0xff]  }
 0x234   : > { %6771 = vmatpush1.bf16.msra.mxu1 %v9508_v32  ;;  %v11136_v32 = vsub.s32 6, %v10531_v45 }
 0x235   : > { %6853 = vmatpush1.bf16.msra.mxu0 %v9511_v33  ;;  %6772 = vmatprep.subr.bf16.mxu1 %v9516_v34  ;;  %v9583_v33 = vld [vmem:[%s10477_s7 + $0x1300] ss:$120 sps:$4 sm:$0xff]   ;;  %v11140_v34 = vld [vmem:[%s10483_s30 + $0x8] sm:$0xff] }
 0x236   : > { %6854 = vmatprep.subr.bf16.mxu0 %v9519_v35  ;;  %v11143_v35 = vsub.s32 7, %v10531_v45 }
 0x238   : > { %6773 = vmatpush1.bf16.msra.mxu1 %v9514_v36  ;;  %v9588_v36 = vld [vmem:[%s10477_s7 + $0x13ec] ss:$120 sps:$4 sm:$0xff]  }
 0x239   : > { %6855 = vmatpush1.bf16.msra.mxu0 %v9517_v37  ;;  %6774 = vmatprep.subr.bf16.mxu1 %v9522_v38  ;;  %v9591_v37 = vld [vmem:[%s10477_s7 + $0x13f4] ss:$120 sps:$4 sm:$0xff]   ;;  %v9586_v38 = vld [vmem:[%s10477_s7 + $0x13e8] ss:$120 sps:$4 sm:$0xff]  }
 0x23a   : > { %6856 = vmatprep.subr.bf16.mxu0 %v9525_v39  ;;  %v9589_v39 = vld [vmem:[%s10477_s7 + $0x13f0] ss:$120 sps:$4 sm:$0xff]  }
 0x23c   : > { %6775 = vmatpush1.bf16.msra.mxu1 %v9520_v40  ;;  %v10229_v40 = vld [vmem:[%s10483_s30] sm:$0xff] }
 0x23d   : > { %6857 = vmatpush1.bf16.msra.mxu0 %v9523_v41  ;;  %6776 = vmatprep.subr.bf16.mxu1 %v9528_v42  ;;  %v1228_v41 = vrot.slane %v10229_v40, %v11136_v32  ;;  %v1236_v42 = vrot.slane %v11140_v34, %v10801_v47  ;;  %v1232_v45 = vrot.slane %v10229_v40, %v11143_v35  ;;  %v9636_v40 = vld [vmem:[%s10477_s7 + $0x1b6c] ss:$120 sps:$4 sm:$0xff]  }
 0x23e   : > { %6858 = vmatprep.subr.bf16.mxu0 %v9531_v43  ;;  %v1240_v43 = vrot.slane %v11140_v34, %v10806_v50 }
 0x240   : > { %6777 = vmatpush1.bf16.msra.mxu1 %v9526_v44  ;;  %v9594_v44 = vld [vmem:[%s10477_s7 + $0x14dc] ss:$120 sps:$4 sm:$0xff]  }
 0x241   : > { %6859 = vmatpush1.bf16.msra.mxu0 %v9529_v46  ;;  %6778 = vmatprep.subr.bf16.mxu1 %v9534_v48  ;;  %v9597_v46 = vld [vmem:[%s10477_s7 + $0x14e4] ss:$120 sps:$4 sm:$0xff]  }
 0x242   : > { %6860 = vmatprep.subr.bf16.mxu0 %v9537_v49 }
 0x244   : > { %6779 = vmatpush1.bf16.msra.mxu1 %v9532_v51  ;;  %v9592_v51 = vld [vmem:[%s10477_s7 + $0x14d8] ss:$120 sps:$4 sm:$0xff]  }
 0x245   : > { %6861 = vmatpush1.bf16.msra.mxu0 %v9535_v53  ;;  %6780 = vmatprep.subr.bf16.mxu1 %v9540_v54  ;;  %v9595_v53 = vld [vmem:[%s10477_s7 + $0x14e0] ss:$120 sps:$4 sm:$0xff]  }
 0x246   : > { %6862 = vmatprep.subr.bf16.mxu0 %v9543_v56 }
 0x248   : > { %6781 = vmatpush1.bf16.msra.mxu1 %v9538_v59 }
 0x249   : > { %6863 = vmatpush1.bf16.msra.mxu0 %v9541_v60  ;;  %6782 = vmatprep.subr.bf16.mxu1 %v9546_v62 }
 0x24a   : > { %6864 = vmatprep.subr.bf16.mxu0 %v9549_v63 }
 0x24c   : > { %6783 = vmatpush1.bf16.msra.mxu1 %v9544_v0 }
 0x24d   : > { %6865 = vmatpush1.bf16.msra.mxu0 %v9547_v1  ;;  %6784 = vmatprep.subr.bf16.mxu1 %v9552_v2 }
 0x24e   : > { %6866 = vmatprep.subr.bf16.mxu0 %v9555_v4 }
 0x250   : > { %6785 = vmatpush1.bf16.msra.mxu1 %v9550_v5  ;;  %v9600_v5 = vld [vmem:[%s10477_s7 + $0x15cc] ss:$120 sps:$4 sm:$0xff]  }
 0x251   : > { %6867 = vmatpush1.bf16.msra.mxu0 %v9553_v6  ;;  %6795 = vmatprep.subr.bf16.mxu1 %v9558_v7  ;;  %v9603_v6 = vld [vmem:[%s10477_s7 + $0x15d4] ss:$120 sps:$4 sm:$0xff]  }
 0x252   : > { %6877 = vmatprep.subr.bf16.mxu0 %v9561_v10 }
 0x253   : > { %6787 = vmatmul.mubr.bf16.vlgmr.msra.gmra.mrb[16].mxu1 %v10566_v9 }
 0x254   : > { %6869 = vmatmul.mubr.bf16.vlgmr.msra.gmra.mrb[16].mxu0 %v10566_v9  ;;  %6796 = vmatpush1.bf16.msra.mxu1 %v9556_v11  ;;  %v9598_v11 = vld [vmem:[%s10477_s7 + $0x15c8] ss:$120 sps:$4 sm:$0xff]  }
 0x255   : > { %6878 = vmatpush1.bf16.msra.mxu0 %v9559_v8  ;;  %6797 = vmatprep.subr.bf16.mxu1 %v9564_v13  ;;  %v9601_v8 = vld [vmem:[%s10477_s7 + $0x15d0] ss:$120 sps:$4 sm:$0xff]   ;;  %v7465_v13 = vrot.slane %v7457_v3, %v10990_v55  ;;  %v9612_v3 = vld [vmem:[%s10477_s7 + $0x17ac] ss:$120 sps:$4 sm:$0xff]  }
 0x256   : > { %6879 = vmatprep.subr.bf16.mxu0 %v9567_v17  ;;  %6827 = vmatprep.mubr.bf16.mxu1 %v10551_v61 }
 0x257   : > { %6909 = vmatprep.mubr.bf16.mxu0 %v10551_v61 }
 0x258   : > { %6798 = vmatpush1.bf16.msra.mxu1 %v9562_v12  ;;  %v9606_v12 = vld [vmem:[%s10477_s7 + $0x16bc] ss:$120 sps:$4 sm:$0xff]  }
 0x259   : > { %6880 = vmatpush1.bf16.msra.mxu0 %v9565_v15  ;;  %6799 = vmatprep.subr.bf16.mxu1 %v9570_v16  ;;  %v9609_v15 = vld [vmem:[%s10477_s7 + $0x16c4] ss:$120 sps:$4 sm:$0xff]  }
 0x25a   : > { %6881 = vmatprep.subr.bf16.mxu0 %v9573_v18  ;;  %v9615_v18 = vld [vmem:[%s10477_s7 + $0x17b4] ss:$120 sps:$4 sm:$0xff]  }
 0x25c   : > { %6800 = vmatpush1.bf16.msra.mxu1 %v9568_v19  ;;  %v9610_v19 = vld [vmem:[%s10477_s7 + $0x17a8] ss:$120 sps:$4 sm:$0xff]  }
 0x25d   : > { %6882 = vmatpush1.bf16.msra.mxu0 %v9571_v20  ;;  %6801 = vmatprep.subr.bf16.mxu1 %v9576_v21  ;;  %v9613_v20 = vld [vmem:[%s10477_s7 + $0x17b0] ss:$120 sps:$4 sm:$0xff]   ;;  %v9618_v21 = vld [vmem:[%s10477_s7 + $0x189c] ss:$120 sps:$4 sm:$0xff]  }
 0x25e   : > { %6883 = vmatprep.subr.bf16.mxu0 %v9579_v22  ;;  %v9621_v22 = vld [vmem:[%s10477_s7 + $0x18a4] ss:$120 sps:$4 sm:$0xff]  }
 0x260   : > { %6802 = vmatpush1.bf16.msra.mxu1 %v9574_v23  ;;  %v9616_v23 = vld [vmem:[%s10477_s7 + $0x1898] ss:$120 sps:$4 sm:$0xff]  }
 0x261   : > { %6884 = vmatpush1.bf16.msra.mxu0 %v9577_v24  ;;  %6803 = vmatprep.subr.bf16.mxu1 %v9582_v27  ;;  %v9619_v24 = vld [vmem:[%s10477_s7 + $0x18a0] ss:$120 sps:$4 sm:$0xff]   ;;  %v9624_v27 = vld [vmem:[%s10477_s7 + $0x198c] ss:$120 sps:$4 sm:$0xff]  }
 0x262   : > { %6885 = vmatprep.subr.bf16.mxu0 %v9585_v28  ;;  %v9627_v28 = vld [vmem:[%s10477_s7 + $0x1994] ss:$120 sps:$4 sm:$0xff]  }
 0x264   : > { %6804 = vmatpush1.bf16.msra.mxu1 %v9580_v29  ;;  %v9622_v29 = vld [vmem:[%s10477_s7 + $0x1988] ss:$120 sps:$4 sm:$0xff]  }
 0x265   : > { %6886 = vmatpush1.bf16.msra.mxu0 %v9583_v33  ;;  %6805 = vmatprep.subr.bf16.mxu1 %v9588_v36  ;;  %v9625_v33 = vld [vmem:[%s10477_s7 + $0x1990] ss:$120 sps:$4 sm:$0xff]   ;;  %v9630_v36 = vld [vmem:[%s10477_s7 + $0x1a7c] ss:$120 sps:$4 sm:$0xff]  }
 0x266   : > { %6887 = vmatprep.subr.bf16.mxu0 %v9591_v37  ;;  %v6501_v48 = vpop.f32.mrb[8].mxu1  ;;  %v9633_v37 = vld [vmem:[%s10477_s7 + $0x1a84] ss:$120 sps:$4 sm:$0xff]  }
 0x267   : > { %v6583_v49 = vpop.f32.mrb[8].mxu0  ;;  %v8655_v54 = vadd.f32 %v6501_v48, %v1228_v41  ;;  %v6503_v59 = vpop.f32.mrb[9].mxu1  ;;  %v9639_v41 = vld [vmem:[%s10477_s7 + $0x1b74] ss:$120 sps:$4 sm:$0xff]   ;;  %v9643_v48 = vld [vmem:[%s10477_s7 + $0x1c60] ss:$120 sps:$4 sm:$0xff]  }
 0x268   : > { %v11160_v56 = vadd.f32 %v6583_v49, %v1236_v42  ;;  %v6585_v60 = vpop.f32.mrb[9].mxu0  ;;  %v8656_v62 = vadd.f32 %v6503_v59, %v1232_v45  ;;  %v6505_v0 = vpop.f32.mrb[10].mxu1  ;;  %6806 = vmatpush1.bf16.msra.mxu1 %v9586_v38  ;;  %v9628_v38 = vld [vmem:[%s10477_s7 + $0x1a78] ss:$120 sps:$4 sm:$0xff]   ;;  %v9634_v42 = vld [vmem:[%s10477_s7 + $0x1b68] ss:$120 sps:$4 sm:$0xff]  }
 0x269   : > { %v11162_v63 = vadd.f32 %v6585_v60, %v1240_v43  ;;  %v6587_v1 = vpop.f32.mrb[10].mxu0  ;;  %6888 = vmatpush1.bf16.msra.mxu0 %v9589_v39  ;;  %v6506_v2 = vpop.f32.mrb[11].mxu1  ;;  %6807 = vmatprep.subr.bf16.mxu1 %v9594_v44  ;;  %v9631_v39 = vld [vmem:[%s10477_s7 + $0x1a80] ss:$120 sps:$4 sm:$0xff]   ;;  %v9637_v45 = vld [vmem:[%s10477_s7 + $0x1b70] ss:$120 sps:$4 sm:$0xff]  }
 0x26a   : > { %v6588_v4 = vpop.f32.mrb[11].mxu0  ;;  %6889 = vmatprep.subr.bf16.mxu0 %v9597_v46  ;;  %v7458_v7 = vcombine.low %v8655_v54, %v8656_v62  ;;  %v9642_v43 = vld [vmem:[%s10477_s7 + $0x1c5c] ss:$120 sps:$4 sm:$0xff]   ;;  %v9640_v46 = vld [vmem:[%s10477_s7 + $0x1c58] ss:$120 sps:$4 sm:$0xff]  }
 0x26b   : > { %v7474_v10 = vcombine.low %v11160_v56, %v11162_v63  ;;  %v9645_v44 = vld [vmem:[%s10477_s7 + $0x1c64] ss:$120 sps:$4 sm:$0xff]   ;;  %v9649_v54 = vld [vmem:[%s10477_s7 + $0x1d50] ss:$120 sps:$4 sm:$0xff]   ;;  %v9657_v60 = vld [vmem:[%s10477_s7 + $0x54] ss:$120 sps:$4 sm:$0xff]  }
 0x26c   : > { %v7472_v17 = vrot.slane %v7458_v7, %v10990_v55  ;;  %6808 = vmatpush1.bf16.msra.mxu1 %v9592_v51  ;;  %v9648_v49 = vld [vmem:[%s10477_s7 + $0x1d4c] ss:$120 sps:$4 sm:$0xff]   ;;  %v9652_v62 = vld [vmem:[%s10477_s7 + $0x48] ss:$120 sps:$4 sm:$0xff]   ;;  %v9660_v1 = vld [vmem:[%s10477_s7 + $0x13c] ss:$120 sps:$4 sm:$0xff]  }
 0x26d   : > { %6890 = vmatpush1.bf16.msra.mxu0 %v9595_v53  ;;  %6809 = vmatprep.subr.bf16.mxu1 %v9600_v5  ;;  %v9651_v51 = vld [vmem:[%s10477_s7 + $0x1d54] ss:$120 sps:$4 sm:$0xff]   ;;  %v9646_v53 = vld [vmem:[%s10477_s7 + $0x1d48] ss:$120 sps:$4 sm:$0xff]   ;;  %v9663_v2 = vld [vmem:[%s10477_s7 + $0x144] ss:$120 sps:$4 sm:$0xff]  }
 0x26e   : > { %6891 = vmatprep.subr.bf16.mxu0 %v9603_v6  ;;  %v7473_v16 = vcombine.low %v7465_v13, %v7472_v17  ;;  %v9654_v59 = vld [vmem:[%s10477_s7 + $0x4c] ss:$120 sps:$4 sm:$0xff]   ;;  %v9655_v0 = vld [vmem:[%s10477_s7 + $0x50] ss:$120 sps:$4 sm:$0xff]   ;;  %v9661_v5 = vld [vmem:[%s10477_s7 + $0x140] ss:$120 sps:$4 sm:$0xff]  }
 0x26f   : > { %v9658_v4 = vld [vmem:[%s10477_s7 + $0x138] ss:$120 sps:$4 sm:$0xff]   ;;  %v9666_v6 = vld [vmem:[%s10477_s7 + $0x22c] ss:$120 sps:$4 sm:$0xff]   ;;  %v9672_v13 = vld [vmem:[%s10477_s7 + $0x31c] ss:$120 sps:$4 sm:$0xff]  }
 0x270   : > { %7576 = vst [vmem:[%s11009_s28 + $0x8] sm:$0xff] %v7473_v16  ;;  %6810 = vmatpush1.bf16.msra.mxu1 %v9598_v11  ;;  %v9669_v7 = vld [vmem:[%s10477_s7 + $0x234] ss:$120 sps:$4 sm:$0xff]   ;;  %v9664_v11 = vld [vmem:[%s10477_s7 + $0x228] ss:$120 sps:$4 sm:$0xff]  }
 0x271   : > { %6892 = vmatpush1.bf16.msra.mxu0 %v9601_v8  ;;  %6811 = vmatprep.subr.bf16.mxu1 %v9606_v12  ;;  %v9667_v8 = vld [vmem:[%s10477_s7 + $0x230] ss:$120 sps:$4 sm:$0xff]   ;;  %v9675_v17 = vld [vmem:[%s10477_s7 + $0x324] ss:$120 sps:$4 sm:$0xff]  }
 0x272   : > { %6893 = vmatprep.subr.bf16.mxu0 %v9609_v15  ;;  %v9670_v12 = vld [vmem:[%s10477_s7 + $0x318] ss:$120 sps:$4 sm:$0xff]   ;;  %v9678_v16 = vld [vmem:[%s10477_s7 + $0x40c] ss:$120 sps:$4 sm:$0xff]   ;;  %v9796_v56 = vld [vmem:[%s10477_s7 + $0x16c8] ss:$120 sps:$4 sm:$0xff]  }
 0x273   : > { %v9673_v15 = vld [vmem:[%s10477_s7 + $0x320] ss:$120 sps:$4 sm:$0xff]   ;;  %v9799_v63 = vld [vmem:[%s10477_s7 + $0x16d0] ss:$120 sps:$4 sm:$0xff]  }
 0x274   : > { %6812 = vmatpush1.bf16.msra.mxu1 %v9604_v52  ;;  %v9681_v52 = vld [vmem:[%s10477_s7 + $0x414] ss:$120 sps:$4 sm:$0xff]  }
 0x275   : > { %6894 = vmatpush1.bf16.msra.mxu0 %v9607_v57  ;;  %6813 = vmatprep.subr.bf16.mxu1 %v9612_v3  ;;  %v9676_v57 = vld [vmem:[%s10477_s7 + $0x408] ss:$120 sps:$4 sm:$0xff]  }
 0x276   : > { %6895 = vmatprep.subr.bf16.mxu0 %v9615_v18  ;;  %v9679_v3 = vld [vmem:[%s10477_s7 + $0x410] ss:$120 sps:$4 sm:$0xff]   ;;  %v9684_v18 = vld [vmem:[%s10477_s7 + $0x4fc] ss:$120 sps:$4 sm:$0xff]  }
 0x278   : > { %6814 = vmatpush1.bf16.msra.mxu1 %v9610_v19  ;;  %v9687_v19 = vld [vmem:[%s10477_s7 + $0x504] ss:$120 sps:$4 sm:$0xff]  }
 0x279   : > { %6896 = vmatpush1.bf16.msra.mxu0 %v9613_v20  ;;  %6815 = vmatprep.subr.bf16.mxu1 %v9618_v21  ;;  %v9682_v20 = vld [vmem:[%s10477_s7 + $0x4f8] ss:$120 sps:$4 sm:$0xff]  }
 0x27a   : > { %6897 = vmatprep.subr.bf16.mxu0 %v9621_v22  ;;  %v9685_v21 = vld [vmem:[%s10477_s7 + $0x500] ss:$120 sps:$4 sm:$0xff]   ;;  %v9690_v22 = vld [vmem:[%s10477_s7 + $0x5ec] ss:$120 sps:$4 sm:$0xff]  }
 0x27c   : > { %6816 = vmatpush1.bf16.msra.mxu1 %v9616_v23  ;;  %v9693_v23 = vld [vmem:[%s10477_s7 + $0x5f4] ss:$120 sps:$4 sm:$0xff]  }
 0x27d   : > { %6898 = vmatpush1.bf16.msra.mxu0 %v9619_v24  ;;  %6817 = vmatprep.subr.bf16.mxu1 %v9624_v27  ;;  %v9688_v24 = vld [vmem:[%s10477_s7 + $0x5e8] ss:$120 sps:$4 sm:$0xff]  }
 0x27e   : > { %6899 = vmatprep.subr.bf16.mxu0 %v9627_v28  ;;  %v9691_v27 = vld [vmem:[%s10477_s7 + $0x5f0] ss:$120 sps:$4 sm:$0xff]   ;;  %v9696_v28 = vld [vmem:[%s10477_s7 + $0x6dc] ss:$120 sps:$4 sm:$0xff]  }
 0x280   : > { %6818 = vmatpush1.bf16.msra.mxu1 %v9622_v29  ;;  %v9699_v29 = vld [vmem:[%s10477_s7 + $0x6e4] ss:$120 sps:$4 sm:$0xff]  }
 0x281   : > { %6900 = vmatpush1.bf16.msra.mxu0 %v9625_v33  ;;  %6819 = vmatprep.subr.bf16.mxu1 %v9630_v36  ;;  %v9694_v33 = vld [vmem:[%s10477_s7 + $0x6d8] ss:$120 sps:$4 sm:$0xff]  }
 0x282   : > { %6901 = vmatprep.subr.bf16.mxu0 %v9633_v37  ;;  %v9697_v36 = vld [vmem:[%s10477_s7 + $0x6e0] ss:$120 sps:$4 sm:$0xff]   ;;  %v9702_v37 = vld [vmem:[%s10477_s7 + $0x7cc] ss:$120 sps:$4 sm:$0xff]  }
 0x284   : > { %6820 = vmatpush1.bf16.msra.mxu1 %v9628_v38  ;;  %v9705_v38 = vld [vmem:[%s10477_s7 + $0x7d4] ss:$120 sps:$4 sm:$0xff]  }
 0x285   : > { %6902 = vmatpush1.bf16.msra.mxu0 %v9631_v39  ;;  %6821 = vmatprep.subr.bf16.mxu1 %v9636_v40  ;;  %v9700_v39 = vld [vmem:[%s10477_s7 + $0x7c8] ss:$120 sps:$4 sm:$0xff]  }
 0x286   : > { %6903 = vmatprep.subr.bf16.mxu0 %v9639_v41  ;;  %v9703_v40 = vld [vmem:[%s10477_s7 + $0x7d0] ss:$120 sps:$4 sm:$0xff]   ;;  %v9708_v41 = vld [vmem:[%s10477_s7 + $0x8bc] ss:$120 sps:$4 sm:$0xff]  }
 0x288   : > { %6822 = vmatpush1.bf16.msra.mxu1 %v9634_v42  ;;  %v9711_v42 = vld [vmem:[%s10477_s7 + $0x8c4] ss:$120 sps:$4 sm:$0xff]  }
 0x289   : > { %6904 = vmatpush1.bf16.msra.mxu0 %v9637_v45  ;;  %6823 = vmatprep.subr.bf16.mxu1 %v9642_v43  ;;  %v9706_v45 = vld [vmem:[%s10477_s7 + $0x8b8] ss:$120 sps:$4 sm:$0xff]  }
 0x28a   : > { %6905 = vmatprep.subr.bf16.mxu0 %v9645_v44  ;;  %v9709_v43 = vld [vmem:[%s10477_s7 + $0x8c0] ss:$120 sps:$4 sm:$0xff]   ;;  %v9714_v44 = vld [vmem:[%s10477_s7 + $0x9ac] ss:$120 sps:$4 sm:$0xff]  }
 0x28c   : > { %6824 = vmatpush1.bf16.msra.mxu1 %v9640_v46  ;;  %v9717_v46 = vld [vmem:[%s10477_s7 + $0x9b4] ss:$120 sps:$4 sm:$0xff]  }
 0x28d   : > { %6906 = vmatpush1.bf16.msra.mxu0 %v9643_v48  ;;  %6825 = vmatprep.subr.bf16.mxu1 %v9648_v49  ;;  %v9712_v48 = vld [vmem:[%s10477_s7 + $0x9a8] ss:$120 sps:$4 sm:$0xff]  }
 0x28e   : > { %6907 = vmatprep.subr.bf16.mxu0 %v9651_v51  ;;  %v9715_v49 = vld [vmem:[%s10477_s7 + $0x9b0] ss:$120 sps:$4 sm:$0xff]   ;;  %v9720_v51 = vld [vmem:[%s10477_s7 + $0xa9c] ss:$120 sps:$4 sm:$0xff]  }
 0x290   : > { %6826 = vmatpush1.bf16.msra.mxu1 %v9646_v53  ;;  %v9723_v53 = vld [vmem:[%s10477_s7 + $0xaa4] ss:$120 sps:$4 sm:$0xff]  }
 0x291   : > { %6908 = vmatpush1.bf16.msra.mxu0 %v9649_v54  ;;  %6918 = vmatprep.subr.bf16.mxu1 %v9654_v59  ;;  %v9718_v54 = vld [vmem:[%s10477_s7 + $0xa98] ss:$120 sps:$4 sm:$0xff]  }
 0x292   : > { %7000 = vmatprep.subr.bf16.mxu0 %v9657_v60  ;;  %v9721_v59 = vld [vmem:[%s10477_s7 + $0xaa0] ss:$120 sps:$4 sm:$0xff]   ;;  %v9726_v60 = vld [vmem:[%s10477_s7 + $0xb8c] ss:$120 sps:$4 sm:$0xff]  }
 0x293   : > { %6828 = vmatmul.mubr.bf16.vlgmr.msra.gmra.mrb[16].mxu1 %v10574_v14 }
 0x294   : > { %6910 = vmatmul.mubr.bf16.vlgmr.msra.gmra.mrb[16].mxu0 %v10574_v14  ;;  %6919 = vmatpush1.bf16.msra.mxu1 %v9652_v62  ;;  %v9729_v62 = vld [vmem:[%s10477_s7 + $0xb94] ss:$120 sps:$4 sm:$0xff]  }
 0x295   : > { %7001 = vmatpush1.bf16.msra.mxu0 %v9655_v0  ;;  %6920 = vmatprep.subr.bf16.mxu1 %v9660_v1  ;;  %v9724_v0 = vld [vmem:[%s10477_s7 + $0xb88] ss:$120 sps:$4 sm:$0xff]  }
 0x296   : > { %7002 = vmatprep.subr.bf16.mxu0 %v9663_v2  ;;  %6950 = vmatprep.mubr.bf16.mxu1 %v10545_v58  ;;  %v9727_v1 = vld [vmem:[%s10477_s7 + $0xb90] ss:$120 sps:$4 sm:$0xff]   ;;  %v9732_v2 = vld [vmem:[%s10477_s7 + $0xc7c] ss:$120 sps:$4 sm:$0xff]  }
 0x297   : > { %7032 = vmatprep.mubr.bf16.mxu0 %v10545_v58 }
 0x298   : > { %6921 = vmatpush1.bf16.msra.mxu1 %v9658_v4  ;;  %v9735_v4 = vld [vmem:[%s10477_s7 + $0xc84] ss:$120 sps:$4 sm:$0xff]  }
 0x299   : > { %7003 = vmatpush1.bf16.msra.mxu0 %v9661_v5  ;;  %6922 = vmatprep.subr.bf16.mxu1 %v9666_v6  ;;  %v9730_v5 = vld [vmem:[%s10477_s7 + $0xc78] ss:$120 sps:$4 sm:$0xff]  }
 0x29a   : > { %7004 = vmatprep.subr.bf16.mxu0 %v9669_v7  ;;  %v9733_v6 = vld [vmem:[%s10477_s7 + $0xc80] ss:$120 sps:$4 sm:$0xff]   ;;  %v9738_v7 = vld [vmem:[%s10477_s7 + $0xd6c] ss:$120 sps:$4 sm:$0xff]  }
 0x29c   : > { %6923 = vmatpush1.bf16.msra.mxu1 %v9664_v11  ;;  %v9741_v11 = vld [vmem:[%s10477_s7 + $0xd74] ss:$120 sps:$4 sm:$0xff]  }
 0x29d   : > { %7005 = vmatpush1.bf16.msra.mxu0 %v9667_v8  ;;  %6924 = vmatprep.subr.bf16.mxu1 %v9672_v13  ;;  %v9736_v8 = vld [vmem:[%s10477_s7 + $0xd68] ss:$120 sps:$4 sm:$0xff]  }
 0x29e   : > { %7006 = vmatprep.subr.bf16.mxu0 %v9675_v17  ;;  %v9739_v13 = vld [vmem:[%s10477_s7 + $0xd70] ss:$120 sps:$4 sm:$0xff]   ;;  %v9744_v17 = vld [vmem:[%s10477_s7 + $0xe5c] ss:$120 sps:$4 sm:$0xff]  }
 0x2a0   : > { %6925 = vmatpush1.bf16.msra.mxu1 %v9670_v12  ;;  %v9747_v12 = vld [vmem:[%s10477_s7 + $0xe64] ss:$120 sps:$4 sm:$0xff]  }
 0x2a1   : > { %7007 = vmatpush1.bf16.msra.mxu0 %v9673_v15  ;;  %6926 = vmatprep.subr.bf16.mxu1 %v9678_v16  ;;  %v9742_v15 = vld [vmem:[%s10477_s7 + $0xe58] ss:$120 sps:$4 sm:$0xff]  }
 0x2a2   : > { %7008 = vmatprep.subr.bf16.mxu0 %v9681_v52  ;;  %v9745_v16 = vld [vmem:[%s10477_s7 + $0xe60] ss:$120 sps:$4 sm:$0xff]   ;;  %v9750_v52 = vld [vmem:[%s10477_s7 + $0xf4c] ss:$120 sps:$4 sm:$0xff]  }
 0x2a4   : > { %6927 = vmatpush1.bf16.msra.mxu1 %v9676_v57  ;;  %v9753_v57 = vld [vmem:[%s10477_s7 + $0xf54] ss:$120 sps:$4 sm:$0xff]  }
 0x2a5   : > { %7009 = vmatpush1.bf16.msra.mxu0 %v9679_v3  ;;  %6928 = vmatprep.subr.bf16.mxu1 %v9684_v18  ;;  %v9748_v3 = vld [vmem:[%s10477_s7 + $0xf48] ss:$120 sps:$4 sm:$0xff]  }
 0x2a6   : > { %7010 = vmatprep.subr.bf16.mxu0 %v9687_v19  ;;  %v9751_v18 = vld [vmem:[%s10477_s7 + $0xf50] ss:$120 sps:$4 sm:$0xff]   ;;  %v9756_v19 = vld [vmem:[%s10477_s7 + $0x103c] ss:$120 sps:$4 sm:$0xff]  }
 0x2a8   : > { %6929 = vmatpush1.bf16.msra.mxu1 %v9682_v20  ;;  %v9759_v20 = vld [vmem:[%s10477_s7 + $0x1044] ss:$120 sps:$4 sm:$0xff]  }
 0x2a9   : > { %7011 = vmatpush1.bf16.msra.mxu0 %v9685_v21  ;;  %6930 = vmatprep.subr.bf16.mxu1 %v9690_v22  ;;  %v9754_v21 = vld [vmem:[%s10477_s7 + $0x1038] ss:$120 sps:$4 sm:$0xff]  }
 0x2aa   : > { %7012 = vmatprep.subr.bf16.mxu0 %v9693_v23  ;;  %v9757_v22 = vld [vmem:[%s10477_s7 + $0x1040] ss:$120 sps:$4 sm:$0xff]   ;;  %v9762_v23 = vld [vmem:[%s10477_s7 + $0x112c] ss:$120 sps:$4 sm:$0xff]  }
 0x2ac   : > { %6931 = vmatpush1.bf16.msra.mxu1 %v9688_v24  ;;  %v9765_v24 = vld [vmem:[%s10477_s7 + $0x1134] ss:$120 sps:$4 sm:$0xff]  }
 0x2ad   : > { %7013 = vmatpush1.bf16.msra.mxu0 %v9691_v27  ;;  %6932 = vmatprep.subr.bf16.mxu1 %v9696_v28  ;;  %v9760_v27 = vld [vmem:[%s10477_s7 + $0x1128] ss:$120 sps:$4 sm:$0xff]  }
 0x2ae   : > { %7014 = vmatprep.subr.bf16.mxu0 %v9699_v29  ;;  %v9763_v28 = vld [vmem:[%s10477_s7 + $0x1130] ss:$120 sps:$4 sm:$0xff]   ;;  %v9768_v29 = vld [vmem:[%s10477_s7 + $0x121c] ss:$120 sps:$4 sm:$0xff]  }
 0x2b0   : > { %6933 = vmatpush1.bf16.msra.mxu1 %v9694_v33  ;;  %v9771_v33 = vld [vmem:[%s10477_s7 + $0x1224] ss:$120 sps:$4 sm:$0xff]  }
 0x2b1   : > { %7015 = vmatpush1.bf16.msra.mxu0 %v9697_v36  ;;  %6934 = vmatprep.subr.bf16.mxu1 %v9702_v37  ;;  %v9766_v36 = vld [vmem:[%s10477_s7 + $0x1218] ss:$120 sps:$4 sm:$0xff]  }
 0x2b2   : > { %7016 = vmatprep.subr.bf16.mxu0 %v9705_v38  ;;  %v9769_v37 = vld [vmem:[%s10477_s7 + $0x1220] ss:$120 sps:$4 sm:$0xff]   ;;  %v9774_v38 = vld [vmem:[%s10477_s7 + $0x130c] ss:$120 sps:$4 sm:$0xff]  }
 0x2b4   : > { %6935 = vmatpush1.bf16.msra.mxu1 %v9700_v39  ;;  %v9777_v39 = vld [vmem:[%s10477_s7 + $0x1314] ss:$120 sps:$4 sm:$0xff]  }
 0x2b5   : > { %7017 = vmatpush1.bf16.msra.mxu0 %v9703_v40  ;;  %6936 = vmatprep.subr.bf16.mxu1 %v9708_v41  ;;  %v9772_v40 = vld [vmem:[%s10477_s7 + $0x1308] ss:$120 sps:$4 sm:$0xff]  }
 0x2b6   : > { %7018 = vmatprep.subr.bf16.mxu0 %v9711_v42  ;;  %v9775_v41 = vld [vmem:[%s10477_s7 + $0x1310] ss:$120 sps:$4 sm:$0xff]   ;;  %v9780_v42 = vld [vmem:[%s10477_s7 + $0x13fc] ss:$120 sps:$4 sm:$0xff]  }
 0x2b8   : > { %6937 = vmatpush1.bf16.msra.mxu1 %v9706_v45  ;;  %v9783_v45 = vld [vmem:[%s10477_s7 + $0x1404] ss:$120 sps:$4 sm:$0xff]  }
 0x2b9   : > { %7019 = vmatpush1.bf16.msra.mxu0 %v9709_v43  ;;  %6938 = vmatprep.subr.bf16.mxu1 %v9714_v44  ;;  %v1244_v43 = vrot.slane %v11140_v34, %v10956_v25  ;;  %v1252_v44 = vrot.slane %v11140_v34, %v10959_v26 }
 0x2ba   : > { %7020 = vmatprep.subr.bf16.mxu0 %v9717_v46  ;;  %v1248_v46 = vrot.slane %v11140_v34, %v10963_v30 }
 0x2bc   : > { %6939 = vmatpush1.bf16.msra.mxu1 %v9712_v48  ;;  %v1256_v48 = vrot.slane %v11140_v34, %v10966_v31 }
 0x2bd   : > { %7021 = vmatpush1.bf16.msra.mxu0 %v9715_v49  ;;  %6940 = vmatprep.subr.bf16.mxu1 %v9720_v51  ;;  %v9778_v49 = vld [vmem:[%s10477_s7 + $0x13f8] ss:$120 sps:$4 sm:$0xff]  }
 0x2be   : > { %7022 = vmatprep.subr.bf16.mxu0 %v9723_v53  ;;  %v9781_v51 = vld [vmem:[%s10477_s7 + $0x1400] ss:$120 sps:$4 sm:$0xff]   ;;  %v9786_v53 = vld [vmem:[%s10477_s7 + $0x14ec] ss:$120 sps:$4 sm:$0xff]  }
 0x2c0   : > { %6941 = vmatpush1.bf16.msra.mxu1 %v9718_v54  ;;  %v9789_v54 = vld [vmem:[%s10477_s7 + $0x14f4] ss:$120 sps:$4 sm:$0xff]  }
 0x2c1   : > { %7023 = vmatpush1.bf16.msra.mxu0 %v9721_v59  ;;  %6942 = vmatprep.subr.bf16.mxu1 %v9726_v60 }
 0x2c2   : > { %7024 = vmatprep.subr.bf16.mxu0 %v9729_v62 }
 0x2c4   : > { %6943 = vmatpush1.bf16.msra.mxu1 %v9724_v0 }
 0x2c5   : > { %7025 = vmatpush1.bf16.msra.mxu0 %v9727_v1  ;;  %6944 = vmatprep.subr.bf16.mxu1 %v9732_v2 }
 0x2c6   : > { %7026 = vmatprep.subr.bf16.mxu0 %v9735_v4 }
 0x2c8   : > { %6945 = vmatpush1.bf16.msra.mxu1 %v9730_v5 }
 0x2c9   : > { %7027 = vmatpush1.bf16.msra.mxu0 %v9733_v6  ;;  %6946 = vmatprep.subr.bf16.mxu1 %v9738_v7  ;;  %v9784_v7 = vld [vmem:[%s10477_s7 + $0x14e8] ss:$120 sps:$4 sm:$0xff]  }
 0x2ca   : > { %7028 = vmatprep.subr.bf16.mxu0 %v9741_v11  ;;  %v9787_v11 = vld [vmem:[%s10477_s7 + $0x14f0] ss:$120 sps:$4 sm:$0xff]  }
 0x2cc   : > { %6947 = vmatpush1.bf16.msra.mxu1 %v9736_v8 }
 0x2cd   : > { %7029 = vmatpush1.bf16.msra.mxu0 %v9739_v13  ;;  %6948 = vmatprep.subr.bf16.mxu1 %v9744_v17  ;;  %v9792_v17 = vld [vmem:[%s10477_s7 + $0x15dc] ss:$120 sps:$4 sm:$0xff]  }
 0x2ce   : > { %7030 = vmatprep.subr.bf16.mxu0 %v9747_v12  ;;  %v9795_v12 = vld [vmem:[%s10477_s7 + $0x15e4] ss:$120 sps:$4 sm:$0xff]  }
 0x2d0   : > { %6949 = vmatpush1.bf16.msra.mxu1 %v9742_v15 }
 0x2d1   : > { %7031 = vmatpush1.bf16.msra.mxu0 %v9745_v16  ;;  %6959 = vmatprep.subr.bf16.mxu1 %v9750_v52  ;;  %v7482_v52 = vrot.slane %v7474_v10, %v10990_v55  ;;  %v9804_v10 = vld [vmem:[%s10477_s7 + $0x17bc] ss:$120 sps:$4 sm:$0xff]  }
 0x2d2   : > { %7041 = vmatprep.subr.bf16.mxu0 %v9753_v57 }
 0x2d3   : > { %6951 = vmatmul.mubr.bf16.vlgmr.msra.gmra.mrb[20].mxu1 %v10566_v9 }
 0x2d4   : > { %7033 = vmatmul.mubr.bf16.vlgmr.msra.gmra.mrb[20].mxu0 %v10566_v9  ;;  %6960 = vmatpush1.bf16.msra.mxu1 %v9748_v3  ;;  %v9790_v3 = vld [vmem:[%s10477_s7 + $0x15d8] ss:$120 sps:$4 sm:$0xff]  }
 0x2d5   : > { %7042 = vmatpush1.bf16.msra.mxu0 %v9751_v18  ;;  %6961 = vmatprep.subr.bf16.mxu1 %v9756_v19  ;;  %v9793_v18 = vld [vmem:[%s10477_s7 + $0x15e0] ss:$120 sps:$4 sm:$0xff]   ;;  %v9798_v19 = vld [vmem:[%s10477_s7 + $0x16cc] ss:$120 sps:$4 sm:$0xff]  }
 0x2d6   : > { %7043 = vmatprep.subr.bf16.mxu0 %v9759_v20  ;;  %6991 = vmatprep.mubr.bf16.mxu1 %v10551_v61  ;;  %v9801_v20 = vld [vmem:[%s10477_s7 + $0x16d4] ss:$120 sps:$4 sm:$0xff]  }
 0x2d7   : > { %7073 = vmatprep.mubr.bf16.mxu0 %v10551_v61 }
 0x2d8   : > { %6962 = vmatpush1.bf16.msra.mxu1 %v9754_v21 }
 0x2d9   : > { %7044 = vmatpush1.bf16.msra.mxu0 %v9757_v22  ;;  %6963 = vmatprep.subr.bf16.mxu1 %v9762_v23  ;;  %v9807_v22 = vld [vmem:[%s10477_s7 + $0x17c4] ss:$120 sps:$4 sm:$0xff]   ;;  %v9802_v23 = vld [vmem:[%s10477_s7 + $0x17b8] ss:$120 sps:$4 sm:$0xff]  }
 0x2da   : > { %7045 = vmatprep.subr.bf16.mxu0 %v9765_v24  ;;  %v9805_v24 = vld [vmem:[%s10477_s7 + $0x17c0] ss:$120 sps:$4 sm:$0xff]  }
 0x2dc   : > { %6964 = vmatpush1.bf16.msra.mxu1 %v9760_v27  ;;  %v9810_v27 = vld [vmem:[%s10477_s7 + $0x18ac] ss:$120 sps:$4 sm:$0xff]  }
 0x2dd   : > { %7046 = vmatpush1.bf16.msra.mxu0 %v9763_v28  ;;  %6965 = vmatprep.subr.bf16.mxu1 %v9768_v29  ;;  %v9813_v28 = vld [vmem:[%s10477_s7 + $0x18b4] ss:$120 sps:$4 sm:$0xff]   ;;  %v9808_v29 = vld [vmem:[%s10477_s7 + $0x18a8] ss:$120 sps:$4 sm:$0xff]  }
 0x2de   : > { %7047 = vmatprep.subr.bf16.mxu0 %v9771_v33  ;;  %v9811_v33 = vld [vmem:[%s10477_s7 + $0x18b0] ss:$120 sps:$4 sm:$0xff]  }
 0x2e0   : > { %6966 = vmatpush1.bf16.msra.mxu1 %v9766_v36  ;;  %v9816_v36 = vld [vmem:[%s10477_s7 + $0x199c] ss:$120 sps:$4 sm:$0xff]  }
 0x2e1   : > { %7048 = vmatpush1.bf16.msra.mxu0 %v9769_v37  ;;  %6967 = vmatprep.subr.bf16.mxu1 %v9774_v38  ;;  %v9819_v37 = vld [vmem:[%s10477_s7 + $0x19a4] ss:$120 sps:$4 sm:$0xff]   ;;  %v9814_v38 = vld [vmem:[%s10477_s7 + $0x1998] ss:$120 sps:$4 sm:$0xff]  }
 0x2e2   : > { %7049 = vmatprep.subr.bf16.mxu0 %v9777_v39  ;;  %v9817_v39 = vld [vmem:[%s10477_s7 + $0x19a0] ss:$120 sps:$4 sm:$0xff]  }
 0x2e4   : > { %6968 = vmatpush1.bf16.msra.mxu1 %v9772_v40  ;;  %v9822_v40 = vld [vmem:[%s10477_s7 + $0x1a8c] ss:$120 sps:$4 sm:$0xff]  }
 0x2e5   : > { %7050 = vmatpush1.bf16.msra.mxu0 %v9775_v41  ;;  %6969 = vmatprep.subr.bf16.mxu1 %v9780_v42  ;;  %v9825_v41 = vld [vmem:[%s10477_s7 + $0x1a94] ss:$120 sps:$4 sm:$0xff]   ;;  %v9820_v42 = vld [vmem:[%s10477_s7 + $0x1a88] ss:$120 sps:$4 sm:$0xff]  }
 0x2e6   : > { %7051 = vmatprep.subr.bf16.mxu0 %v9783_v45  ;;  %v6665_v59 = vpop.f32.mrb[12].mxu1  ;;  %v9823_v45 = vld [vmem:[%s10477_s7 + $0x1a90] ss:$120 sps:$4 sm:$0xff]  }
 0x2e7   : > { %v6747_v60 = vpop.f32.mrb[12].mxu0  ;;  %v8659_v62 = vadd.f32 %v6665_v59, %v1244_v43  ;;  %v6667_v1 = vpop.f32.mrb[13].mxu1  ;;  %v9828_v43 = vld [vmem:[%s10477_s7 + $0x1b7c] ss:$120 sps:$4 sm:$0xff]  }
 0x2e8   : > { %v11314_v0 = vadd.f32 %v6747_v60, %v1252_v44  ;;  %v6749_v2 = vpop.f32.mrb[13].mxu0  ;;  %v8660_v4 = vadd.f32 %v6667_v1, %v1248_v46  ;;  %v6669_v34 = vpop.f32.mrb[14].mxu1  ;;  %6970 = vmatpush1.bf16.msra.mxu1 %v9778_v49  ;;  %v9831_v44 = vld [vmem:[%s10477_s7 + $0x1b84] ss:$120 sps:$4 sm:$0xff]   ;;  %v9826_v46 = vld [vmem:[%s10477_s7 + $0x1b78] ss:$120 sps:$4 sm:$0xff]  }
 0x2e9   : > { %v11316_v5 = vadd.f32 %v6749_v2, %v1256_v48  ;;  %v6751_v6 = vpop.f32.mrb[14].mxu0  ;;  %7052 = vmatpush1.bf16.msra.mxu0 %v9781_v51  ;;  %v6670_v8 = vpop.f32.mrb[15].mxu1  ;;  %6971 = vmatprep.subr.bf16.mxu1 %v9786_v53  ;;  %v9829_v48 = vld [vmem:[%s10477_s7 + $0x1b80] ss:$120 sps:$4 sm:$0xff]   ;;  %v9834_v49 = vld [vmem:[%s10477_s7 + $0x1c6c] ss:$120 sps:$4 sm:$0xff]  }
 0x2ea   : > { %v6752_v13 = vpop.f32.mrb[15].mxu0  ;;  %7053 = vmatprep.subr.bf16.mxu0 %v9789_v54  ;;  %v7475_v15 = vcombine.low %v8659_v62, %v8660_v4  ;;  %v9837_v51 = vld [vmem:[%s10477_s7 + $0x1c74] ss:$120 sps:$4 sm:$0xff]   ;;  %v9832_v53 = vld [vmem:[%s10477_s7 + $0x1c68] ss:$120 sps:$4 sm:$0xff]  }
 0x2eb   : > { %v7491_v16 = vcombine.low %v11314_v0, %v11316_v5  ;;  %v9835_v54 = vld [vmem:[%s10477_s7 + $0x1c70] ss:$120 sps:$4 sm:$0xff]   ;;  %v9840_v59 = vld [vmem:[%s10477_s7 + $0x1d5c] ss:$120 sps:$4 sm:$0xff]   ;;  %v9841_v1 = vld [vmem:[%s10477_s7 + $0x1d60] ss:$120 sps:$4 sm:$0xff]  }
 0x2ec   : > { %v7489_v57 = vrot.slane %v7475_v15, %v10990_v55  ;;  %6972 = vmatpush1.bf16.msra.mxu1 %v9784_v7  ;;  %v9843_v60 = vld [vmem:[%s10477_s7 + $0x1d64] ss:$120 sps:$4 sm:$0xff]   ;;  %v9838_v62 = vld [vmem:[%s10477_s7 + $0x1d58] ss:$120 sps:$4 sm:$0xff]   ;;  %v9850_v8 = vld [vmem:[%s10477_s7 + $0x148] ss:$120 sps:$4 sm:$0xff]  }
 0x2ed   : > { %7054 = vmatpush1.bf16.msra.mxu0 %v9787_v11  ;;  %6973 = vmatprep.subr.bf16.mxu1 %v9792_v17  ;;  %v9846_v2 = vld [vmem:[%s10477_s7 + $0x5c] ss:$120 sps:$4 sm:$0xff]   ;;  %v9844_v34 = vld [vmem:[%s10477_s7 + $0x58] ss:$120 sps:$4 sm:$0xff]   ;;  %v9852_v7 = vld [vmem:[%s10477_s7 + $0x14c] ss:$120 sps:$4 sm:$0xff]  }
 0x2ee   : > { %7055 = vmatprep.subr.bf16.mxu0 %v9795_v12  ;;  %v7490_v21 = vcombine.low %v7482_v52, %v7489_v57  ;;  %v9849_v4 = vld [vmem:[%s10477_s7 + $0x64] ss:$120 sps:$4 sm:$0xff]   ;;  %v9847_v6 = vld [vmem:[%s10477_s7 + $0x60] ss:$120 sps:$4 sm:$0xff]   ;;  %v9855_v11 = vld [vmem:[%s10477_s7 + $0x154] ss:$120 sps:$4 sm:$0xff]  }
 0x2ef   : > { %v9853_v13 = vld [vmem:[%s10477_s7 + $0x150] ss:$120 sps:$4 sm:$0xff]   ;;  %v9858_v17 = vld [vmem:[%s10477_s7 + $0x23c] ss:$120 sps:$4 sm:$0xff]   ;;  %v9859_v52 = vld [vmem:[%s10477_s7 + $0x240] ss:$120 sps:$4 sm:$0xff]  }
 0x2f0   : > { %7577 = vst [vmem:[%s11009_s28 + $0x10] sm:$0xff] %v7490_v21  ;;  %6974 = vmatpush1.bf16.msra.mxu1 %v9790_v3  ;;  %v9861_v12 = vld [vmem:[%s10477_s7 + $0x244] ss:$120 sps:$4 sm:$0xff]   ;;  %v9856_v15 = vld [vmem:[%s10477_s7 + $0x238] ss:$120 sps:$4 sm:$0xff]  }
 0x2f1   : > { %7056 = vmatpush1.bf16.msra.mxu0 %v9793_v18  ;;  %6975 = vmatprep.subr.bf16.mxu1 %v9798_v19  ;;  %v9864_v57 = vld [vmem:[%s10477_s7 + $0x32c] ss:$120 sps:$4 sm:$0xff]   ;;  %v9862_v18 = vld [vmem:[%s10477_s7 + $0x328] ss:$120 sps:$4 sm:$0xff]   ;;  %v9988_v0 = vld [vmem:[%s10477_s7 + $0x16d8] ss:$120 sps:$4 sm:$0xff]  }
 0x2f2   : > { %7057 = vmatprep.subr.bf16.mxu0 %v9801_v20  ;;  %v9867_v3 = vld [vmem:[%s10477_s7 + $0x334] ss:$120 sps:$4 sm:$0xff]   ;;  %v9865_v19 = vld [vmem:[%s10477_s7 + $0x330] ss:$120 sps:$4 sm:$0xff]   ;;  %v9873_v21 = vld [vmem:[%s10477_s7 + $0x424] ss:$120 sps:$4 sm:$0xff]  }
 0x2f3   : > { %v9870_v20 = vld [vmem:[%s10477_s7 + $0x41c] ss:$120 sps:$4 sm:$0xff]   ;;  %v9991_v5 = vld [vmem:[%s10477_s7 + $0x16e0] ss:$120 sps:$4 sm:$0xff]  }
 0x2f4   : > { %6976 = vmatpush1.bf16.msra.mxu1 %v9796_v56  ;;  %v9868_v56 = vld [vmem:[%s10477_s7 + $0x418] ss:$120 sps:$4 sm:$0xff]  }
 0x2f5   : > { %7058 = vmatpush1.bf16.msra.mxu0 %v9799_v63  ;;  %6977 = vmatprep.subr.bf16.mxu1 %v9804_v10  ;;  %v9871_v63 = vld [vmem:[%s10477_s7 + $0x420] ss:$120 sps:$4 sm:$0xff]   ;;  %v9876_v10 = vld [vmem:[%s10477_s7 + $0x50c] ss:$120 sps:$4 sm:$0xff]  }
 0x2f6   : > { %7059 = vmatprep.subr.bf16.mxu0 %v9807_v22  ;;  %v9879_v22 = vld [vmem:[%s10477_s7 + $0x514] ss:$120 sps:$4 sm:$0xff]  }
 0x2f8   : > { %6978 = vmatpush1.bf16.msra.mxu1 %v9802_v23  ;;  %v9874_v23 = vld [vmem:[%s10477_s7 + $0x508] ss:$120 sps:$4 sm:$0xff]  }
 0x2f9   : > { %7060 = vmatpush1.bf16.msra.mxu0 %v9805_v24  ;;  %6979 = vmatprep.subr.bf16.mxu1 %v9810_v27  ;;  %v9877_v24 = vld [vmem:[%s10477_s7 + $0x510] ss:$120 sps:$4 sm:$0xff]   ;;  %v9882_v27 = vld [vmem:[%s10477_s7 + $0x5fc] ss:$120 sps:$4 sm:$0xff]  }
 0x2fa   : > { %7061 = vmatprep.subr.bf16.mxu0 %v9813_v28  ;;  %v9885_v28 = vld [vmem:[%s10477_s7 + $0x604] ss:$120 sps:$4 sm:$0xff]  }
 0x2fc   : > { %6980 = vmatpush1.bf16.msra.mxu1 %v9808_v29  ;;  %v9880_v29 = vld [vmem:[%s10477_s7 + $0x5f8] ss:$120 sps:$4 sm:$0xff]  }
 0x2fd   : > { %7062 = vmatpush1.bf16.msra.mxu0 %v9811_v33  ;;  %6981 = vmatprep.subr.bf16.mxu1 %v9816_v36  ;;  %v9883_v33 = vld [vmem:[%s10477_s7 + $0x600] ss:$120 sps:$4 sm:$0xff]   ;;  %v9888_v36 = vld [vmem:[%s10477_s7 + $0x6ec] ss:$120 sps:$4 sm:$0xff]  }
 0x2fe   : > { %7063 = vmatprep.subr.bf16.mxu0 %v9819_v37  ;;  %v9891_v37 = vld [vmem:[%s10477_s7 + $0x6f4] ss:$120 sps:$4 sm:$0xff]  }
 0x300   : > { %6982 = vmatpush1.bf16.msra.mxu1 %v9814_v38  ;;  %v9886_v38 = vld [vmem:[%s10477_s7 + $0x6e8] ss:$120 sps:$4 sm:$0xff]  }
 0x301   : > { %7064 = vmatpush1.bf16.msra.mxu0 %v9817_v39  ;;  %6983 = vmatprep.subr.bf16.mxu1 %v9822_v40  ;;  %v9889_v39 = vld [vmem:[%s10477_s7 + $0x6f0] ss:$120 sps:$4 sm:$0xff]   ;;  %v9894_v40 = vld [vmem:[%s10477_s7 + $0x7dc] ss:$120 sps:$4 sm:$0xff]  }
 0x302   : > { %7065 = vmatprep.subr.bf16.mxu0 %v9825_v41  ;;  %v9897_v41 = vld [vmem:[%s10477_s7 + $0x7e4] ss:$120 sps:$4 sm:$0xff]  }
 0x304   : > { %6984 = vmatpush1.bf16.msra.mxu1 %v9820_v42  ;;  %v9892_v42 = vld [vmem:[%s10477_s7 + $0x7d8] ss:$120 sps:$4 sm:$0xff]  }
 0x305   : > { %7066 = vmatpush1.bf16.msra.mxu0 %v9823_v45  ;;  %6985 = vmatprep.subr.bf16.mxu1 %v9828_v43  ;;  %v9895_v45 = vld [vmem:[%s10477_s7 + $0x7e0] ss:$120 sps:$4 sm:$0xff]   ;;  %v9900_v43 = vld [vmem:[%s10477_s7 + $0x8cc] ss:$120 sps:$4 sm:$0xff]  }
 0x306   : > { %7067 = vmatprep.subr.bf16.mxu0 %v9831_v44  ;;  %v9903_v44 = vld [vmem:[%s10477_s7 + $0x8d4] ss:$120 sps:$4 sm:$0xff]  }
 0x308   : > { %6986 = vmatpush1.bf16.msra.mxu1 %v9826_v46  ;;  %v9898_v46 = vld [vmem:[%s10477_s7 + $0x8c8] ss:$120 sps:$4 sm:$0xff]  }
 0x309   : > { %7068 = vmatpush1.bf16.msra.mxu0 %v9829_v48  ;;  %6987 = vmatprep.subr.bf16.mxu1 %v9834_v49  ;;  %v9901_v48 = vld [vmem:[%s10477_s7 + $0x8d0] ss:$120 sps:$4 sm:$0xff]   ;;  %v9906_v49 = vld [vmem:[%s10477_s7 + $0x9bc] ss:$120 sps:$4 sm:$0xff]  }
 0x30a   : > { %7069 = vmatprep.subr.bf16.mxu0 %v9837_v51  ;;  %v9909_v51 = vld [vmem:[%s10477_s7 + $0x9c4] ss:$120 sps:$4 sm:$0xff]  }
 0x30c   : > { %6988 = vmatpush1.bf16.msra.mxu1 %v9832_v53  ;;  %v9904_v53 = vld [vmem:[%s10477_s7 + $0x9b8] ss:$120 sps:$4 sm:$0xff]  }
 0x30d   : > { %7070 = vmatpush1.bf16.msra.mxu0 %v9835_v54  ;;  %6989 = vmatprep.subr.bf16.mxu1 %v9840_v59  ;;  %v9907_v54 = vld [vmem:[%s10477_s7 + $0x9c0] ss:$120 sps:$4 sm:$0xff]   ;;  %v9912_v59 = vld [vmem:[%s10477_s7 + $0xaac] ss:$120 sps:$4 sm:$0xff]  }
 0x30e   : > { %7071 = vmatprep.subr.bf16.mxu0 %v9843_v60  ;;  %v9915_v60 = vld [vmem:[%s10477_s7 + $0xab4] ss:$120 sps:$4 sm:$0xff]  }
 0x310   : > { %6990 = vmatpush1.bf16.msra.mxu1 %v9838_v62  ;;  %v9910_v62 = vld [vmem:[%s10477_s7 + $0xaa8] ss:$120 sps:$4 sm:$0xff]  }
 0x311   : > { %7072 = vmatpush1.bf16.msra.mxu0 %v9841_v1  ;;  %7082 = vmatprep.subr.bf16.mxu1 %v9846_v2  ;;  %v9913_v1 = vld [vmem:[%s10477_s7 + $0xab0] ss:$120 sps:$4 sm:$0xff]   ;;  %v9918_v2 = vld [vmem:[%s10477_s7 + $0xb9c] ss:$120 sps:$4 sm:$0xff]  }
 0x312   : > { %7164 = vmatprep.subr.bf16.mxu0 %v9849_v4  ;;  %v9921_v4 = vld [vmem:[%s10477_s7 + $0xba4] ss:$120 sps:$4 sm:$0xff]  }
 0x313   : > { %6992 = vmatmul.mubr.bf16.vlgmr.msra.gmra.mrb[20].mxu1 %v10574_v14 }
 0x314   : > { %7074 = vmatmul.mubr.bf16.vlgmr.msra.gmra.mrb[20].mxu0 %v10574_v14  ;;  %7083 = vmatpush1.bf16.msra.mxu1 %v9844_v34  ;;  %v9916_v34 = vld [vmem:[%s10477_s7 + $0xb98] ss:$120 sps:$4 sm:$0xff]  }
 0x315   : > { %7165 = vmatpush1.bf16.msra.mxu0 %v9847_v6  ;;  %7084 = vmatprep.subr.bf16.mxu1 %v9852_v7  ;;  %v9919_v6 = vld [vmem:[%s10477_s7 + $0xba0] ss:$120 sps:$4 sm:$0xff]   ;;  %v9924_v7 = vld [vmem:[%s10477_s7 + $0xc8c] ss:$120 sps:$4 sm:$0xff]  }
 0x316   : > { %7166 = vmatprep.subr.bf16.mxu0 %v9855_v11  ;;  %7114 = vmatprep.mubr.bf16.mxu1 %v10545_v58  ;;  %v9927_v11 = vld [vmem:[%s10477_s7 + $0xc94] ss:$120 sps:$4 sm:$0xff]  }
 0x317   : > { %7196 = vmatprep.mubr.bf16.mxu0 %v10545_v58 }
 0x318   : > { %7085 = vmatpush1.bf16.msra.mxu1 %v9850_v8  ;;  %v9922_v8 = vld [vmem:[%s10477_s7 + $0xc88] ss:$120 sps:$4 sm:$0xff]  }
 0x319   : > { %7167 = vmatpush1.bf16.msra.mxu0 %v9853_v13  ;;  %7086 = vmatprep.subr.bf16.mxu1 %v9858_v17  ;;  %v9925_v13 = vld [vmem:[%s10477_s7 + $0xc90] ss:$120 sps:$4 sm:$0xff]   ;;  %v9930_v17 = vld [vmem:[%s10477_s7 + $0xd7c] ss:$120 sps:$4 sm:$0xff]  }
 0x31a   : > { %7168 = vmatprep.subr.bf16.mxu0 %v9861_v12  ;;  %v9933_v12 = vld [vmem:[%s10477_s7 + $0xd84] ss:$120 sps:$4 sm:$0xff]  }
 0x31c   : > { %7087 = vmatpush1.bf16.msra.mxu1 %v9856_v15  ;;  %v9928_v15 = vld [vmem:[%s10477_s7 + $0xd78] ss:$120 sps:$4 sm:$0xff]  }
 0x31d   : > { %7169 = vmatpush1.bf16.msra.mxu0 %v9859_v52  ;;  %7088 = vmatprep.subr.bf16.mxu1 %v9864_v57  ;;  %v9931_v52 = vld [vmem:[%s10477_s7 + $0xd80] ss:$120 sps:$4 sm:$0xff]   ;;  %v9936_v57 = vld [vmem:[%s10477_s7 + $0xe6c] ss:$120 sps:$4 sm:$0xff]  }
 0x31e   : > { %7170 = vmatprep.subr.bf16.mxu0 %v9867_v3  ;;  %v9939_v3 = vld [vmem:[%s10477_s7 + $0xe74] ss:$120 sps:$4 sm:$0xff]  }
 0x320   : > { %7089 = vmatpush1.bf16.msra.mxu1 %v9862_v18  ;;  %v9934_v18 = vld [vmem:[%s10477_s7 + $0xe68] ss:$120 sps:$4 sm:$0xff]  }
 0x321   : > { %7171 = vmatpush1.bf16.msra.mxu0 %v9865_v19  ;;  %7090 = vmatprep.subr.bf16.mxu1 %v9870_v20  ;;  %v9937_v19 = vld [vmem:[%s10477_s7 + $0xe70] ss:$120 sps:$4 sm:$0xff]   ;;  %v9942_v20 = vld [vmem:[%s10477_s7 + $0xf5c] ss:$120 sps:$4 sm:$0xff]  }
 0x322   : > { %7172 = vmatprep.subr.bf16.mxu0 %v9873_v21  ;;  %v9945_v21 = vld [vmem:[%s10477_s7 + $0xf64] ss:$120 sps:$4 sm:$0xff]  }
 0x324   : > { %7091 = vmatpush1.bf16.msra.mxu1 %v9868_v56  ;;  %v9940_v56 = vld [vmem:[%s10477_s7 + $0xf58] ss:$120 sps:$4 sm:$0xff]  }
 0x325   : > { %7173 = vmatpush1.bf16.msra.mxu0 %v9871_v63  ;;  %7092 = vmatprep.subr.bf16.mxu1 %v9876_v10  ;;  %v9943_v63 = vld [vmem:[%s10477_s7 + $0xf60] ss:$120 sps:$4 sm:$0xff]   ;;  %v9948_v10 = vld [vmem:[%s10477_s7 + $0x104c] ss:$120 sps:$4 sm:$0xff]  }
 0x326   : > { %7174 = vmatprep.subr.bf16.mxu0 %v9879_v22  ;;  %v9951_v22 = vld [vmem:[%s10477_s7 + $0x1054] ss:$120 sps:$4 sm:$0xff]  }
 0x328   : > { %7093 = vmatpush1.bf16.msra.mxu1 %v9874_v23  ;;  %v9946_v23 = vld [vmem:[%s10477_s7 + $0x1048] ss:$120 sps:$4 sm:$0xff]  }
 0x329   : > { %7175 = vmatpush1.bf16.msra.mxu0 %v9877_v24  ;;  %7094 = vmatprep.subr.bf16.mxu1 %v9882_v27  ;;  %v9949_v24 = vld [vmem:[%s10477_s7 + $0x1050] ss:$120 sps:$4 sm:$0xff]   ;;  %v9954_v27 = vld [vmem:[%s10477_s7 + $0x113c] ss:$120 sps:$4 sm:$0xff]  }
 0x32a   : > { %7176 = vmatprep.subr.bf16.mxu0 %v9885_v28  ;;  %v9957_v28 = vld [vmem:[%s10477_s7 + $0x1144] ss:$120 sps:$4 sm:$0xff]  }
 0x32c   : > { %7095 = vmatpush1.bf16.msra.mxu1 %v9880_v29  ;;  %v9952_v29 = vld [vmem:[%s10477_s7 + $0x1138] ss:$120 sps:$4 sm:$0xff]  }
 0x32d   : > { %7177 = vmatpush1.bf16.msra.mxu0 %v9883_v33  ;;  %7096 = vmatprep.subr.bf16.mxu1 %v9888_v36  ;;  %v9955_v33 = vld [vmem:[%s10477_s7 + $0x1140] ss:$120 sps:$4 sm:$0xff]   ;;  %v9960_v36 = vld [vmem:[%s10477_s7 + $0x122c] ss:$120 sps:$4 sm:$0xff]  }
 0x32e   : > { %7178 = vmatprep.subr.bf16.mxu0 %v9891_v37  ;;  %v9963_v37 = vld [vmem:[%s10477_s7 + $0x1234] ss:$120 sps:$4 sm:$0xff]  }
 0x330   : > { %7097 = vmatpush1.bf16.msra.mxu1 %v9886_v38  ;;  %v9958_v38 = vld [vmem:[%s10477_s7 + $0x1228] ss:$120 sps:$4 sm:$0xff]  }
 0x331   : > { %7179 = vmatpush1.bf16.msra.mxu0 %v9889_v39  ;;  %7098 = vmatprep.subr.bf16.mxu1 %v9894_v40  ;;  %v9961_v39 = vld [vmem:[%s10477_s7 + $0x1230] ss:$120 sps:$4 sm:$0xff]   ;;  %v9966_v40 = vld [vmem:[%s10477_s7 + $0x131c] ss:$120 sps:$4 sm:$0xff]  }
 0x332   : > { %7180 = vmatprep.subr.bf16.mxu0 %v9897_v41  ;;  %v9969_v41 = vld [vmem:[%s10477_s7 + $0x1324] ss:$120 sps:$4 sm:$0xff]  }
 0x334   : > { %7099 = vmatpush1.bf16.msra.mxu1 %v9892_v42  ;;  %v9964_v42 = vld [vmem:[%s10477_s7 + $0x1318] ss:$120 sps:$4 sm:$0xff]  }
 0x335   : > { %7181 = vmatpush1.bf16.msra.mxu0 %v9895_v45  ;;  %7100 = vmatprep.subr.bf16.mxu1 %v9900_v43  ;;  %v9967_v45 = vld [vmem:[%s10477_s7 + $0x1320] ss:$120 sps:$4 sm:$0xff]   ;;  %v11457_v43 = vld [vmem:[%s10483_s30 + $0x10] sm:$0xff] }
 0x336   : > { %7182 = vmatprep.subr.bf16.mxu0 %v9903_v44  ;;  %v9972_v44 = vld [vmem:[%s10477_s7 + $0x140c] ss:$120 sps:$4 sm:$0xff]  }
 0x338   : > { %7101 = vmatpush1.bf16.msra.mxu1 %v9898_v46  ;;  %v9975_v46 = vld [vmem:[%s10477_s7 + $0x1414] ss:$120 sps:$4 sm:$0xff]  }
 0x339   : > { %7183 = vmatpush1.bf16.msra.mxu0 %v9901_v48  ;;  %7102 = vmatprep.subr.bf16.mxu1 %v9906_v49  ;;  %v10230_v48 = vld [vmem:[%s10483_s30 + $0x8] sm:$0xff] }
 0x33a   : > { %7184 = vmatprep.subr.bf16.mxu0 %v9909_v51  ;;  %v1260_v49 = vrot.slane %v10230_v48, %v11136_v32  ;;  %v1268_v51 = vrot.slane %v11457_v43, %v10801_v47 }
 0x33c   : > { %7103 = vmatpush1.bf16.msra.mxu1 %v9904_v53  ;;  %v1264_v53 = vrot.slane %v10230_v48, %v11143_v35  ;;  %v10012_v48 = vld [vmem:[%s10477_s7 + $0x1a98] ss:$120 sps:$4 sm:$0xff]  }
 0x33d   : > { %7185 = vmatpush1.bf16.msra.mxu0 %v9907_v54  ;;  %7104 = vmatprep.subr.bf16.mxu1 %v9912_v59  ;;  %v1272_v54 = vrot.slane %v11457_v43, %v10806_v50  ;;  %v9970_v59 = vld [vmem:[%s10477_s7 + $0x1408] ss:$120 sps:$4 sm:$0xff]  }
 0x33e   : > { %7186 = vmatprep.subr.bf16.mxu0 %v9915_v60  ;;  %v9973_v60 = vld [vmem:[%s10477_s7 + $0x1410] ss:$120 sps:$4 sm:$0xff]  }
 0x340   : > { %7105 = vmatpush1.bf16.msra.mxu1 %v9910_v62  ;;  %v9978_v62 = vld [vmem:[%s10477_s7 + $0x14fc] ss:$120 sps:$4 sm:$0xff]  }
 0x341   : > { %7187 = vmatpush1.bf16.msra.mxu0 %v9913_v1  ;;  %7106 = vmatprep.subr.bf16.mxu1 %v9918_v2  ;;  %v9981_v1 = vld [vmem:[%s10477_s7 + $0x1504] ss:$120 sps:$4 sm:$0xff]  }
 0x342   : > { %7188 = vmatprep.subr.bf16.mxu0 %v9921_v4 }
 0x344   : > { %7107 = vmatpush1.bf16.msra.mxu1 %v9916_v34 }
 0x345   : > { %7189 = vmatpush1.bf16.msra.mxu0 %v9919_v6  ;;  %7108 = vmatprep.subr.bf16.mxu1 %v9924_v7 }
 0x346   : > { %7190 = vmatprep.subr.bf16.mxu0 %v9927_v11 }
 0x348   : > { %7109 = vmatpush1.bf16.msra.mxu1 %v9922_v8 }
 0x349   : > { %7191 = vmatpush1.bf16.msra.mxu0 %v9925_v13  ;;  %7110 = vmatprep.subr.bf16.mxu1 %v9930_v17 }
 0x34a   : > { %7192 = vmatprep.subr.bf16.mxu0 %v9933_v12 }
 0x34c   : > { %7111 = vmatpush1.bf16.msra.mxu1 %v9928_v15  ;;  %v9976_v15 = vld [vmem:[%s10477_s7 + $0x14f8] ss:$120 sps:$4 sm:$0xff]  }
 0x34d   : > { %7193 = vmatpush1.bf16.msra.mxu0 %v9931_v52  ;;  %7112 = vmatprep.subr.bf16.mxu1 %v9936_v57  ;;  %v9979_v52 = vld [vmem:[%s10477_s7 + $0x1500] ss:$120 sps:$4 sm:$0xff]  }
 0x34e   : > { %7194 = vmatprep.subr.bf16.mxu0 %v9939_v3 }
 0x350   : > { %7113 = vmatpush1.bf16.msra.mxu1 %v9934_v18  ;;  %v9984_v18 = vld [vmem:[%s10477_s7 + $0x15ec] ss:$120 sps:$4 sm:$0xff]  }
 0x351   : > { %7195 = vmatpush1.bf16.msra.mxu0 %v9937_v19  ;;  %7123 = vmatprep.subr.bf16.mxu1 %v9942_v20  ;;  %v9987_v19 = vld [vmem:[%s10477_s7 + $0x15f4] ss:$120 sps:$4 sm:$0xff]  }
 0x352   : > { %7205 = vmatprep.subr.bf16.mxu0 %v9945_v21 }
 0x353   : > { %7115 = vmatmul.mubr.bf16.vlgmr.msra.gmra.mrb[24].mxu1 %v10566_v9 }
 0x354   : > { %7197 = vmatmul.mubr.bf16.vlgmr.msra.gmra.mrb[24].mxu0 %v10566_v9  ;;  %7124 = vmatpush1.bf16.msra.mxu1 %v9940_v56  ;;  %v7499_v56 = vrot.slane %v7491_v16, %v10990_v55  ;;  %v9996_v16 = vld [vmem:[%s10477_s7 + $0x17cc] ss:$120 sps:$4 sm:$0xff]  }
 0x355   : > { %7206 = vmatpush1.bf16.msra.mxu0 %v9943_v63  ;;  %7125 = vmatprep.subr.bf16.mxu1 %v9948_v10  ;;  %v9982_v10 = vld [vmem:[%s10477_s7 + $0x15e8] ss:$120 sps:$4 sm:$0xff]  }
 0x356   : > { %7207 = vmatprep.subr.bf16.mxu0 %v9951_v22  ;;  %7155 = vmatprep.mubr.bf16.mxu1 %v10551_v61  ;;  %v9985_v22 = vld [vmem:[%s10477_s7 + $0x15f0] ss:$120 sps:$4 sm:$0xff]  }
 0x357   : > { %7237 = vmatprep.mubr.bf16.mxu0 %v10551_v61 }
 0x358   : > { %7126 = vmatpush1.bf16.msra.mxu1 %v9946_v23  ;;  %v9990_v23 = vld [vmem:[%s10477_s7 + $0x16dc] ss:$120 sps:$4 sm:$0xff]  }
 0x359   : > { %7208 = vmatpush1.bf16.msra.mxu0 %v9949_v24  ;;  %7127 = vmatprep.subr.bf16.mxu1 %v9954_v27  ;;  %v9993_v24 = vld [vmem:[%s10477_s7 + $0x16e4] ss:$120 sps:$4 sm:$0xff]  }
 0x35a   : > { %7209 = vmatprep.subr.bf16.mxu0 %v9957_v28  ;;  %v9999_v28 = vld [vmem:[%s10477_s7 + $0x17d4] ss:$120 sps:$4 sm:$0xff]  }
 0x35c   : > { %7128 = vmatpush1.bf16.msra.mxu1 %v9952_v29  ;;  %v9994_v29 = vld [vmem:[%s10477_s7 + $0x17c8] ss:$120 sps:$4 sm:$0xff]  }
 0x35d   : > { %7210 = vmatpush1.bf16.msra.mxu0 %v9955_v33  ;;  %7129 = vmatprep.subr.bf16.mxu1 %v9960_v36  ;;  %v9997_v33 = vld [vmem:[%s10477_s7 + $0x17d0] ss:$120 sps:$4 sm:$0xff]   ;;  %v10002_v36 = vld [vmem:[%s10477_s7 + $0x18bc] ss:$120 sps:$4 sm:$0xff]  }
 0x35e   : > { %7211 = vmatprep.subr.bf16.mxu0 %v9963_v37  ;;  %v10005_v37 = vld [vmem:[%s10477_s7 + $0x18c4] ss:$120 sps:$4 sm:$0xff]  }
 0x360   : > { %7130 = vmatpush1.bf16.msra.mxu1 %v9958_v38  ;;  %v10000_v38 = vld [vmem:[%s10477_s7 + $0x18b8] ss:$120 sps:$4 sm:$0xff]  }
 0x361   : > { %7212 = vmatpush1.bf16.msra.mxu0 %v9961_v39  ;;  %7131 = vmatprep.subr.bf16.mxu1 %v9966_v40  ;;  %v10003_v39 = vld [vmem:[%s10477_s7 + $0x18c0] ss:$120 sps:$4 sm:$0xff]   ;;  %v10008_v40 = vld [vmem:[%s10477_s7 + $0x19ac] ss:$120 sps:$4 sm:$0xff]  }
 0x362   : > { %7213 = vmatprep.subr.bf16.mxu0 %v9969_v41  ;;  %v10011_v41 = vld [vmem:[%s10477_s7 + $0x19b4] ss:$120 sps:$4 sm:$0xff]  }
 0x364   : > { %7132 = vmatpush1.bf16.msra.mxu1 %v9964_v42  ;;  %v10006_v42 = vld [vmem:[%s10477_s7 + $0x19a8] ss:$120 sps:$4 sm:$0xff]  }
 0x365   : > { %7214 = vmatpush1.bf16.msra.mxu0 %v9967_v45  ;;  %7133 = vmatprep.subr.bf16.mxu1 %v9972_v44  ;;  %v10009_v45 = vld [vmem:[%s10477_s7 + $0x19b0] ss:$120 sps:$4 sm:$0xff]   ;;  %v10014_v44 = vld [vmem:[%s10477_s7 + $0x1a9c] ss:$120 sps:$4 sm:$0xff]  }
 0x366   : > { %7215 = vmatprep.subr.bf16.mxu0 %v9975_v46  ;;  %v6829_v2 = vpop.f32.mrb[16].mxu1  ;;  %v10017_v46 = vld [vmem:[%s10477_s7 + $0x1aa4] ss:$120 sps:$4 sm:$0xff]  }
 0x367   : > { %v6911_v4 = vpop.f32.mrb[16].mxu0  ;;  %v8663_v34 = vadd.f32 %v6829_v2, %v1260_v49  ;;  %v6831_v7 = vpop.f32.mrb[17].mxu1  ;;  %v10015_v49 = vld [vmem:[%s10477_s7 + $0x1aa0] ss:$120 sps:$4 sm:$0xff]  }
 0x368   : > { %v11472_v6 = vadd.f32 %v6911_v4, %v1268_v51  ;;  %v6913_v11 = vpop.f32.mrb[17].mxu0  ;;  %v8664_v8 = vadd.f32 %v6831_v7, %v1264_v53  ;;  %v6833_v17 = vpop.f32.mrb[18].mxu1  ;;  %7134 = vmatpush1.bf16.msra.mxu1 %v9970_v59  ;;  %v10020_v51 = vld [vmem:[%s10477_s7 + $0x1b8c] ss:$120 sps:$4 sm:$0xff]   ;;  %v10021_v59 = vld [vmem:[%s10477_s7 + $0x1b90] ss:$120 sps:$4 sm:$0xff]  }
 0x369   : > { %v11474_v13 = vadd.f32 %v6913_v11, %v1272_v54  ;;  %v6915_v12 = vpop.f32.mrb[18].mxu0  ;;  %7216 = vmatpush1.bf16.msra.mxu0 %v9973_v60  ;;  %v6834_v57 = vpop.f32.mrb[19].mxu1  ;;  %7135 = vmatprep.subr.bf16.mxu1 %v9978_v62  ;;  %v10023_v53 = vld [vmem:[%s10477_s7 + $0x1b94] ss:$120 sps:$4 sm:$0xff]   ;;  %v10018_v54 = vld [vmem:[%s10477_s7 + $0x1b88] ss:$120 sps:$4 sm:$0xff]  }
 0x36a   : > { %v6916_v3 = vpop.f32.mrb[19].mxu0  ;;  %7217 = vmatprep.subr.bf16.mxu0 %v9981_v1  ;;  %v7492_v20 = vcombine.low %v8663_v34, %v8664_v8  ;;  %v10026_v60 = vld [vmem:[%s10477_s7 + $0x1c7c] ss:$120 sps:$4 sm:$0xff]   ;;  %v10024_v1 = vld [vmem:[%s10477_s7 + $0x1c78] ss:$120 sps:$4 sm:$0xff]  }
 0x36b   : > { %v7508_v21 = vcombine.low %v11472_v6, %v11474_v13  ;;  %v10029_v62 = vld [vmem:[%s10477_s7 + $0x1c84] ss:$120 sps:$4 sm:$0xff]   ;;  %v10027_v2 = vld [vmem:[%s10477_s7 + $0x1c80] ss:$120 sps:$4 sm:$0xff]   ;;  %v10035_v34 = vld [vmem:[%s10477_s7 + $0x1d74] ss:$120 sps:$4 sm:$0xff]  }
 0x36c   : > { %v7506_v63 = vrot.slane %v7492_v20, %v10990_v55  ;;  %7136 = vmatpush1.bf16.msra.mxu1 %v9976_v15  ;;  %v10032_v4 = vld [vmem:[%s10477_s7 + $0x1d6c] ss:$120 sps:$4 sm:$0xff]   ;;  %v10030_v7 = vld [vmem:[%s10477_s7 + $0x1d68] ss:$120 sps:$4 sm:$0xff]   ;;  %v10042_v3 = vld [vmem:[%s10477_s7 + $0x158] ss:$120 sps:$4 sm:$0xff]  }
 0x36d   : > { %7218 = vmatpush1.bf16.msra.mxu0 %v9979_v52  ;;  %7137 = vmatprep.subr.bf16.mxu1 %v9984_v18  ;;  %v10033_v11 = vld [vmem:[%s10477_s7 + $0x1d70] ss:$120 sps:$4 sm:$0xff]   ;;  %v10038_v8 = vld [vmem:[%s10477_s7 + $0x6c] ss:$120 sps:$4 sm:$0xff]   ;;  %v10044_v52 = vld [vmem:[%s10477_s7 + $0x15c] ss:$120 sps:$4 sm:$0xff]  }
 0x36e   : > { %7219 = vmatprep.subr.bf16.mxu0 %v9987_v19  ;;  %v7507_v27 = vcombine.low %v7499_v56, %v7506_v63  ;;  %v10041_v17 = vld [vmem:[%s10477_s7 + $0x74] ss:$120 sps:$4 sm:$0xff]   ;;  %v10036_v12 = vld [vmem:[%s10477_s7 + $0x68] ss:$120 sps:$4 sm:$0xff]   ;;  %v10047_v57 = vld [vmem:[%s10477_s7 + $0x164] ss:$120 sps:$4 sm:$0xff]  }
 0x36f   : > { %v10039_v15 = vld [vmem:[%s10477_s7 + $0x70] ss:$120 sps:$4 sm:$0xff]   ;;  %v10045_v18 = vld [vmem:[%s10477_s7 + $0x160] ss:$120 sps:$4 sm:$0xff]   ;;  %v10050_v19 = vld [vmem:[%s10477_s7 + $0x24c] ss:$120 sps:$4 sm:$0xff]  }
 0x370   : > { %7578 = vst [vmem:[%s11009_s28 + $0x18] sm:$0xff] %v7507_v27  ;;  %7138 = vmatpush1.bf16.msra.mxu1 %v9982_v10  ;;  %v10053_v20 = vld [vmem:[%s10477_s7 + $0x254] ss:$120 sps:$4 sm:$0xff]   ;;  %v10048_v56 = vld [vmem:[%s10477_s7 + $0x248] ss:$120 sps:$4 sm:$0xff]  }
 0x371   : > { %7220 = vmatpush1.bf16.msra.mxu0 %v9985_v22  ;;  %7139 = vmatprep.subr.bf16.mxu1 %v9990_v23  ;;  %v10051_v63 = vld [vmem:[%s10477_s7 + $0x250] ss:$120 sps:$4 sm:$0xff]   ;;  %v10056_v10 = vld [vmem:[%s10477_s7 + $0x33c] ss:$120 sps:$4 sm:$0xff]  }
 0x372   : > { %7221 = vmatprep.subr.bf16.mxu0 %v9993_v24  ;;  %v10059_v22 = vld [vmem:[%s10477_s7 + $0x344] ss:$120 sps:$4 sm:$0xff]   ;;  %v10054_v23 = vld [vmem:[%s10477_s7 + $0x338] ss:$120 sps:$4 sm:$0xff]   ;;  %v10065_v27 = vld [vmem:[%s10477_s7 + $0x434] ss:$120 sps:$4 sm:$0xff]  }
 0x373   : > { %v10057_v24 = vld [vmem:[%s10477_s7 + $0x340] ss:$120 sps:$4 sm:$0xff]   ;;  %v10183_v13 = vld [vmem:[%s10477_s7 + $0x16f0] ss:$120 sps:$4 sm:$0xff]  }
 0x374   : > { %7140 = vmatpush1.bf16.msra.mxu1 %v9988_v0  ;;  %v10060_v0 = vld [vmem:[%s10477_s7 + $0x428] ss:$120 sps:$4 sm:$0xff]  }
 0x375   : > { %7222 = vmatpush1.bf16.msra.mxu0 %v9991_v5  ;;  %7141 = vmatprep.subr.bf16.mxu1 %v9996_v16  ;;  %v10063_v5 = vld [vmem:[%s10477_s7 + $0x430] ss:$120 sps:$4 sm:$0xff]   ;;  %v10068_v16 = vld [vmem:[%s10477_s7 + $0x51c] ss:$120 sps:$4 sm:$0xff]  }
 0x376   : > { %7223 = vmatprep.subr.bf16.mxu0 %v9999_v28  ;;  %v10071_v28 = vld [vmem:[%s10477_s7 + $0x524] ss:$120 sps:$4 sm:$0xff]   ;;  %v10180_v6 = vld [vmem:[%s10477_s7 + $0x16e8] ss:$120 sps:$4 sm:$0xff]  }
 0x378   : > { %7142 = vmatpush1.bf16.msra.mxu1 %v9994_v29  ;;  %v10066_v29 = vld [vmem:[%s10477_s7 + $0x518] ss:$120 sps:$4 sm:$0xff]  }
 0x379   : > { %7224 = vmatpush1.bf16.msra.mxu0 %v9997_v33  ;;  %7143 = vmatprep.subr.bf16.mxu1 %v10002_v36  ;;  %v10069_v33 = vld [vmem:[%s10477_s7 + $0x520] ss:$120 sps:$4 sm:$0xff]   ;;  %v10074_v36 = vld [vmem:[%s10477_s7 + $0x60c] ss:$120 sps:$4 sm:$0xff]  }
 0x37a   : > { %7225 = vmatprep.subr.bf16.mxu0 %v10005_v37  ;;  %v10077_v37 = vld [vmem:[%s10477_s7 + $0x614] ss:$120 sps:$4 sm:$0xff]  }
 0x37c   : > { %7144 = vmatpush1.bf16.msra.mxu1 %v10000_v38  ;;  %v10072_v38 = vld [vmem:[%s10477_s7 + $0x608] ss:$120 sps:$4 sm:$0xff]  }
 0x37d   : > { %7226 = vmatpush1.bf16.msra.mxu0 %v10003_v39  ;;  %7145 = vmatprep.subr.bf16.mxu1 %v10008_v40  ;;  %v10075_v39 = vld [vmem:[%s10477_s7 + $0x610] ss:$120 sps:$4 sm:$0xff]   ;;  %v10080_v40 = vld [vmem:[%s10477_s7 + $0x6fc] ss:$120 sps:$4 sm:$0xff]  }
 0x37e   : > { %7227 = vmatprep.subr.bf16.mxu0 %v10011_v41  ;;  %v10083_v41 = vld [vmem:[%s10477_s7 + $0x704] ss:$120 sps:$4 sm:$0xff]  }
 0x380   : > { %7146 = vmatpush1.bf16.msra.mxu1 %v10006_v42  ;;  %v10078_v42 = vld [vmem:[%s10477_s7 + $0x6f8] ss:$120 sps:$4 sm:$0xff]  }
 0x381   : > { %7228 = vmatpush1.bf16.msra.mxu0 %v10009_v45  ;;  %7147 = vmatprep.subr.bf16.mxu1 %v10014_v44  ;;  %v10081_v45 = vld [vmem:[%s10477_s7 + $0x700] ss:$120 sps:$4 sm:$0xff]   ;;  %v10086_v44 = vld [vmem:[%s10477_s7 + $0x7ec] ss:$120 sps:$4 sm:$0xff]  }
 0x382   : > { %7229 = vmatprep.subr.bf16.mxu0 %v10017_v46  ;;  %v10089_v46 = vld [vmem:[%s10477_s7 + $0x7f4] ss:$120 sps:$4 sm:$0xff]  }
 0x384   : > { %7148 = vmatpush1.bf16.msra.mxu1 %v10012_v48  ;;  %v10084_v48 = vld [vmem:[%s10477_s7 + $0x7e8] ss:$120 sps:$4 sm:$0xff]  }
 0x385   : > { %7230 = vmatpush1.bf16.msra.mxu0 %v10015_v49  ;;  %7149 = vmatprep.subr.bf16.mxu1 %v10020_v51  ;;  %v10087_v49 = vld [vmem:[%s10477_s7 + $0x7f0] ss:$120 sps:$4 sm:$0xff]   ;;  %v10092_v51 = vld [vmem:[%s10477_s7 + $0x8dc] ss:$120 sps:$4 sm:$0xff]  }
 0x386   : > { %7231 = vmatprep.subr.bf16.mxu0 %v10023_v53  ;;  %v10095_v53 = vld [vmem:[%s10477_s7 + $0x8e4] ss:$120 sps:$4 sm:$0xff]  }
 0x388   : > { %7150 = vmatpush1.bf16.msra.mxu1 %v10018_v54  ;;  %v10090_v54 = vld [vmem:[%s10477_s7 + $0x8d8] ss:$120 sps:$4 sm:$0xff]  }
 0x389   : > { %7232 = vmatpush1.bf16.msra.mxu0 %v10021_v59  ;;  %7151 = vmatprep.subr.bf16.mxu1 %v10026_v60  ;;  %v10093_v59 = vld [vmem:[%s10477_s7 + $0x8e0] ss:$120 sps:$4 sm:$0xff]   ;;  %v10098_v60 = vld [vmem:[%s10477_s7 + $0x9cc] ss:$120 sps:$4 sm:$0xff]  }
 0x38a   : > { %7233 = vmatprep.subr.bf16.mxu0 %v10029_v62  ;;  %v10101_v62 = vld [vmem:[%s10477_s7 + $0x9d4] ss:$120 sps:$4 sm:$0xff]  }
 0x38c   : > { %7152 = vmatpush1.bf16.msra.mxu1 %v10024_v1  ;;  %v10096_v1 = vld [vmem:[%s10477_s7 + $0x9c8] ss:$120 sps:$4 sm:$0xff]  }
 0x38d   : > { %7234 = vmatpush1.bf16.msra.mxu0 %v10027_v2  ;;  %7153 = vmatprep.subr.bf16.mxu1 %v10032_v4  ;;  %v10099_v2 = vld [vmem:[%s10477_s7 + $0x9d0] ss:$120 sps:$4 sm:$0xff]   ;;  %v10104_v4 = vld [vmem:[%s10477_s7 + $0xabc] ss:$120 sps:$4 sm:$0xff]  }
 0x38e   : > { %7235 = vmatprep.subr.bf16.mxu0 %v10035_v34  ;;  %v10107_v34 = vld [vmem:[%s10477_s7 + $0xac4] ss:$120 sps:$4 sm:$0xff]  }
 0x390   : > { %7154 = vmatpush1.bf16.msra.mxu1 %v10030_v7  ;;  %v10102_v7 = vld [vmem:[%s10477_s7 + $0xab8] ss:$120 sps:$4 sm:$0xff]  }
 0x391   : > { %7236 = vmatpush1.bf16.msra.mxu0 %v10033_v11  ;;  %7246 = vmatprep.subr.bf16.mxu1 %v10038_v8  ;;  %v10105_v11 = vld [vmem:[%s10477_s7 + $0xac0] ss:$120 sps:$4 sm:$0xff]   ;;  %v10110_v8 = vld [vmem:[%s10477_s7 + $0xbac] ss:$120 sps:$4 sm:$0xff]  }
 0x392   : > { %7328 = vmatprep.subr.bf16.mxu0 %v10041_v17  ;;  %v10113_v17 = vld [vmem:[%s10477_s7 + $0xbb4] ss:$120 sps:$4 sm:$0xff]  }
 0x393   : > { %7156 = vmatmul.mubr.bf16.vlgmr.msra.gmra.mrb[24].mxu1 %v10574_v14 }
 0x394   : > { %7238 = vmatmul.mubr.bf16.vlgmr.msra.gmra.mrb[24].mxu0 %v10574_v14  ;;  %7247 = vmatpush1.bf16.msra.mxu1 %v10036_v12  ;;  %v10108_v12 = vld [vmem:[%s10477_s7 + $0xba8] ss:$120 sps:$4 sm:$0xff]  }
 0x395   : > { %7329 = vmatpush1.bf16.msra.mxu0 %v10039_v15  ;;  %7248 = vmatprep.subr.bf16.mxu1 %v10044_v52  ;;  %v10111_v15 = vld [vmem:[%s10477_s7 + $0xbb0] ss:$120 sps:$4 sm:$0xff]   ;;  %v10116_v52 = vld [vmem:[%s10477_s7 + $0xc9c] ss:$120 sps:$4 sm:$0xff]  }
 0x396   : > { %7330 = vmatprep.subr.bf16.mxu0 %v10047_v57  ;;  %7278 = vmatprep.mubr.bf16.mxu1 %v10545_v58  ;;  %v10119_v57 = vld [vmem:[%s10477_s7 + $0xca4] ss:$120 sps:$4 sm:$0xff]  }
 0x397   : > { %7360 = vmatprep.mubr.bf16.mxu0 %v10545_v58  ;;  %v10062_v58 = vld [vmem:[%s10477_s7 + $0x42c] ss:$120 sps:$4 sm:$0xff]  }
 0x398   : > { %7249 = vmatpush1.bf16.msra.mxu1 %v10042_v3  ;;  %v10114_v3 = vld [vmem:[%s10477_s7 + $0xc98] ss:$120 sps:$4 sm:$0xff]  }
 0x399   : > { %7331 = vmatpush1.bf16.msra.mxu0 %v10045_v18  ;;  %7250 = vmatprep.subr.bf16.mxu1 %v10050_v19  ;;  %v10117_v18 = vld [vmem:[%s10477_s7 + $0xca0] ss:$120 sps:$4 sm:$0xff]   ;;  %v10122_v19 = vld [vmem:[%s10477_s7 + $0xd8c] ss:$120 sps:$4 sm:$0xff]  }
 0x39a   : > { %7332 = vmatprep.subr.bf16.mxu0 %v10053_v20  ;;  %v10125_v20 = vld [vmem:[%s10477_s7 + $0xd94] ss:$120 sps:$4 sm:$0xff]  }
 0x39c   : > { %7251 = vmatpush1.bf16.msra.mxu1 %v10048_v56  ;;  %v10120_v56 = vld [vmem:[%s10477_s7 + $0xd88] ss:$120 sps:$4 sm:$0xff]  }
 0x39d   : > { %7333 = vmatpush1.bf16.msra.mxu0 %v10051_v63  ;;  %7252 = vmatprep.subr.bf16.mxu1 %v10056_v10  ;;  %v10123_v63 = vld [vmem:[%s10477_s7 + $0xd90] ss:$120 sps:$4 sm:$0xff]   ;;  %v10128_v10 = vld [vmem:[%s10477_s7 + $0xe7c] ss:$120 sps:$4 sm:$0xff]  }
 0x39e   : > { %7334 = vmatprep.subr.bf16.mxu0 %v10059_v22  ;;  %v10131_v22 = vld [vmem:[%s10477_s7 + $0xe84] ss:$120 sps:$4 sm:$0xff]  }
 0x3a0   : > { %7253 = vmatpush1.bf16.msra.mxu1 %v10054_v23  ;;  %v10126_v23 = vld [vmem:[%s10477_s7 + $0xe78] ss:$120 sps:$4 sm:$0xff]  }
 0x3a1   : > { %7335 = vmatpush1.bf16.msra.mxu0 %v10057_v24  ;;  %7254 = vmatprep.subr.bf16.mxu1 %v10062_v58  ;;  %v10129_v24 = vld [vmem:[%s10477_s7 + $0xe80] ss:$120 sps:$4 sm:$0xff]   ;;  %v10134_v58 = vld [vmem:[%s10477_s7 + $0xf6c] ss:$120 sps:$4 sm:$0xff]  }
 0x3a2   : > { %7336 = vmatprep.subr.bf16.mxu0 %v10065_v27  ;;  %v10137_v27 = vld [vmem:[%s10477_s7 + $0xf74] ss:$120 sps:$4 sm:$0xff]  }
 0x3a4   : > { %7255 = vmatpush1.bf16.msra.mxu1 %v10060_v0  ;;  %v10132_v0 = vld [vmem:[%s10477_s7 + $0xf68] ss:$120 sps:$4 sm:$0xff]  }
 0x3a5   : > { %7337 = vmatpush1.bf16.msra.mxu0 %v10063_v5  ;;  %7256 = vmatprep.subr.bf16.mxu1 %v10068_v16  ;;  %v10135_v5 = vld [vmem:[%s10477_s7 + $0xf70] ss:$120 sps:$4 sm:$0xff]   ;;  %v10140_v16 = vld [vmem:[%s10477_s7 + $0x105c] ss:$120 sps:$4 sm:$0xff]  }
 0x3a6   : > { %7338 = vmatprep.subr.bf16.mxu0 %v10071_v28  ;;  %v10143_v28 = vld [vmem:[%s10477_s7 + $0x1064] ss:$120 sps:$4 sm:$0xff]  }
 0x3a8   : > { %7257 = vmatpush1.bf16.msra.mxu1 %v10066_v29  ;;  %v10138_v29 = vld [vmem:[%s10477_s7 + $0x1058] ss:$120 sps:$4 sm:$0xff]  }
 0x3a9   : > { %7339 = vmatpush1.bf16.msra.mxu0 %v10069_v33  ;;  %7258 = vmatprep.subr.bf16.mxu1 %v10074_v36  ;;  %v10141_v33 = vld [vmem:[%s10477_s7 + $0x1060] ss:$120 sps:$4 sm:$0xff]   ;;  %v10146_v36 = vld [vmem:[%s10477_s7 + $0x114c] ss:$120 sps:$4 sm:$0xff]  }
 0x3aa   : > { %7340 = vmatprep.subr.bf16.mxu0 %v10077_v37  ;;  %v10149_v37 = vld [vmem:[%s10477_s7 + $0x1154] ss:$120 sps:$4 sm:$0xff]  }
 0x3ac   : > { %7259 = vmatpush1.bf16.msra.mxu1 %v10072_v38  ;;  %v10147_v38 = vld [vmem:[%s10477_s7 + $0x1150] ss:$120 sps:$4 sm:$0xff]  }
 0x3ad   : > { %7341 = vmatpush1.bf16.msra.mxu0 %v10075_v39  ;;  %7260 = vmatprep.subr.bf16.mxu1 %v10080_v40  ;;  %v10152_v39 = vld [vmem:[%s10477_s7 + $0x123c] ss:$120 sps:$4 sm:$0xff]  }
 0x3ae   : > { %7342 = vmatprep.subr.bf16.mxu0 %v10083_v41  ;;  %v10155_v40 = vld [vmem:[%s10477_s7 + $0x1244] ss:$120 sps:$4 sm:$0xff]   ;;  %v10150_v41 = vld [vmem:[%s10477_s7 + $0x1238] ss:$120 sps:$4 sm:$0xff]  }
 0x3b0   : > { %7261 = vmatpush1.bf16.msra.mxu1 %v10078_v42  ;;  %v10153_v42 = vld [vmem:[%s10477_s7 + $0x1240] ss:$120 sps:$4 sm:$0xff]  }
 0x3b1   : > { %7343 = vmatpush1.bf16.msra.mxu0 %v10081_v45  ;;  %7262 = vmatprep.subr.bf16.mxu1 %v10086_v44  ;;  %v10161_v45 = vld [vmem:[%s10477_s7 + $0x1334] ss:$120 sps:$4 sm:$0xff]   ;;  %v10156_v44 = vld [vmem:[%s10477_s7 + $0x1328] ss:$120 sps:$4 sm:$0xff]  }
 0x3b2   : > { %7344 = vmatprep.subr.bf16.mxu0 %v10089_v46  ;;  %v10159_v46 = vld [vmem:[%s10477_s7 + $0x1330] ss:$120 sps:$4 sm:$0xff]  }
 0x3b4   : > { %7263 = vmatpush1.bf16.msra.mxu1 %v10084_v48  ;;  %v10164_v48 = vld [vmem:[%s10477_s7 + $0x141c] ss:$120 sps:$4 sm:$0xff]  }
 0x3b5   : > { %7345 = vmatpush1.bf16.msra.mxu0 %v10087_v49  ;;  %7264 = vmatprep.subr.bf16.mxu1 %v10092_v51  ;;  %v10167_v49 = vld [vmem:[%s10477_s7 + $0x1424] ss:$120 sps:$4 sm:$0xff]   ;;  %v1276_v51 = vrot.slane %v11457_v43, %v10956_v25 }
 0x3b6   : > { %7346 = vmatprep.subr.bf16.mxu0 %v10095_v53  ;;  %v1284_v53 = vrot.slane %v11457_v43, %v10959_v26 }
 0x3b8   : > { %7265 = vmatpush1.bf16.msra.mxu1 %v10090_v54  ;;  %v1280_v54 = vrot.slane %v11457_v43, %v10963_v30 }
 0x3b9   : > { %7347 = vmatpush1.bf16.msra.mxu0 %v10093_v59  ;;  %7266 = vmatprep.subr.bf16.mxu1 %v10098_v60  ;;  %v1288_v59 = vrot.slane %v11457_v43, %v10966_v31  ;;  %v10162_v60 = vld [vmem:[%s10477_s7 + $0x1418] ss:$120 sps:$4 sm:$0xff]  }
 0x3ba   : > { %7348 = vmatprep.subr.bf16.mxu0 %v10101_v62  ;;  %v10165_v62 = vld [vmem:[%s10477_s7 + $0x1420] ss:$120 sps:$4 sm:$0xff]  }
 0x3bc   : > { %7267 = vmatpush1.bf16.msra.mxu1 %v10096_v1  ;;  %v10170_v1 = vld [vmem:[%s10477_s7 + $0x150c] ss:$120 sps:$4 sm:$0xff]  }
 0x3bd   : > { %7349 = vmatpush1.bf16.msra.mxu0 %v10099_v2  ;;  %7268 = vmatprep.subr.bf16.mxu1 %v10104_v4  ;;  %v10173_v2 = vld [vmem:[%s10477_s7 + $0x1514] ss:$120 sps:$4 sm:$0xff]  }
 0x3be   : > { %7350 = vmatprep.subr.bf16.mxu0 %v10107_v34 }
 0x3c0   : > { %7269 = vmatpush1.bf16.msra.mxu1 %v10102_v7 }
 0x3c1   : > { %7351 = vmatpush1.bf16.msra.mxu0 %v10105_v11  ;;  %7270 = vmatprep.subr.bf16.mxu1 %v10110_v8 }
 0x3c2   : > { %7352 = vmatprep.subr.bf16.mxu0 %v10113_v17 }
 0x3c4   : > { %7271 = vmatpush1.bf16.msra.mxu1 %v10108_v12 }
 0x3c5   : > { %7353 = vmatpush1.bf16.msra.mxu0 %v10111_v15  ;;  %7272 = vmatprep.subr.bf16.mxu1 %v10116_v52 }
 0x3c6   : > { %7354 = vmatprep.subr.bf16.mxu0 %v10119_v57 }
 0x3c8   : > { %7273 = vmatpush1.bf16.msra.mxu1 %v10114_v3  ;;  %v10168_v3 = vld [vmem:[%s10477_s7 + $0x1508] ss:$120 sps:$4 sm:$0xff]  }
 0x3c9   : > { %7355 = vmatpush1.bf16.msra.mxu0 %v10117_v18  ;;  %7274 = vmatprep.subr.bf16.mxu1 %v10122_v19  ;;  %v10171_v18 = vld [vmem:[%s10477_s7 + $0x1510] ss:$120 sps:$4 sm:$0xff]  }
 0x3ca   : > { %7356 = vmatprep.subr.bf16.mxu0 %v10125_v20 }
 0x3cc   : > { %7275 = vmatpush1.bf16.msra.mxu1 %v10120_v56  ;;  %v10176_v56 = vld [vmem:[%s10477_s7 + $0x15fc] ss:$120 sps:$4 sm:$0xff]  }
 0x3cd   : > { %7357 = vmatpush1.bf16.msra.mxu0 %v10123_v63  ;;  %7276 = vmatprep.subr.bf16.mxu1 %v10128_v10  ;;  %v10179_v63 = vld [vmem:[%s10477_s7 + $0x1604] ss:$120 sps:$4 sm:$0xff]  }
 0x3ce   : > { %7358 = vmatprep.subr.bf16.mxu0 %v10131_v22 }
 0x3d0   : > { %7277 = vmatpush1.bf16.msra.mxu1 %v10126_v23  ;;  %v7516_v23 = vrot.slane %v7508_v21, %v10990_v55  ;;  %v10188_v21 = vld [vmem:[%s10477_s7 + $0x17dc] ss:$120 sps:$4 sm:$0xff]  }
 0x3d1   : > { %7359 = vmatpush1.bf16.msra.mxu0 %v10129_v24  ;;  %7287 = vmatprep.subr.bf16.mxu1 %v10134_v58  ;;  %v10174_v58 = vld [vmem:[%s10477_s7 + $0x15f8] ss:$120 sps:$4 sm:$0xff]  }
 0x3d2   : > { %7369 = vmatprep.subr.bf16.mxu0 %v10137_v27  ;;  %v10177_v27 = vld [vmem:[%s10477_s7 + $0x1600] ss:$120 sps:$4 sm:$0xff]  }
 0x3d3   : > { %7279 = vmatmul.mubr.bf16.vlgmr.msra.gmra.mrb[28].mxu1 %v10566_v9 }
 0x3d4   : > { %7361 = vmatmul.mubr.bf16.vlgmr.msra.gmra.mrb[28].mxu0 %v10566_v9  ;;  %7288 = vmatpush1.bf16.msra.mxu1 %v10132_v0  ;;  %v10144_v9 = vld [vmem:[%s10477_s7 + $0x1148] ss:$120 sps:$4 sm:$0xff]   ;;  %v10182_v0 = vld [vmem:[%s10477_s7 + $0x16ec] ss:$120 sps:$4 sm:$0xff]  }
 0x3d5   : > { %7370 = vmatpush1.bf16.msra.mxu0 %v10135_v5  ;;  %7289 = vmatprep.subr.bf16.mxu1 %v10140_v16  ;;  %v10185_v5 = vld [vmem:[%s10477_s7 + $0x16f4] ss:$120 sps:$4 sm:$0xff]  }
 0x3d6   : > { %7371 = vmatprep.subr.bf16.mxu0 %v10143_v28  ;;  %7319 = vmatprep.mubr.bf16.mxu1 %v10551_v61  ;;  %v10191_v28 = vld [vmem:[%s10477_s7 + $0x17e4] ss:$120 sps:$4 sm:$0xff]  }
 0x3d7   : > { %7401 = vmatprep.mubr.bf16.mxu0 %v10551_v61  ;;  %v10158_v61 = vld [vmem:[%s10477_s7 + $0x132c] ss:$120 sps:$4 sm:$0xff]  }
 0x3d8   : > { %7290 = vmatpush1.bf16.msra.mxu1 %v10138_v29  ;;  %v10186_v29 = vld [vmem:[%s10477_s7 + $0x17d8] ss:$120 sps:$4 sm:$0xff]  }
 0x3d9   : > { %7372 = vmatpush1.bf16.msra.mxu0 %v10141_v33  ;;  %7291 = vmatprep.subr.bf16.mxu1 %v10146_v36  ;;  %v10189_v33 = vld [vmem:[%s10477_s7 + $0x17e0] ss:$120 sps:$4 sm:$0xff]   ;;  %v10194_v36 = vld [vmem:[%s10477_s7 + $0x18cc] ss:$120 sps:$4 sm:$0xff]  }
 0x3da   : > { %7373 = vmatprep.subr.bf16.mxu0 %v10149_v37  ;;  %v10197_v37 = vld [vmem:[%s10477_s7 + $0x18d4] ss:$120 sps:$4 sm:$0xff]  }
 0x3dc   : > { %7292 = vmatpush1.bf16.msra.mxu1 %v10144_v9  ;;  %v10192_v9 = vld [vmem:[%s10477_s7 + $0x18c8] ss:$120 sps:$4 sm:$0xff]  }
 0x3dd   : > { %7374 = vmatpush1.bf16.msra.mxu0 %v10147_v38  ;;  %7293 = vmatprep.subr.bf16.mxu1 %v10152_v39  ;;  %v10195_v38 = vld [vmem:[%s10477_s7 + $0x18d0] ss:$120 sps:$4 sm:$0xff]   ;;  %v10200_v39 = vld [vmem:[%s10477_s7 + $0x19bc] ss:$120 sps:$4 sm:$0xff]  }
 0x3de   : > { %7375 = vmatprep.subr.bf16.mxu0 %v10155_v40  ;;  %v10203_v40 = vld [vmem:[%s10477_s7 + $0x19c4] ss:$120 sps:$4 sm:$0xff]  }
 0x3e0   : > { %7294 = vmatpush1.bf16.msra.mxu1 %v10150_v41  ;;  %v10198_v41 = vld [vmem:[%s10477_s7 + $0x19b8] ss:$120 sps:$4 sm:$0xff]  }
 0x3e1   : > { %7376 = vmatpush1.bf16.msra.mxu0 %v10153_v42  ;;  %7295 = vmatprep.subr.bf16.mxu1 %v10158_v61  ;;  %v10201_v42 = vld [vmem:[%s10477_s7 + $0x19c0] ss:$120 sps:$4 sm:$0xff]   ;;  %v10206_v61 = vld [vmem:[%s10477_s7 + $0x1aac] ss:$120 sps:$4 sm:$0xff]  }
 0x3e2   : > { %7377 = vmatprep.subr.bf16.mxu0 %v10161_v45  ;;  %v10209_v45 = vld [vmem:[%s10477_s7 + $0x1ab4] ss:$120 sps:$4 sm:$0xff]  }
 0x3e4   : > { %7296 = vmatpush1.bf16.msra.mxu1 %v10156_v44  ;;  %v10204_v44 = vld [vmem:[%s10477_s7 + $0x1aa8] ss:$120 sps:$4 sm:$0xff]  }
 0x3e5   : > { %7378 = vmatpush1.bf16.msra.mxu0 %v10159_v46  ;;  %7297 = vmatprep.subr.bf16.mxu1 %v10164_v48  ;;  %v10207_v46 = vld [vmem:[%s10477_s7 + $0x1ab0] ss:$120 sps:$4 sm:$0xff]   ;;  %v10212_v48 = vld [vmem:[%s10477_s7 + $0x1b9c] ss:$120 sps:$4 sm:$0xff]  }
 0x3e6   : > { %7379 = vmatprep.subr.bf16.mxu0 %v10167_v49  ;;  %v6993_v4 = vpop.f32.mrb[20].mxu1  ;;  %v10215_v49 = vld [vmem:[%s10477_s7 + $0x1ba4] ss:$120 sps:$4 sm:$0xff]  }
 0x3e7   : > { %v7075_v34 = vpop.f32.mrb[20].mxu0  ;;  %v8667_v7 = vadd.f32 %v6993_v4, %v1276_v51  ;;  %v6995_v8 = vpop.f32.mrb[21].mxu1  ;;  %v10210_v51 = vld [vmem:[%s10477_s7 + $0x1b98] ss:$120 sps:$4 sm:$0xff]  }
 0x3e8   : > { %v11628_v11 = vadd.f32 %v7075_v34, %v1284_v53  ;;  %v7077_v17 = vpop.f32.mrb[21].mxu0  ;;  %v8668_v12 = vadd.f32 %v6995_v8, %v1280_v54  ;;  %v6997_v52 = vpop.f32.mrb[22].mxu1  ;;  %7298 = vmatpush1.bf16.msra.mxu1 %v10162_v60  ;;  %v10213_v53 = vld [vmem:[%s10477_s7 + $0x1ba0] ss:$120 sps:$4 sm:$0xff]   ;;  %v10218_v54 = vld [vmem:[%s10477_s7 + $0x1c8c] ss:$120 sps:$4 sm:$0xff]   ;;  %v1292_v8 = vrot.slane %v11457_v43, %v11136_v32 }
 0x3e9   : > { %v11630_v15 = vadd.f32 %v7077_v17, %v1288_v59  ;;  %v7079_v57 = vpop.f32.mrb[22].mxu0  ;;  %7380 = vmatpush1.bf16.msra.mxu0 %v10165_v62  ;;  %v6998_v19 = vpop.f32.mrb[23].mxu1  ;;  %7299 = vmatprep.subr.bf16.mxu1 %v10170_v1  ;;  %v10221_v59 = vld [vmem:[%s10477_s7 + $0x1c94] ss:$120 sps:$4 sm:$0xff]   ;;  %v10216_v60 = vld [vmem:[%s10477_s7 + $0x1c88] ss:$120 sps:$4 sm:$0xff]  }
 0x3ea   : > { %v7080_v20 = vpop.f32.mrb[23].mxu0  ;;  %7381 = vmatprep.subr.bf16.mxu0 %v10173_v2  ;;  %v7509_v10 = vcombine.low %v8667_v7, %v8668_v12  ;;  %v10219_v62 = vld [vmem:[%s10477_s7 + $0x1c90] ss:$120 sps:$4 sm:$0xff]   ;;  %v10224_v1 = vld [vmem:[%s10477_s7 + $0x1d7c] ss:$120 sps:$4 sm:$0xff]   ;;  %v1296_v12 = vrot.slane %v11457_v43, %v11143_v35 }
 0x3eb   : > { %v7525_v22 = vcombine.low %v11628_v11, %v11630_v15  ;;  %v10227_v2 = vld [vmem:[%s10477_s7 + $0x1d84] ss:$120 sps:$4 sm:$0xff]   ;;  %v10222_v4 = vld [vmem:[%s10477_s7 + $0x1d78] ss:$120 sps:$4 sm:$0xff]  }
 0x3ec   : > { %v7523_v24 = vrot.slane %v7509_v10, %v10990_v55  ;;  %7300 = vmatpush1.bf16.msra.mxu1 %v10168_v3  ;;  %v10225_v34 = vld [vmem:[%s10477_s7 + $0x1d80] ss:$120 sps:$4 sm:$0xff]  }
 0x3ed   : > { %7382 = vmatpush1.bf16.msra.mxu0 %v10171_v18  ;;  %7301 = vmatprep.subr.bf16.mxu1 %v10176_v56  ;;  %v1196_v7 = vld [vmem:[%s10483_s30 + $0x18] sm:$0x3f] }
 0x3ee   : > { %7383 = vmatprep.subr.bf16.mxu0 %v10179_v63  ;;  %v7524_v16 = vcombine.low %v7516_v23, %v7523_v24  ;;  %v1300_v17 = vrot.slane %v1196_v7, %v10801_v47  ;;  %v1304_v52 = vrot.slane %v1196_v7, %v10806_v50  ;;  %v7533_v50 = vrot.slane %v7525_v22, %v10990_v55 }
 0x3f0   : > { %7579 = vst [vmem:[%s11009_s28 + $0x20] sm:$0xff] %v7524_v16  ;;  %7302 = vmatpush1.bf16.msra.mxu1 %v10174_v58  ;;  %v1320_v16 = vrot.slane %v1196_v7, %v10966_v31 }
 0x3f1   : > { %7384 = vmatpush1.bf16.msra.mxu0 %v10177_v27  ;;  %7303 = vmatprep.subr.bf16.mxu1 %v10182_v0  ;;  %v1308_v27 = vrot.slane %v1196_v7, %v10956_v25  ;;  %v1316_v0 = vrot.slane %v1196_v7, %v10959_v26 }
 0x3f2   : > { %7385 = vmatprep.subr.bf16.mxu0 %v10185_v5  ;;  %v1312_v5 = vrot.slane %v1196_v7, %v10963_v30 }
 0x3f4   : > { %7304 = vmatpush1.bf16.msra.mxu1 %v10180_v6 }
 0x3f5   : > { %7386 = vmatpush1.bf16.msra.mxu0 %v10183_v13  ;;  %7305 = vmatprep.subr.bf16.mxu1 %v10188_v21 }
 0x3f6   : > { %7387 = vmatprep.subr.bf16.mxu0 %v10191_v28 }
 0x3f8   : > { %7306 = vmatpush1.bf16.msra.mxu1 %v10186_v29 }
 0x3f9   : > { %7388 = vmatpush1.bf16.msra.mxu0 %v10189_v33  ;;  %7307 = vmatprep.subr.bf16.mxu1 %v10194_v36 }
 0x3fa   : > { %7389 = vmatprep.subr.bf16.mxu0 %v10197_v37 }
 0x3fc   : > { %7308 = vmatpush1.bf16.msra.mxu1 %v10192_v9 }
 0x3fd   : > { %7390 = vmatpush1.bf16.msra.mxu0 %v10195_v38  ;;  %7309 = vmatprep.subr.bf16.mxu1 %v10200_v39 }
 0x3fe   : > { %7391 = vmatprep.subr.bf16.mxu0 %v10203_v40 }
 0x400   : > { %7310 = vmatpush1.bf16.msra.mxu1 %v10198_v41 }
 0x401   : > { %7392 = vmatpush1.bf16.msra.mxu0 %v10201_v42  ;;  %7311 = vmatprep.subr.bf16.mxu1 %v10206_v61 }
 0x402   : > { %7393 = vmatprep.subr.bf16.mxu0 %v10209_v45 }
 0x404   : > { %7312 = vmatpush1.bf16.msra.mxu1 %v10204_v44 }
 0x405   : > { %7394 = vmatpush1.bf16.msra.mxu0 %v10207_v46  ;;  %7313 = vmatprep.subr.bf16.mxu1 %v10212_v48 }
 0x406   : > { %7395 = vmatprep.subr.bf16.mxu0 %v10215_v49 }
 0x408   : > { %7314 = vmatpush1.bf16.msra.mxu1 %v10210_v51 }
 0x409   : > { %7396 = vmatpush1.bf16.msra.mxu0 %v10213_v53  ;;  %7315 = vmatprep.subr.bf16.mxu1 %v10218_v54 }
 0x40a   : > { %7397 = vmatprep.subr.bf16.mxu0 %v10221_v59 }
 0x40c   : > { %7316 = vmatpush1.bf16.msra.mxu1 %v10216_v60 }
 0x40d   : > { %7398 = vmatpush1.bf16.msra.mxu0 %v10219_v62  ;;  %7317 = vmatprep.subr.bf16.mxu1 %v10224_v1 }
 0x40e   : > { %7399 = vmatprep.subr.bf16.mxu0 %v10227_v2 }
 0x410   : > { %7318 = vmatpush1.bf16.msra.mxu1 %v10222_v4 }
 0x411   : > { %7400 = vmatpush1.bf16.msra.mxu0 %v10225_v34 }
 0x413   : > { %7320 = vmatmul.mubr.bf16.vlgmr.msra.gmra.mrb[28].mxu1 %v10574_v14 }
 0x414   : > { %7402 = vmatmul.mubr.bf16.vlgmr.msra.gmra.mrb[28].mxu0 %v10574_v14 }
 0x466   : > { %v7157_v57 = vpop.f32.mrb[24].mxu1 }
 0x467   : > { %v7239_v3 = vpop.f32.mrb[24].mxu0  ;;  %v8671_v18 = vadd.f32 %v7157_v57, %v1292_v8  ;;  %v7159_v20 = vpop.f32.mrb[25].mxu1 }
 0x468   : > { %v8673_v19 = vadd.f32 %v7239_v3, %v1300_v17  ;;  %v7241_v56 = vpop.f32.mrb[25].mxu0  ;;  %v8672_v63 = vadd.f32 %v7159_v20, %v1296_v12  ;;  %v7161_v10 = vpop.f32.mrb[26].mxu1 }
 0x469   : > { %v8674_v14 = vadd.f32 %v7241_v56, %v1304_v52  ;;  %v7243_v23 = vpop.f32.mrb[26].mxu0  ;;  %v7162_v24 = vpop.f32.mrb[27].mxu1 }
 0x46a   : > { %v7244_v32 = vpop.f32.mrb[27].mxu0  ;;  %v7526_v58 = vcombine.low %v8671_v18, %v8672_v63 }
 0x46b   : > { %v7542_v47 = vcombine.low %v8673_v19, %v8674_v14 }
 0x46c   : > { %v7540_v35 = vrot.slane %v7526_v58, %v10990_v55 }
 0x46d   : > { %v7550_v30 = vrot.slane %v7542_v47, %v10990_v55 }
 0x46e   : > { %v7541_v43 = vcombine.low %v7533_v50, %v7540_v35 }
 0x470   : > { %7580 = vst [vmem:[%s11009_s28 + $0x28] sm:$0xff] %v7541_v43 }
 0x4e6   : > { %v7321_v6 = vpop.f32.mrb[28].mxu1 }
 0x4e7   : > { %v7403_v13 = vpop.f32.mrb[28].mxu0  ;;  %v8675_v21 = vadd.f32 %v7321_v6, %v1308_v27  ;;  %v7323_v11 = vpop.f32.mrb[29].mxu1 }
 0x4e8   : > { %v8677_v28 = vadd.f32 %v7403_v13, %v1316_v0  ;;  %v7405_v15 = vpop.f32.mrb[29].mxu0  ;;  %v8676_v22 = vadd.f32 %v7323_v11, %v1312_v5  ;;  %v7325_v33 = vpop.f32.mrb[30].mxu1 }
 0x4e9   : > { %v8678_v29 = vadd.f32 %v7405_v15, %v1320_v16  ;;  %v7407_v36 = vpop.f32.mrb[30].mxu0  ;;  %v7326_v37 = vpop.f32.mrb[31].mxu1 }
 0x4ea   : > { %v7408_v25 = vpop.f32.mrb[31].mxu0  ;;  %v7543_v9 = vcombine.low %v8675_v21, %v8676_v22 }
 0x4eb   : > { %v7559_v26 = vcombine.low %v8677_v28, %v8678_v29 }
 0x4ec   : > { %v7557_v31 = vrot.slane %v7543_v9, %v10990_v55 }
 0x4ed   : > { %8642 = vst.sshfl [vmem:[%s11009_s28 + $0x38] sm:$0x33 pattern:$0x76325410] %v7559_v26 }
 0x4ee   : > { %v7558_v38 = vcombine.low %v7550_v30, %v7557_v31 }
 0x4f0   : > { %7581 = vst [vmem:[%s11009_s28 + $0x30] sm:$0xff] %v7558_v38 }
 0x4f1 PF: > { %p16_p8 = scmp.ge.s32.totalorder %s10378_s17, 6   ;;  %s11724_s12 = smov %s10321_s13 }
 0x4f2   : > { %s11725_s13 = smov %s10325_s14  ;;  %s11726_s14 = smov %s10388_s20 }
 0x4f3   : > { %s11727_s15 = smov %s10378_s17  ;;  %18 = sbr.rel (!%p16_p8) target bundleno = 5 (0x5), region = 85 }
 0x4fa   :  { %7605 = vsyncpa [#allocation3], 1 }
 0x4fb   :  { %7607 = vsyncpa [#allocation3 + $0x1], 1 }
 0x4fc   :  { %7608 = vsyncpa [#allocation5], 1 }
 0x4fd   :  { %7610 = vsyncpa [#allocation5 + $0x1], 1 }

</bundles_post_ra>
